<compile_context>
chip_gen: v6e
topology: v6e:2x2x1
jax: 0.10.0
libtpu: 0.0.40
codegen_flags: <defaults>
</compile_context>

<pallas_src>
import jax
import jax.numpy as jnp
from jax.experimental import pallas as pl
from jax.experimental.pallas import tpu as pltpu


def _rup(v, m=8):
    return -(-v // m) * m


def net_forward(kp, x_nchw):
    """kp: kernel-layout params from prepare_params(); x_nchw: (N, Cin, H, W)."""
    N, Cin, H, W = map(int, x_nchw.shape)
    n_classes = int(kp["bfc"].shape[-1])
    C1, C2, C3, C4 = 10, 20, 10, 20

    # ---- stage geometry (valid convs, stride 1; 2x2 max-pools) ----
    H1, W1 = H - 2, W - 2            # conv1 3x3
    H2, W2 = H1 - 1, W1 - 1          # conv2 2x2
    Hp1, Wp1 = H2 // 2, W2 // 2      # pool1
    H3, W3 = Hp1 - 1, Wp1 - 1        # conv3 2x2
    H4, W4 = H3 - 1, W3 - 1          # conv4 2x2
    Hp2, Wp2 = H4 // 2, W4 // 2      # pool2
    R = Hp2 * Wp2                    # FC spatial positions per sample

    # 8-aligned row strides of the flat (rows=(h,w), lanes=channels) layout.
    Wr = _rup(W)        # stages 1-2 (input grid)
    W2r = _rup(W2)      # stages 3-5 (post-pool1 grid, w-dilation 2)

    # Max valid output-row index of conv2 / conv4 (row = h*stride + [2*]w).
    vout2 = (H2 - 1) * Wr + (W2 - 1)
    vout4 = (H4 - 1) * W2r + 2 * (W4 - 1)

    # Band-matmul output row counts: each stage computes rows [0, r_out) so every
    # row the NEXT stage's *valid* work reads has been written.
    r_out4 = _rup((2 * (Hp2 - 1) + 1) * W2r + 2 * (2 * (Wp2 - 1) + 1) + 1)  # pool2 reads
    r_out3 = _rup(vout4 + W2r + 2 + 1)                                      # conv4 reads
    r_out2 = _rup((2 * (Hp1 - 1) + 1) * Wr + W2 + 1)                        # pool1 reads
    r_out1 = _rup(vout2 + Wr + 1 + 1)                                       # conv2 reads

    # Scratch row allocations: must also cover each band matmul's constant
    # over-READ ((kh-1)*hstep + (kw-1)*wstep rows past its last output row).
    # Over-read rows only ever feed junk output rows that are never read later.
    A5 = _rup(r_out4)
    A4 = _rup(max(r_out3, r_out4 - 1 + W2r + 2 + 1))
    A3 = _rup(max((Hp1 - 1) * W2r + W2, r_out3 - 1 + W2r + 2 + 1))
    A2 = _rup(r_out2)
    A1 = _rup(max(r_out1, r_out2 - 1 + Wr + 1 + 1))
    A0 = _rup(max(H * Wr, r_out1 - 1 + 2 * Wr + 2 + 1))

    def kernel(x_ref, w1_ref, b1_ref, w2_ref, b2_ref, w3_ref, b3_ref,
               w4_ref, b4_ref, wcat_ref, mask_ref, sel_ref, bfc_ref,
               o_ref, s1, s2, s3, s4, s5):
        # Scratch is deliberately NOT zeroed: uninitialized / junk rows and
        # columns only contribute to junk rows/columns (see geometry above).

        def conv_relu(in_ref, out_ref, w_ref, b_ref, r_out, kh, kw, hstep, wstep):
            # Implicit-GEMM conv: one contiguous band matmul per (kh, kw) tap.
            acc = None
            for i in range(kh):
                for j in range(kw):
                    src = i * hstep + j * wstep
                    t = jnp.dot(in_ref[src:src + r_out, :], w_ref[i, j],
                                preferred_element_type=jnp.float32)
                    acc = t if acc is None else acc + t
            out_ref[0:r_out, :] = jnp.maximum(acc + b_ref[...], 0.0)

        conv_relu(x_ref, s1, w1_ref, b1_ref, r_out1, 3, 3, Wr, 1)   # conv1+ReLU
        conv_relu(s1, s2, w2_ref, b2_ref, r_out2, 2, 2, Wr, 1)      # conv2+ReLU

        # pool1 (2x2 max) -> compact layout: row = hp*W2r + w, pooled values at
        # even w (the w-dilation 2 is consumed by conv3/conv4 via wstep=2).
        for hp in range(Hp1):
            r0 = 2 * hp * Wr
            r1 = r0 + Wr
            a = jnp.maximum(s2[r0:r0 + W2, :], s2[r0 + 1:r0 + 1 + W2, :])
            b = jnp.maximum(s2[r1:r1 + W2, :], s2[r1 + 1:r1 + 1 + W2, :])
            s3[hp * W2r:hp * W2r + W2, :] = jnp.maximum(a, b)

        conv_relu(s3, s4, w3_ref, b3_ref, r_out3, 2, 2, W2r, 2)     # conv3+ReLU
        conv_relu(s4, s5, w4_ref, b4_ref, r_out4, 2, 2, W2r, 2)     # conv4+ReLU

        # pool2 (2x2 max) via strided row loads -> P (R, C4); FC as two dense
        # matmuls (mask / selection trick), bias, exact softmax(dim=1).
        parts = []
        for hp2 in range(Hp2):
            base = 2 * hp2 * W2r
            blk = [s5[pl.ds(base + dh * W2r + 2 * dw, Wp2, stride=4), :]
                   for dh in (0, 1) for dw in (0, 1)]
            parts.append(jnp.maximum(jnp.maximum(blk[0], blk[1]),
                                     jnp.maximum(blk[2], blk[3])))
        P = jnp.concatenate(parts, axis=0)                                 # (R, C4)

        G = jnp.dot(P, wcat_ref[...], preferred_element_type=jnp.float32)  # (R, R*K)
        Lw = jnp.sum(G * mask_ref[...], axis=0, keepdims=True)             # (1, R*K)
        logits = jnp.dot(Lw, sel_ref[...],
                         preferred_element_type=jnp.float32) + bfc_ref[...]
        m = jnp.max(logits, axis=-1, keepdims=True)
        e = jnp.exp(logits - m)
        o_ref[...] = e / jnp.sum(e, axis=-1, keepdims=True)

    # NCHW -> NHWC, pad width W->Wr and rows to A0 (zeros), flatten per sample.
    x = jnp.transpose(x_nchw, (0, 2, 3, 1)).astype(jnp.float32)
    x = jnp.pad(x, ((0, 0), (0, 0), (0, Wr - W), (0, 0)))
    x = x.reshape(N, H * Wr, Cin)
    x = jnp.pad(x, ((0, 0), (0, A0 - H * Wr), (0, 0)))

    def full_spec(a):
        zeros = (0,) * a.ndim
        return pl.BlockSpec(tuple(a.shape), lambda n: zeros)

    in_specs = [
        pl.BlockSpec((None, A0, Cin), lambda n: (n, 0, 0)),     # x (per sample)
        full_spec(kp["w1"]), full_spec(kp["b1"]),
        full_spec(kp["w2"]), full_spec(kp["b2"]),
        full_spec(kp["w3"]), full_spec(kp["b3"]),
        full_spec(kp["w4"]), full_spec(kp["b4"]),
        full_spec(kp["wcat"]), full_spec(kp["fcmask"]),
        full_spec(kp["fcsel"]), full_spec(kp["bfc"]),
    ]

    macs = (H1 * W1 * 9 * Cin * C1 + H2 * W2 * 4 * C1 * C2
            + H3 * W3 * 4 * C2 * C3 + H4 * W4 * 4 * C3 * C4
            + R * C4 * R * n_classes + R * n_classes * n_classes)
    w_bytes = sum(int(v.size) * 4 for v in kp.values())
    cost = pl.CostEstimate(
        flops=2 * N * macs,
        transcendentals=N * n_classes,
        bytes_accessed=4 * (N * A0 * Cin + N * n_classes) + w_bytes)

    out = pl.pallas_call(
        kernel,
        out_shape=jax.ShapeDtypeStruct((N, 1, n_classes), jnp.float32),
        grid=(N,),
        in_specs=in_specs,
        out_specs=pl.BlockSpec((None, 1, n_classes), lambda n: (n, 0, 0)),
        scratch_shapes=[
            pltpu.VMEM((A1, C1), jnp.float32),   # conv1 out
            pltpu.VMEM((A2, C2), jnp.float32),   # conv2 out
            pltpu.VMEM((A3, C2), jnp.float32),   # pool1 out (compact, w-dilated)
            pltpu.VMEM((A4, C3), jnp.float32),   # conv3 out (w-dilated)
            pltpu.VMEM((A5, C4), jnp.float32),   # conv4 out (w-dilated)
        ],
        compiler_params=pltpu.CompilerParams(dimension_semantics=("parallel",)),
        cost_estimate=cost,
    )(x, kp["w1"], kp["b1"], kp["w2"], kp["b2"], kp["w3"], kp["b3"],
      kp["w4"], kp["b4"], kp["wcat"], kp["fcmask"], kp["fcsel"], kp["bfc"])
    return out[:, 0, :]


# --------------------------------------------------------------------------
# Parameters: PyTorch-layout init + one-time conversion to kernel layout
# --------------------------------------------------------------------------
def init_params(key, in_channels, n_classes, convs_output):
    ks = jax.random.split(key, 10)
    f = lambda k, shape, s: (s * jax.random.normal(k, shape)).astype(jnp.float32)
    return {
        # conv weights PyTorch-style: (Cout, Cin, KH, KW)
        "w1": f(ks[0], (10, in_channels, 3, 3), 0.1),
        "b1": f(ks[1], (10,), 0.1),
        "w2": f(ks[2], (20, 10, 2, 2), 0.1),
        "b2": f(ks[3], (20,), 0.1),
        "w3": f(ks[4], (10, 20, 2, 2), 0.1),
        "b3": f(ks[5], (10,), 0.1),
        "w4": f(ks[6], (20, 10, 2, 2), 0.1),
        "b4": f(ks[7], (20,), 0.1),
        # Linear: (n_classes, D) like torch; D flattens (C, H, W)
        "w_fc": f(ks[8], (n_classes, convs_output), 0.05),
        "b_fc": f(ks[9], (n_classes,), 0.05),
    }


def prepare_params(params, n_classes, c_last, hp2, wp2):
    """One-time layout conversion (at init, not per forward):
      * conv weights (Cout,Cin,KH,KW) -> (KH,KW,Cin,Cout); biases -> (1,C).
      * FC weight -> `wcat` (C4, R*K): column r*K+k holds the torch FC weight for
        spatial position r = hp2*Wp2 + wp2 (NCHW-flatten compatible), channel
        (row) and class k.  `fcmask` (R, R*K) is the diagonal-block selector and
        `fcsel` (R*K, K) folds per-position logits into class logits, so the
        kernel's FC is two plain 2-D matmuls with no activation flatten/transpose.
    """
    t = lambda w: jnp.transpose(w, (2, 3, 1, 0))
    R = hp2 * wp2
    wfc = params["w_fc"].reshape(n_classes, c_last, hp2, wp2)             # (K,C,h,w)
    wfc = jnp.transpose(wfc, (2, 3, 1, 0)).reshape(R, c_last, n_classes)  # (r,c,k)
    wcat = jnp.transpose(wfc, (1, 0, 2)).reshape(c_last, R * n_classes)   # (c, r*K+k)
    cols = jnp.arange(R * n_classes)
    fcmask = (cols[None, :] // n_classes == jnp.arange(R)[:, None]).astype(jnp.float32)
    fcsel = (cols[:, None] % n_classes == jnp.arange(n_classes)[None, :]).astype(jnp.float32)
    return {
        "w1": t(params["w1"]), "b1": params["b1"].reshape(1, -1),
        "w2": t(params["w2"]), "b2": params["b2"].reshape(1, -1),
        "w3": t(params["w3"]), "b3": params["b3"].reshape(1, -1),
        "w4": t(params["w4"]), "b4": params["b4"].reshape(1, -1),
        "wcat": wcat, "fcmask": fcmask, "fcsel": fcsel,
        "bfc": params["b_fc"].reshape(1, -1),
    }


if __name__ == "__main__":
    key = jax.random.PRNGKey(0)
    k_x, k_p = jax.random.split(key)

    batch, in_channels, spatial, n_classes = 2, 3, 23, 10
    # 23 ->conv3x3-> 21 ->conv2x2-> 20 ->pool-> 10 ->conv2x2-> 9 ->conv2x2-> 8 ->pool-> 4
    hp2 = wp2 = 4
    convs_output = 20 * hp2 * wp2   # actual-shape analogue of torch's 20*55*55

    x = jax.random.normal(k_x, (batch, in_channels, spatial, spatial),
                          dtype=jnp.float32)
    params = init_params(k_p, in_channels, n_classes, convs_output)
    kparams = prepare_params(params, n_classes, 20, hp2, wp2)

    fwd = jax.jit(net_forward)
    out = jax.block_until_ready(fwd(kparams, x))

    assert out.shape == (batch, n_classes)
    assert bool(jnp.all(jnp.isfinite(out)))
    # exact softmax division -> rows sum to 1 to float precision
    assert jnp.allclose(jnp.sum(out, axis=1), 1.0, atol=1e-5)
    print("KERNEL_OK")
</pallas_src>

<mosaic_0001>
module attributes {stable_mosaic.version = 11 : i64} {
  func.func @kernel(%arg0: i32, %arg1: memref<1x560x3xf32, #tpu.memory_space<vmem>>, %arg2: memref<3x3x3x10xf32, #tpu.memory_space<vmem>>, %arg3: memref<1x10xf32, #tpu.memory_space<vmem>>, %arg4: memref<2x2x10x20xf32, #tpu.memory_space<vmem>>, %arg5: memref<1x20xf32, #tpu.memory_space<vmem>>, %arg6: memref<2x2x20x10xf32, #tpu.memory_space<vmem>>, %arg7: memref<1x10xf32, #tpu.memory_space<vmem>>, %arg8: memref<2x2x10x20xf32, #tpu.memory_space<vmem>>, %arg9: memref<1x20xf32, #tpu.memory_space<vmem>>, %arg10: memref<20x160xf32, #tpu.memory_space<vmem>>, %arg11: memref<16x160xf32, #tpu.memory_space<vmem>>, %arg12: memref<160x10xf32, #tpu.memory_space<vmem>>, %arg13: memref<1x10xf32, #tpu.memory_space<vmem>>, %arg14: memref<1x1x10xf32, #tpu.memory_space<vmem>>, %arg15: memref<512x10xf32, #tpu.memory_space<vmem>>, %arg16: memref<480x20xf32, #tpu.memory_space<vmem>>, %arg17: memref<248x20xf32, #tpu.memory_space<vmem>>, %arg18: memref<216x10xf32, #tpu.memory_space<vmem>>, %arg19: memref<184x20xf32, #tpu.memory_space<vmem>>) attributes {dimension_semantics = [#tpu.dimension_semantics<parallel>], iteration_bounds = array<i64: 2>, scalar_prefetch = 0 : i64, scratch_operands = 5 : i64, tpu.core_type = #tpu.core_type<tc>, window_params = [{transform_indices = @transform_0, window_bounds = array<i64: 1, 560, 3>}, {pipeline_mode = #tpu.pipeline_mode<synchronous>, transform_indices = @transform_1, window_bounds = array<i64: 3, 3, 3, 10>}, {pipeline_mode = #tpu.pipeline_mode<synchronous>, transform_indices = @transform_2, window_bounds = array<i64: 1, 10>}, {pipeline_mode = #tpu.pipeline_mode<synchronous>, transform_indices = @transform_3, window_bounds = array<i64: 2, 2, 10, 20>}, {pipeline_mode = #tpu.pipeline_mode<synchronous>, transform_indices = @transform_4, window_bounds = array<i64: 1, 20>}, {pipeline_mode = #tpu.pipeline_mode<synchronous>, transform_indices = @transform_5, window_bounds = array<i64: 2, 2, 20, 10>}, {pipeline_mode = #tpu.pipeline_mode<synchronous>, transform_indices = @transform_6, window_bounds = array<i64: 1, 10>}, {pipeline_mode = #tpu.pipeline_mode<synchronous>, transform_indices = @transform_7, window_bounds = array<i64: 2, 2, 10, 20>}, {pipeline_mode = #tpu.pipeline_mode<synchronous>, transform_indices = @transform_8, window_bounds = array<i64: 1, 20>}, {pipeline_mode = #tpu.pipeline_mode<synchronous>, transform_indices = @transform_9, window_bounds = array<i64: 20, 160>}, {pipeline_mode = #tpu.pipeline_mode<synchronous>, transform_indices = @transform_10, window_bounds = array<i64: 16, 160>}, {pipeline_mode = #tpu.pipeline_mode<synchronous>, transform_indices = @transform_11, window_bounds = array<i64: 160, 10>}, {pipeline_mode = #tpu.pipeline_mode<synchronous>, transform_indices = @transform_12, window_bounds = array<i64: 1, 10>}, {transform_indices = @transform_13, window_bounds = array<i64: 1, 1, 10>}]} {
    %c0 = arith.constant 0 : index
    %c0_0 = arith.constant 0 : index
    %c0_1 = arith.constant 0 : index
    %0 = vector.load %arg1[%c0, %c0_0, %c0_1] : memref<1x560x3xf32, #tpu.memory_space<vmem>>, vector<1x504x3xf32>
    %1 = vector.shape_cast %0 : vector<1x504x3xf32> to vector<504x3xf32>
    %c0_2 = arith.constant 0 : index
    %c0_3 = arith.constant 0 : index
    %c0_4 = arith.constant 0 : index
    %c0_5 = arith.constant 0 : index
    %2 = vector.load %arg2[%c0_2, %c0_3, %c0_4, %c0_5] : memref<3x3x3x10xf32, #tpu.memory_space<vmem>>, vector<1x1x3x10xf32>
    %3 = vector.shape_cast %2 : vector<1x1x3x10xf32> to vector<3x10xf32>
    %cst = arith.constant dense<0.000000e+00> : vector<504x10xf32>
    %4 = tpu.matmul %1, %3, %cst {dimension_numbers = #tpu.dot_dimension_numbers<[1], [0], [0], [1], [0, 0, 1, 1], [], []>} : vector<504x3xf32>, vector<3x10xf32>, vector<504x10xf32> -> vector<504x10xf32>
    %c0_6 = arith.constant 0 : index
    %c1 = arith.constant 1 : index
    %c0_7 = arith.constant 0 : index
    %5 = vector.load %arg1[%c0_6, %c1, %c0_7] : memref<1x560x3xf32, #tpu.memory_space<vmem>>, vector<1x504x3xf32>
    %6 = vector.shape_cast %5 : vector<1x504x3xf32> to vector<504x3xf32>
    %c0_8 = arith.constant 0 : index
    %c1_9 = arith.constant 1 : index
    %c0_10 = arith.constant 0 : index
    %c0_11 = arith.constant 0 : index
    %7 = vector.load %arg2[%c0_8, %c1_9, %c0_10, %c0_11] : memref<3x3x3x10xf32, #tpu.memory_space<vmem>>, vector<1x1x3x10xf32>
    %8 = vector.shape_cast %7 : vector<1x1x3x10xf32> to vector<3x10xf32>
    %cst_12 = arith.constant dense<0.000000e+00> : vector<504x10xf32>
    %9 = tpu.matmul %6, %8, %cst_12 {dimension_numbers = #tpu.dot_dimension_numbers<[1], [0], [0], [1], [0, 0, 1, 1], [], []>} : vector<504x3xf32>, vector<3x10xf32>, vector<504x10xf32> -> vector<504x10xf32>
    %10 = arith.addf %4, %9 : vector<504x10xf32>
    %c0_13 = arith.constant 0 : index
    %c2 = arith.constant 2 : index
    %c0_14 = arith.constant 0 : index
    %11 = vector.load %arg1[%c0_13, %c2, %c0_14] : memref<1x560x3xf32, #tpu.memory_space<vmem>>, vector<1x504x3xf32>
    %12 = vector.shape_cast %11 : vector<1x504x3xf32> to vector<504x3xf32>
    %c0_15 = arith.constant 0 : index
    %c2_16 = arith.constant 2 : index
    %c0_17 = arith.constant 0 : index
    %c0_18 = arith.constant 0 : index
    %13 = vector.load %arg2[%c0_15, %c2_16, %c0_17, %c0_18] : memref<3x3x3x10xf32, #tpu.memory_space<vmem>>, vector<1x1x3x10xf32>
    %14 = vector.shape_cast %13 : vector<1x1x3x10xf32> to vector<3x10xf32>
    %cst_19 = arith.constant dense<0.000000e+00> : vector<504x10xf32>
    %15 = tpu.matmul %12, %14, %cst_19 {dimension_numbers = #tpu.dot_dimension_numbers<[1], [0], [0], [1], [0, 0, 1, 1], [], []>} : vector<504x3xf32>, vector<3x10xf32>, vector<504x10xf32> -> vector<504x10xf32>
    %16 = arith.addf %10, %15 : vector<504x10xf32>
    %c0_20 = arith.constant 0 : index
    %c24 = arith.constant 24 : index
    %c0_21 = arith.constant 0 : index
    %17 = vector.load %arg1[%c0_20, %c24, %c0_21] : memref<1x560x3xf32, #tpu.memory_space<vmem>>, vector<1x504x3xf32>
    %18 = vector.shape_cast %17 : vector<1x504x3xf32> to vector<504x3xf32>
    %c1_22 = arith.constant 1 : index
    %c0_23 = arith.constant 0 : index
    %c0_24 = arith.constant 0 : index
    %c0_25 = arith.constant 0 : index
    %19 = vector.load %arg2[%c1_22, %c0_23, %c0_24, %c0_25] : memref<3x3x3x10xf32, #tpu.memory_space<vmem>>, vector<1x1x3x10xf32>
    %20 = vector.shape_cast %19 : vector<1x1x3x10xf32> to vector<3x10xf32>
    %cst_26 = arith.constant dense<0.000000e+00> : vector<504x10xf32>
    %21 = tpu.matmul %18, %20, %cst_26 {dimension_numbers = #tpu.dot_dimension_numbers<[1], [0], [0], [1], [0, 0, 1, 1], [], []>} : vector<504x3xf32>, vector<3x10xf32>, vector<504x10xf32> -> vector<504x10xf32>
    %22 = arith.addf %16, %21 : vector<504x10xf32>
    %c0_27 = arith.constant 0 : index
    %c25 = arith.constant 25 : index
    %c0_28 = arith.constant 0 : index
    %23 = vector.load %arg1[%c0_27, %c25, %c0_28] : memref<1x560x3xf32, #tpu.memory_space<vmem>>, vector<1x504x3xf32>
    %24 = vector.shape_cast %23 : vector<1x504x3xf32> to vector<504x3xf32>
    %c1_29 = arith.constant 1 : index
    %c1_30 = arith.constant 1 : index
    %c0_31 = arith.constant 0 : index
    %c0_32 = arith.constant 0 : index
    %25 = vector.load %arg2[%c1_29, %c1_30, %c0_31, %c0_32] : memref<3x3x3x10xf32, #tpu.memory_space<vmem>>, vector<1x1x3x10xf32>
    %26 = vector.shape_cast %25 : vector<1x1x3x10xf32> to vector<3x10xf32>
    %cst_33 = arith.constant dense<0.000000e+00> : vector<504x10xf32>
    %27 = tpu.matmul %24, %26, %cst_33 {dimension_numbers = #tpu.dot_dimension_numbers<[1], [0], [0], [1], [0, 0, 1, 1], [], []>} : vector<504x3xf32>, vector<3x10xf32>, vector<504x10xf32> -> vector<504x10xf32>
    %28 = arith.addf %22, %27 : vector<504x10xf32>
    %c0_34 = arith.constant 0 : index
    %c26 = arith.constant 26 : index
    %c0_35 = arith.constant 0 : index
    %29 = vector.load %arg1[%c0_34, %c26, %c0_35] : memref<1x560x3xf32, #tpu.memory_space<vmem>>, vector<1x504x3xf32>
    %30 = vector.shape_cast %29 : vector<1x504x3xf32> to vector<504x3xf32>
    %c1_36 = arith.constant 1 : index
    %c2_37 = arith.constant 2 : index
    %c0_38 = arith.constant 0 : index
    %c0_39 = arith.constant 0 : index
    %31 = vector.load %arg2[%c1_36, %c2_37, %c0_38, %c0_39] : memref<3x3x3x10xf32, #tpu.memory_space<vmem>>, vector<1x1x3x10xf32>
    %32 = vector.shape_cast %31 : vector<1x1x3x10xf32> to vector<3x10xf32>
    %cst_40 = arith.constant dense<0.000000e+00> : vector<504x10xf32>
    %33 = tpu.matmul %30, %32, %cst_40 {dimension_numbers = #tpu.dot_dimension_numbers<[1], [0], [0], [1], [0, 0, 1, 1], [], []>} : vector<504x3xf32>, vector<3x10xf32>, vector<504x10xf32> -> vector<504x10xf32>
    %34 = arith.addf %28, %33 : vector<504x10xf32>
    %c0_41 = arith.constant 0 : index
    %c48 = arith.constant 48 : index
    %c0_42 = arith.constant 0 : index
    %35 = vector.load %arg1[%c0_41, %c48, %c0_42] : memref<1x560x3xf32, #tpu.memory_space<vmem>>, vector<1x504x3xf32>
    %36 = vector.shape_cast %35 : vector<1x504x3xf32> to vector<504x3xf32>
    %c2_43 = arith.constant 2 : index
    %c0_44 = arith.constant 0 : index
    %c0_45 = arith.constant 0 : index
    %c0_46 = arith.constant 0 : index
    %37 = vector.load %arg2[%c2_43, %c0_44, %c0_45, %c0_46] : memref<3x3x3x10xf32, #tpu.memory_space<vmem>>, vector<1x1x3x10xf32>
    %38 = vector.shape_cast %37 : vector<1x1x3x10xf32> to vector<3x10xf32>
    %cst_47 = arith.constant dense<0.000000e+00> : vector<504x10xf32>
    %39 = tpu.matmul %36, %38, %cst_47 {dimension_numbers = #tpu.dot_dimension_numbers<[1], [0], [0], [1], [0, 0, 1, 1], [], []>} : vector<504x3xf32>, vector<3x10xf32>, vector<504x10xf32> -> vector<504x10xf32>
    %40 = arith.addf %34, %39 : vector<504x10xf32>
    %c0_48 = arith.constant 0 : index
    %c49 = arith.constant 49 : index
    %c0_49 = arith.constant 0 : index
    %41 = vector.load %arg1[%c0_48, %c49, %c0_49] : memref<1x560x3xf32, #tpu.memory_space<vmem>>, vector<1x504x3xf32>
    %42 = vector.shape_cast %41 : vector<1x504x3xf32> to vector<504x3xf32>
    %c2_50 = arith.constant 2 : index
    %c1_51 = arith.constant 1 : index
    %c0_52 = arith.constant 0 : index
    %c0_53 = arith.constant 0 : index
    %43 = vector.load %arg2[%c2_50, %c1_51, %c0_52, %c0_53] : memref<3x3x3x10xf32, #tpu.memory_space<vmem>>, vector<1x1x3x10xf32>
    %44 = vector.shape_cast %43 : vector<1x1x3x10xf32> to vector<3x10xf32>
    %cst_54 = arith.constant dense<0.000000e+00> : vector<504x10xf32>
    %45 = tpu.matmul %42, %44, %cst_54 {dimension_numbers = #tpu.dot_dimension_numbers<[1], [0], [0], [1], [0, 0, 1, 1], [], []>} : vector<504x3xf32>, vector<3x10xf32>, vector<504x10xf32> -> vector<504x10xf32>
    %46 = arith.addf %40, %45 : vector<504x10xf32>
    %c0_55 = arith.constant 0 : index
    %c50 = arith.constant 50 : index
    %c0_56 = arith.constant 0 : index
    %47 = vector.load %arg1[%c0_55, %c50, %c0_56] : memref<1x560x3xf32, #tpu.memory_space<vmem>>, vector<1x504x3xf32>
    %48 = vector.shape_cast %47 : vector<1x504x3xf32> to vector<504x3xf32>
    %c2_57 = arith.constant 2 : index
    %c2_58 = arith.constant 2 : index
    %c0_59 = arith.constant 0 : index
    %c0_60 = arith.constant 0 : index
    %49 = vector.load %arg2[%c2_57, %c2_58, %c0_59, %c0_60] : memref<3x3x3x10xf32, #tpu.memory_space<vmem>>, vector<1x1x3x10xf32>
    %50 = vector.shape_cast %49 : vector<1x1x3x10xf32> to vector<3x10xf32>
    %cst_61 = arith.constant dense<0.000000e+00> : vector<504x10xf32>
    %51 = tpu.matmul %48, %50, %cst_61 {dimension_numbers = #tpu.dot_dimension_numbers<[1], [0], [0], [1], [0, 0, 1, 1], [], []>} : vector<504x3xf32>, vector<3x10xf32>, vector<504x10xf32> -> vector<504x10xf32>
    %52 = arith.addf %46, %51 : vector<504x10xf32>
    %c0_62 = arith.constant 0 : index
    %c0_63 = arith.constant 0 : index
    %53 = vector.load %arg3[%c0_62, %c0_63] : memref<1x10xf32, #tpu.memory_space<vmem>>, vector<1x10xf32>
    %54 = vector.broadcast %53 : vector<1x10xf32> to vector<504x10xf32>
    %55 = arith.addf %52, %54 : vector<504x10xf32>
    %cst_64 = arith.constant 0.000000e+00 : f32
    %56 = vector.broadcast %cst_64 : f32 to vector<504x10xf32>
    %57 = arith.maximumf %55, %56 : vector<504x10xf32>
    %c0_65 = arith.constant 0 : index
    %c0_66 = arith.constant 0 : index
    %58 = vector.load %arg15[%c0_65, %c0_66] : memref<512x10xf32, #tpu.memory_space<vmem>>, vector<504x10xf32>
    tpu.vector_store %arg15[%c0_65, %c0_66], %57 {strides = array<i32>} : memref<512x10xf32, #tpu.memory_space<vmem>>, vector<504x10xf32>,
    %c0_67 = arith.constant 0 : index
    %c0_68 = arith.constant 0 : index
    %59 = vector.load %arg15[%c0_67, %c0_68] : memref<512x10xf32, #tpu.memory_space<vmem>>, vector<480x10xf32>
    %c0_69 = arith.constant 0 : index
    %c0_70 = arith.constant 0 : index
    %c0_71 = arith.constant 0 : index
    %c0_72 = arith.constant 0 : index
    %60 = vector.load %arg4[%c0_69, %c0_70, %c0_71, %c0_72] : memref<2x2x10x20xf32, #tpu.memory_space<vmem>>, vector<1x1x10x20xf32>
    %61 = vector.shape_cast %60 : vector<1x1x10x20xf32> to vector<10x20xf32>
    %cst_73 = arith.constant dense<0.000000e+00> : vector<480x20xf32>
    %62 = tpu.matmul %59, %61, %cst_73 {dimension_numbers = #tpu.dot_dimension_numbers<[1], [0], [0], [1], [0, 0, 1, 1], [], []>} : vector<480x10xf32>, vector<10x20xf32>, vector<480x20xf32> -> vector<480x20xf32>
    %c1_74 = arith.constant 1 : index
    %c0_75 = arith.constant 0 : index
    %63 = vector.load %arg15[%c1_74, %c0_75] : memref<512x10xf32, #tpu.memory_space<vmem>>, vector<480x10xf32>
    %c0_76 = arith.constant 0 : index
    %c1_77 = arith.constant 1 : index
    %c0_78 = arith.constant 0 : index
    %c0_79 = arith.constant 0 : index
    %64 = vector.load %arg4[%c0_76, %c1_77, %c0_78, %c0_79] : memref<2x2x10x20xf32, #tpu.memory_space<vmem>>, vector<1x1x10x20xf32>
    %65 = vector.shape_cast %64 : vector<1x1x10x20xf32> to vector<10x20xf32>
    %cst_80 = arith.constant dense<0.000000e+00> : vector<480x20xf32>
    %66 = tpu.matmul %63, %65, %cst_80 {dimension_numbers = #tpu.dot_dimension_numbers<[1], [0], [0], [1], [0, 0, 1, 1], [], []>} : vector<480x10xf32>, vector<10x20xf32>, vector<480x20xf32> -> vector<480x20xf32>
    %67 = arith.addf %62, %66 : vector<480x20xf32>
    %c24_81 = arith.constant 24 : index
    %c0_82 = arith.constant 0 : index
    %68 = vector.load %arg15[%c24_81, %c0_82] : memref<512x10xf32, #tpu.memory_space<vmem>>, vector<480x10xf32>
    %c1_83 = arith.constant 1 : index
    %c0_84 = arith.constant 0 : index
    %c0_85 = arith.constant 0 : index
    %c0_86 = arith.constant 0 : index
    %69 = vector.load %arg4[%c1_83, %c0_84, %c0_85, %c0_86] : memref<2x2x10x20xf32, #tpu.memory_space<vmem>>, vector<1x1x10x20xf32>
    %70 = vector.shape_cast %69 : vector<1x1x10x20xf32> to vector<10x20xf32>
    %cst_87 = arith.constant dense<0.000000e+00> : vector<480x20xf32>
    %71 = tpu.matmul %68, %70, %cst_87 {dimension_numbers = #tpu.dot_dimension_numbers<[1], [0], [0], [1], [0, 0, 1, 1], [], []>} : vector<480x10xf32>, vector<10x20xf32>, vector<480x20xf32> -> vector<480x20xf32>
    %72 = arith.addf %67, %71 : vector<480x20xf32>
    %c25_88 = arith.constant 25 : index
    %c0_89 = arith.constant 0 : index
    %73 = vector.load %arg15[%c25_88, %c0_89] : memref<512x10xf32, #tpu.memory_space<vmem>>, vector<480x10xf32>
    %c1_90 = arith.constant 1 : index
    %c1_91 = arith.constant 1 : index
    %c0_92 = arith.constant 0 : index
    %c0_93 = arith.constant 0 : index
    %74 = vector.load %arg4[%c1_90, %c1_91, %c0_92, %c0_93] : memref<2x2x10x20xf32, #tpu.memory_space<vmem>>, vector<1x1x10x20xf32>
    %75 = vector.shape_cast %74 : vector<1x1x10x20xf32> to vector<10x20xf32>
    %cst_94 = arith.constant dense<0.000000e+00> : vector<480x20xf32>
    %76 = tpu.matmul %73, %75, %cst_94 {dimension_numbers = #tpu.dot_dimension_numbers<[1], [0], [0], [1], [0, 0, 1, 1], [], []>} : vector<480x10xf32>, vector<10x20xf32>, vector<480x20xf32> -> vector<480x20xf32>
    %77 = arith.addf %72, %76 : vector<480x20xf32>
    %c0_95 = arith.constant 0 : index
    %c0_96 = arith.constant 0 : index
    %78 = vector.load %arg5[%c0_95, %c0_96] : memref<1x20xf32, #tpu.memory_space<vmem>>, vector<1x20xf32>
    %79 = vector.broadcast %78 : vector<1x20xf32> to vector<480x20xf32>
    %80 = arith.addf %77, %79 : vector<480x20xf32>
    %cst_97 = arith.constant 0.000000e+00 : f32
    %81 = vector.broadcast %cst_97 : f32 to vector<480x20xf32>
    %82 = arith.maximumf %80, %81 : vector<480x20xf32>
    %c0_98 = arith.constant 0 : index
    %c0_99 = arith.constant 0 : index
    %83 = vector.load %arg16[%c0_98, %c0_99] : memref<480x20xf32, #tpu.memory_space<vmem>>, vector<480x20xf32>
    tpu.vector_store %arg16[%c0_98, %c0_99], %82 {strides = array<i32>} : memref<480x20xf32, #tpu.memory_space<vmem>>, vector<480x20xf32>,
    %c0_100 = arith.constant 0 : index
    %c0_101 = arith.constant 0 : index
    %84 = vector.load %arg16[%c0_100, %c0_101] : memref<480x20xf32, #tpu.memory_space<vmem>>, vector<20x20xf32>
    %c1_102 = arith.constant 1 : index
    %c0_103 = arith.constant 0 : index
    %85 = vector.load %arg16[%c1_102, %c0_103] : memref<480x20xf32, #tpu.memory_space<vmem>>, vector<20x20xf32>
    %86 = arith.maximumf %84, %85 : vector<20x20xf32>
    %c24_104 = arith.constant 24 : index
    %c0_105 = arith.constant 0 : index
    %87 = vector.load %arg16[%c24_104, %c0_105] : memref<480x20xf32, #tpu.memory_space<vmem>>, vector<20x20xf32>
    %c25_106 = arith.constant 25 : index
    %c0_107 = arith.constant 0 : index
    %88 = vector.load %arg16[%c25_106, %c0_107] : memref<480x20xf32, #tpu.memory_space<vmem>>, vector<20x20xf32>
    %89 = arith.maximumf %87, %88 : vector<20x20xf32>
    %90 = arith.maximumf %86, %89 : vector<20x20xf32>
    %c0_108 = arith.constant 0 : index
    %c0_109 = arith.constant 0 : index
    %91 = vector.load %arg17[%c0_108, %c0_109] : memref<248x20xf32, #tpu.memory_space<vmem>>, vector<20x20xf32>
    tpu.vector_store %arg17[%c0_108, %c0_109], %90 {strides = array<i32>} : memref<248x20xf32, #tpu.memory_space<vmem>>, vector<20x20xf32>,
    %c48_110 = arith.constant 48 : index
    %c0_111 = arith.constant 0 : index
    %92 = vector.load %arg16[%c48_110, %c0_111] : memref<480x20xf32, #tpu.memory_space<vmem>>, vector<20x20xf32>
    %c49_112 = arith.constant 49 : index
    %c0_113 = arith.constant 0 : index
    %93 = vector.load %arg16[%c49_112, %c0_113] : memref<480x20xf32, #tpu.memory_space<vmem>>, vector<20x20xf32>
    %94 = arith.maximumf %92, %93 : vector<20x20xf32>
    %c72 = arith.constant 72 : index
    %c0_114 = arith.constant 0 : index
    %95 = vector.load %arg16[%c72, %c0_114] : memref<480x20xf32, #tpu.memory_space<vmem>>, vector<20x20xf32>
    %c73 = arith.constant 73 : index
    %c0_115 = arith.constant 0 : index
    %96 = vector.load %arg16[%c73, %c0_115] : memref<480x20xf32, #tpu.memory_space<vmem>>, vector<20x20xf32>
    %97 = arith.maximumf %95, %96 : vector<20x20xf32>
    %98 = arith.maximumf %94, %97 : vector<20x20xf32>
    %c24_116 = arith.constant 24 : index
    %c0_117 = arith.constant 0 : index
    %99 = vector.load %arg17[%c24_116, %c0_117] : memref<248x20xf32, #tpu.memory_space<vmem>>, vector<20x20xf32>
    tpu.vector_store %arg17[%c24_116, %c0_117], %98 {strides = array<i32>} : memref<248x20xf32, #tpu.memory_space<vmem>>, vector<20x20xf32>,
    %c96 = arith.constant 96 : index
    %c0_118 = arith.constant 0 : index
    %100 = vector.load %arg16[%c96, %c0_118] : memref<480x20xf32, #tpu.memory_space<vmem>>, vector<20x20xf32>
    %c97 = arith.constant 97 : index
    %c0_119 = arith.constant 0 : index
    %101 = vector.load %arg16[%c97, %c0_119] : memref<480x20xf32, #tpu.memory_space<vmem>>, vector<20x20xf32>
    %102 = arith.maximumf %100, %101 : vector<20x20xf32>
    %c120 = arith.constant 120 : index
    %c0_120 = arith.constant 0 : index
    %103 = vector.load %arg16[%c120, %c0_120] : memref<480x20xf32, #tpu.memory_space<vmem>>, vector<20x20xf32>
    %c121 = arith.constant 121 : index
    %c0_121 = arith.constant 0 : index
    %104 = vector.load %arg16[%c121, %c0_121] : memref<480x20xf32, #tpu.memory_space<vmem>>, vector<20x20xf32>
    %105 = arith.maximumf %103, %104 : vector<20x20xf32>
    %106 = arith.maximumf %102, %105 : vector<20x20xf32>
    %c48_122 = arith.constant 48 : index
    %c0_123 = arith.constant 0 : index
    %107 = vector.load %arg17[%c48_122, %c0_123] : memref<248x20xf32, #tpu.memory_space<vmem>>, vector<20x20xf32>
    tpu.vector_store %arg17[%c48_122, %c0_123], %106 {strides = array<i32>} : memref<248x20xf32, #tpu.memory_space<vmem>>, vector<20x20xf32>,
    %c144 = arith.constant 144 : index
    %c0_124 = arith.constant 0 : index
    %108 = vector.load %arg16[%c144, %c0_124] : memref<480x20xf32, #tpu.memory_space<vmem>>, vector<20x20xf32>
    %c145 = arith.constant 145 : index
    %c0_125 = arith.constant 0 : index
    %109 = vector.load %arg16[%c145, %c0_125] : memref<480x20xf32, #tpu.memory_space<vmem>>, vector<20x20xf32>
    %110 = arith.maximumf %108, %109 : vector<20x20xf32>
    %c168 = arith.constant 168 : index
    %c0_126 = arith.constant 0 : index
    %111 = vector.load %arg16[%c168, %c0_126] : memref<480x20xf32, #tpu.memory_space<vmem>>, vector<20x20xf32>
    %c169 = arith.constant 169 : index
    %c0_127 = arith.constant 0 : index
    %112 = vector.load %arg16[%c169, %c0_127] : memref<480x20xf32, #tpu.memory_space<vmem>>, vector<20x20xf32>
    %113 = arith.maximumf %111, %112 : vector<20x20xf32>
    %114 = arith.maximumf %110, %113 : vector<20x20xf32>
    %c72_128 = arith.constant 72 : index
    %c0_129 = arith.constant 0 : index
    %115 = vector.load %arg17[%c72_128, %c0_129] : memref<248x20xf32, #tpu.memory_space<vmem>>, vector<20x20xf32>
    tpu.vector_store %arg17[%c72_128, %c0_129], %114 {strides = array<i32>} : memref<248x20xf32, #tpu.memory_space<vmem>>, vector<20x20xf32>,
    %c192 = arith.constant 192 : index
    %c0_130 = arith.constant 0 : index
    %116 = vector.load %arg16[%c192, %c0_130] : memref<480x20xf32, #tpu.memory_space<vmem>>, vector<20x20xf32>
    %c193 = arith.constant 193 : index
    %c0_131 = arith.constant 0 : index
    %117 = vector.load %arg16[%c193, %c0_131] : memref<480x20xf32, #tpu.memory_space<vmem>>, vector<20x20xf32>
    %118 = arith.maximumf %116, %117 : vector<20x20xf32>
    %c216 = arith.constant 216 : index
    %c0_132 = arith.constant 0 : index
    %119 = vector.load %arg16[%c216, %c0_132] : memref<480x20xf32, #tpu.memory_space<vmem>>, vector<20x20xf32>
    %c217 = arith.constant 217 : index
    %c0_133 = arith.constant 0 : index
    %120 = vector.load %arg16[%c217, %c0_133] : memref<480x20xf32, #tpu.memory_space<vmem>>, vector<20x20xf32>
    %121 = arith.maximumf %119, %120 : vector<20x20xf32>
    %122 = arith.maximumf %118, %121 : vector<20x20xf32>
    %c96_134 = arith.constant 96 : index
    %c0_135 = arith.constant 0 : index
    %123 = vector.load %arg17[%c96_134, %c0_135] : memref<248x20xf32, #tpu.memory_space<vmem>>, vector<20x20xf32>
    tpu.vector_store %arg17[%c96_134, %c0_135], %122 {strides = array<i32>} : memref<248x20xf32, #tpu.memory_space<vmem>>, vector<20x20xf32>,
    %c240 = arith.constant 240 : index
    %c0_136 = arith.constant 0 : index
    %124 = vector.load %arg16[%c240, %c0_136] : memref<480x20xf32, #tpu.memory_space<vmem>>, vector<20x20xf32>
    %c241 = arith.constant 241 : index
    %c0_137 = arith.constant 0 : index
    %125 = vector.load %arg16[%c241, %c0_137] : memref<480x20xf32, #tpu.memory_space<vmem>>, vector<20x20xf32>
    %126 = arith.maximumf %124, %125 : vector<20x20xf32>
    %c264 = arith.constant 264 : index
    %c0_138 = arith.constant 0 : index
    %127 = vector.load %arg16[%c264, %c0_138] : memref<480x20xf32, #tpu.memory_space<vmem>>, vector<20x20xf32>
    %c265 = arith.constant 265 : index
    %c0_139 = arith.constant 0 : index
    %128 = vector.load %arg16[%c265, %c0_139] : memref<480x20xf32, #tpu.memory_space<vmem>>, vector<20x20xf32>
    %129 = arith.maximumf %127, %128 : vector<20x20xf32>
    %130 = arith.maximumf %126, %129 : vector<20x20xf32>
    %c120_140 = arith.constant 120 : index
    %c0_141 = arith.constant 0 : index
    %131 = vector.load %arg17[%c120_140, %c0_141] : memref<248x20xf32, #tpu.memory_space<vmem>>, vector<20x20xf32>
    tpu.vector_store %arg17[%c120_140, %c0_141], %130 {strides = array<i32>} : memref<248x20xf32, #tpu.memory_space<vmem>>, vector<20x20xf32>,
    %c288 = arith.constant 288 : index
    %c0_142 = arith.constant 0 : index
    %132 = vector.load %arg16[%c288, %c0_142] : memref<480x20xf32, #tpu.memory_space<vmem>>, vector<20x20xf32>
    %c289 = arith.constant 289 : index
    %c0_143 = arith.constant 0 : index
    %133 = vector.load %arg16[%c289, %c0_143] : memref<480x20xf32, #tpu.memory_space<vmem>>, vector<20x20xf32>
    %134 = arith.maximumf %132, %133 : vector<20x20xf32>
    %c312 = arith.constant 312 : index
    %c0_144 = arith.constant 0 : index
    %135 = vector.load %arg16[%c312, %c0_144] : memref<480x20xf32, #tpu.memory_space<vmem>>, vector<20x20xf32>
    %c313 = arith.constant 313 : index
    %c0_145 = arith.constant 0 : index
    %136 = vector.load %arg16[%c313, %c0_145] : memref<480x20xf32, #tpu.memory_space<vmem>>, vector<20x20xf32>
    %137 = arith.maximumf %135, %136 : vector<20x20xf32>
    %138 = arith.maximumf %134, %137 : vector<20x20xf32>
    %c144_146 = arith.constant 144 : index
    %c0_147 = arith.constant 0 : index
    %139 = vector.load %arg17[%c144_146, %c0_147] : memref<248x20xf32, #tpu.memory_space<vmem>>, vector<20x20xf32>
    tpu.vector_store %arg17[%c144_146, %c0_147], %138 {strides = array<i32>} : memref<248x20xf32, #tpu.memory_space<vmem>>, vector<20x20xf32>,
    %c336 = arith.constant 336 : index
    %c0_148 = arith.constant 0 : index
    %140 = vector.load %arg16[%c336, %c0_148] : memref<480x20xf32, #tpu.memory_space<vmem>>, vector<20x20xf32>
    %c337 = arith.constant 337 : index
    %c0_149 = arith.constant 0 : index
    %141 = vector.load %arg16[%c337, %c0_149] : memref<480x20xf32, #tpu.memory_space<vmem>>, vector<20x20xf32>
    %142 = arith.maximumf %140, %141 : vector<20x20xf32>
    %c360 = arith.constant 360 : index
    %c0_150 = arith.constant 0 : index
    %143 = vector.load %arg16[%c360, %c0_150] : memref<480x20xf32, #tpu.memory_space<vmem>>, vector<20x20xf32>
    %c361 = arith.constant 361 : index
    %c0_151 = arith.constant 0 : index
    %144 = vector.load %arg16[%c361, %c0_151] : memref<480x20xf32, #tpu.memory_space<vmem>>, vector<20x20xf32>
    %145 = arith.maximumf %143, %144 : vector<20x20xf32>
    %146 = arith.maximumf %142, %145 : vector<20x20xf32>
    %c168_152 = arith.constant 168 : index
    %c0_153 = arith.constant 0 : index
    %147 = vector.load %arg17[%c168_152, %c0_153] : memref<248x20xf32, #tpu.memory_space<vmem>>, vector<20x20xf32>
    tpu.vector_store %arg17[%c168_152, %c0_153], %146 {strides = array<i32>} : memref<248x20xf32, #tpu.memory_space<vmem>>, vector<20x20xf32>,
    %c384 = arith.constant 384 : index
    %c0_154 = arith.constant 0 : index
    %148 = vector.load %arg16[%c384, %c0_154] : memref<480x20xf32, #tpu.memory_space<vmem>>, vector<20x20xf32>
    %c385 = arith.constant 385 : index
    %c0_155 = arith.constant 0 : index
    %149 = vector.load %arg16[%c385, %c0_155] : memref<480x20xf32, #tpu.memory_space<vmem>>, vector<20x20xf32>
    %150 = arith.maximumf %148, %149 : vector<20x20xf32>
    %c408 = arith.constant 408 : index
    %c0_156 = arith.constant 0 : index
    %151 = vector.load %arg16[%c408, %c0_156] : memref<480x20xf32, #tpu.memory_space<vmem>>, vector<20x20xf32>
    %c409 = arith.constant 409 : index
    %c0_157 = arith.constant 0 : index
    %152 = vector.load %arg16[%c409, %c0_157] : memref<480x20xf32, #tpu.memory_space<vmem>>, vector<20x20xf32>
    %153 = arith.maximumf %151, %152 : vector<20x20xf32>
    %154 = arith.maximumf %150, %153 : vector<20x20xf32>
    %c192_158 = arith.constant 192 : index
    %c0_159 = arith.constant 0 : index
    %155 = vector.load %arg17[%c192_158, %c0_159] : memref<248x20xf32, #tpu.memory_space<vmem>>, vector<20x20xf32>
    tpu.vector_store %arg17[%c192_158, %c0_159], %154 {strides = array<i32>} : memref<248x20xf32, #tpu.memory_space<vmem>>, vector<20x20xf32>,
    %c432 = arith.constant 432 : index
    %c0_160 = arith.constant 0 : index
    %156 = vector.load %arg16[%c432, %c0_160] : memref<480x20xf32, #tpu.memory_space<vmem>>, vector<20x20xf32>
    %c433 = arith.constant 433 : index
    %c0_161 = arith.constant 0 : index
    %157 = vector.load %arg16[%c433, %c0_161] : memref<480x20xf32, #tpu.memory_space<vmem>>, vector<20x20xf32>
    %158 = arith.maximumf %156, %157 : vector<20x20xf32>
    %c456 = arith.constant 456 : index
    %c0_162 = arith.constant 0 : index
    %159 = vector.load %arg16[%c456, %c0_162] : memref<480x20xf32, #tpu.memory_space<vmem>>, vector<20x20xf32>
    %c457 = arith.constant 457 : index
    %c0_163 = arith.constant 0 : index
    %160 = vector.load %arg16[%c457, %c0_163] : memref<480x20xf32, #tpu.memory_space<vmem>>, vector<20x20xf32>
    %161 = arith.maximumf %159, %160 : vector<20x20xf32>
    %162 = arith.maximumf %158, %161 : vector<20x20xf32>
    %c216_164 = arith.constant 216 : index
    %c0_165 = arith.constant 0 : index
    %163 = vector.load %arg17[%c216_164, %c0_165] : memref<248x20xf32, #tpu.memory_space<vmem>>, vector<20x20xf32>
    tpu.vector_store %arg17[%c216_164, %c0_165], %162 {strides = array<i32>} : memref<248x20xf32, #tpu.memory_space<vmem>>, vector<20x20xf32>,
    %c0_166 = arith.constant 0 : index
    %c0_167 = arith.constant 0 : index
    %164 = vector.load %arg17[%c0_166, %c0_167] : memref<248x20xf32, #tpu.memory_space<vmem>>, vector<216x20xf32>
    %c0_168 = arith.constant 0 : index
    %c0_169 = arith.constant 0 : index
    %c0_170 = arith.constant 0 : index
    %c0_171 = arith.constant 0 : index
    %165 = vector.load %arg6[%c0_168, %c0_169, %c0_170, %c0_171] : memref<2x2x20x10xf32, #tpu.memory_space<vmem>>, vector<1x1x20x10xf32>
    %166 = vector.shape_cast %165 : vector<1x1x20x10xf32> to vector<20x10xf32>
    %cst_172 = arith.constant dense<0.000000e+00> : vector<216x10xf32>
    %167 = tpu.matmul %164, %166, %cst_172 {dimension_numbers = #tpu.dot_dimension_numbers<[1], [0], [0], [1], [0, 0, 1, 1], [], []>} : vector<216x20xf32>, vector<20x10xf32>, vector<216x10xf32> -> vector<216x10xf32>
    %c2_173 = arith.constant 2 : index
    %c0_174 = arith.constant 0 : index
    %168 = vector.load %arg17[%c2_173, %c0_174] : memref<248x20xf32, #tpu.memory_space<vmem>>, vector<216x20xf32>
    %c0_175 = arith.constant 0 : index
    %c1_176 = arith.constant 1 : index
    %c0_177 = arith.constant 0 : index
    %c0_178 = arith.constant 0 : index
    %169 = vector.load %arg6[%c0_175, %c1_176, %c0_177, %c0_178] : memref<2x2x20x10xf32, #tpu.memory_space<vmem>>, vector<1x1x20x10xf32>
    %170 = vector.shape_cast %169 : vector<1x1x20x10xf32> to vector<20x10xf32>
    %cst_179 = arith.constant dense<0.000000e+00> : vector<216x10xf32>
    %171 = tpu.matmul %168, %170, %cst_179 {dimension_numbers = #tpu.dot_dimension_numbers<[1], [0], [0], [1], [0, 0, 1, 1], [], []>} : vector<216x20xf32>, vector<20x10xf32>, vector<216x10xf32> -> vector<216x10xf32>
    %172 = arith.addf %167, %171 : vector<216x10xf32>
    %c24_180 = arith.constant 24 : index
    %c0_181 = arith.constant 0 : index
    %173 = vector.load %arg17[%c24_180, %c0_181] : memref<248x20xf32, #tpu.memory_space<vmem>>, vector<216x20xf32>
    %c1_182 = arith.constant 1 : index
    %c0_183 = arith.constant 0 : index
    %c0_184 = arith.constant 0 : index
    %c0_185 = arith.constant 0 : index
    %174 = vector.load %arg6[%c1_182, %c0_183, %c0_184, %c0_185] : memref<2x2x20x10xf32, #tpu.memory_space<vmem>>, vector<1x1x20x10xf32>
    %175 = vector.shape_cast %174 : vector<1x1x20x10xf32> to vector<20x10xf32>
    %cst_186 = arith.constant dense<0.000000e+00> : vector<216x10xf32>
    %176 = tpu.matmul %173, %175, %cst_186 {dimension_numbers = #tpu.dot_dimension_numbers<[1], [0], [0], [1], [0, 0, 1, 1], [], []>} : vector<216x20xf32>, vector<20x10xf32>, vector<216x10xf32> -> vector<216x10xf32>
    %177 = arith.addf %172, %176 : vector<216x10xf32>
    %c26_187 = arith.constant 26 : index
    %c0_188 = arith.constant 0 : index
    %178 = vector.load %arg17[%c26_187, %c0_188] : memref<248x20xf32, #tpu.memory_space<vmem>>, vector<216x20xf32>
    %c1_189 = arith.constant 1 : index
    %c1_190 = arith.constant 1 : index
    %c0_191 = arith.constant 0 : index
    %c0_192 = arith.constant 0 : index
    %179 = vector.load %arg6[%c1_189, %c1_190, %c0_191, %c0_192] : memref<2x2x20x10xf32, #tpu.memory_space<vmem>>, vector<1x1x20x10xf32>
    %180 = vector.shape_cast %179 : vector<1x1x20x10xf32> to vector<20x10xf32>
    %cst_193 = arith.constant dense<0.000000e+00> : vector<216x10xf32>
    %181 = tpu.matmul %178, %180, %cst_193 {dimension_numbers = #tpu.dot_dimension_numbers<[1], [0], [0], [1], [0, 0, 1, 1], [], []>} : vector<216x20xf32>, vector<20x10xf32>, vector<216x10xf32> -> vector<216x10xf32>
    %182 = arith.addf %177, %181 : vector<216x10xf32>
    %c0_194 = arith.constant 0 : index
    %c0_195 = arith.constant 0 : index
    %183 = vector.load %arg7[%c0_194, %c0_195] : memref<1x10xf32, #tpu.memory_space<vmem>>, vector<1x10xf32>
    %184 = vector.broadcast %183 : vector<1x10xf32> to vector<216x10xf32>
    %185 = arith.addf %182, %184 : vector<216x10xf32>
    %cst_196 = arith.constant 0.000000e+00 : f32
    %186 = vector.broadcast %cst_196 : f32 to vector<216x10xf32>
    %187 = arith.maximumf %185, %186 : vector<216x10xf32>
    %c0_197 = arith.constant 0 : index
    %c0_198 = arith.constant 0 : index
    %188 = vector.load %arg18[%c0_197, %c0_198] : memref<216x10xf32, #tpu.memory_space<vmem>>, vector<216x10xf32>
    tpu.vector_store %arg18[%c0_197, %c0_198], %187 {strides = array<i32>} : memref<216x10xf32, #tpu.memory_space<vmem>>, vector<216x10xf32>,
    %c0_199 = arith.constant 0 : index
    %c0_200 = arith.constant 0 : index
    %189 = vector.load %arg18[%c0_199, %c0_200] : memref<216x10xf32, #tpu.memory_space<vmem>>, vector<184x10xf32>
    %c0_201 = arith.constant 0 : index
    %c0_202 = arith.constant 0 : index
    %c0_203 = arith.constant 0 : index
    %c0_204 = arith.constant 0 : index
    %190 = vector.load %arg8[%c0_201, %c0_202, %c0_203, %c0_204] : memref<2x2x10x20xf32, #tpu.memory_space<vmem>>, vector<1x1x10x20xf32>
    %191 = vector.shape_cast %190 : vector<1x1x10x20xf32> to vector<10x20xf32>
    %cst_205 = arith.constant dense<0.000000e+00> : vector<184x20xf32>
    %192 = tpu.matmul %189, %191, %cst_205 {dimension_numbers = #tpu.dot_dimension_numbers<[1], [0], [0], [1], [0, 0, 1, 1], [], []>} : vector<184x10xf32>, vector<10x20xf32>, vector<184x20xf32> -> vector<184x20xf32>
    %c2_206 = arith.constant 2 : index
    %c0_207 = arith.constant 0 : index
    %193 = vector.load %arg18[%c2_206, %c0_207] : memref<216x10xf32, #tpu.memory_space<vmem>>, vector<184x10xf32>
    %c0_208 = arith.constant 0 : index
    %c1_209 = arith.constant 1 : index
    %c0_210 = arith.constant 0 : index
    %c0_211 = arith.constant 0 : index
    %194 = vector.load %arg8[%c0_208, %c1_209, %c0_210, %c0_211] : memref<2x2x10x20xf32, #tpu.memory_space<vmem>>, vector<1x1x10x20xf32>
    %195 = vector.shape_cast %194 : vector<1x1x10x20xf32> to vector<10x20xf32>
    %cst_212 = arith.constant dense<0.000000e+00> : vector<184x20xf32>
    %196 = tpu.matmul %193, %195, %cst_212 {dimension_numbers = #tpu.dot_dimension_numbers<[1], [0], [0], [1], [0, 0, 1, 1], [], []>} : vector<184x10xf32>, vector<10x20xf32>, vector<184x20xf32> -> vector<184x20xf32>
    %197 = arith.addf %192, %196 : vector<184x20xf32>
    %c24_213 = arith.constant 24 : index
    %c0_214 = arith.constant 0 : index
    %198 = vector.load %arg18[%c24_213, %c0_214] : memref<216x10xf32, #tpu.memory_space<vmem>>, vector<184x10xf32>
    %c1_215 = arith.constant 1 : index
    %c0_216 = arith.constant 0 : index
    %c0_217 = arith.constant 0 : index
    %c0_218 = arith.constant 0 : index
    %199 = vector.load %arg8[%c1_215, %c0_216, %c0_217, %c0_218] : memref<2x2x10x20xf32, #tpu.memory_space<vmem>>, vector<1x1x10x20xf32>
    %200 = vector.shape_cast %199 : vector<1x1x10x20xf32> to vector<10x20xf32>
    %cst_219 = arith.constant dense<0.000000e+00> : vector<184x20xf32>
    %201 = tpu.matmul %198, %200, %cst_219 {dimension_numbers = #tpu.dot_dimension_numbers<[1], [0], [0], [1], [0, 0, 1, 1], [], []>} : vector<184x10xf32>, vector<10x20xf32>, vector<184x20xf32> -> vector<184x20xf32>
    %202 = arith.addf %197, %201 : vector<184x20xf32>
    %c26_220 = arith.constant 26 : index
    %c0_221 = arith.constant 0 : index
    %203 = vector.load %arg18[%c26_220, %c0_221] : memref<216x10xf32, #tpu.memory_space<vmem>>, vector<184x10xf32>
    %c1_222 = arith.constant 1 : index
    %c1_223 = arith.constant 1 : index
    %c0_224 = arith.constant 0 : index
    %c0_225 = arith.constant 0 : index
    %204 = vector.load %arg8[%c1_222, %c1_223, %c0_224, %c0_225] : memref<2x2x10x20xf32, #tpu.memory_space<vmem>>, vector<1x1x10x20xf32>
    %205 = vector.shape_cast %204 : vector<1x1x10x20xf32> to vector<10x20xf32>
    %cst_226 = arith.constant dense<0.000000e+00> : vector<184x20xf32>
    %206 = tpu.matmul %203, %205, %cst_226 {dimension_numbers = #tpu.dot_dimension_numbers<[1], [0], [0], [1], [0, 0, 1, 1], [], []>} : vector<184x10xf32>, vector<10x20xf32>, vector<184x20xf32> -> vector<184x20xf32>
    %207 = arith.addf %202, %206 : vector<184x20xf32>
    %c0_227 = arith.constant 0 : index
    %c0_228 = arith.constant 0 : index
    %208 = vector.load %arg9[%c0_227, %c0_228] : memref<1x20xf32, #tpu.memory_space<vmem>>, vector<1x20xf32>
    %209 = vector.broadcast %208 : vector<1x20xf32> to vector<184x20xf32>
    %210 = arith.addf %207, %209 : vector<184x20xf32>
    %cst_229 = arith.constant 0.000000e+00 : f32
    %211 = vector.broadcast %cst_229 : f32 to vector<184x20xf32>
    %212 = arith.maximumf %210, %211 : vector<184x20xf32>
    %c0_230 = arith.constant 0 : index
    %c0_231 = arith.constant 0 : index
    %213 = vector.load %arg19[%c0_230, %c0_231] : memref<184x20xf32, #tpu.memory_space<vmem>>, vector<184x20xf32>
    tpu.vector_store %arg19[%c0_230, %c0_231], %212 {strides = array<i32>} : memref<184x20xf32, #tpu.memory_space<vmem>>, vector<184x20xf32>,
    %c0_232 = arith.constant 0 : index
    %c0_233 = arith.constant 0 : index
    %214 = tpu.strided_load %arg19[%c0_232, %c0_233] {strides = array<i32: 4, 1>} : memref<184x20xf32, #tpu.memory_space<vmem>>, vector<4x20xf32>
    %c2_234 = arith.constant 2 : index
    %c0_235 = arith.constant 0 : index
    %215 = tpu.strided_load %arg19[%c2_234, %c0_235] {strides = array<i32: 4, 1>} : memref<184x20xf32, #tpu.memory_space<vmem>>, vector<4x20xf32>
    %c24_236 = arith.constant 24 : index
    %c0_237 = arith.constant 0 : index
    %216 = tpu.strided_load %arg19[%c24_236, %c0_237] {strides = array<i32: 4, 1>} : memref<184x20xf32, #tpu.memory_space<vmem>>, vector<4x20xf32>
    %c26_238 = arith.constant 26 : index
    %c0_239 = arith.constant 0 : index
    %217 = tpu.strided_load %arg19[%c26_238, %c0_239] {strides = array<i32: 4, 1>} : memref<184x20xf32, #tpu.memory_space<vmem>>, vector<4x20xf32>
    %218 = arith.maximumf %214, %215 : vector<4x20xf32>
    %219 = arith.maximumf %216, %217 : vector<4x20xf32>
    %220 = arith.maximumf %218, %219 : vector<4x20xf32>
    %c48_240 = arith.constant 48 : index
    %c0_241 = arith.constant 0 : index
    %221 = tpu.strided_load %arg19[%c48_240, %c0_241] {strides = array<i32: 4, 1>} : memref<184x20xf32, #tpu.memory_space<vmem>>, vector<4x20xf32>
    %c50_242 = arith.constant 50 : index
    %c0_243 = arith.constant 0 : index
    %222 = tpu.strided_load %arg19[%c50_242, %c0_243] {strides = array<i32: 4, 1>} : memref<184x20xf32, #tpu.memory_space<vmem>>, vector<4x20xf32>
    %c72_244 = arith.constant 72 : index
    %c0_245 = arith.constant 0 : index
    %223 = tpu.strided_load %arg19[%c72_244, %c0_245] {strides = array<i32: 4, 1>} : memref<184x20xf32, #tpu.memory_space<vmem>>, vector<4x20xf32>
    %c74 = arith.constant 74 : index
    %c0_246 = arith.constant 0 : index
    %224 = tpu.strided_load %arg19[%c74, %c0_246] {strides = array<i32: 4, 1>} : memref<184x20xf32, #tpu.memory_space<vmem>>, vector<4x20xf32>
    %225 = arith.maximumf %221, %222 : vector<4x20xf32>
    %226 = arith.maximumf %223, %224 : vector<4x20xf32>
    %227 = arith.maximumf %225, %226 : vector<4x20xf32>
    %c96_247 = arith.constant 96 : index
    %c0_248 = arith.constant 0 : index
    %228 = tpu.strided_load %arg19[%c96_247, %c0_248] {strides = array<i32: 4, 1>} : memref<184x20xf32, #tpu.memory_space<vmem>>, vector<4x20xf32>
    %c98 = arith.constant 98 : index
    %c0_249 = arith.constant 0 : index
    %229 = tpu.strided_load %arg19[%c98, %c0_249] {strides = array<i32: 4, 1>} : memref<184x20xf32, #tpu.memory_space<vmem>>, vector<4x20xf32>
    %c120_250 = arith.constant 120 : index
    %c0_251 = arith.constant 0 : index
    %230 = tpu.strided_load %arg19[%c120_250, %c0_251] {strides = array<i32: 4, 1>} : memref<184x20xf32, #tpu.memory_space<vmem>>, vector<4x20xf32>
    %c122 = arith.constant 122 : index
    %c0_252 = arith.constant 0 : index
    %231 = tpu.strided_load %arg19[%c122, %c0_252] {strides = array<i32: 4, 1>} : memref<184x20xf32, #tpu.memory_space<vmem>>, vector<4x20xf32>
    %232 = arith.maximumf %228, %229 : vector<4x20xf32>
    %233 = arith.maximumf %230, %231 : vector<4x20xf32>
    %234 = arith.maximumf %232, %233 : vector<4x20xf32>
    %c144_253 = arith.constant 144 : index
    %c0_254 = arith.constant 0 : index
    %235 = tpu.strided_load %arg19[%c144_253, %c0_254] {strides = array<i32: 4, 1>} : memref<184x20xf32, #tpu.memory_space<vmem>>, vector<4x20xf32>
    %c146 = arith.constant 146 : index
    %c0_255 = arith.constant 0 : index
    %236 = tpu.strided_load %arg19[%c146, %c0_255] {strides = array<i32: 4, 1>} : memref<184x20xf32, #tpu.memory_space<vmem>>, vector<4x20xf32>
    %c168_256 = arith.constant 168 : index
    %c0_257 = arith.constant 0 : index
    %237 = tpu.strided_load %arg19[%c168_256, %c0_257] {strides = array<i32: 4, 1>} : memref<184x20xf32, #tpu.memory_space<vmem>>, vector<4x20xf32>
    %c170 = arith.constant 170 : index
    %c0_258 = arith.constant 0 : index
    %238 = tpu.strided_load %arg19[%c170, %c0_258] {strides = array<i32: 4, 1>} : memref<184x20xf32, #tpu.memory_space<vmem>>, vector<4x20xf32>
    %239 = arith.maximumf %235, %236 : vector<4x20xf32>
    %240 = arith.maximumf %237, %238 : vector<4x20xf32>
    %241 = arith.maximumf %239, %240 : vector<4x20xf32>
    %242 = tpu.concatenate %220, %227, %234, %241 in 0 : vector<4x20xf32>, vector<4x20xf32>, vector<4x20xf32>, vector<4x20xf32> -> vector<16x20xf32>
    %c0_259 = arith.constant 0 : index
    %c0_260 = arith.constant 0 : index
    %243 = vector.load %arg10[%c0_259, %c0_260] : memref<20x160xf32, #tpu.memory_space<vmem>>, vector<20x160xf32>
    %cst_261 = arith.constant dense<0.000000e+00> : vector<16x160xf32>
    %244 = tpu.matmul %242, %243, %cst_261 {dimension_numbers = #tpu.dot_dimension_numbers<[1], [0], [0], [1], [0, 0, 1, 1], [], []>} : vector<16x20xf32>, vector<20x160xf32>, vector<16x160xf32> -> vector<16x160xf32>
    %c0_262 = arith.constant 0 : index
    %c0_263 = arith.constant 0 : index
    %245 = vector.load %arg11[%c0_262, %c0_263] : memref<16x160xf32, #tpu.memory_space<vmem>>, vector<16x160xf32>
    %246 = arith.mulf %244, %245 : vector<16x160xf32>
    %cst_264 = arith.constant dense<0.000000e+00> : vector<160xf32>
    %247 = vector.multi_reduction <add>, %246, %cst_264 [0] : vector<16x160xf32> to vector<160xf32>
    %248 = vector.shape_cast %247 : vector<160xf32> to vector<1x160xf32>
    %c0_265 = arith.constant 0 : index
    %c0_266 = arith.constant 0 : index
    %249 = vector.load %arg12[%c0_265, %c0_266] : memref<160x10xf32, #tpu.memory_space<vmem>>, vector<160x10xf32>
    %cst_267 = arith.constant dense<0.000000e+00> : vector<1x10xf32>
    %250 = tpu.matmul %248, %249, %cst_267 {dimension_numbers = #tpu.dot_dimension_numbers<[1], [0], [0], [1], [0, 0, 1, 1], [], []>} : vector<1x160xf32>, vector<160x10xf32>, vector<1x10xf32> -> vector<1x10xf32>
    %c0_268 = arith.constant 0 : index
    %c0_269 = arith.constant 0 : index
    %251 = vector.load %arg13[%c0_268, %c0_269] : memref<1x10xf32, #tpu.memory_space<vmem>>, vector<1x10xf32>
    %252 = arith.addf %250, %251 : vector<1x10xf32>
    %cst_270 = arith.constant dense<0xFF800000> : vector<1xf32>
    %253 = vector.multi_reduction <maximumf>, %252, %cst_270 [1] : vector<1x10xf32> to vector<1xf32>
    %254 = vector.shape_cast %253 : vector<1xf32> to vector<1x1xf32>
    %255 = vector.broadcast %254 : vector<1x1xf32> to vector<1x10xf32>
    %256 = arith.subf %252, %255 : vector<1x10xf32>
    %257 = math.exp %256 : vector<1x10xf32>
    %cst_271 = arith.constant dense<0.000000e+00> : vector<1xf32>
    %258 = vector.multi_reduction <add>, %257, %cst_271 [1] : vector<1x10xf32> to vector<1xf32>
    %259 = vector.shape_cast %258 : vector<1xf32> to vector<1x1xf32>
    %260 = vector.broadcast %259 : vector<1x1xf32> to vector<1x10xf32>
    %261 = arith.divf %257, %260 : vector<1x10xf32>
    %c0_272 = arith.constant 0 : index
    %c0_273 = arith.constant 0 : index
    %c0_274 = arith.constant 0 : index
    %262 = vector.load %arg14[%c0_272, %c0_273, %c0_274] : memref<1x1x10xf32, #tpu.memory_space<vmem>>, vector<1x1x10xf32>
    %263 = vector.shape_cast %262 : vector<1x1x10xf32> to vector<1x10xf32>
    %264 = vector.shape_cast %261 : vector<1x10xf32> to vector<1x1x10xf32>
    tpu.vector_store %arg14[%c0_272, %c0_273, %c0_274], %264 {strides = array<i32>} : memref<1x1x10xf32, #tpu.memory_space<vmem>>, vector<1x1x10xf32>,
    return
  }
  func.func @transform_0(%arg0: i32) -> (i32, i32, i32) {
    %c0_i32 = arith.constant 0 : i32
    %c0_i32_0 = arith.constant 0 : i32
    %c0_i32_1 = arith.constant 0 : i32
    return %arg0, %c0_i32, %c0_i32_0 : i32, i32, i32
  }
  func.func @transform_1(%arg0: i32) -> (i32, i32, i32, i32) {
    %c0_i32 = arith.constant 0 : i32
    %c0_i32_0 = arith.constant 0 : i32
    %c0_i32_1 = arith.constant 0 : i32
    %c0_i32_2 = arith.constant 0 : i32
    %c0_i32_3 = arith.constant 0 : i32
    return %c0_i32, %c0_i32_0, %c0_i32_1, %c0_i32_2 : i32, i32, i32, i32
  }
  func.func @transform_2(%arg0: i32) -> (i32, i32) {
    %c0_i32 = arith.constant 0 : i32
    %c0_i32_0 = arith.constant 0 : i32
    %c0_i32_1 = arith.constant 0 : i32
    return %c0_i32, %c0_i32_0 : i32, i32
  }
  func.func @transform_3(%arg0: i32) -> (i32, i32, i32, i32) {
    %c0_i32 = arith.constant 0 : i32
    %c0_i32_0 = arith.constant 0 : i32
    %c0_i32_1 = arith.constant 0 : i32
    %c0_i32_2 = arith.constant 0 : i32
    %c0_i32_3 = arith.constant 0 : i32
    return %c0_i32, %c0_i32_0, %c0_i32_1, %c0_i32_2 : i32, i32, i32, i32
  }
  func.func @transform_4(%arg0: i32) -> (i32, i32) {
    %c0_i32 = arith.constant 0 : i32
    %c0_i32_0 = arith.constant 0 : i32
    %c0_i32_1 = arith.constant 0 : i32
    return %c0_i32, %c0_i32_0 : i32, i32
  }
  func.func @transform_5(%arg0: i32) -> (i32, i32, i32, i32) {
    %c0_i32 = arith.constant 0 : i32
    %c0_i32_0 = arith.constant 0 : i32
    %c0_i32_1 = arith.constant 0 : i32
    %c0_i32_2 = arith.constant 0 : i32
    %c0_i32_3 = arith.constant 0 : i32
    return %c0_i32, %c0_i32_0, %c0_i32_1, %c0_i32_2 : i32, i32, i32, i32
  }
  func.func @transform_6(%arg0: i32) -> (i32, i32) {
    %c0_i32 = arith.constant 0 : i32
    %c0_i32_0 = arith.constant 0 : i32
    %c0_i32_1 = arith.constant 0 : i32
    return %c0_i32, %c0_i32_0 : i32, i32
  }
  func.func @transform_7(%arg0: i32) -> (i32, i32, i32, i32) {
    %c0_i32 = arith.constant 0 : i32
    %c0_i32_0 = arith.constant 0 : i32
    %c0_i32_1 = arith.constant 0 : i32
    %c0_i32_2 = arith.constant 0 : i32
    %c0_i32_3 = arith.constant 0 : i32
    return %c0_i32, %c0_i32_0, %c0_i32_1, %c0_i32_2 : i32, i32, i32, i32
  }
  func.func @transform_8(%arg0: i32) -> (i32, i32) {
    %c0_i32 = arith.constant 0 : i32
    %c0_i32_0 = arith.constant 0 : i32
    %c0_i32_1 = arith.constant 0 : i32
    return %c0_i32, %c0_i32_0 : i32, i32
  }
  func.func @transform_9(%arg0: i32) -> (i32, i32) {
    %c0_i32 = arith.constant 0 : i32
    %c0_i32_0 = arith.constant 0 : i32
    %c0_i32_1 = arith.constant 0 : i32
    return %c0_i32, %c0_i32_0 : i32, i32
  }
  func.func @transform_10(%arg0: i32) -> (i32, i32) {
    %c0_i32 = arith.constant 0 : i32
    %c0_i32_0 = arith.constant 0 : i32
    %c0_i32_1 = arith.constant 0 : i32
    return %c0_i32, %c0_i32_0 : i32, i32
  }
  func.func @transform_11(%arg0: i32) -> (i32, i32) {
    %c0_i32 = arith.constant 0 : i32
    %c0_i32_0 = arith.constant 0 : i32
    %c0_i32_1 = arith.constant 0 : i32
    return %c0_i32, %c0_i32_0 : i32, i32
  }
  func.func @transform_12(%arg0: i32) -> (i32, i32) {
    %c0_i32 = arith.constant 0 : i32
    %c0_i32_0 = arith.constant 0 : i32
    %c0_i32_1 = arith.constant 0 : i32
    return %c0_i32, %c0_i32_0 : i32, i32
  }
  func.func @transform_13(%arg0: i32) -> (i32, i32, i32) {
    %c0_i32 = arith.constant 0 : i32
    %c0_i32_0 = arith.constant 0 : i32
    %c0_i32_1 = arith.constant 0 : i32
    return %arg0, %c0_i32, %c0_i32_0 : i32, i32, i32
  }
}

</mosaic_0001>

<bundles_post_ra>
// kernel: net_forward.1
= control target key start
LH: loop header
LB: loop body
LE: loop exit
PB: predicated region body
PF: predicated region fallthrough
CT: control target
= control target key end

     0   :  { %s23766_s0 = inlined_call_operand.vmem [shape: f32[2,560,3], index: 0, kind: input, shape index: {}]   ;;  %s23767_s1 = inlined_call_operand.vmem [shape: f32[3,3,3,10], index: 1, kind: input, shape index: {}]   ;;  %s23768_s2 = inlined_call_operand.vmem [shape: f32[1,10], index: 2, kind: input, shape index: {}]   ;;  %s23769_s3 = inlined_call_operand.vmem [shape: f32[2,2,10,20], index: 3, kind: input, shape index: {}]   ;;  %s23770_s4 = inlined_call_operand.vmem [shape: f32[1,20], index: 4, kind: input, shape index: {}]   ;;  %s23771_s5 = inlined_call_operand.vmem [shape: f32[2,2,20,10], index: 5, kind: input, shape index: {}]   ;;  %s23772_s6 = inlined_call_operand.vmem [shape: f32[1,10], index: 6, kind: input, shape index: {}]   ;;  %s23773_s7 = inlined_call_operand.vmem [shape: f32[2,2,10,20], index: 7, kind: input, shape index: {}]   ;;  %s23774_s8 = inlined_call_operand.vmem [shape: f32[1,20], index: 8, kind: input, shape index: {}]   ;;  %s23775_s9 = inlined_call_operand.vmem [shape: f32[20,160], index: 9, kind: input, shape index: {}]   ;;  %s23776_s10 = inlined_call_operand.vmem [shape: f32[16,160], index: 10, kind: input, shape index: {}]   ;;  %s23777_s11 = inlined_call_operand.vmem [shape: f32[160,10], index: 11, kind: input, shape index: {}]   ;;  %s23778_s12 = inlined_call_operand.vmem [shape: f32[1,10], index: 12, kind: input, shape index: {}]   ;;  %s23779_s13 = inlined_call_operand.hbm [shape: f32[2,1,10], index: 13, kind: output, shape index: {}]  }
   0x1   :  { %23782 = sst [smem:[#allocation102_spill]] %s23766_s0 }
   0x2   :  { %23783 = sst [smem:[#allocation103_spill]] %s23767_s1 }
   0x3   :  { %23784 = sst [smem:[#allocation104_spill]] %s23768_s2 }
   0x4   :  { %23785 = sst [smem:[#allocation105_spill]] %s23769_s3 }
   0x5   :  { %18 = vsyncpa [#allocation8], 0 }
   0x6   :  { %20 = vsyncpa [#allocation8 + $0x1], 0  ;;  %s17828_s25 = smov 0   ;;  %s17830_s26 = smov 0  }
   0x7   :  { %s17832_s27 = smov 0   ;;  %s17834_s28 = smov 0  }
   0x8 LB: > { %s17849_s29 = sadd.s32 4294967295, %s17753_s28   ;;  %s12784_s30 = sadd.s32 4294967294, %s17753_s28   ;;  %s17753_s28 = sphi %s17834_s28, %s24074_s28   ;;  %s17749_s27 = sphi %s17832_s27, %s24073_s27   ;;  %s17745_s26 = sphi %s17830_s26, %s24072_s26   ;;  %s17741_s25 = sphi %s17828_s25, %s24071_s25  }
   0x9   : > { %s17853_s14 = sadd.s32 1, %s17753_s28   ;;  %s311_s15 = sadd.s32 1, %s17749_s27 }
   0xa   : > { %s308_s16 = ssub.s32 %s17753_s28, %s17853_s14  ;;  %p321_p0 = scmp.ne.s32.totalorder %s17749_s27, %s17745_s26 }
   0xb   : > { %p309_p1 = scmp.eq.s32.totalorder %s308_s16, 0  ;;  %p322_p2 = scmp.eq.s32.totalorder %s17849_s29, 1 }
   0xc   : > { %p327_p3 = scmp.ne.s32.totalorder %s17745_s26, %s17741_s25  ;;  %p328_p4 = scmp.eq.s32.totalorder %s12784_s30, 1 }
   0xd   : > { %s17864_s17 = scalar_select %p309_p1, %s17749_s27, %s311_s15  }
   0xe   : > { %p17866_p5 = por %p322_p2, %p321_p0  ;;  %p17870_p6 = por %p328_p4, %p327_p3 }
   0xf   : > { %p12787_p7 = scmp.ge.s32.totalorder %s17753_s28, 1  ;;  %p390_p8 = scmp.lt.s32.totalorder %s17753_s28, 3 }
  0x11   : > { %p391_p9 = pnand %p12787_p7, %p390_p8 }
  0x13   : > { %394 = sbr.rel (%p391_p9) target bundleno = 3298 (0xce2), region = 72 }
  0x18   : > { %s23788_s1 = sld [smem:[#allocation103_spill]]  ;;  %vm757_vm0 = vcmask 1042432   ;;  %p433_p10 = scmp.lt.s32.totalorder %s17849_s29, 1  ;;  %v23780_v1 = vmov 0.0   ;;  %vm17756_vm1 = vmmov 0   ;;  %vm567_vm2 = vcmask 23552  }
  0x19   : > { %14902 = vmatprep.subr.mxu0 %v23780_v1  ;;  %17637 = vmatprep.subr.mxu1 %v23780_v1  ;;  %s23789_s0 = sld [smem:[#allocation102_spill]]  ;;  %vm7115_vm3 = vcmask 1041408   ;;  %vm6746_vm4 = vcmask 80896   ;;  %vm9945_vm5 = vcmask 1043456   ;;  %vm9501_vm6 = vcmask 162816   ;;  %s431_s24 = sand.u32 1, %s17745_s26  }
  0x1a   : > { %s434_s22 = scalar_select %p433_p10, %s17849_s29, 1  ;;  %14904 = vmatprep.mubr.msk.f32.mxu0 %vm17756_vm1, %v23780_v1  ;;  %15090 = vmatprep.mubr.msk.f32.mxu1 %vm17756_vm1, %v23780_v1  ;;  %vm9585_vm7 = vcmask 158720   ;;  %vm12599_vm8 = vcmask 261120   ;;  %vm12703_vm9 = vcmask 73728  }
  0x1b   : > { %s23847_s3 = sld [smem:[#allocation105_spill]]  ;;  %s13855_s30 = sshll.u32 %s17849_s29, 4 }
  0x1c   : > { %s17639_s23 = smul.u32 560, %s434_s22  ;;  %s23872_s2 = sld [smem:[#allocation104_spill]] }
  0x1d   : > { %s12727_s22 = scalar_lea.hbm %s23779_s13, %s13855_s30 }
  0x1e   : > { %v12789_v0 = vld [vmem:[%s23788_s1 + $0x4] sm:$0x7]  ;;  %v12918_v2 = vld [vmem:[%s23788_s1 + $0x8] sm:$0x7]  ;;  %v501_v5 = vld [vmem:[%s23788_s1] sm:$0x7] }
  0x1f   : > { %14903 = vmatpush3.msk.msra.mxu0 %vm757_vm0, %v12789_v0  ;;  %17638 = vmatpush3.msk.msra.mxu1 %vm757_vm0, %v12789_v0  ;;  %s17894_s15 = scalar_lea.vmem %s23789_s0, %s17639_s23  ;;  %s12717_s23 = scalar_lea.sflag [#allocation8], %s431_s24 }
  0x20   : > { %15284 = vmatprep.subr.mxu0 %v23780_v1  ;;  %15093 = vmatprep.subr.mxu1 %v23780_v1  ;;  %v502_v3 = vld [vmem:[%s17894_s15 + $0x1] sm:$0xff]  ;;  %v564_v4 = vld [vmem:[%s17894_s15 + $0x1f1] sm:$0xff]  ;;  %v503_v6 = vld [vmem:[%s17894_s15 + $0x9] sm:$0xff] }
  0x21   : > { %14905 = vmatmul.mubr.msk.f32.vlgmr.msra.gmra.mxu0 %vm567_vm2, %v502_v3  ;;  %15091 = vmatmul.mubr.msk.f32.vlgmr.msra.gmra.mxu1 %vm567_vm2, %v564_v4  ;;  %v438_v7 = vld [vmem:[%s17894_s15] sm:$0xff]  ;;  %v504_v8 = vld [vmem:[%s17894_s15 + $0x11] sm:$0xff]  ;;  %v439_v9 = vld [vmem:[%s17894_s15 + $0x8] sm:$0xff] }
  0x22   : > { %15285 = vmatpush3.msk.msra.mxu0 %vm757_vm0, %v12918_v2  ;;  %14907 = vmatprep.mubr.msk.f32.mxu0 %vm17756_vm1, %v23780_v1  ;;  %v505_v10 = vld [vmem:[%s17894_s15 + $0x19] sm:$0xff]  ;;  %v440_v11 = vld [vmem:[%s17894_s15 + $0x10] sm:$0xff]  ;;  %v506_v12 = vld [vmem:[%s17894_s15 + $0x21] sm:$0xff] }
  0x23   : > { %15094 = vmatpush3.msk.msra.mxu1 %vm757_vm0, %v501_v5  ;;  %15095 = vmatprep.mubr.msk.f32.mxu1 %vm17756_vm1, %v23780_v1  ;;  %v17940_v13 = vld [vmem:[%s17894_s15 + $0x18] sm:$0xff]  ;;  %v507_v14 = vld [vmem:[%s17894_s15 + $0x29] sm:$0xff]  ;;  %v17951_v15 = vld [vmem:[%s17894_s15 + $0x20] sm:$0xff] }
  0x24   : > { %15475 = vmatprep.subr.mxu1 %v23780_v1  ;;  %15666 = vmatprep.subr.mxu0 %v23780_v1  ;;  %v508_v16 = vld [vmem:[%s17894_s15 + $0x31] sm:$0xff]  ;;  %v17962_v17 = vld [vmem:[%s17894_s15 + $0x28] sm:$0xff]  ;;  %v509_v18 = vld [vmem:[%s17894_s15 + $0x39] sm:$0xff] }
  0x25   : > { %14908 = vmatmul.mubr.msk.f32.gmra.mxu0 %vm567_vm2, %v503_v6  ;;  %15096 = vmatmul.mubr.msk.f32.vlgmr.msra.gmra.mxu1 %vm567_vm2, %v438_v7  ;;  %v17973_v19 = vld [vmem:[%s17894_s15 + $0x30] sm:$0xff]  ;;  %v510_v20 = vld [vmem:[%s17894_s15 + $0x41] sm:$0xff]  ;;  %v17984_v21 = vld [vmem:[%s17894_s15 + $0x38] sm:$0xff] }
  0x26   : > { %14910 = vmatprep.mubr.msk.f32.mxu0 %vm17756_vm1, %v23780_v1  ;;  %15098 = vmatprep.mubr.msk.f32.mxu1 %vm17756_vm1, %v23780_v1  ;;  %v511_v22 = vld [vmem:[%s17894_s15 + $0x49] sm:$0xff]  ;;  %v17995_v23 = vld [vmem:[%s17894_s15 + $0x40] sm:$0xff]  ;;  %v512_v24 = vld [vmem:[%s17894_s15 + $0x51] sm:$0xff] }
  0x27   : > { %v18006_v25 = vld [vmem:[%s17894_s15 + $0x48] sm:$0xff]  ;;  %v513_v26 = vld [vmem:[%s17894_s15 + $0x59] sm:$0xff]  ;;  %v18017_v27 = vld [vmem:[%s17894_s15 + $0x50] sm:$0xff] }
  0x28   : > { %v514_v28 = vld [vmem:[%s17894_s15 + $0x61] sm:$0xff]  ;;  %v18028_v29 = vld [vmem:[%s17894_s15 + $0x58] sm:$0xff]  ;;  %v515_v30 = vld [vmem:[%s17894_s15 + $0x69] sm:$0xff] }
  0x29   : > { %14911 = vmatmul.mubr.msk.f32.gmra.mxu0 %vm567_vm2, %v504_v8  ;;  %15099 = vmatmul.mubr.msk.f32.gmra.mxu1 %vm567_vm2, %v439_v9  ;;  %v18039_v31 = vld [vmem:[%s17894_s15 + $0x60] sm:$0xff]  ;;  %v516_v32 = vld [vmem:[%s17894_s15 + $0x71] sm:$0xff]  ;;  %v18050_v33 = vld [vmem:[%s17894_s15 + $0x68] sm:$0xff] }
  0x2a   : > { %14913 = vmatprep.mubr.msk.f32.mxu0 %vm17756_vm1, %v23780_v1  ;;  %15101 = vmatprep.mubr.msk.f32.mxu1 %vm17756_vm1, %v23780_v1  ;;  %v517_v34 = vld [vmem:[%s17894_s15 + $0x79] sm:$0xff]  ;;  %v18061_v35 = vld [vmem:[%s17894_s15 + $0x70] sm:$0xff]  ;;  %v518_v36 = vld [vmem:[%s17894_s15 + $0x81] sm:$0xff] }
  0x2b   : > { %v18072_v37 = vld [vmem:[%s17894_s15 + $0x78] sm:$0xff]  ;;  %v519_v38 = vld [vmem:[%s17894_s15 + $0x89] sm:$0xff]  ;;  %v454_v39 = vld [vmem:[%s17894_s15 + $0x80] sm:$0xff] }
  0x2c   : > { %v520_v40 = vld [vmem:[%s17894_s15 + $0x91] sm:$0xff]  ;;  %v455_v41 = vld [vmem:[%s17894_s15 + $0x88] sm:$0xff]  ;;  %v521_v42 = vld [vmem:[%s17894_s15 + $0x99] sm:$0xff] }
  0x2d   : > { %14914 = vmatmul.mubr.msk.f32.gmra.mxu0 %vm567_vm2, %v505_v10  ;;  %15102 = vmatmul.mubr.msk.f32.gmra.mxu1 %vm567_vm2, %v440_v11  ;;  %v456_v43 = vld [vmem:[%s17894_s15 + $0x90] sm:$0xff]  ;;  %v522_v44 = vld [vmem:[%s17894_s15 + $0xa1] sm:$0xff]  ;;  %v457_v45 = vld [vmem:[%s17894_s15 + $0x98] sm:$0xff] }
  0x2e   : > { %14916 = vmatprep.mubr.msk.f32.mxu0 %vm17756_vm1, %v23780_v1  ;;  %15104 = vmatprep.mubr.msk.f32.mxu1 %vm17756_vm1, %v23780_v1  ;;  %v523_v46 = vld [vmem:[%s17894_s15 + $0xa9] sm:$0xff]  ;;  %v458_v47 = vld [vmem:[%s17894_s15 + $0xa0] sm:$0xff]  ;;  %v524_v48 = vld [vmem:[%s17894_s15 + $0xb1] sm:$0xff] }
  0x2f   : > { %v459_v49 = vld [vmem:[%s17894_s15 + $0xa8] sm:$0xff]  ;;  %v525_v50 = vld [vmem:[%s17894_s15 + $0xb9] sm:$0xff]  ;;  %v460_v51 = vld [vmem:[%s17894_s15 + $0xb0] sm:$0xff] }
  0x30   : > { %v526_v52 = vld [vmem:[%s17894_s15 + $0xc1] sm:$0xff]  ;;  %v461_v53 = vld [vmem:[%s17894_s15 + $0xb8] sm:$0xff]  ;;  %v527_v54 = vld [vmem:[%s17894_s15 + $0xc9] sm:$0xff] }
  0x31   : > { %14917 = vmatmul.mubr.msk.f32.gmra.mxu0 %vm567_vm2, %v506_v12  ;;  %15105 = vmatmul.mubr.msk.f32.gmra.mxu1 %vm567_vm2, %v17940_v13  ;;  %v462_v55 = vld [vmem:[%s17894_s15 + $0xc0] sm:$0xff]  ;;  %v528_v56 = vld [vmem:[%s17894_s15 + $0xd1] sm:$0xff]  ;;  %v463_v57 = vld [vmem:[%s17894_s15 + $0xc8] sm:$0xff] }
  0x32   : > { %14919 = vmatprep.mubr.msk.f32.mxu0 %vm17756_vm1, %v23780_v1  ;;  %15107 = vmatprep.mubr.msk.f32.mxu1 %vm17756_vm1, %v23780_v1  ;;  %v529_v58 = vld [vmem:[%s17894_s15 + $0xd9] sm:$0xff]  ;;  %v464_v59 = vld [vmem:[%s17894_s15 + $0xd0] sm:$0xff]  ;;  %v530_v60 = vld [vmem:[%s17894_s15 + $0xe1] sm:$0xff] }
  0x33   : > { %v465_v61 = vld [vmem:[%s17894_s15 + $0xd8] sm:$0xff]  ;;  %v531_v62 = vld [vmem:[%s17894_s15 + $0xe9] sm:$0xff]  ;;  %v466_v63 = vld [vmem:[%s17894_s15 + $0xe0] sm:$0xff] }
  0x34   : > { %v532_v0 = vld [vmem:[%s17894_s15 + $0xf1] sm:$0xff]  ;;  %v467_v2 = vld [vmem:[%s17894_s15 + $0xe8] sm:$0xff]  ;;  %v533_v4 = vld [vmem:[%s17894_s15 + $0xf9] sm:$0xff] }
  0x35   : > { %14920 = vmatmul.mubr.msk.f32.gmra.mxu0 %vm567_vm2, %v507_v14  ;;  %15108 = vmatmul.mubr.msk.f32.gmra.mxu1 %vm567_vm2, %v17951_v15  ;;  %v12983_v3 = vld [vmem:[%s23788_s1 + $0xc] sm:$0x7]  ;;  %v468_v5 = vld [vmem:[%s17894_s15 + $0xf0] sm:$0xff]  ;;  %v534_v6 = vld [vmem:[%s17894_s15 + $0x101] sm:$0xff] }
  0x36   : > { %14922 = vmatprep.mubr.msk.f32.mxu0 %vm17756_vm1, %v23780_v1  ;;  %15110 = vmatprep.mubr.msk.f32.mxu1 %vm17756_vm1, %v23780_v1  ;;  %v469_v7 = vld [vmem:[%s17894_s15 + $0xf8] sm:$0xff]  ;;  %v535_v8 = vld [vmem:[%s17894_s15 + $0x109] sm:$0xff]  ;;  %v470_v9 = vld [vmem:[%s17894_s15 + $0x100] sm:$0xff] }
  0x37   : > { %15476 = vmatpush3.msk.msra.mxu1 %vm757_vm0, %v12983_v3  ;;  %v536_v10 = vld [vmem:[%s17894_s15 + $0x111] sm:$0xff]  ;;  %v471_v11 = vld [vmem:[%s17894_s15 + $0x108] sm:$0xff]  ;;  %v537_v12 = vld [vmem:[%s17894_s15 + $0x119] sm:$0xff] }
  0x38   : > { %15857 = vmatprep.subr.mxu1 %v23780_v1  ;;  %v472_v14 = vld [vmem:[%s17894_s15 + $0x110] sm:$0xff] }
  0x39   : > { %14923 = vmatmul.mubr.msk.f32.gmra.mxu0 %vm567_vm2, %v508_v16  ;;  %15111 = vmatmul.mubr.msk.f32.gmra.mxu1 %vm567_vm2, %v17962_v17  ;;  %v538_v16 = vld [vmem:[%s17894_s15 + $0x121] sm:$0xff] }
  0x3a   : > { %14925 = vmatprep.mubr.msk.f32.mxu0 %vm17756_vm1, %v23780_v1  ;;  %15113 = vmatprep.mubr.msk.f32.mxu1 %vm17756_vm1, %v23780_v1 }
  0x3d   : > { %14926 = vmatmul.mubr.msk.f32.gmra.mxu0 %vm567_vm2, %v509_v18  ;;  %15114 = vmatmul.mubr.msk.f32.gmra.mxu1 %vm567_vm2, %v17973_v19  ;;  %v473_v18 = vld [vmem:[%s17894_s15 + $0x118] sm:$0xff] }
  0x3e   : > { %14928 = vmatprep.mubr.msk.f32.mxu0 %vm17756_vm1, %v23780_v1  ;;  %15116 = vmatprep.mubr.msk.f32.mxu1 %vm17756_vm1, %v23780_v1 }
  0x41   : > { %14929 = vmatmul.mubr.msk.f32.gmra.mxu0 %vm567_vm2, %v510_v20  ;;  %15117 = vmatmul.mubr.msk.f32.gmra.mxu1 %vm567_vm2, %v17984_v21  ;;  %v539_v20 = vld [vmem:[%s17894_s15 + $0x129] sm:$0xff] }
  0x42   : > { %14931 = vmatprep.mubr.msk.f32.mxu0 %vm17756_vm1, %v23780_v1  ;;  %15119 = vmatprep.mubr.msk.f32.mxu1 %vm17756_vm1, %v23780_v1 }
  0x45   : > { %14932 = vmatmul.mubr.msk.f32.gmra.mxu0 %vm567_vm2, %v511_v22  ;;  %15120 = vmatmul.mubr.msk.f32.gmra.mxu1 %vm567_vm2, %v17995_v23  ;;  %v474_v22 = vld [vmem:[%s17894_s15 + $0x120] sm:$0xff] }
  0x46   : > { %14934 = vmatprep.mubr.msk.f32.mxu0 %vm17756_vm1, %v23780_v1  ;;  %15122 = vmatprep.mubr.msk.f32.mxu1 %vm17756_vm1, %v23780_v1 }
  0x49   : > { %14935 = vmatmul.mubr.msk.f32.gmra.mxu0 %vm567_vm2, %v512_v24  ;;  %15123 = vmatmul.mubr.msk.f32.gmra.mxu1 %vm567_vm2, %v18006_v25  ;;  %v540_v24 = vld [vmem:[%s17894_s15 + $0x131] sm:$0xff] }
  0x4a   : > { %14937 = vmatprep.mubr.msk.f32.mxu0 %vm17756_vm1, %v23780_v1  ;;  %15125 = vmatprep.mubr.msk.f32.mxu1 %vm17756_vm1, %v23780_v1 }
  0x4d   : > { %14938 = vmatmul.mubr.msk.f32.gmra.mxu0 %vm567_vm2, %v513_v26  ;;  %15126 = vmatmul.mubr.msk.f32.gmra.mxu1 %vm567_vm2, %v18017_v27  ;;  %v475_v26 = vld [vmem:[%s17894_s15 + $0x128] sm:$0xff] }
  0x4e   : > { %14940 = vmatprep.mubr.msk.f32.mxu0 %vm17756_vm1, %v23780_v1  ;;  %15128 = vmatprep.mubr.msk.f32.mxu1 %vm17756_vm1, %v23780_v1 }
  0x51   : > { %14941 = vmatmul.mubr.msk.f32.gmra.mxu0 %vm567_vm2, %v514_v28  ;;  %15129 = vmatmul.mubr.msk.f32.gmra.mxu1 %vm567_vm2, %v18028_v29  ;;  %v541_v28 = vld [vmem:[%s17894_s15 + $0x139] sm:$0xff] }
  0x52   : > { %14943 = vmatprep.mubr.msk.f32.mxu0 %vm17756_vm1, %v23780_v1  ;;  %15131 = vmatprep.mubr.msk.f32.mxu1 %vm17756_vm1, %v23780_v1 }
  0x55   : > { %14944 = vmatmul.mubr.msk.f32.gmra.mxu0 %vm567_vm2, %v515_v30  ;;  %15132 = vmatmul.mubr.msk.f32.gmra.mxu1 %vm567_vm2, %v18039_v31  ;;  %v476_v30 = vld [vmem:[%s17894_s15 + $0x130] sm:$0xff] }
  0x56   : > { %14946 = vmatprep.mubr.msk.f32.mxu0 %vm17756_vm1, %v23780_v1  ;;  %15134 = vmatprep.mubr.msk.f32.mxu1 %vm17756_vm1, %v23780_v1 }
  0x59   : > { %14947 = vmatmul.mubr.msk.f32.gmra.mxu0 %vm567_vm2, %v516_v32  ;;  %15135 = vmatmul.mubr.msk.f32.gmra.mxu1 %vm567_vm2, %v18050_v33  ;;  %v542_v32 = vld [vmem:[%s17894_s15 + $0x141] sm:$0xff] }
  0x5a   : > { %14949 = vmatprep.mubr.msk.f32.mxu0 %vm17756_vm1, %v23780_v1  ;;  %15137 = vmatprep.mubr.msk.f32.mxu1 %vm17756_vm1, %v23780_v1 }
  0x5d   : > { %14950 = vmatmul.mubr.msk.f32.gmra.mxu0 %vm567_vm2, %v517_v34  ;;  %15138 = vmatmul.mubr.msk.f32.gmra.mxu1 %vm567_vm2, %v18061_v35  ;;  %v477_v34 = vld [vmem:[%s17894_s15 + $0x138] sm:$0xff] }
  0x5e   : > { %14952 = vmatprep.mubr.msk.f32.mxu0 %vm17756_vm1, %v23780_v1  ;;  %15140 = vmatprep.mubr.msk.f32.mxu1 %vm17756_vm1, %v23780_v1 }
  0x61   : > { %14953 = vmatmul.mubr.msk.f32.gmra.mxu0 %vm567_vm2, %v518_v36  ;;  %15141 = vmatmul.mubr.msk.f32.gmra.mxu1 %vm567_vm2, %v18072_v37  ;;  %v543_v36 = vld [vmem:[%s17894_s15 + $0x149] sm:$0xff] }
  0x62   : > { %14955 = vmatprep.mubr.msk.f32.mxu0 %vm17756_vm1, %v23780_v1  ;;  %15143 = vmatprep.mubr.msk.f32.mxu1 %vm17756_vm1, %v23780_v1 }
  0x65   : > { %14956 = vmatmul.mubr.msk.f32.gmra.mxu0 %vm567_vm2, %v519_v38  ;;  %15144 = vmatmul.mubr.msk.f32.gmra.mxu1 %vm567_vm2, %v454_v39  ;;  %v478_v38 = vld [vmem:[%s17894_s15 + $0x140] sm:$0xff]  ;;  %v544_v39 = vld [vmem:[%s17894_s15 + $0x151] sm:$0xff] }
  0x66   : > { %14958 = vmatprep.mubr.msk.f32.mxu0 %vm17756_vm1, %v23780_v1  ;;  %15146 = vmatprep.mubr.msk.f32.mxu1 %vm17756_vm1, %v23780_v1 }
  0x69   : > { %14959 = vmatmul.mubr.msk.f32.gmra.mxu0 %vm567_vm2, %v520_v40  ;;  %15147 = vmatmul.mubr.msk.f32.gmra.mxu1 %vm567_vm2, %v455_v41  ;;  %v479_v40 = vld [vmem:[%s17894_s15 + $0x148] sm:$0xff]  ;;  %v545_v41 = vld [vmem:[%s17894_s15 + $0x159] sm:$0xff] }
  0x6a   : > { %14961 = vmatprep.mubr.msk.f32.mxu0 %vm17756_vm1, %v23780_v1  ;;  %15149 = vmatprep.mubr.msk.f32.mxu1 %vm17756_vm1, %v23780_v1 }
  0x6d   : > { %14962 = vmatmul.mubr.msk.f32.gmra.mxu0 %vm567_vm2, %v521_v42  ;;  %15150 = vmatmul.mubr.msk.f32.gmra.mxu1 %vm567_vm2, %v456_v43  ;;  %v480_v42 = vld [vmem:[%s17894_s15 + $0x150] sm:$0xff]  ;;  %v546_v43 = vld [vmem:[%s17894_s15 + $0x161] sm:$0xff] }
  0x6e   : > { %14964 = vmatprep.mubr.msk.f32.mxu0 %vm17756_vm1, %v23780_v1  ;;  %15152 = vmatprep.mubr.msk.f32.mxu1 %vm17756_vm1, %v23780_v1 }
  0x71   : > { %14965 = vmatmul.mubr.msk.f32.gmra.mxu0 %vm567_vm2, %v522_v44  ;;  %15153 = vmatmul.mubr.msk.f32.gmra.mxu1 %vm567_vm2, %v457_v45  ;;  %v481_v44 = vld [vmem:[%s17894_s15 + $0x158] sm:$0xff]  ;;  %v547_v45 = vld [vmem:[%s17894_s15 + $0x169] sm:$0xff] }
  0x72   : > { %14967 = vmatprep.mubr.msk.f32.mxu0 %vm17756_vm1, %v23780_v1  ;;  %15155 = vmatprep.mubr.msk.f32.mxu1 %vm17756_vm1, %v23780_v1 }
  0x75   : > { %14968 = vmatmul.mubr.msk.f32.gmra.mxu0 %vm567_vm2, %v523_v46  ;;  %15156 = vmatmul.mubr.msk.f32.gmra.mxu1 %vm567_vm2, %v458_v47  ;;  %v482_v46 = vld [vmem:[%s17894_s15 + $0x160] sm:$0xff]  ;;  %v548_v47 = vld [vmem:[%s17894_s15 + $0x171] sm:$0xff] }
  0x76   : > { %14970 = vmatprep.mubr.msk.f32.mxu0 %vm17756_vm1, %v23780_v1  ;;  %15158 = vmatprep.mubr.msk.f32.mxu1 %vm17756_vm1, %v23780_v1 }
  0x79   : > { %14971 = vmatmul.mubr.msk.f32.gmra.mxu0 %vm567_vm2, %v524_v48  ;;  %15159 = vmatmul.mubr.msk.f32.gmra.mxu1 %vm567_vm2, %v459_v49  ;;  %v483_v48 = vld [vmem:[%s17894_s15 + $0x168] sm:$0xff]  ;;  %v549_v49 = vld [vmem:[%s17894_s15 + $0x179] sm:$0xff] }
  0x7a   : > { %14973 = vmatprep.mubr.msk.f32.mxu0 %vm17756_vm1, %v23780_v1  ;;  %15161 = vmatprep.mubr.msk.f32.mxu1 %vm17756_vm1, %v23780_v1 }
  0x7d   : > { %14974 = vmatmul.mubr.msk.f32.gmra.mxu0 %vm567_vm2, %v525_v50  ;;  %15162 = vmatmul.mubr.msk.f32.gmra.mxu1 %vm567_vm2, %v460_v51  ;;  %v484_v50 = vld [vmem:[%s17894_s15 + $0x170] sm:$0xff]  ;;  %v550_v51 = vld [vmem:[%s17894_s15 + $0x181] sm:$0xff] }
  0x7e   : > { %14976 = vmatprep.mubr.msk.f32.mxu0 %vm17756_vm1, %v23780_v1  ;;  %15164 = vmatprep.mubr.msk.f32.mxu1 %vm17756_vm1, %v23780_v1 }
  0x81   : > { %14977 = vmatmul.mubr.msk.f32.gmra.mxu0 %vm567_vm2, %v526_v52  ;;  %15165 = vmatmul.mubr.msk.f32.gmra.mxu1 %vm567_vm2, %v461_v53  ;;  %v485_v52 = vld [vmem:[%s17894_s15 + $0x178] sm:$0xff] }
  0x82   : > { %14979 = vmatprep.mubr.msk.f32.mxu0 %vm17756_vm1, %v23780_v1  ;;  %15167 = vmatprep.mubr.msk.f32.mxu1 %vm17756_vm1, %v23780_v1 }
  0x85   : > { %14980 = vmatmul.mubr.msk.f32.gmra.mxu0 %vm567_vm2, %v527_v54  ;;  %15168 = vmatmul.mubr.msk.f32.gmra.mxu1 %vm567_vm2, %v462_v55  ;;  %v551_v55 = vld [vmem:[%s17894_s15 + $0x189] sm:$0xff] }
  0x86   : > { %14982 = vmatprep.mubr.msk.f32.mxu0 %vm17756_vm1, %v23780_v1  ;;  %15170 = vmatprep.mubr.msk.f32.mxu1 %vm17756_vm1, %v23780_v1 }
  0x89   : > { %14983 = vmatmul.mubr.msk.f32.gmra.mxu0 %vm567_vm2, %v528_v56  ;;  %15171 = vmatmul.mubr.msk.f32.gmra.mxu1 %vm567_vm2, %v463_v57  ;;  %v486_v56 = vld [vmem:[%s17894_s15 + $0x180] sm:$0xff] }
  0x8a   : > { %14985 = vmatprep.mubr.msk.f32.mxu0 %vm17756_vm1, %v23780_v1  ;;  %15173 = vmatprep.mubr.msk.f32.mxu1 %vm17756_vm1, %v23780_v1 }
  0x8d   : > { %14986 = vmatmul.mubr.msk.f32.gmra.mxu0 %vm567_vm2, %v529_v58  ;;  %15174 = vmatmul.mubr.msk.f32.gmra.mxu1 %vm567_vm2, %v464_v59 }
  0x8e   : > { %14988 = vmatprep.mubr.msk.f32.mxu0 %vm17756_vm1, %v23780_v1  ;;  %15176 = vmatprep.mubr.msk.f32.mxu1 %vm17756_vm1, %v23780_v1 }
  0x91   : > { %14989 = vmatmul.mubr.msk.f32.gmra.mxu0 %vm567_vm2, %v530_v60  ;;  %15177 = vmatmul.mubr.msk.f32.gmra.mxu1 %vm567_vm2, %v465_v61 }
  0x92   : > { %14991 = vmatprep.mubr.msk.f32.mxu0 %vm17756_vm1, %v23780_v1  ;;  %15179 = vmatprep.mubr.msk.f32.mxu1 %vm17756_vm1, %v23780_v1 }
  0x95   : > { %14992 = vmatmul.mubr.msk.f32.gmra.mxu0 %vm567_vm2, %v531_v62  ;;  %15180 = vmatmul.mubr.msk.f32.gmra.mxu1 %vm567_vm2, %v466_v63  ;;  %v552_v62 = vld [vmem:[%s17894_s15 + $0x191] sm:$0xff]  ;;  %v487_v63 = vld [vmem:[%s17894_s15 + $0x188] sm:$0xff] }
  0x96   : > { %14994 = vmatprep.mubr.msk.f32.mxu0 %vm17756_vm1, %v23780_v1  ;;  %15182 = vmatprep.mubr.msk.f32.mxu1 %vm17756_vm1, %v23780_v1 }
  0x99   : > { %14995 = vmatmul.mubr.msk.f32.gmra.mxu0 %vm567_vm2, %v532_v0  ;;  %15183 = vmatmul.mubr.msk.f32.gmra.mxu1 %vm567_vm2, %v467_v2 }
  0x9a   : > { %14997 = vmatprep.mubr.msk.f32.mxu0 %vm17756_vm1, %v23780_v1  ;;  %15185 = vmatprep.mubr.msk.f32.mxu1 %vm17756_vm1, %v23780_v1 }
  0x9d   : > { %14998 = vmatmul.mubr.msk.f32.gmra.mxu0 %vm567_vm2, %v533_v4  ;;  %15186 = vmatmul.mubr.msk.f32.gmra.mxu1 %vm567_vm2, %v468_v5 }
  0x9e   : > { %15000 = vmatprep.mubr.msk.f32.mxu0 %vm17756_vm1, %v23780_v1  ;;  %15188 = vmatprep.mubr.msk.f32.mxu1 %vm17756_vm1, %v23780_v1 }
  0xa1   : > { %15001 = vmatmul.mubr.msk.f32.gmra.mxu0 %vm567_vm2, %v534_v6  ;;  %15189 = vmatmul.mubr.msk.f32.gmra.mxu1 %vm567_vm2, %v469_v7  ;;  %v553_v6 = vld [vmem:[%s17894_s15 + $0x199] sm:$0xff]  ;;  %v488_v7 = vld [vmem:[%s17894_s15 + $0x190] sm:$0xff] }
  0xa2   : > { %15003 = vmatprep.mubr.msk.f32.mxu0 %vm17756_vm1, %v23780_v1  ;;  %15191 = vmatprep.mubr.msk.f32.mxu1 %vm17756_vm1, %v23780_v1 }
  0xa5   : > { %15004 = vmatmul.mubr.msk.f32.gmra.mxu0 %vm567_vm2, %v535_v8  ;;  %15192 = vmatmul.mubr.msk.f32.gmra.mxu1 %vm567_vm2, %v470_v9 }
  0xa6   : > { %15006 = vmatprep.mubr.msk.f32.mxu0 %vm17756_vm1, %v23780_v1  ;;  %15194 = vmatprep.mubr.msk.f32.mxu1 %vm17756_vm1, %v23780_v1 }
  0xa9   : > { %15007 = vmatmul.mubr.msk.f32.gmra.mxu0 %vm567_vm2, %v536_v10  ;;  %15195 = vmatmul.mubr.msk.f32.gmra.mxu1 %vm567_vm2, %v471_v11 }
  0xaa   : > { %15009 = vmatprep.mubr.msk.f32.mxu0 %vm17756_vm1, %v23780_v1  ;;  %15197 = vmatprep.mubr.msk.f32.mxu1 %vm17756_vm1, %v23780_v1 }
  0xad   : > { %15010 = vmatmul.mubr.msk.f32.gmra.mxu0 %vm567_vm2, %v537_v12  ;;  %15198 = vmatmul.mubr.msk.f32.gmra.mxu1 %vm567_vm2, %v472_v14  ;;  %v554_v14 = vld [vmem:[%s17894_s15 + $0x1a1] sm:$0xff] }
  0xae   : > { %15012 = vmatprep.mubr.msk.f32.mxu0 %vm17756_vm1, %v23780_v1  ;;  %15200 = vmatprep.mubr.msk.f32.mxu1 %vm17756_vm1, %v23780_v1 }
  0xb1   : > { %15013 = vmatmul.mubr.msk.f32.gmra.mxu0 %vm567_vm2, %v538_v16  ;;  %15201 = vmatmul.mubr.msk.f32.gmra.mxu1 %vm567_vm2, %v473_v18  ;;  %v489_v16 = vld [vmem:[%s17894_s15 + $0x198] sm:$0xff] }
  0xb2   : > { %15015 = vmatprep.mubr.msk.f32.mxu0 %vm17756_vm1, %v23780_v1  ;;  %15203 = vmatprep.mubr.msk.f32.mxu1 %vm17756_vm1, %v23780_v1 }
  0xb5   : > { %15016 = vmatmul.mubr.msk.f32.gmra.mxu0 %vm567_vm2, %v539_v20  ;;  %15204 = vmatmul.mubr.msk.f32.gmra.mxu1 %vm567_vm2, %v474_v22 }
  0xb6   : > { %15018 = vmatprep.mubr.msk.f32.mxu0 %vm17756_vm1, %v23780_v1  ;;  %15206 = vmatprep.mubr.msk.f32.mxu1 %vm17756_vm1, %v23780_v1 }
  0xb9   : > { %15019 = vmatmul.mubr.msk.f32.gmra.mxu0 %vm567_vm2, %v540_v24  ;;  %15207 = vmatmul.mubr.msk.f32.gmra.mxu1 %vm567_vm2, %v475_v26 }
  0xba   : > { %15021 = vmatprep.mubr.msk.f32.mxu0 %vm17756_vm1, %v23780_v1  ;;  %15209 = vmatprep.mubr.msk.f32.mxu1 %vm17756_vm1, %v23780_v1 }
  0xbd   : > { %15022 = vmatmul.mubr.msk.f32.gmra.mxu0 %vm567_vm2, %v541_v28  ;;  %15210 = vmatmul.mubr.msk.f32.gmra.mxu1 %vm567_vm2, %v476_v30  ;;  %v555_v28 = vld [vmem:[%s17894_s15 + $0x1a9] sm:$0xff]  ;;  %v490_v30 = vld [vmem:[%s17894_s15 + $0x1a0] sm:$0xff] }
  0xbe   : > { %15024 = vmatprep.mubr.msk.f32.mxu0 %vm17756_vm1, %v23780_v1  ;;  %15212 = vmatprep.mubr.msk.f32.mxu1 %vm17756_vm1, %v23780_v1 }
  0xc1   : > { %15025 = vmatmul.mubr.msk.f32.gmra.mxu0 %vm567_vm2, %v542_v32  ;;  %15213 = vmatmul.mubr.msk.f32.gmra.mxu1 %vm567_vm2, %v477_v34 }
  0xc2   : > { %15027 = vmatprep.mubr.msk.f32.mxu0 %vm17756_vm1, %v23780_v1  ;;  %15215 = vmatprep.mubr.msk.f32.mxu1 %vm17756_vm1, %v23780_v1 }
  0xc5   : > { %15028 = vmatmul.mubr.msk.f32.gmra.mxu0 %vm567_vm2, %v543_v36  ;;  %15216 = vmatmul.mubr.msk.f32.gmra.mxu1 %vm567_vm2, %v478_v38 }
  0xc6   : > { %15030 = vmatprep.mubr.msk.f32.mxu0 %vm17756_vm1, %v23780_v1  ;;  %15218 = vmatprep.mubr.msk.f32.mxu1 %vm17756_vm1, %v23780_v1 }
  0xc9   : > { %15031 = vmatmul.mubr.msk.f32.gmra.mxu0 %vm567_vm2, %v544_v39  ;;  %15219 = vmatmul.mubr.msk.f32.gmra.mxu1 %vm567_vm2, %v479_v40  ;;  %v556_v40 = vld [vmem:[%s17894_s15 + $0x1b1] sm:$0xff] }
  0xca   : > { %15033 = vmatprep.mubr.msk.f32.mxu0 %vm17756_vm1, %v23780_v1  ;;  %15221 = vmatprep.mubr.msk.f32.mxu1 %vm17756_vm1, %v23780_v1 }
  0xcd   : > { %15034 = vmatmul.mubr.msk.f32.gmra.mxu0 %vm567_vm2, %v545_v41  ;;  %15222 = vmatmul.mubr.msk.f32.gmra.mxu1 %vm567_vm2, %v480_v42  ;;  %v491_v41 = vld [vmem:[%s17894_s15 + $0x1a8] sm:$0xff] }
  0xce   : > { %15036 = vmatprep.mubr.msk.f32.mxu0 %vm17756_vm1, %v23780_v1  ;;  %15224 = vmatprep.mubr.msk.f32.mxu1 %vm17756_vm1, %v23780_v1 }
  0xd1   : > { %15037 = vmatmul.mubr.msk.f32.gmra.mxu0 %vm567_vm2, %v546_v43  ;;  %15225 = vmatmul.mubr.msk.f32.gmra.mxu1 %vm567_vm2, %v481_v44 }
  0xd2   : > { %15039 = vmatprep.mubr.msk.f32.mxu0 %vm17756_vm1, %v23780_v1  ;;  %15227 = vmatprep.mubr.msk.f32.mxu1 %vm17756_vm1, %v23780_v1 }
  0xd5   : > { %15040 = vmatmul.mubr.msk.f32.gmra.mxu0 %vm567_vm2, %v547_v45  ;;  %15228 = vmatmul.mubr.msk.f32.gmra.mxu1 %vm567_vm2, %v482_v46 }
  0xd6   : > { %15042 = vmatprep.mubr.msk.f32.mxu0 %vm17756_vm1, %v23780_v1  ;;  %15230 = vmatprep.mubr.msk.f32.mxu1 %vm17756_vm1, %v23780_v1 }
  0xd9   : > { %15043 = vmatmul.mubr.msk.f32.gmra.mxu0 %vm567_vm2, %v548_v47  ;;  %15231 = vmatmul.mubr.msk.f32.gmra.mxu1 %vm567_vm2, %v483_v48  ;;  %v557_v47 = vld [vmem:[%s17894_s15 + $0x1b9] sm:$0xff]  ;;  %v492_v48 = vld [vmem:[%s17894_s15 + $0x1b0] sm:$0xff] }
  0xda   : > { %15045 = vmatprep.mubr.msk.f32.mxu0 %vm17756_vm1, %v23780_v1  ;;  %15233 = vmatprep.mubr.msk.f32.mxu1 %vm17756_vm1, %v23780_v1 }
  0xdd   : > { %15046 = vmatmul.mubr.msk.f32.gmra.mxu0 %vm567_vm2, %v549_v49  ;;  %15234 = vmatmul.mubr.msk.f32.gmra.mxu1 %vm567_vm2, %v484_v50 }
  0xde   : > { %15048 = vmatprep.mubr.msk.f32.mxu0 %vm17756_vm1, %v23780_v1  ;;  %15236 = vmatprep.mubr.msk.f32.mxu1 %vm17756_vm1, %v23780_v1 }
  0xe1   : > { %v827_v53 = vpop.f32.mrf.mxu0  ;;  %15049 = vmatmul.mubr.msk.f32.gmra.mxu0 %vm567_vm2, %v550_v51  ;;  %v18337_v54 = vpop.f32.mrf.mxu1  ;;  %15237 = vmatmul.mubr.msk.f32.gmra.mxu1 %vm567_vm2, %v485_v52 }
  0xe2   : > { %23790 = vst [vmem:[#allocation10_spill] sm:$0xff] %v18337_v54  ;;  %15051 = vmatprep.mubr.msk.f32.mxu0 %vm17756_vm1, %v23780_v1  ;;  %15239 = vmatprep.mubr.msk.f32.mxu1 %vm17756_vm1, %v23780_v1 }
  0xe3   : > { %v14906_v57 = vpop.f32.mrf.mxu0  ;;  %v15092_v58 = vpop.f32.mrf.mxu1 }
  0xe5   : > { %v832_v59 = vpop.f32.mrf.mxu0  ;;  %15052 = vmatmul.mubr.msk.f32.gmra.mxu0 %vm567_vm2, %v551_v55  ;;  %v1399_v60 = vpop.f32.mrf.mxu1  ;;  %15240 = vmatmul.mubr.msk.f32.gmra.mxu1 %vm567_vm2, %v486_v56  ;;  %v558_v55 = vld [vmem:[%s17894_s15 + $0x1c1] sm:$0xff]  ;;  %v493_v56 = vld [vmem:[%s17894_s15 + $0x1b8] sm:$0xff] }
  0xe6   : > { %v18348_v61 = vadd.f32 %v1399_v60, %v827_v53  ;;  %15054 = vmatprep.mubr.msk.f32.mxu0 %vm17756_vm1, %v23780_v1  ;;  %15242 = vmatprep.mubr.msk.f32.mxu1 %vm17756_vm1, %v23780_v1 }
  0xe7   : > { %v14909_v0 = vpop.f32.mrf.mxu0  ;;  %v15097_v2 = vpop.f32.mrf.mxu1 }
  0xe8   : > { %v494_v0 = vld [vmem:[%s17894_s15 + $0x1c0] sm:$0xff] }
  0xe9   : > { %v837_v3 = vpop.f32.mrf.mxu0  ;;  %15055 = vmatmul.mubr.msk.f32.gmra.mxu0 %vm567_vm2, %v552_v62  ;;  %v1404_v4 = vpop.f32.mrf.mxu1  ;;  %15243 = vmatmul.mubr.msk.f32.gmra.mxu1 %vm567_vm2, %v487_v63  ;;  %v559_v63 = vld [vmem:[%s17894_s15 + $0x1c9] sm:$0xff] }
  0xea   : > { %v18358_v5 = vadd.f32 %v1404_v4, %v832_v59  ;;  %15057 = vmatprep.mubr.msk.f32.mxu0 %vm17756_vm1, %v23780_v1  ;;  %15245 = vmatprep.mubr.msk.f32.mxu1 %vm17756_vm1, %v23780_v1 }
  0xeb   : > { %v14912_v8 = vpop.f32.mrf.mxu0  ;;  %v15100_v9 = vpop.f32.mrf.mxu1 }
  0xec   : > { %v560_v8 = vld [vmem:[%s17894_s15 + $0x1d1] sm:$0xff]  ;;  %v495_v9 = vld [vmem:[%s17894_s15 + $0x1c8] sm:$0xff] }
  0xed   : > { %v842_v10 = vpop.f32.mrf.mxu0  ;;  %15058 = vmatmul.mubr.msk.f32.gmra.mxu0 %vm567_vm2, %v553_v6  ;;  %v1409_v11 = vpop.f32.mrf.mxu1  ;;  %15246 = vmatmul.mubr.msk.f32.gmra.mxu1 %vm567_vm2, %v488_v7 }
  0xee   : > { %v18368_v12 = vadd.f32 %v1409_v11, %v837_v3  ;;  %15060 = vmatprep.mubr.msk.f32.mxu0 %vm17756_vm1, %v23780_v1  ;;  %15248 = vmatprep.mubr.msk.f32.mxu1 %vm17756_vm1, %v23780_v1 }
  0xef   : > { %v14915_v18 = vpop.f32.mrf.mxu0  ;;  %v15103_v20 = vpop.f32.mrf.mxu1 }
  0xf0   : > { %v561_v20 = vld [vmem:[%s17894_s15 + $0x1d9] sm:$0xff] }
  0xf1   : > { %v847_v22 = vpop.f32.mrf.mxu0  ;;  %15061 = vmatmul.mubr.msk.f32.gmra.mxu0 %vm567_vm2, %v554_v14  ;;  %v1414_v24 = vpop.f32.mrf.mxu1  ;;  %15249 = vmatmul.mubr.msk.f32.gmra.mxu1 %vm567_vm2, %v489_v16 }
  0xf2   : > { %v18378_v26 = vadd.f32 %v1414_v24, %v842_v10  ;;  %15063 = vmatprep.mubr.msk.f32.mxu0 %vm17756_vm1, %v23780_v1  ;;  %15251 = vmatprep.mubr.msk.f32.mxu1 %vm17756_vm1, %v23780_v1 }
  0xf3   : > { %v14918_v32 = vpop.f32.mrf.mxu0  ;;  %v15106_v34 = vpop.f32.mrf.mxu1 }
  0xf5   : > { %v852_v36 = vpop.f32.mrf.mxu0  ;;  %15064 = vmatmul.mubr.msk.f32.gmra.mxu0 %vm567_vm2, %v555_v28  ;;  %v1419_v38 = vpop.f32.mrf.mxu1  ;;  %15252 = vmatmul.mubr.msk.f32.gmra.mxu1 %vm567_vm2, %v490_v30 }
  0xf6   : > { %v18388_v39 = vadd.f32 %v1419_v38, %v847_v22  ;;  %15066 = vmatprep.mubr.msk.f32.mxu0 %vm17756_vm1, %v23780_v1  ;;  %15254 = vmatprep.mubr.msk.f32.mxu1 %vm17756_vm1, %v23780_v1  ;;  %v496_v22 = vld [vmem:[%s17894_s15 + $0x1d0] sm:$0xff]  ;;  %v497_v38 = vld [vmem:[%s17894_s15 + $0x1d8] sm:$0xff] }
  0xf7   : > { %v14921_v42 = vpop.f32.mrf.mxu0  ;;  %v15109_v43 = vpop.f32.mrf.mxu1 }
  0xf9   : > { %v857_v44 = vpop.f32.mrf.mxu0  ;;  %15067 = vmatmul.mubr.msk.f32.gmra.mxu0 %vm567_vm2, %v556_v40  ;;  %v1424_v45 = vpop.f32.mrf.mxu1  ;;  %15255 = vmatmul.mubr.msk.f32.gmra.mxu1 %vm567_vm2, %v491_v41 }
  0xfa   : > { %v18398_v46 = vadd.f32 %v1424_v45, %v852_v36  ;;  %15069 = vmatprep.mubr.msk.f32.mxu0 %vm17756_vm1, %v23780_v1  ;;  %15257 = vmatprep.mubr.msk.f32.mxu1 %vm17756_vm1, %v23780_v1  ;;  %v562_v36 = vld [vmem:[%s17894_s15 + $0x1e1] sm:$0xff]  ;;  %v563_v45 = vld [vmem:[%s17894_s15 + $0x1e9] sm:$0xff] }
  0xfb   : > { %v14924_v49 = vpop.f32.mrf.mxu0  ;;  %v15112_v50 = vpop.f32.mrf.mxu1 }
  0xfd   : > { %v862_v51 = vpop.f32.mrf.mxu0  ;;  %15070 = vmatmul.mubr.msk.f32.gmra.mxu0 %vm567_vm2, %v557_v47  ;;  %v1429_v52 = vpop.f32.mrf.mxu1  ;;  %15258 = vmatmul.mubr.msk.f32.gmra.mxu1 %vm567_vm2, %v492_v48  ;;  %v498_v47 = vld [vmem:[%s17894_s15 + $0x1e0] sm:$0xff] }
  0xfe   : > { %v18408_v53 = vadd.f32 %v1429_v52, %v857_v44  ;;  %15072 = vmatprep.mubr.msk.f32.mxu0 %vm17756_vm1, %v23780_v1  ;;  %15260 = vmatprep.mubr.msk.f32.mxu1 %vm17756_vm1, %v23780_v1 }
  0xff   : > { %v14927_v57 = vpop.f32.mrf.mxu0  ;;  %v15115_v58 = vpop.f32.mrf.mxu1 }
 0x101   : > { %v867_v59 = vpop.f32.mrf.mxu0  ;;  %15073 = vmatmul.mubr.msk.f32.gmra.mxu0 %vm567_vm2, %v558_v55  ;;  %v1434_v60 = vpop.f32.mrf.mxu1  ;;  %15261 = vmatmul.mubr.msk.f32.gmra.mxu1 %vm567_vm2, %v493_v56  ;;  %v499_v55 = vld [vmem:[%s17894_s15 + $0x1e8] sm:$0xff] }
 0x102   : > { %v18418_v62 = vadd.f32 %v1434_v60, %v862_v51  ;;  %15075 = vmatprep.mubr.msk.f32.mxu0 %vm17756_vm1, %v23780_v1  ;;  %15263 = vmatprep.mubr.msk.f32.mxu1 %vm17756_vm1, %v23780_v1  ;;  %v1713_v56 = vld [vmem:[%s17894_s15 + $0x2] sm:$0xff] }
 0x103   : > { %v14930_v2 = vpop.f32.mrf.mxu0  ;;  %v15118_v3 = vpop.f32.mrf.mxu1 }
 0x104   : > { %v500_v2 = vld [vmem:[%s17894_s15 + $0x1f0] sm:$0xff] }
 0x105   : > { %v872_v4 = vpop.f32.mrf.mxu0  ;;  %15076 = vmatmul.mubr.msk.f32.gmra.mxu0 %vm567_vm2, %v559_v63  ;;  %v1439_v6 = vpop.f32.mrf.mxu1  ;;  %15264 = vmatmul.mubr.msk.f32.gmra.mxu1 %vm567_vm2, %v494_v0  ;;  %v1714_v3 = vld [vmem:[%s17894_s15 + $0xa] sm:$0xff] }
 0x106   : > { %v18428_v7 = vadd.f32 %v1439_v6, %v867_v59  ;;  %15078 = vmatprep.mubr.msk.f32.mxu0 %vm17756_vm1, %v23780_v1  ;;  %15266 = vmatprep.mubr.msk.f32.mxu1 %vm17756_vm1, %v23780_v1  ;;  %v13048_v59 = vld [vmem:[%s23788_s1 + $0x10] sm:$0x7] }
 0x107   : > { %v14933_v10 = vpop.f32.mrf.mxu0  ;;  %v15121_v11 = vpop.f32.mrf.mxu1 }
 0x108   : > { %v1715_v11 = vld [vmem:[%s17894_s15 + $0x12] sm:$0xff] }
 0x109   : > { %v877_v14 = vpop.f32.mrf.mxu0  ;;  %15079 = vmatmul.mubr.msk.f32.gmra.mxu0 %vm567_vm2, %v560_v8  ;;  %v1444_v16 = vpop.f32.mrf.mxu1  ;;  %15267 = vmatmul.mubr.msk.f32.gmra.mxu1 %vm567_vm2, %v495_v9 }
 0x10a   : > { %v18438_v18 = vadd.f32 %v1444_v16, %v872_v4  ;;  %15081 = vmatprep.mubr.msk.f32.mxu0 %vm17756_vm1, %v23780_v1  ;;  %15269 = vmatprep.mubr.msk.f32.mxu1 %vm17756_vm1, %v23780_v1 }
 0x10b   : > { %v14936_v24 = vpop.f32.mrf.mxu0  ;;  %v15124_v28 = vpop.f32.mrf.mxu1 }
 0x10c   : > { %v1716_v28 = vld [vmem:[%s17894_s15 + $0x1a] sm:$0xff] }
 0x10d   : > { %v882_v30 = vpop.f32.mrf.mxu0  ;;  %15082 = vmatmul.mubr.msk.f32.gmra.mxu0 %vm567_vm2, %v561_v20  ;;  %v1449_v32 = vpop.f32.mrf.mxu1  ;;  %15270 = vmatmul.mubr.msk.f32.gmra.mxu1 %vm567_vm2, %v496_v22 }
 0x10e   : > { %v18448_v34 = vadd.f32 %v1449_v32, %v877_v14  ;;  %15084 = vmatprep.mubr.msk.f32.mxu0 %vm17756_vm1, %v23780_v1  ;;  %15272 = vmatprep.mubr.msk.f32.mxu1 %vm17756_vm1, %v23780_v1 }
 0x10f   : > { %v14939_v40 = vpop.f32.mrf.mxu0  ;;  %v15127_v41 = vpop.f32.mrf.mxu1 }
 0x110   : > { %v1717_v40 = vld [vmem:[%s17894_s15 + $0x22] sm:$0xff] }
 0x111   : > { %v887_v42 = vpop.f32.mrf.mxu0  ;;  %15085 = vmatmul.mubr.msk.f32.gmra.mxu0 %vm567_vm2, %v562_v36  ;;  %v1454_v43 = vpop.f32.mrf.mxu1  ;;  %15273 = vmatmul.mubr.msk.f32.gmra.mxu1 %vm567_vm2, %v497_v38 }
 0x112   : > { %v18458_v44 = vadd.f32 %v1454_v43, %v882_v30  ;;  %15087 = vmatprep.mubr.msk.f32.mxu0 %vm17756_vm1, %v23780_v1  ;;  %15275 = vmatprep.mubr.msk.f32.mxu1 %vm17756_vm1, %v23780_v1 }
 0x113   : > { %v14942_v48 = vpop.f32.mrf.mxu0  ;;  %v15130_v49 = vpop.f32.mrf.mxu1 }
 0x115   : > { %v892_v50 = vpop.f32.mrf.mxu0  ;;  %15088 = vmatmul.mubr.msk.f32.gmra.mxu0 %vm567_vm2, %v563_v45  ;;  %v1459_v51 = vpop.f32.mrf.mxu1  ;;  %15276 = vmatmul.mubr.msk.f32.gmra.mxu1 %vm567_vm2, %v498_v47  ;;  %v1718_v47 = vld [vmem:[%s17894_s15 + $0x2a] sm:$0xff] }
 0x116   : > { %v18468_v52 = vadd.f32 %v1459_v51, %v887_v42  ;;  %15278 = vmatprep.mubr.msk.f32.mxu1 %vm17756_vm1, %v23780_v1  ;;  %15286 = vmatprep.mubr.msk.f32.mxu0 %vm17756_vm1, %v23780_v1 }
 0x117   : > { %v14945_v57 = vpop.f32.mrf.mxu0  ;;  %v15133_v58 = vpop.f32.mrf.mxu1 }
 0x119   : > { %v897_v60 = vpop.f32.mrf.mxu0  ;;  %v1464_v63 = vpop.f32.mrf.mxu1  ;;  %15279 = vmatmul.mubr.msk.f32.gmra.mxu1 %vm567_vm2, %v499_v55  ;;  %15287 = vmatmul.mubr.msk.f32.vlgmr.msra.gmra.mxu0 %vm567_vm2, %v1713_v56  ;;  %v1719_v55 = vld [vmem:[%s17894_s15 + $0x32] sm:$0xff] }
 0x11a   : > { %v18481_v0 = vadd.f32 %v1464_v63, %v892_v50  ;;  %15667 = vmatpush3.msk.msra.mxu0 %vm757_vm0, %v13048_v59  ;;  %15281 = vmatprep.mubr.msk.f32.mxu1 %vm17756_vm1, %v23780_v1 }
 0x11b   : > { %v14948_v4 = vpop.f32.mrf.mxu0  ;;  %v15136_v6 = vpop.f32.mrf.mxu1  ;;  %15289 = vmatprep.mubr.msk.f32.mxu0 %vm17756_vm1, %v23780_v1  ;;  %16048 = vmatprep.subr.mxu0 %v23780_v1 }
 0x11c   : > { %v1721_v6 = vld [vmem:[%s17894_s15 + $0x42] sm:$0xff] }
 0x11d   : > { %v902_v8 = vpop.f32.mrf.mxu0  ;;  %v1469_v9 = vpop.f32.mrf.mxu1  ;;  %15282 = vmatmul.mubr.msk.f32.gmra.mxu1 %vm567_vm2, %v500_v2  ;;  %15290 = vmatmul.mubr.msk.f32.gmra.mxu0 %vm567_vm2, %v1714_v3 }
 0x11e   : > { %v18493_v10 = vadd.f32 %v1469_v9, %v897_v60  ;;  %15292 = vmatprep.mubr.msk.f32.mxu0 %vm17756_vm1, %v23780_v1  ;;  %15477 = vmatprep.mubr.msk.f32.mxu1 %vm17756_vm1, %v23780_v1  ;;  %v1720_v60 = vld [vmem:[%s17894_s15 + $0x3a] sm:$0xff] }
 0x11f   : > { %v14951_v14 = vpop.f32.mrf.mxu0  ;;  %v15139_v16 = vpop.f32.mrf.mxu1 }
 0x120   : > { %v1722_v16 = vld [vmem:[%s17894_s15 + $0x4a] sm:$0xff] }
 0x121   : > { %v907_v20 = vpop.f32.mrf.mxu0  ;;  %v1474_v22 = vpop.f32.mrf.mxu1  ;;  %15293 = vmatmul.mubr.msk.f32.gmra.mxu0 %vm567_vm2, %v1715_v11  ;;  %15478 = vmatmul.mubr.msk.f32.vlgmr.msra.gmra.mxu1 %vm567_vm2, %v17940_v13 }
 0x122   : > { %v18503_v24 = vadd.f32 %v1474_v22, %v902_v8  ;;  %15295 = vmatprep.mubr.msk.f32.mxu0 %vm17756_vm1, %v23780_v1  ;;  %15480 = vmatprep.mubr.msk.f32.mxu1 %vm17756_vm1, %v23780_v1 }
 0x123   : > { %v14954_v30 = vpop.f32.mrf.mxu0  ;;  %v15142_v32 = vpop.f32.mrf.mxu1 }
 0x124   : > { %v1723_v32 = vld [vmem:[%s17894_s15 + $0x52] sm:$0xff] }
 0x125   : > { %v912_v36 = vpop.f32.mrf.mxu0  ;;  %v1479_v38 = vpop.f32.mrf.mxu1  ;;  %15296 = vmatmul.mubr.msk.f32.gmra.mxu0 %vm567_vm2, %v1716_v28  ;;  %15481 = vmatmul.mubr.msk.f32.gmra.mxu1 %vm567_vm2, %v17951_v15 }
 0x126   : > { %v18513_v13 = vadd.f32 %v1479_v38, %v907_v20  ;;  %15298 = vmatprep.mubr.msk.f32.mxu0 %vm17756_vm1, %v23780_v1  ;;  %15483 = vmatprep.mubr.msk.f32.mxu1 %vm17756_vm1, %v23780_v1 }
 0x127   : > { %v14957_v41 = vpop.f32.mrf.mxu0  ;;  %v15145_v42 = vpop.f32.mrf.mxu1 }
 0x128   : > { %v1724_v42 = vld [vmem:[%s17894_s15 + $0x5a] sm:$0xff] }
 0x129   : > { %v917_v43 = vpop.f32.mrf.mxu0  ;;  %v1484_v45 = vpop.f32.mrf.mxu1  ;;  %15299 = vmatmul.mubr.msk.f32.gmra.mxu0 %vm567_vm2, %v1717_v40  ;;  %15484 = vmatmul.mubr.msk.f32.gmra.mxu1 %vm567_vm2, %v17962_v17 }
 0x12a   : > { %v18523_v15 = vadd.f32 %v1484_v45, %v912_v36  ;;  %15301 = vmatprep.mubr.msk.f32.mxu0 %vm17756_vm1, %v23780_v1  ;;  %15486 = vmatprep.mubr.msk.f32.mxu1 %vm17756_vm1, %v23780_v1 }
 0x12b   : > { %v14960_v48 = vpop.f32.mrf.mxu0  ;;  %v15148_v49 = vpop.f32.mrf.mxu1 }
 0x12c   : > { %v1725_v49 = vld [vmem:[%s17894_s15 + $0x62] sm:$0xff] }
 0x12d   : > { %v922_v50 = vpop.f32.mrf.mxu0  ;;  %v1489_v51 = vpop.f32.mrf.mxu1  ;;  %15302 = vmatmul.mubr.msk.f32.gmra.mxu0 %vm567_vm2, %v1718_v47  ;;  %15487 = vmatmul.mubr.msk.f32.gmra.mxu1 %vm567_vm2, %v17973_v19 }
 0x12e   : > { %v18533_v17 = vadd.f32 %v1489_v51, %v917_v43  ;;  %15304 = vmatprep.mubr.msk.f32.mxu0 %vm17756_vm1, %v23780_v1  ;;  %15489 = vmatprep.mubr.msk.f32.mxu1 %vm17756_vm1, %v23780_v1 }
 0x12f   : > { %v14963_v56 = vpop.f32.mrf.mxu0  ;;  %v15151_v57 = vpop.f32.mrf.mxu1 }
 0x130   : > { %v1726_v57 = vld [vmem:[%s17894_s15 + $0x6a] sm:$0xff] }
 0x131   : > { %v927_v58 = vpop.f32.mrf.mxu0  ;;  %v1494_v59 = vpop.f32.mrf.mxu1  ;;  %15305 = vmatmul.mubr.msk.f32.gmra.mxu0 %vm567_vm2, %v1719_v55  ;;  %15490 = vmatmul.mubr.msk.f32.gmra.mxu1 %vm567_vm2, %v17984_v21 }
 0x132   : > { %v18543_v19 = vadd.f32 %v1494_v59, %v922_v50  ;;  %15307 = vmatprep.mubr.msk.f32.mxu0 %vm17756_vm1, %v23780_v1  ;;  %15492 = vmatprep.mubr.msk.f32.mxu1 %vm17756_vm1, %v23780_v1 }
 0x133   : > { %v14966_v63 = vpop.f32.mrf.mxu0  ;;  %v15154_v2 = vpop.f32.mrf.mxu1 }
 0x134   : > { %v1727_v2 = vld [vmem:[%s17894_s15 + $0x72] sm:$0xff] }
 0x135   : > { %v932_v3 = vpop.f32.mrf.mxu0  ;;  %v1499_v4 = vpop.f32.mrf.mxu1  ;;  %15308 = vmatmul.mubr.msk.f32.gmra.mxu0 %vm567_vm2, %v1720_v60  ;;  %15493 = vmatmul.mubr.msk.f32.gmra.mxu1 %vm567_vm2, %v17995_v23 }
 0x136   : > { %v18553_v21 = vadd.f32 %v1499_v4, %v927_v58  ;;  %15310 = vmatprep.mubr.msk.f32.mxu0 %vm17756_vm1, %v23780_v1  ;;  %15495 = vmatprep.mubr.msk.f32.mxu1 %vm17756_vm1, %v23780_v1 }
 0x137   : > { %v14969_v8 = vpop.f32.mrf.mxu0  ;;  %v15157_v9 = vpop.f32.mrf.mxu1 }
 0x138   : > { %v1728_v9 = vld [vmem:[%s17894_s15 + $0x7a] sm:$0xff] }
 0x139   : > { %v937_v11 = vpop.f32.mrf.mxu0  ;;  %v1504_v14 = vpop.f32.mrf.mxu1  ;;  %15311 = vmatmul.mubr.msk.f32.gmra.mxu0 %vm567_vm2, %v1721_v6  ;;  %15496 = vmatmul.mubr.msk.f32.gmra.mxu1 %vm567_vm2, %v18006_v25 }
 0x13a   : > { %v18563_v23 = vadd.f32 %v1504_v14, %v932_v3  ;;  %15313 = vmatprep.mubr.msk.f32.mxu0 %vm17756_vm1, %v23780_v1  ;;  %15498 = vmatprep.mubr.msk.f32.mxu1 %vm17756_vm1, %v23780_v1 }
 0x13b   : > { %v14972_v20 = vpop.f32.mrf.mxu0  ;;  %v15160_v22 = vpop.f32.mrf.mxu1 }
 0x13d   : > { %v942_v28 = vpop.f32.mrf.mxu0  ;;  %v1509_v30 = vpop.f32.mrf.mxu1  ;;  %15314 = vmatmul.mubr.msk.f32.gmra.mxu0 %vm567_vm2, %v1722_v16  ;;  %15499 = vmatmul.mubr.msk.f32.gmra.mxu1 %vm567_vm2, %v18017_v27 }
 0x13e   : > { %v18573_v25 = vadd.f32 %v1509_v30, %v937_v11  ;;  %15316 = vmatprep.mubr.msk.f32.mxu0 %vm17756_vm1, %v23780_v1  ;;  %15501 = vmatprep.mubr.msk.f32.mxu1 %vm17756_vm1, %v23780_v1  ;;  %v2426_v11 = vld [vmem:[%s17894_s15 + $0x80] sm:$0xff]  ;;  %v2427_v30 = vld [vmem:[%s17894_s15 + $0x88] sm:$0xff] }
 0x13f   : > { %v14975_v36 = vpop.f32.mrf.mxu0  ;;  %v15163_v38 = vpop.f32.mrf.mxu1 }
 0x141   : > { %v947_v40 = vpop.f32.mrf.mxu0  ;;  %v1514_v41 = vpop.f32.mrf.mxu1  ;;  %15317 = vmatmul.mubr.msk.f32.gmra.mxu0 %vm567_vm2, %v1723_v32  ;;  %15502 = vmatmul.mubr.msk.f32.gmra.mxu1 %vm567_vm2, %v18028_v29 }
 0x142   : > { %v18583_v27 = vadd.f32 %v1514_v41, %v942_v28  ;;  %15319 = vmatprep.mubr.msk.f32.mxu0 %vm17756_vm1, %v23780_v1  ;;  %15504 = vmatprep.mubr.msk.f32.mxu1 %vm17756_vm1, %v23780_v1  ;;  %v1729_v28 = vld [vmem:[%s17894_s15 + $0x82] sm:$0xff] }
 0x143   : > { %v14978_v43 = vpop.f32.mrf.mxu0  ;;  %v15166_v45 = vpop.f32.mrf.mxu1 }
 0x144   : > { %v2428_v43 = vld [vmem:[%s17894_s15 + $0x90] sm:$0xff] }
 0x145   : > { %v952_v47 = vpop.f32.mrf.mxu0  ;;  %v1519_v48 = vpop.f32.mrf.mxu1  ;;  %15320 = vmatmul.mubr.msk.f32.gmra.mxu0 %vm567_vm2, %v1724_v42  ;;  %15505 = vmatmul.mubr.msk.f32.gmra.mxu1 %vm567_vm2, %v18039_v31  ;;  %v1730_v42 = vld [vmem:[%s17894_s15 + $0x8a] sm:$0xff] }
 0x146   : > { %v18593_v29 = vadd.f32 %v1519_v48, %v947_v40  ;;  %15322 = vmatprep.mubr.msk.f32.mxu0 %vm17756_vm1, %v23780_v1  ;;  %15507 = vmatprep.mubr.msk.f32.mxu1 %vm17756_vm1, %v23780_v1 }
 0x147   : > { %v14981_v50 = vpop.f32.mrf.mxu0  ;;  %v15169_v51 = vpop.f32.mrf.mxu1 }
 0x148   : > { %v1731_v51 = vld [vmem:[%s17894_s15 + $0x92] sm:$0xff] }
 0x149   : > { %v957_v55 = vpop.f32.mrf.mxu0  ;;  %v1524_v56 = vpop.f32.mrf.mxu1  ;;  %15323 = vmatmul.mubr.msk.f32.gmra.mxu0 %vm567_vm2, %v1725_v49  ;;  %15508 = vmatmul.mubr.msk.f32.gmra.mxu1 %vm567_vm2, %v18050_v33 }
 0x14a   : > { %v18603_v31 = vadd.f32 %v1524_v56, %v952_v47  ;;  %15325 = vmatprep.mubr.msk.f32.mxu0 %vm17756_vm1, %v23780_v1  ;;  %15510 = vmatprep.mubr.msk.f32.mxu1 %vm17756_vm1, %v23780_v1 }
 0x14b   : > { %v14984_v58 = vpop.f32.mrf.mxu0  ;;  %v15172_v59 = vpop.f32.mrf.mxu1 }
 0x14d   : > { %v962_v60 = vpop.f32.mrf.mxu0  ;;  %v1529_v63 = vpop.f32.mrf.mxu1  ;;  %15326 = vmatmul.mubr.msk.f32.gmra.mxu0 %vm567_vm2, %v1726_v57  ;;  %15511 = vmatmul.mubr.msk.f32.gmra.mxu1 %vm567_vm2, %v18061_v35 }
 0x14e   : > { %v18613_v33 = vadd.f32 %v1529_v63, %v957_v55  ;;  %15328 = vmatprep.mubr.msk.f32.mxu0 %vm17756_vm1, %v23780_v1  ;;  %15513 = vmatprep.mubr.msk.f32.mxu1 %vm17756_vm1, %v23780_v1  ;;  %v2429_v55 = vld [vmem:[%s17894_s15 + $0x98] sm:$0xff] }
 0x14f   : > { %v14987_v3 = vpop.f32.mrf.mxu0  ;;  %v15175_v4 = vpop.f32.mrf.mxu1  ;;  %v1732_v63 = vld [vmem:[%s17894_s15 + $0x9a] sm:$0xff] }
 0x151   : > { %v967_v6 = vpop.f32.mrf.mxu0  ;;  %v1534_v8 = vpop.f32.mrf.mxu1  ;;  %15329 = vmatmul.mubr.msk.f32.gmra.mxu0 %vm567_vm2, %v1727_v2  ;;  %15514 = vmatmul.mubr.msk.f32.gmra.mxu1 %vm567_vm2, %v18072_v37  ;;  %v2430_v2 = vld [vmem:[%s17894_s15 + $0xa0] sm:$0xff] }
 0x152   : > { %v18623_v35 = vadd.f32 %v1534_v8, %v962_v60  ;;  %15331 = vmatprep.mubr.msk.f32.mxu0 %vm17756_vm1, %v23780_v1  ;;  %15516 = vmatprep.mubr.msk.f32.mxu1 %vm17756_vm1, %v23780_v1 }
 0x153   : > { %v14990_v14 = vpop.f32.mrf.mxu0  ;;  %v15178_v16 = vpop.f32.mrf.mxu1 }
 0x154   : > { %v2431_v14 = vld [vmem:[%s17894_s15 + $0xa8] sm:$0xff] }
 0x155   : > { %v972_v20 = vpop.f32.mrf.mxu0  ;;  %v1539_v22 = vpop.f32.mrf.mxu1  ;;  %15332 = vmatmul.mubr.msk.f32.gmra.mxu0 %vm567_vm2, %v1728_v9  ;;  %15517 = vmatmul.mubr.msk.f32.gmra.mxu1 %vm567_vm2, %v2426_v11  ;;  %v1733_v11 = vld [vmem:[%s17894_s15 + $0xa2] sm:$0xff] }
 0x156   : > { %v18633_v37 = vadd.f32 %v1539_v22, %v967_v6  ;;  %15334 = vmatprep.mubr.msk.f32.mxu0 %vm17756_vm1, %v23780_v1  ;;  %15519 = vmatprep.mubr.msk.f32.mxu1 %vm17756_vm1, %v23780_v1 }
 0x157   : > { %v14993_v32 = vpop.f32.mrf.mxu0  ;;  %v15181_v36 = vpop.f32.mrf.mxu1 }
 0x158   : > { %v1734_v32 = vld [vmem:[%s17894_s15 + $0xaa] sm:$0xff] }
 0x159   : > { %v977_v38 = vpop.f32.mrf.mxu0  ;;  %v1544_v40 = vpop.f32.mrf.mxu1  ;;  %15335 = vmatmul.mubr.msk.f32.gmra.mxu0 %vm567_vm2, %v1729_v28  ;;  %15520 = vmatmul.mubr.msk.f32.gmra.mxu1 %vm567_vm2, %v2427_v30  ;;  %v2432_v36 = vld [vmem:[%s17894_s15 + $0xb0] sm:$0xff] }
 0x15a   : > { %v18643_v41 = vadd.f32 %v1544_v40, %v972_v20  ;;  %15337 = vmatprep.mubr.msk.f32.mxu0 %vm17756_vm1, %v23780_v1  ;;  %15522 = vmatprep.mubr.msk.f32.mxu1 %vm17756_vm1, %v23780_v1 }
 0x15b   : > { %v14996_v45 = vpop.f32.mrf.mxu0  ;;  %v15184_v47 = vpop.f32.mrf.mxu1 }
 0x15c   : > { %v1735_v47 = vld [vmem:[%s17894_s15 + $0xb2] sm:$0xff] }
 0x15d   : > { %v982_v48 = vpop.f32.mrf.mxu0  ;;  %v1549_v49 = vpop.f32.mrf.mxu1  ;;  %15338 = vmatmul.mubr.msk.f32.gmra.mxu0 %vm567_vm2, %v1730_v42  ;;  %15523 = vmatmul.mubr.msk.f32.gmra.mxu1 %vm567_vm2, %v2428_v43 }
 0x15e   : > { %v18653_v50 = vadd.f32 %v1549_v49, %v977_v38  ;;  %15340 = vmatprep.mubr.msk.f32.mxu0 %vm17756_vm1, %v23780_v1  ;;  %15525 = vmatprep.mubr.msk.f32.mxu1 %vm17756_vm1, %v23780_v1 }
 0x15f   : > { %v14999_v56 = vpop.f32.mrf.mxu0  ;;  %v15187_v57 = vpop.f32.mrf.mxu1 }
 0x161   : > { %v987_v58 = vpop.f32.mrf.mxu0  ;;  %v1554_v59 = vpop.f32.mrf.mxu1  ;;  %15341 = vmatmul.mubr.msk.f32.gmra.mxu0 %vm567_vm2, %v1731_v51  ;;  %15526 = vmatmul.mubr.msk.f32.gmra.mxu1 %vm567_vm2, %v2429_v55 }
 0x162   : > { %v18663_v60 = vadd.f32 %v1554_v59, %v982_v48  ;;  %15343 = vmatprep.mubr.msk.f32.mxu0 %vm17756_vm1, %v23780_v1  ;;  %15528 = vmatprep.mubr.msk.f32.mxu1 %vm17756_vm1, %v23780_v1  ;;  %v2433_v48 = vld [vmem:[%s17894_s15 + $0xb8] sm:$0xff]  ;;  %v2434_v59 = vld [vmem:[%s17894_s15 + $0xc0] sm:$0xff] }
 0x163   : > { %v15002_v3 = vpop.f32.mrf.mxu0  ;;  %v15190_v4 = vpop.f32.mrf.mxu1 }
 0x165   : > { %v992_v6 = vpop.f32.mrf.mxu0  ;;  %v1559_v8 = vpop.f32.mrf.mxu1  ;;  %15344 = vmatmul.mubr.msk.f32.gmra.mxu0 %vm567_vm2, %v1732_v63  ;;  %15529 = vmatmul.mubr.msk.f32.gmra.mxu1 %vm567_vm2, %v2430_v2 }
 0x166   : > { %v18673_v9 = vadd.f32 %v1559_v8, %v987_v58  ;;  %15346 = vmatprep.mubr.msk.f32.mxu0 %vm17756_vm1, %v23780_v1  ;;  %15531 = vmatprep.mubr.msk.f32.mxu1 %vm17756_vm1, %v23780_v1  ;;  %v1736_v58 = vld [vmem:[%s17894_s15 + $0xba] sm:$0xff]  ;;  %v1737_v8 = vld [vmem:[%s17894_s15 + $0xc2] sm:$0xff] }
 0x167   : > { %v15005_v16 = vpop.f32.mrf.mxu0  ;;  %v15193_v20 = vpop.f32.mrf.mxu1 }
 0x169   : > { %v997_v22 = vpop.f32.mrf.mxu0  ;;  %v1564_v28 = vpop.f32.mrf.mxu1  ;;  %15347 = vmatmul.mubr.msk.f32.gmra.mxu0 %vm567_vm2, %v1733_v11  ;;  %15532 = vmatmul.mubr.msk.f32.gmra.mxu1 %vm567_vm2, %v2431_v14  ;;  %v2435_v11 = vld [vmem:[%s17894_s15 + $0xc8] sm:$0xff] }
 0x16a   : > { %v18683_v30 = vadd.f32 %v1564_v28, %v992_v6  ;;  %15349 = vmatprep.mubr.msk.f32.mxu0 %vm17756_vm1, %v23780_v1  ;;  %15534 = vmatprep.mubr.msk.f32.mxu1 %vm17756_vm1, %v23780_v1 }
 0x16b   : > { %v15008_v38 = vpop.f32.mrf.mxu0  ;;  %v15196_v40 = vpop.f32.mrf.mxu1 }
 0x16d   : > { %v1002_v42 = vpop.f32.mrf.mxu0  ;;  %v1569_v43 = vpop.f32.mrf.mxu1  ;;  %15350 = vmatmul.mubr.msk.f32.gmra.mxu0 %vm567_vm2, %v1734_v32  ;;  %15535 = vmatmul.mubr.msk.f32.gmra.mxu1 %vm567_vm2, %v2432_v36  ;;  %v1738_v32 = vld [vmem:[%s17894_s15 + $0xca] sm:$0xff] }
 0x16e   : > { %v18693_v45 = vadd.f32 %v1569_v43, %v997_v22  ;;  %15352 = vmatprep.mubr.msk.f32.mxu0 %vm17756_vm1, %v23780_v1  ;;  %15537 = vmatprep.mubr.msk.f32.mxu1 %vm17756_vm1, %v23780_v1  ;;  %v2436_v36 = vld [vmem:[%s17894_s15 + $0xd0] sm:$0xff] }
 0x16f   : > { %v15011_v49 = vpop.f32.mrf.mxu0  ;;  %v15199_v51 = vpop.f32.mrf.mxu1 }
 0x170   : > { %v2437_v49 = vld [vmem:[%s17894_s15 + $0xd8] sm:$0xff] }
 0x171   : > { %v1007_v55 = vpop.f32.mrf.mxu0  ;;  %v1574_v56 = vpop.f32.mrf.mxu1  ;;  %15353 = vmatmul.mubr.msk.f32.gmra.mxu0 %vm567_vm2, %v1735_v47  ;;  %15538 = vmatmul.mubr.msk.f32.gmra.mxu1 %vm567_vm2, %v2433_v48  ;;  %v1739_v48 = vld [vmem:[%s17894_s15 + $0xd2] sm:$0xff] }
 0x172   : > { %v18703_v57 = vadd.f32 %v1574_v56, %v1002_v42  ;;  %15355 = vmatprep.mubr.msk.f32.mxu0 %vm17756_vm1, %v23780_v1  ;;  %15540 = vmatprep.mubr.msk.f32.mxu1 %vm17756_vm1, %v23780_v1 }
 0x173   : > { %v15014_v63 = vpop.f32.mrf.mxu0  ;;  %v15202_v2 = vpop.f32.mrf.mxu1 }
 0x174   : > { %v1740_v63 = vld [vmem:[%s17894_s15 + $0xda] sm:$0xff] }
 0x175   : > { %v1012_v3 = vpop.f32.mrf.mxu0  ;;  %v1579_v4 = vpop.f32.mrf.mxu1  ;;  %15356 = vmatmul.mubr.msk.f32.gmra.mxu0 %vm567_vm2, %v1736_v58  ;;  %15541 = vmatmul.mubr.msk.f32.gmra.mxu1 %vm567_vm2, %v2434_v59  ;;  %v2438_v2 = vld [vmem:[%s17894_s15 + $0xe0] sm:$0xff] }
 0x176   : > { %v18713_v6 = vadd.f32 %v1579_v4, %v1007_v55  ;;  %15358 = vmatprep.mubr.msk.f32.mxu0 %vm17756_vm1, %v23780_v1  ;;  %15543 = vmatprep.mubr.msk.f32.mxu1 %vm17756_vm1, %v23780_v1 }
 0x177   : > { %v15017_v14 = vpop.f32.mrf.mxu0  ;;  %v15205_v16 = vpop.f32.mrf.mxu1 }
 0x178   : > { %v1741_v16 = vld [vmem:[%s17894_s15 + $0xe2] sm:$0xff] }
 0x179   : > { %v1017_v20 = vpop.f32.mrf.mxu0  ;;  %v1584_v22 = vpop.f32.mrf.mxu1  ;;  %15359 = vmatmul.mubr.msk.f32.gmra.mxu0 %vm567_vm2, %v1737_v8  ;;  %15544 = vmatmul.mubr.msk.f32.gmra.mxu1 %vm567_vm2, %v2435_v11 }
 0x17a   : > { %v18723_v28 = vadd.f32 %v1584_v22, %v1012_v3  ;;  %15361 = vmatprep.mubr.msk.f32.mxu0 %vm17756_vm1, %v23780_v1  ;;  %15546 = vmatprep.mubr.msk.f32.mxu1 %vm17756_vm1, %v23780_v1 }
 0x17b   : > { %v15020_v38 = vpop.f32.mrf.mxu0  ;;  %v15208_v40 = vpop.f32.mrf.mxu1 }
 0x17d   : > { %v1022_v42 = vpop.f32.mrf.mxu0  ;;  %v1589_v43 = vpop.f32.mrf.mxu1  ;;  %15362 = vmatmul.mubr.msk.f32.gmra.mxu0 %vm567_vm2, %v1738_v32  ;;  %15547 = vmatmul.mubr.msk.f32.gmra.mxu1 %vm567_vm2, %v2436_v36 }
 0x17e   : > { %v18733_v47 = vadd.f32 %v1589_v43, %v1017_v20  ;;  %15364 = vmatprep.mubr.msk.f32.mxu0 %vm17756_vm1, %v23780_v1  ;;  %15549 = vmatprep.mubr.msk.f32.mxu1 %vm17756_vm1, %v23780_v1  ;;  %v2439_v20 = vld [vmem:[%s17894_s15 + $0xe8] sm:$0xff]  ;;  %v2440_v43 = vld [vmem:[%s17894_s15 + $0xf0] sm:$0xff] }
 0x17f   : > { %v15023_v51 = vpop.f32.mrf.mxu0  ;;  %v15211_v55 = vpop.f32.mrf.mxu1 }
 0x181   : > { %v1027_v56 = vpop.f32.mrf.mxu0  ;;  %v1594_v58 = vpop.f32.mrf.mxu1  ;;  %15365 = vmatmul.mubr.msk.f32.gmra.mxu0 %vm567_vm2, %v1739_v48  ;;  %15550 = vmatmul.mubr.msk.f32.gmra.mxu1 %vm567_vm2, %v2437_v49 }
 0x182   : > { %v18743_v59 = vadd.f32 %v1594_v58, %v1022_v42  ;;  %15367 = vmatprep.mubr.msk.f32.mxu0 %vm17756_vm1, %v23780_v1  ;;  %15552 = vmatprep.mubr.msk.f32.mxu1 %vm17756_vm1, %v23780_v1  ;;  %v1742_v42 = vld [vmem:[%s17894_s15 + $0xea] sm:$0xff]  ;;  %v1743_v58 = vld [vmem:[%s17894_s15 + $0xf2] sm:$0xff] }
 0x183   : > { %v15026_v3 = vpop.f32.mrf.mxu0  ;;  %v15214_v4 = vpop.f32.mrf.mxu1 }
 0x185   : > { %v1032_v8 = vpop.f32.mrf.mxu0  ;;  %v1599_v11 = vpop.f32.mrf.mxu1  ;;  %15368 = vmatmul.mubr.msk.f32.gmra.mxu0 %vm567_vm2, %v1740_v63  ;;  %15553 = vmatmul.mubr.msk.f32.gmra.mxu1 %vm567_vm2, %v2438_v2  ;;  %v2441_v63 = vld [vmem:[%s17894_s15 + $0xf8] sm:$0xff] }
 0x186   : > { %v18753_v14 = vadd.f32 %v1599_v11, %v1027_v56  ;;  %15370 = vmatprep.mubr.msk.f32.mxu0 %vm17756_vm1, %v23780_v1  ;;  %15555 = vmatprep.mubr.msk.f32.mxu1 %vm17756_vm1, %v23780_v1 }
 0x187   : > { %v15029_v22 = vpop.f32.mrf.mxu0  ;;  %v15217_v32 = vpop.f32.mrf.mxu1 }
 0x189   : > { %v1037_v36 = vpop.f32.mrf.mxu0  ;;  %v1604_v38 = vpop.f32.mrf.mxu1  ;;  %15371 = vmatmul.mubr.msk.f32.gmra.mxu0 %vm567_vm2, %v1741_v16  ;;  %15556 = vmatmul.mubr.msk.f32.gmra.mxu1 %vm567_vm2, %v2439_v20  ;;  %v1744_v16 = vld [vmem:[%s17894_s15 + $0xfa] sm:$0xff] }
 0x18a   : > { %v18763_v40 = vadd.f32 %v1604_v38, %v1032_v8  ;;  %15373 = vmatprep.mubr.msk.f32.mxu0 %vm17756_vm1, %v23780_v1  ;;  %15558 = vmatprep.mubr.msk.f32.mxu1 %vm17756_vm1, %v23780_v1  ;;  %v2442_v20 = vld [vmem:[%s17894_s15 + $0x100] sm:$0xff] }
 0x18b   : > { %v15032_v48 = vpop.f32.mrf.mxu0  ;;  %v15220_v49 = vpop.f32.mrf.mxu1 }
 0x18c   : > { %v1745_v48 = vld [vmem:[%s17894_s15 + $0x102] sm:$0xff] }
 0x18d   : > { %v1042_v51 = vpop.f32.mrf.mxu0  ;;  %v1609_v55 = vpop.f32.mrf.mxu1  ;;  %15374 = vmatmul.mubr.msk.f32.gmra.mxu0 %vm567_vm2, %v1742_v42  ;;  %15559 = vmatmul.mubr.msk.f32.gmra.mxu1 %vm567_vm2, %v2440_v43  ;;  %v2443_v49 = vld [vmem:[%s17894_s15 + $0x108] sm:$0xff] }
 0x18e   : > { %v18773_v56 = vadd.f32 %v1609_v55, %v1037_v36  ;;  %15376 = vmatprep.mubr.msk.f32.mxu0 %vm17756_vm1, %v23780_v1  ;;  %15561 = vmatprep.mubr.msk.f32.mxu1 %vm17756_vm1, %v23780_v1  ;;  %v13113_v36 = vld [vmem:[%s23788_s1 + $0x14] sm:$0x7] }
 0x18f   : > { %v15035_v2 = vpop.f32.mrf.mxu0  ;;  %v15223_v3 = vpop.f32.mrf.mxu1  ;;  %15858 = vmatpush3.msk.msra.mxu1 %vm757_vm0, %v13113_v36  ;;  %v1747_v36 = vld [vmem:[%s17894_s15 + $0x112] sm:$0xff] }
 0x190   : > { %16239 = vmatprep.subr.mxu1 %v23780_v1  ;;  %v1746_v3 = vld [vmem:[%s17894_s15 + $0x10a] sm:$0xff] }
 0x191   : > { %v1047_v4 = vpop.f32.mrf.mxu0  ;;  %v1614_v8 = vpop.f32.mrf.mxu1  ;;  %15377 = vmatmul.mubr.msk.f32.gmra.mxu0 %vm567_vm2, %v1743_v58  ;;  %15562 = vmatmul.mubr.msk.f32.gmra.mxu1 %vm567_vm2, %v2441_v63 }
 0x192   : > { %v18783_v11 = vadd.f32 %v1614_v8, %v1042_v51  ;;  %15379 = vmatprep.mubr.msk.f32.mxu0 %vm17756_vm1, %v23780_v1  ;;  %15564 = vmatprep.mubr.msk.f32.mxu1 %vm17756_vm1, %v23780_v1 }
 0x193   : > { %v15038_v22 = vpop.f32.mrf.mxu0  ;;  %v15226_v32 = vpop.f32.mrf.mxu1 }
 0x195   : > { %v1052_v38 = vpop.f32.mrf.mxu0  ;;  %v1619_v42 = vpop.f32.mrf.mxu1  ;;  %15380 = vmatmul.mubr.msk.f32.gmra.mxu0 %vm567_vm2, %v1744_v16  ;;  %15565 = vmatmul.mubr.msk.f32.gmra.mxu1 %vm567_vm2, %v2442_v20 }
 0x196   : > { %v18797_v43 = vadd.f32 %v1619_v42, %v1047_v4  ;;  %15382 = vmatprep.mubr.msk.f32.mxu0 %vm17756_vm1, %v23780_v1  ;;  %15567 = vmatprep.mubr.msk.f32.mxu1 %vm17756_vm1, %v23780_v1  ;;  %v2444_v4 = vld [vmem:[%s17894_s15 + $0x110] sm:$0xff] }
 0x197   : > { %v15041_v51 = vpop.f32.mrf.mxu0  ;;  %v15229_v55 = vpop.f32.mrf.mxu1 }
 0x199   : > { %v1057_v58 = vpop.f32.mrf.mxu0  ;;  %v1624_v63 = vpop.f32.mrf.mxu1  ;;  %15383 = vmatmul.mubr.msk.f32.gmra.mxu0 %vm567_vm2, %v1745_v48  ;;  %15568 = vmatmul.mubr.msk.f32.gmra.mxu1 %vm567_vm2, %v2443_v49 }
 0x19a   : > { %v18808_v2 = vadd.f32 %v1624_v63, %v1052_v38  ;;  %15385 = vmatprep.mubr.msk.f32.mxu0 %vm17756_vm1, %v23780_v1  ;;  %15570 = vmatprep.mubr.msk.f32.mxu1 %vm17756_vm1, %v23780_v1  ;;  %v2445_v38 = vld [vmem:[%s17894_s15 + $0x118] sm:$0xff]  ;;  %v2446_v63 = vld [vmem:[%s17894_s15 + $0x120] sm:$0xff] }
 0x19b   : > { %v15044_v8 = vpop.f32.mrf.mxu0  ;;  %v15232_v16 = vpop.f32.mrf.mxu1 }
 0x19d   : > { %v1062_v20 = vpop.f32.mrf.mxu0  ;;  %v1629_v22 = vpop.f32.mrf.mxu1  ;;  %15386 = vmatmul.mubr.msk.f32.gmra.mxu0 %vm567_vm2, %v1746_v3  ;;  %15571 = vmatmul.mubr.msk.f32.gmra.mxu1 %vm567_vm2, %v2444_v4 }
 0x19e   : > { %v18818_v32 = vadd.f32 %v1629_v22, %v1057_v58  ;;  %15388 = vmatprep.mubr.msk.f32.mxu0 %vm17756_vm1, %v23780_v1  ;;  %15573 = vmatprep.mubr.msk.f32.mxu1 %vm17756_vm1, %v23780_v1  ;;  %v1748_v58 = vld [vmem:[%s17894_s15 + $0x11a] sm:$0xff]  ;;  %v1749_v22 = vld [vmem:[%s17894_s15 + $0x122] sm:$0xff] }
 0x19f   : > { %v15047_v42 = vpop.f32.mrf.mxu0  ;;  %v15235_v48 = vpop.f32.mrf.mxu1 }
 0x1a1   : > { %v1067_v49 = vpop.f32.mrf.mxu0  ;;  %v1634_v51 = vpop.f32.mrf.mxu1  ;;  %15389 = vmatmul.mubr.msk.f32.gmra.mxu0 %vm567_vm2, %v1747_v36  ;;  %15574 = vmatmul.mubr.msk.f32.gmra.mxu1 %vm567_vm2, %v2445_v38  ;;  %v2447_v36 = vld [vmem:[%s17894_s15 + $0x128] sm:$0xff] }
 0x1a2   : > { %v18828_v55 = vadd.f32 %v1634_v51, %v1062_v20  ;;  %15391 = vmatprep.mubr.msk.f32.mxu0 %vm17756_vm1, %v23780_v1  ;;  %15576 = vmatprep.mubr.msk.f32.mxu1 %vm17756_vm1, %v23780_v1 }
 0x1a3   : > { %v15050_v3 = vpop.f32.mrf.mxu0  ;;  %v15238_v4 = vpop.f32.mrf.mxu1 }
 0x1a5   : > { %v1072_v8 = vpop.f32.mrf.mxu0  ;;  %v1639_v16 = vpop.f32.mrf.mxu1  ;;  %15392 = vmatmul.mubr.msk.f32.gmra.mxu0 %vm567_vm2, %v1748_v58  ;;  %15577 = vmatmul.mubr.msk.f32.gmra.mxu1 %vm567_vm2, %v2446_v63  ;;  %v1750_v58 = vld [vmem:[%s17894_s15 + $0x12a] sm:$0xff] }
 0x1a6   : > { %v18838_v20 = vadd.f32 %v1639_v16, %v1067_v49  ;;  %15394 = vmatprep.mubr.msk.f32.mxu0 %vm17756_vm1, %v23780_v1  ;;  %15579 = vmatprep.mubr.msk.f32.mxu1 %vm17756_vm1, %v23780_v1  ;;  %v2448_v63 = vld [vmem:[%s17894_s15 + $0x130] sm:$0xff] }
 0x1a7   : > { %v15053_v38 = vpop.f32.mrf.mxu0  ;;  %v15241_v42 = vpop.f32.mrf.mxu1 }
 0x1a9   : > { %v1077_v48 = vpop.f32.mrf.mxu0  ;;  %v1644_v51 = vpop.f32.mrf.mxu1  ;;  %15395 = vmatmul.mubr.msk.f32.gmra.mxu0 %vm567_vm2, %v1749_v22  ;;  %15580 = vmatmul.mubr.msk.f32.gmra.mxu1 %vm567_vm2, %v2447_v36  ;;  %v1751_v22 = vld [vmem:[%s17894_s15 + $0x132] sm:$0xff] }
 0x1aa   : > { %v18848_v49 = vadd.f32 %v1644_v51, %v1072_v8  ;;  %15397 = vmatprep.mubr.msk.f32.mxu0 %vm17756_vm1, %v23780_v1  ;;  %15582 = vmatprep.mubr.msk.f32.mxu1 %vm17756_vm1, %v23780_v1  ;;  %v2449_v36 = vld [vmem:[%s17894_s15 + $0x138] sm:$0xff] }
 0x1ab   : > { %v15056_v3 = vpop.f32.mrf.mxu0  ;;  %v15244_v4 = vpop.f32.mrf.mxu1 }
 0x1ad   : > { %v1082_v16 = vpop.f32.mrf.mxu0  ;;  %v1649_v38 = vpop.f32.mrf.mxu1  ;;  %15398 = vmatmul.mubr.msk.f32.gmra.mxu0 %vm567_vm2, %v1750_v58  ;;  %15583 = vmatmul.mubr.msk.f32.gmra.mxu1 %vm567_vm2, %v2448_v63  ;;  %v1752_v58 = vld [vmem:[%s17894_s15 + $0x13a] sm:$0xff] }
 0x1ae   : > { %v18858_v8 = vadd.f32 %v1649_v38, %v1077_v48  ;;  %15400 = vmatprep.mubr.msk.f32.mxu0 %vm17756_vm1, %v23780_v1  ;;  %15585 = vmatprep.mubr.msk.f32.mxu1 %vm17756_vm1, %v23780_v1  ;;  %v2450_v63 = vld [vmem:[%s17894_s15 + $0x140] sm:$0xff] }
 0x1af   : > { %v15059_v42 = vpop.f32.mrf.mxu0  ;;  %v15247_v51 = vpop.f32.mrf.mxu1 }
 0x1b1   : > { %v1087_v3 = vpop.f32.mrf.mxu0  ;;  %v1654_v4 = vpop.f32.mrf.mxu1  ;;  %15401 = vmatmul.mubr.msk.f32.gmra.mxu0 %vm567_vm2, %v1751_v22  ;;  %15586 = vmatmul.mubr.msk.f32.gmra.mxu1 %vm567_vm2, %v2449_v36  ;;  %v1753_v22 = vld [vmem:[%s17894_s15 + $0x142] sm:$0xff] }
 0x1b2   : > { %v18868_v48 = vadd.f32 %v1654_v4, %v1082_v16  ;;  %15403 = vmatprep.mubr.msk.f32.mxu0 %vm17756_vm1, %v23780_v1  ;;  %15588 = vmatprep.mubr.msk.f32.mxu1 %vm17756_vm1, %v23780_v1  ;;  %v2451_v36 = vld [vmem:[%s17894_s15 + $0x148] sm:$0xff] }
 0x1b3   : > { %v15062_v38 = vpop.f32.mrf.mxu0  ;;  %v15250_v42 = vpop.f32.mrf.mxu1 }
 0x1b4   : > { %23791 = vst [vmem:[#allocation11_spill] sm:$0xff] %v18868_v48 }
 0x1b5   : > { %v1092_v51 = vpop.f32.mrf.mxu0  ;;  %v1659_v54 = vpop.f32.mrf.mxu1  ;;  %15404 = vmatmul.mubr.msk.f32.gmra.mxu0 %vm567_vm2, %v1752_v58  ;;  %15589 = vmatmul.mubr.msk.f32.gmra.mxu1 %vm567_vm2, %v2450_v63  ;;  %v2452_v58 = vld [vmem:[%s17894_s15 + $0x150] sm:$0xff] }
 0x1b6   : > { %v18878_v16 = vadd.f32 %v1659_v54, %v1087_v3  ;;  %15406 = vmatprep.mubr.msk.f32.mxu0 %vm17756_vm1, %v23780_v1  ;;  %15591 = vmatprep.mubr.msk.f32.mxu1 %vm17756_vm1, %v23780_v1  ;;  %v1754_v3 = vld [vmem:[%s17894_s15 + $0x14a] sm:$0xff] }
 0x1b7   : > { %v15065_v4 = vpop.f32.mrf.mxu0  ;;  %v15253_v38 = vpop.f32.mrf.mxu1 }
 0x1b8   : > { %23792 = vst [vmem:[#allocation12_spill] sm:$0xff] %v18878_v16 }
 0x1b9   : > { %v1097_v42 = vpop.f32.mrf.mxu0  ;;  %v1664_v48 = vpop.f32.mrf.mxu1  ;;  %15407 = vmatmul.mubr.msk.f32.gmra.mxu0 %vm567_vm2, %v1753_v22  ;;  %15592 = vmatmul.mubr.msk.f32.gmra.mxu1 %vm567_vm2, %v2451_v36  ;;  %v2453_v22 = vld [vmem:[%s17894_s15 + $0x158] sm:$0xff] }
 0x1ba   : > { %v18888_v54 = vadd.f32 %v1664_v48, %v1092_v51  ;;  %15409 = vmatprep.mubr.msk.f32.mxu0 %vm17756_vm1, %v23780_v1  ;;  %15594 = vmatprep.mubr.msk.f32.mxu1 %vm17756_vm1, %v23780_v1  ;;  %v1755_v51 = vld [vmem:[%s17894_s15 + $0x152] sm:$0xff] }
 0x1bb   : > { %v15068_v63 = vpop.f32.mrf.mxu0  ;;  %v15256_v4 = vpop.f32.mrf.mxu1 }
 0x1bc   : > { %23793 = vst [vmem:[#allocation13_spill] sm:$0xff] %v18888_v54 }
 0x1bd   : > { %v1102_v38 = vpop.f32.mrf.mxu0  ;;  %v1669_v16 = vpop.f32.mrf.mxu1  ;;  %15410 = vmatmul.mubr.msk.f32.gmra.mxu0 %vm567_vm2, %v1754_v3  ;;  %15595 = vmatmul.mubr.msk.f32.gmra.mxu1 %vm567_vm2, %v2452_v58  ;;  %v2454_v3 = vld [vmem:[%s17894_s15 + $0x160] sm:$0xff] }
 0x1be   : > { %v18898_v48 = vadd.f32 %v1669_v16, %v1097_v42  ;;  %15412 = vmatprep.mubr.msk.f32.mxu0 %vm17756_vm1, %v23780_v1  ;;  %15597 = vmatprep.mubr.msk.f32.mxu1 %vm17756_vm1, %v23780_v1  ;;  %v1756_v42 = vld [vmem:[%s17894_s15 + $0x15a] sm:$0xff] }
 0x1bf   : > { %v15071_v36 = vpop.f32.mrf.mxu0  ;;  %v15259_v63 = vpop.f32.mrf.mxu1 }
 0x1c0   : > { %23794 = vst [vmem:[#allocation14_spill] sm:$0xff] %v18898_v48 }
 0x1c1   : > { %v1107_v4 = vpop.f32.mrf.mxu0  ;;  %v1674_v54 = vpop.f32.mrf.mxu1  ;;  %15413 = vmatmul.mubr.msk.f32.gmra.mxu0 %vm567_vm2, %v1755_v51  ;;  %15598 = vmatmul.mubr.msk.f32.gmra.mxu1 %vm567_vm2, %v2453_v22  ;;  %v2455_v51 = vld [vmem:[%s17894_s15 + $0x168] sm:$0xff] }
 0x1c2   : > { %v18908_v16 = vadd.f32 %v1674_v54, %v1102_v38  ;;  %15415 = vmatprep.mubr.msk.f32.mxu0 %vm17756_vm1, %v23780_v1  ;;  %15600 = vmatprep.mubr.msk.f32.mxu1 %vm17756_vm1, %v23780_v1  ;;  %v1757_v38 = vld [vmem:[%s17894_s15 + $0x162] sm:$0xff] }
 0x1c3   : > { %v15074_v58 = vpop.f32.mrf.mxu0  ;;  %v15262_v36 = vpop.f32.mrf.mxu1 }
 0x1c4   : > { %23795 = vst [vmem:[#allocation15_spill] sm:$0xff] %v18908_v16 }
 0x1c5   : > { %v1112_v63 = vpop.f32.mrf.mxu0  ;;  %v1679_v48 = vpop.f32.mrf.mxu1  ;;  %15416 = vmatmul.mubr.msk.f32.gmra.mxu0 %vm567_vm2, %v1756_v42  ;;  %15601 = vmatmul.mubr.msk.f32.gmra.mxu1 %vm567_vm2, %v2454_v3  ;;  %v2456_v42 = vld [vmem:[%s17894_s15 + $0x170] sm:$0xff] }
 0x1c6   : > { %v18918_v54 = vadd.f32 %v1679_v48, %v1107_v4  ;;  %15418 = vmatprep.mubr.msk.f32.mxu0 %vm17756_vm1, %v23780_v1  ;;  %15603 = vmatprep.mubr.msk.f32.mxu1 %vm17756_vm1, %v23780_v1  ;;  %v1758_v4 = vld [vmem:[%s17894_s15 + $0x16a] sm:$0xff] }
 0x1c7   : > { %v15077_v22 = vpop.f32.mrf.mxu0  ;;  %v15265_v58 = vpop.f32.mrf.mxu1 }
 0x1c8   : > { %23796 = vst [vmem:[#allocation16_spill] sm:$0xff] %v18918_v54 }
 0x1c9   : > { %v1117_v36 = vpop.f32.mrf.mxu0  ;;  %v1684_v16 = vpop.f32.mrf.mxu1  ;;  %15419 = vmatmul.mubr.msk.f32.gmra.mxu0 %vm567_vm2, %v1757_v38  ;;  %15604 = vmatmul.mubr.msk.f32.gmra.mxu1 %vm567_vm2, %v2455_v51  ;;  %v2457_v38 = vld [vmem:[%s17894_s15 + $0x178] sm:$0xff] }
 0x1ca   : > { %v18928_v48 = vadd.f32 %v1684_v16, %v1112_v63  ;;  %15421 = vmatprep.mubr.msk.f32.mxu0 %vm17756_vm1, %v23780_v1  ;;  %15606 = vmatprep.mubr.msk.f32.mxu1 %vm17756_vm1, %v23780_v1  ;;  %v1759_v63 = vld [vmem:[%s17894_s15 + $0x172] sm:$0xff] }
 0x1cb   : > { %v15080_v3 = vpop.f32.mrf.mxu0  ;;  %v15268_v22 = vpop.f32.mrf.mxu1 }
 0x1cc   : > { %23797 = vst [vmem:[#allocation17_spill] sm:$0xff] %v18928_v48 }
 0x1cd   : > { %v1122_v58 = vpop.f32.mrf.mxu0  ;;  %v1689_v54 = vpop.f32.mrf.mxu1  ;;  %15422 = vmatmul.mubr.msk.f32.gmra.mxu0 %vm567_vm2, %v1758_v4  ;;  %15607 = vmatmul.mubr.msk.f32.gmra.mxu1 %vm567_vm2, %v2456_v42  ;;  %v2458_v4 = vld [vmem:[%s17894_s15 + $0x180] sm:$0xff] }
 0x1ce   : > { %v18938_v16 = vadd.f32 %v1689_v54, %v1117_v36  ;;  %15424 = vmatprep.mubr.msk.f32.mxu0 %vm17756_vm1, %v23780_v1  ;;  %15609 = vmatprep.mubr.msk.f32.mxu1 %vm17756_vm1, %v23780_v1  ;;  %v1760_v36 = vld [vmem:[%s17894_s15 + $0x17a] sm:$0xff] }
 0x1cf   : > { %v15083_v51 = vpop.f32.mrf.mxu0  ;;  %v15271_v3 = vpop.f32.mrf.mxu1 }
 0x1d0   : > { %23798 = vst [vmem:[#allocation18_spill] sm:$0xff] %v18938_v16 }
 0x1d1   : > { %v1127_v22 = vpop.f32.mrf.mxu0  ;;  %v1694_v48 = vpop.f32.mrf.mxu1  ;;  %15425 = vmatmul.mubr.msk.f32.gmra.mxu0 %vm567_vm2, %v1759_v63  ;;  %15610 = vmatmul.mubr.msk.f32.gmra.mxu1 %vm567_vm2, %v2457_v38 }
 0x1d2   : > { %v18948_v54 = vadd.f32 %v1694_v48, %v1122_v58  ;;  %15427 = vmatprep.mubr.msk.f32.mxu0 %vm17756_vm1, %v23780_v1  ;;  %15612 = vmatprep.mubr.msk.f32.mxu1 %vm17756_vm1, %v23780_v1  ;;  %v1761_v48 = vld [vmem:[%s17894_s15 + $0x182] sm:$0xff] }
 0x1d3   : > { %v15086_v42 = vpop.f32.mrf.mxu0  ;;  %v15274_v51 = vpop.f32.mrf.mxu1  ;;  %v2459_v58 = vld [vmem:[%s17894_s15 + $0x188] sm:$0xff] }
 0x1d4   : > { %23799 = vst [vmem:[#allocation19_spill] sm:$0xff] %v18948_v54 }
 0x1d5   : > { %v1132_v3 = vpop.f32.mrf.mxu0  ;;  %v1699_v16 = vpop.f32.mrf.mxu1  ;;  %15428 = vmatmul.mubr.msk.f32.gmra.mxu0 %vm567_vm2, %v1760_v36  ;;  %15613 = vmatmul.mubr.msk.f32.gmra.mxu1 %vm567_vm2, %v2458_v4  ;;  %v1762_v36 = vld [vmem:[%s17894_s15 + $0x18a] sm:$0xff] }
 0x1d6   : > { %v18958_v63 = vadd.f32 %v1699_v16, %v1127_v22  ;;  %15430 = vmatprep.mubr.msk.f32.mxu0 %vm17756_vm1, %v23780_v1  ;;  %15615 = vmatprep.mubr.msk.f32.mxu1 %vm17756_vm1, %v23780_v1  ;;  %v2460_v4 = vld [vmem:[%s17894_s15 + $0x190] sm:$0xff] }
 0x1d7   : > { %v15089_v38 = vpop.f32.mrf.mxu0  ;;  %v15277_v42 = vpop.f32.mrf.mxu1 }
 0x1d8   : > { %23800 = vst [vmem:[#allocation20_spill] sm:$0xff] %v18958_v63 }
 0x1d9   : > { %v1704_v51 = vpop.f32.mrf.mxu1  ;;  %v2036_v54 = vpop.f32.mrf.mxu0  ;;  %15431 = vmatmul.mubr.msk.f32.gmra.mxu0 %vm567_vm2, %v1761_v48  ;;  %15616 = vmatmul.mubr.msk.f32.gmra.mxu1 %vm567_vm2, %v2459_v58 }
 0x1da   : > { %v18968_v16 = vadd.f32 %v1704_v51, %v1132_v3  ;;  %v2350_v22 = vadd.f32 %v2036_v54, %v18348_v61  ;;  %15433 = vmatprep.mubr.msk.f32.mxu0 %vm17756_vm1, %v23780_v1  ;;  %15618 = vmatprep.mubr.msk.f32.mxu1 %vm17756_vm1, %v23780_v1  ;;  %v1763_v54 = vld [vmem:[%s17894_s15 + $0x192] sm:$0xff] }
 0x1db   : > { %v15280_v38 = vpop.f32.mrf.mxu1  ;;  %v15288_v42 = vpop.f32.mrf.mxu0  ;;  %v2461_v3 = vld [vmem:[%s17894_s15 + $0x198] sm:$0xff] }
 0x1dc   : > { %v1764_v42 = vld [vmem:[%s17894_s15 + $0x19a] sm:$0xff] }
 0x1dd   : > { %v18977_v63 = vpop.f32.mrf.mxu1  ;;  %v2041_v48 = vpop.f32.mrf.mxu0  ;;  %15434 = vmatmul.mubr.msk.f32.gmra.mxu0 %vm567_vm2, %v1762_v36  ;;  %15619 = vmatmul.mubr.msk.f32.gmra.mxu1 %vm567_vm2, %v2460_v4 }
 0x1de   : > { %v2351_v61 = vadd.f32 %v2041_v48, %v18358_v5  ;;  %15436 = vmatprep.mubr.msk.f32.mxu0 %vm17756_vm1, %v23780_v1  ;;  %15621 = vmatprep.mubr.msk.f32.mxu1 %vm17756_vm1, %v23780_v1  ;;  %v2462_v48 = vld [vmem:[%s17894_s15 + $0x1a0] sm:$0xff] }
 0x1df   : > { %v15283_v58 = vpop.f32.mrf.mxu1  ;;  %v15291_v51 = vpop.f32.mrf.mxu0 }
 0x1e1   : > { %v2046_v38 = vpop.f32.mrf.mxu0  ;;  %15437 = vmatmul.mubr.msk.f32.gmra.mxu0 %vm567_vm2, %v1763_v54  ;;  %v2736_v36 = vpop.f32.mrf.mxu1  ;;  %15622 = vmatmul.mubr.msk.f32.gmra.mxu1 %vm567_vm2, %v2461_v3 }
 0x1e2   : > { %v2352_v4 = vadd.f32 %v2046_v38, %v18368_v12  ;;  %v18991_v5 = vadd.f32 %v2736_v36, %v2350_v22  ;;  %15439 = vmatprep.mubr.msk.f32.mxu0 %vm17756_vm1, %v23780_v1  ;;  %15624 = vmatprep.mubr.msk.f32.mxu1 %vm17756_vm1, %v23780_v1  ;;  %v1765_v38 = vld [vmem:[%s17894_s15 + $0x1a2] sm:$0xff] }
 0x1e3   : > { %v15294_v58 = vpop.f32.mrf.mxu0  ;;  %v15479_v51 = vpop.f32.mrf.mxu1  ;;  %v2463_v36 = vld [vmem:[%s17894_s15 + $0x1a8] sm:$0xff] }
 0x1e5   : > { %v2051_v54 = vpop.f32.mrf.mxu0  ;;  %15440 = vmatmul.mubr.msk.f32.gmra.mxu0 %vm567_vm2, %v1764_v42  ;;  %v2741_v3 = vpop.f32.mrf.mxu1  ;;  %15625 = vmatmul.mubr.msk.f32.gmra.mxu1 %vm567_vm2, %v2462_v48 }
 0x1e6   : > { %v2353_v12 = vadd.f32 %v2051_v54, %v18378_v26  ;;  %v19002_v22 = vadd.f32 %v2741_v3, %v2351_v61  ;;  %15442 = vmatprep.mubr.msk.f32.mxu0 %vm17756_vm1, %v23780_v1  ;;  %15627 = vmatprep.mubr.msk.f32.mxu1 %vm17756_vm1, %v23780_v1  ;;  %v1766_v54 = vld [vmem:[%s17894_s15 + $0x1aa] sm:$0xff] }
 0x1e7   : > { %v15297_v58 = vpop.f32.mrf.mxu0  ;;  %v15482_v51 = vpop.f32.mrf.mxu1  ;;  %v2464_v3 = vld [vmem:[%s17894_s15 + $0x1b0] sm:$0xff] }
 0x1e9   : > { %v2056_v42 = vpop.f32.mrf.mxu0  ;;  %15443 = vmatmul.mubr.msk.f32.gmra.mxu0 %vm567_vm2, %v1765_v38  ;;  %v2746_v48 = vpop.f32.mrf.mxu1  ;;  %15628 = vmatmul.mubr.msk.f32.gmra.mxu1 %vm567_vm2, %v2463_v36 }
 0x1ea   : > { %v2354_v26 = vadd.f32 %v2056_v42, %v18388_v39  ;;  %v19013_v61 = vadd.f32 %v2746_v48, %v2352_v4  ;;  %15445 = vmatprep.mubr.msk.f32.mxu0 %vm17756_vm1, %v23780_v1  ;;  %15630 = vmatprep.mubr.msk.f32.mxu1 %vm17756_vm1, %v23780_v1  ;;  %v1767_v42 = vld [vmem:[%s17894_s15 + $0x1b2] sm:$0xff] }
 0x1eb   : > { %v15300_v58 = vpop.f32.mrf.mxu0  ;;  %v15485_v51 = vpop.f32.mrf.mxu1  ;;  %v2465_v48 = vld [vmem:[%s17894_s15 + $0x1b8] sm:$0xff] }
 0x1ed   : > { %v2061_v38 = vpop.f32.mrf.mxu0  ;;  %15446 = vmatmul.mubr.msk.f32.gmra.mxu0 %vm567_vm2, %v1766_v54  ;;  %v2751_v36 = vpop.f32.mrf.mxu1  ;;  %15631 = vmatmul.mubr.msk.f32.gmra.mxu1 %vm567_vm2, %v2464_v3 }
 0x1ee   : > { %v2355_v39 = vadd.f32 %v2061_v38, %v18398_v46  ;;  %v19024_v4 = vadd.f32 %v2751_v36, %v2353_v12  ;;  %15448 = vmatprep.mubr.msk.f32.mxu0 %vm17756_vm1, %v23780_v1  ;;  %15633 = vmatprep.mubr.msk.f32.mxu1 %vm17756_vm1, %v23780_v1  ;;  %v1768_v38 = vld [vmem:[%s17894_s15 + $0x1ba] sm:$0xff] }
 0x1ef   : > { %v15303_v58 = vpop.f32.mrf.mxu0  ;;  %v15488_v51 = vpop.f32.mrf.mxu1  ;;  %v2466_v36 = vld [vmem:[%s17894_s15 + $0x1c0] sm:$0xff] }
 0x1f1   : > { %v2066_v54 = vpop.f32.mrf.mxu0  ;;  %15449 = vmatmul.mubr.msk.f32.gmra.mxu0 %vm567_vm2, %v1767_v42  ;;  %v2756_v3 = vpop.f32.mrf.mxu1  ;;  %15634 = vmatmul.mubr.msk.f32.gmra.mxu1 %vm567_vm2, %v2465_v48 }
 0x1f2   : > { %v2356_v46 = vadd.f32 %v2066_v54, %v18408_v53  ;;  %v19035_v12 = vadd.f32 %v2756_v3, %v2354_v26  ;;  %15451 = vmatprep.mubr.msk.f32.mxu0 %vm17756_vm1, %v23780_v1  ;;  %15636 = vmatprep.mubr.msk.f32.mxu1 %vm17756_vm1, %v23780_v1  ;;  %v1769_v54 = vld [vmem:[%s17894_s15 + $0x1c2] sm:$0xff] }
 0x1f3   : > { %v15306_v58 = vpop.f32.mrf.mxu0  ;;  %v15491_v51 = vpop.f32.mrf.mxu1  ;;  %v2467_v3 = vld [vmem:[%s17894_s15 + $0x1c8] sm:$0xff] }
 0x1f5   : > { %v2071_v42 = vpop.f32.mrf.mxu0  ;;  %15452 = vmatmul.mubr.msk.f32.gmra.mxu0 %vm567_vm2, %v1768_v38  ;;  %v2761_v48 = vpop.f32.mrf.mxu1  ;;  %15637 = vmatmul.mubr.msk.f32.gmra.mxu1 %vm567_vm2, %v2466_v36 }
 0x1f6   : > { %v2357_v53 = vadd.f32 %v2071_v42, %v18418_v62  ;;  %v19046_v26 = vadd.f32 %v2761_v48, %v2355_v39  ;;  %15454 = vmatprep.mubr.msk.f32.mxu0 %vm17756_vm1, %v23780_v1  ;;  %15639 = vmatprep.mubr.msk.f32.mxu1 %vm17756_vm1, %v23780_v1  ;;  %v1770_v42 = vld [vmem:[%s17894_s15 + $0x1ca] sm:$0xff] }
 0x1f7   : > { %v15309_v58 = vpop.f32.mrf.mxu0  ;;  %v15494_v51 = vpop.f32.mrf.mxu1  ;;  %v2468_v48 = vld [vmem:[%s17894_s15 + $0x1d0] sm:$0xff] }
 0x1f9   : > { %v2076_v38 = vpop.f32.mrf.mxu0  ;;  %15455 = vmatmul.mubr.msk.f32.gmra.mxu0 %vm567_vm2, %v1769_v54  ;;  %v2766_v36 = vpop.f32.mrf.mxu1  ;;  %15640 = vmatmul.mubr.msk.f32.gmra.mxu1 %vm567_vm2, %v2467_v3 }
 0x1fa   : > { %v2358_v62 = vadd.f32 %v2076_v38, %v18428_v7  ;;  %v19057_v39 = vadd.f32 %v2766_v36, %v2356_v46  ;;  %15457 = vmatprep.mubr.msk.f32.mxu0 %vm17756_vm1, %v23780_v1  ;;  %15642 = vmatprep.mubr.msk.f32.mxu1 %vm17756_vm1, %v23780_v1  ;;  %v1771_v38 = vld [vmem:[%s17894_s15 + $0x1d2] sm:$0xff] }
 0x1fb   : > { %v15312_v58 = vpop.f32.mrf.mxu0  ;;  %v15497_v51 = vpop.f32.mrf.mxu1  ;;  %v2469_v36 = vld [vmem:[%s17894_s15 + $0x1d8] sm:$0xff] }
 0x1fd   : > { %v2081_v54 = vpop.f32.mrf.mxu0  ;;  %15458 = vmatmul.mubr.msk.f32.gmra.mxu0 %vm567_vm2, %v1770_v42  ;;  %v2771_v3 = vpop.f32.mrf.mxu1  ;;  %15643 = vmatmul.mubr.msk.f32.gmra.mxu1 %vm567_vm2, %v2468_v48 }
 0x1fe   : > { %v2359_v7 = vadd.f32 %v2081_v54, %v18438_v18  ;;  %v19068_v46 = vadd.f32 %v2771_v3, %v2357_v53  ;;  %15460 = vmatprep.mubr.msk.f32.mxu0 %vm17756_vm1, %v23780_v1  ;;  %15645 = vmatprep.mubr.msk.f32.mxu1 %vm17756_vm1, %v23780_v1  ;;  %v1772_v54 = vld [vmem:[%s17894_s15 + $0x1da] sm:$0xff] }
 0x1ff   : > { %v15315_v58 = vpop.f32.mrf.mxu0  ;;  %v15500_v51 = vpop.f32.mrf.mxu1  ;;  %v2470_v3 = vld [vmem:[%s17894_s15 + $0x1e0] sm:$0xff] }
 0x201   : > { %v2086_v42 = vpop.f32.mrf.mxu0  ;;  %15461 = vmatmul.mubr.msk.f32.gmra.mxu0 %vm567_vm2, %v1771_v38  ;;  %v2776_v48 = vpop.f32.mrf.mxu1  ;;  %15646 = vmatmul.mubr.msk.f32.gmra.mxu1 %vm567_vm2, %v2469_v36 }
 0x202   : > { %v2360_v18 = vadd.f32 %v2086_v42, %v18448_v34  ;;  %v19079_v53 = vadd.f32 %v2776_v48, %v2358_v62  ;;  %15463 = vmatprep.mubr.msk.f32.mxu0 %vm17756_vm1, %v23780_v1  ;;  %15648 = vmatprep.mubr.msk.f32.mxu1 %vm17756_vm1, %v23780_v1  ;;  %v1773_v42 = vld [vmem:[%s17894_s15 + $0x1e2] sm:$0xff] }
 0x203   : > { %v15318_v58 = vpop.f32.mrf.mxu0  ;;  %v15503_v51 = vpop.f32.mrf.mxu1  ;;  %v2471_v48 = vld [vmem:[%s17894_s15 + $0x1e8] sm:$0xff] }
 0x205   : > { %v2091_v38 = vpop.f32.mrf.mxu0  ;;  %15464 = vmatmul.mubr.msk.f32.gmra.mxu0 %vm567_vm2, %v1772_v54  ;;  %v2781_v36 = vpop.f32.mrf.mxu1  ;;  %15649 = vmatmul.mubr.msk.f32.gmra.mxu1 %vm567_vm2, %v2470_v3 }
 0x206   : > { %v2361_v34 = vadd.f32 %v2091_v38, %v18458_v44  ;;  %v19090_v62 = vadd.f32 %v2781_v36, %v2359_v7  ;;  %15466 = vmatprep.mubr.msk.f32.mxu0 %vm17756_vm1, %v23780_v1  ;;  %15651 = vmatprep.mubr.msk.f32.mxu1 %vm17756_vm1, %v23780_v1  ;;  %v1774_v38 = vld [vmem:[%s17894_s15 + $0x1ea] sm:$0xff] }
 0x207   : > { %v15321_v58 = vpop.f32.mrf.mxu0  ;;  %v15506_v51 = vpop.f32.mrf.mxu1  ;;  %v2472_v36 = vld [vmem:[%s17894_s15 + $0x1f0] sm:$0xff] }
 0x209   : > { %v2096_v54 = vpop.f32.mrf.mxu0  ;;  %15467 = vmatmul.mubr.msk.f32.gmra.mxu0 %vm567_vm2, %v1773_v42  ;;  %v2786_v3 = vpop.f32.mrf.mxu1  ;;  %15652 = vmatmul.mubr.msk.f32.gmra.mxu1 %vm567_vm2, %v2471_v48 }
 0x20a   : > { %v2362_v44 = vadd.f32 %v2096_v54, %v18468_v52  ;;  %v19101_v7 = vadd.f32 %v2786_v3, %v2360_v18  ;;  %15469 = vmatprep.mubr.msk.f32.mxu0 %vm17756_vm1, %v23780_v1  ;;  %15654 = vmatprep.mubr.msk.f32.mxu1 %vm17756_vm1, %v23780_v1  ;;  %v1775_v54 = vld [vmem:[%s17894_s15 + $0x1f2] sm:$0xff] }
 0x20b   : > { %v15324_v58 = vpop.f32.mrf.mxu0  ;;  %v15509_v51 = vpop.f32.mrf.mxu1  ;;  %v2473_v3 = vld [vmem:[%s17894_s15 + $0x1f8] sm:$0xff] }
 0x20d   : > { %v2101_v42 = vpop.f32.mrf.mxu0  ;;  %15470 = vmatmul.mubr.msk.f32.gmra.mxu0 %vm567_vm2, %v1774_v38  ;;  %v2791_v48 = vpop.f32.mrf.mxu1  ;;  %15655 = vmatmul.mubr.msk.f32.gmra.mxu1 %vm567_vm2, %v2472_v36 }
 0x20e   : > { %v2363_v52 = vadd.f32 %v2101_v42, %v18481_v0  ;;  %v19112_v18 = vadd.f32 %v2791_v48, %v2361_v34  ;;  %15472 = vmatprep.mubr.msk.f32.mxu0 %vm17756_vm1, %v23780_v1  ;;  %15657 = vmatprep.mubr.msk.f32.mxu1 %vm17756_vm1, %v23780_v1  ;;  %v2474_v42 = vld [vmem:[%s17894_s15 + $0x200] sm:$0xff] }
 0x20f   : > { %v15327_v58 = vpop.f32.mrf.mxu0  ;;  %v15512_v51 = vpop.f32.mrf.mxu1  ;;  %v3113_v48 = vld [vmem:[%s17894_s15 + $0x19] sm:$0xff] }
 0x211   : > { %v2106_v38 = vpop.f32.mrf.mxu0  ;;  %15473 = vmatmul.mubr.msk.f32.gmra.mxu0 %vm567_vm2, %v1775_v54  ;;  %v2796_v36 = vpop.f32.mrf.mxu1  ;;  %15658 = vmatmul.mubr.msk.f32.gmra.mxu1 %vm567_vm2, %v2473_v3  ;;  %v13178_v54 = vld [vmem:[%s23788_s1 + $0x18] sm:$0x7] }
 0x212   : > { %v2364_v0 = vadd.f32 %v2106_v38, %v18493_v10  ;;  %v19123_v34 = vadd.f32 %v2796_v36, %v2362_v44  ;;  %15660 = vmatprep.mubr.msk.f32.mxu1 %vm17756_vm1, %v23780_v1  ;;  %15668 = vmatprep.mubr.msk.f32.mxu0 %vm17756_vm1, %v23780_v1  ;;  %v2475_v36 = vld [vmem:[%s17894_s15 + $0x208] sm:$0xff] }
 0x213   : > { %v15330_v58 = vpop.f32.mrf.mxu0  ;;  %v15515_v51 = vpop.f32.mrf.mxu1 }
 0x214   : > { %23801 = vst [vmem:[#allocation21_spill] sm:$0xff] %v19123_v34  ;;  %v3114_v58 = vld [vmem:[%s17894_s15 + $0x21] sm:$0xff] }
 0x215   : > { %v2111_v3 = vpop.f32.mrf.mxu0  ;;  %v2801_v10 = vpop.f32.mrf.mxu1  ;;  %15661 = vmatmul.mubr.msk.f32.gmra.mxu1 %vm567_vm2, %v2474_v42  ;;  %15669 = vmatmul.mubr.msk.f32.vlgmr.msra.gmra.mxu0 %vm567_vm2, %v3113_v48 }
 0x216   : > { %v2365_v44 = vadd.f32 %v2111_v3, %v18503_v24  ;;  %v19137_v38 = vadd.f32 %v2801_v10, %v2363_v52  ;;  %16049 = vmatpush3.msk.msra.mxu0 %vm757_vm0, %v13178_v54  ;;  %15663 = vmatprep.mubr.msk.f32.mxu1 %vm17756_vm1, %v23780_v1  ;;  %v3813_v54 = vld [vmem:[%s17894_s15 + $0x1a] sm:$0xff] }
 0x217   : > { %v15333_v51 = vpop.f32.mrf.mxu0  ;;  %v15518_v34 = vpop.f32.mrf.mxu1  ;;  %15671 = vmatprep.mubr.msk.f32.mxu0 %vm17756_vm1, %v23780_v1  ;;  %16430 = vmatprep.subr.mxu0 %v23780_v1 }
 0x218   : > { %v3115_v34 = vld [vmem:[%s17894_s15 + $0x29] sm:$0xff] }
 0x219   : > { %v2116_v42 = vpop.f32.mrf.mxu0  ;;  %v2806_v24 = vpop.f32.mrf.mxu1  ;;  %15664 = vmatmul.mubr.msk.f32.gmra.mxu1 %vm567_vm2, %v2475_v36  ;;  %15672 = vmatmul.mubr.msk.f32.gmra.mxu0 %vm567_vm2, %v3114_v58  ;;  %v3116_v58 = vld [vmem:[%s17894_s15 + $0x31] sm:$0xff] }
 0x21a   : > { %v2366_v52 = vadd.f32 %v2116_v42, %v18513_v13  ;;  %v19150_v48 = vadd.f32 %v2806_v24, %v2364_v0  ;;  %15674 = vmatprep.mubr.msk.f32.mxu0 %vm17756_vm1, %v23780_v1  ;;  %15859 = vmatprep.mubr.msk.f32.mxu1 %vm17756_vm1, %v23780_v1  ;;  %v3814_v42 = vld [vmem:[%s17894_s15 + $0x22] sm:$0xff] }
 0x21b   : > { %v15336_v3 = vpop.f32.mrf.mxu0  ;;  %v15521_v10 = vpop.f32.mrf.mxu1 }
 0x21d   : > { %v2121_v51 = vpop.f32.mrf.mxu0  ;;  %v2811_v36 = vpop.f32.mrf.mxu1  ;;  %15675 = vmatmul.mubr.msk.f32.gmra.mxu0 %vm567_vm2, %v3115_v34  ;;  %15860 = vmatmul.mubr.msk.f32.vlgmr.msra.gmra.mxu1 %vm567_vm2, %v3813_v54  ;;  %v3117_v54 = vld [vmem:[%s17894_s15 + $0x39] sm:$0xff] }
 0x21e   : > { %v2367_v13 = vadd.f32 %v2121_v51, %v18523_v15  ;;  %v19161_v0 = vadd.f32 %v2811_v36, %v2365_v44  ;;  %15677 = vmatprep.mubr.msk.f32.mxu0 %vm17756_vm1, %v23780_v1  ;;  %15862 = vmatprep.mubr.msk.f32.mxu1 %vm17756_vm1, %v23780_v1  ;;  %v3815_v51 = vld [vmem:[%s17894_s15 + $0x2a] sm:$0xff] }
 0x21f   : > { %v15339_v24 = vpop.f32.mrf.mxu0  ;;  %v15524_v3 = vpop.f32.mrf.mxu1 }
 0x221   : > { %v2126_v10 = vpop.f32.mrf.mxu0  ;;  %v2816_v34 = vpop.f32.mrf.mxu1  ;;  %15678 = vmatmul.mubr.msk.f32.gmra.mxu0 %vm567_vm2, %v3116_v58  ;;  %15863 = vmatmul.mubr.msk.f32.gmra.mxu1 %vm567_vm2, %v3814_v42  ;;  %v3118_v42 = vld [vmem:[%s17894_s15 + $0x41] sm:$0xff] }
 0x222   : > { %v2368_v15 = vadd.f32 %v2126_v10, %v18533_v17  ;;  %v19172_v44 = vadd.f32 %v2816_v34, %v2366_v52  ;;  %15680 = vmatprep.mubr.msk.f32.mxu0 %vm17756_vm1, %v23780_v1  ;;  %15865 = vmatprep.mubr.msk.f32.mxu1 %vm17756_vm1, %v23780_v1  ;;  %v3816_v10 = vld [vmem:[%s17894_s15 + $0x32] sm:$0xff] }
 0x223   : > { %v15342_v36 = vpop.f32.mrf.mxu0  ;;  %v15527_v24 = vpop.f32.mrf.mxu1 }
 0x225   : > { %v2131_v3 = vpop.f32.mrf.mxu0  ;;  %v2821_v58 = vpop.f32.mrf.mxu1  ;;  %15681 = vmatmul.mubr.msk.f32.gmra.mxu0 %vm567_vm2, %v3117_v54  ;;  %15866 = vmatmul.mubr.msk.f32.gmra.mxu1 %vm567_vm2, %v3815_v51  ;;  %v3119_v51 = vld [vmem:[%s17894_s15 + $0x49] sm:$0xff] }
 0x226   : > { %v2369_v17 = vadd.f32 %v2131_v3, %v18543_v19  ;;  %v19183_v52 = vadd.f32 %v2821_v58, %v2367_v13  ;;  %15683 = vmatprep.mubr.msk.f32.mxu0 %vm17756_vm1, %v23780_v1  ;;  %15868 = vmatprep.mubr.msk.f32.mxu1 %vm17756_vm1, %v23780_v1  ;;  %v3817_v3 = vld [vmem:[%s17894_s15 + $0x3a] sm:$0xff] }
 0x227   : > { %v15345_v34 = vpop.f32.mrf.mxu0  ;;  %v15530_v36 = vpop.f32.mrf.mxu1 }
 0x229   : > { %v2136_v24 = vpop.f32.mrf.mxu0  ;;  %v2826_v54 = vpop.f32.mrf.mxu1  ;;  %15684 = vmatmul.mubr.msk.f32.gmra.mxu0 %vm567_vm2, %v3118_v42  ;;  %15869 = vmatmul.mubr.msk.f32.gmra.mxu1 %vm567_vm2, %v3816_v10  ;;  %v3120_v10 = vld [vmem:[%s17894_s15 + $0x51] sm:$0xff] }
 0x22a   : > { %v2370_v19 = vadd.f32 %v2136_v24, %v18553_v21  ;;  %v19194_v13 = vadd.f32 %v2826_v54, %v2368_v15  ;;  %15686 = vmatprep.mubr.msk.f32.mxu0 %vm17756_vm1, %v23780_v1  ;;  %15871 = vmatprep.mubr.msk.f32.mxu1 %vm17756_vm1, %v23780_v1  ;;  %v3818_v24 = vld [vmem:[%s17894_s15 + $0x42] sm:$0xff] }
 0x22b   : > { %v15348_v58 = vpop.f32.mrf.mxu0  ;;  %v15533_v34 = vpop.f32.mrf.mxu1 }
 0x22d   : > { %v2141_v36 = vpop.f32.mrf.mxu0  ;;  %v2831_v42 = vpop.f32.mrf.mxu1  ;;  %15687 = vmatmul.mubr.msk.f32.gmra.mxu0 %vm567_vm2, %v3119_v51  ;;  %15872 = vmatmul.mubr.msk.f32.gmra.mxu1 %vm567_vm2, %v3817_v3  ;;  %v3121_v3 = vld [vmem:[%s17894_s15 + $0x59] sm:$0xff] }
 0x22e   : > { %v2371_v21 = vadd.f32 %v2141_v36, %v18563_v23  ;;  %v19205_v15 = vadd.f32 %v2831_v42, %v2369_v17  ;;  %15689 = vmatprep.mubr.msk.f32.mxu0 %vm17756_vm1, %v23780_v1  ;;  %15874 = vmatprep.mubr.msk.f32.mxu1 %vm17756_vm1, %v23780_v1  ;;  %v3819_v36 = vld [vmem:[%s17894_s15 + $0x4a] sm:$0xff] }
 0x22f   : > { %v15351_v54 = vpop.f32.mrf.mxu0  ;;  %v15536_v58 = vpop.f32.mrf.mxu1 }
 0x231   : > { %v2146_v34 = vpop.f32.mrf.mxu0  ;;  %v2836_v51 = vpop.f32.mrf.mxu1  ;;  %15690 = vmatmul.mubr.msk.f32.gmra.mxu0 %vm567_vm2, %v3120_v10  ;;  %15875 = vmatmul.mubr.msk.f32.gmra.mxu1 %vm567_vm2, %v3818_v24  ;;  %v3122_v24 = vld [vmem:[%s17894_s15 + $0x61] sm:$0xff] }
 0x232   : > { %v2372_v23 = vadd.f32 %v2146_v34, %v18573_v25  ;;  %v19216_v17 = vadd.f32 %v2836_v51, %v2370_v19  ;;  %15692 = vmatprep.mubr.msk.f32.mxu0 %vm17756_vm1, %v23780_v1  ;;  %15877 = vmatprep.mubr.msk.f32.mxu1 %vm17756_vm1, %v23780_v1  ;;  %v3820_v34 = vld [vmem:[%s17894_s15 + $0x52] sm:$0xff] }
 0x233   : > { %v15354_v42 = vpop.f32.mrf.mxu0  ;;  %v15539_v54 = vpop.f32.mrf.mxu1 }
 0x235   : > { %v2151_v58 = vpop.f32.mrf.mxu0  ;;  %v2841_v10 = vpop.f32.mrf.mxu1  ;;  %15693 = vmatmul.mubr.msk.f32.gmra.mxu0 %vm567_vm2, %v3121_v3  ;;  %15878 = vmatmul.mubr.msk.f32.gmra.mxu1 %vm567_vm2, %v3819_v36  ;;  %v3123_v36 = vld [vmem:[%s17894_s15 + $0x69] sm:$0xff] }
 0x236   : > { %v2373_v25 = vadd.f32 %v2151_v58, %v18583_v27  ;;  %v19227_v19 = vadd.f32 %v2841_v10, %v2371_v21  ;;  %15695 = vmatprep.mubr.msk.f32.mxu0 %vm17756_vm1, %v23780_v1  ;;  %15880 = vmatprep.mubr.msk.f32.mxu1 %vm17756_vm1, %v23780_v1  ;;  %v3821_v58 = vld [vmem:[%s17894_s15 + $0x5a] sm:$0xff] }
 0x237   : > { %v15357_v51 = vpop.f32.mrf.mxu0  ;;  %v15542_v42 = vpop.f32.mrf.mxu1 }
 0x239   : > { %v2156_v54 = vpop.f32.mrf.mxu0  ;;  %v2846_v3 = vpop.f32.mrf.mxu1  ;;  %15696 = vmatmul.mubr.msk.f32.gmra.mxu0 %vm567_vm2, %v3122_v24  ;;  %15881 = vmatmul.mubr.msk.f32.gmra.mxu1 %vm567_vm2, %v3820_v34  ;;  %v3124_v34 = vld [vmem:[%s17894_s15 + $0x71] sm:$0xff] }
 0x23a   : > { %v2374_v27 = vadd.f32 %v2156_v54, %v18593_v29  ;;  %v19238_v21 = vadd.f32 %v2846_v3, %v2372_v23  ;;  %15698 = vmatprep.mubr.msk.f32.mxu0 %vm17756_vm1, %v23780_v1  ;;  %15883 = vmatprep.mubr.msk.f32.mxu1 %vm17756_vm1, %v23780_v1  ;;  %v3822_v54 = vld [vmem:[%s17894_s15 + $0x62] sm:$0xff] }
 0x23b   : > { %v15360_v10 = vpop.f32.mrf.mxu0  ;;  %v15545_v51 = vpop.f32.mrf.mxu1 }
 0x23d   : > { %v2161_v42 = vpop.f32.mrf.mxu0  ;;  %v2851_v24 = vpop.f32.mrf.mxu1  ;;  %15699 = vmatmul.mubr.msk.f32.gmra.mxu0 %vm567_vm2, %v3123_v36  ;;  %15884 = vmatmul.mubr.msk.f32.gmra.mxu1 %vm567_vm2, %v3821_v58  ;;  %v3125_v58 = vld [vmem:[%s17894_s15 + $0x79] sm:$0xff] }
 0x23e   : > { %v2375_v29 = vadd.f32 %v2161_v42, %v18603_v31  ;;  %v19249_v23 = vadd.f32 %v2851_v24, %v2373_v25  ;;  %15701 = vmatprep.mubr.msk.f32.mxu0 %vm17756_vm1, %v23780_v1  ;;  %15886 = vmatprep.mubr.msk.f32.mxu1 %vm17756_vm1, %v23780_v1  ;;  %v3823_v42 = vld [vmem:[%s17894_s15 + $0x6a] sm:$0xff] }
 0x23f   : > { %v15363_v3 = vpop.f32.mrf.mxu0  ;;  %v15548_v10 = vpop.f32.mrf.mxu1 }
 0x241   : > { %v2166_v51 = vpop.f32.mrf.mxu0  ;;  %v2856_v36 = vpop.f32.mrf.mxu1  ;;  %15702 = vmatmul.mubr.msk.f32.gmra.mxu0 %vm567_vm2, %v3124_v34  ;;  %15887 = vmatmul.mubr.msk.f32.gmra.mxu1 %vm567_vm2, %v3822_v54  ;;  %v3126_v54 = vld [vmem:[%s17894_s15 + $0x81] sm:$0xff] }
 0x242   : > { %v2376_v31 = vadd.f32 %v2166_v51, %v18613_v33  ;;  %v19260_v25 = vadd.f32 %v2856_v36, %v2374_v27  ;;  %15704 = vmatprep.mubr.msk.f32.mxu0 %vm17756_vm1, %v23780_v1  ;;  %15889 = vmatprep.mubr.msk.f32.mxu1 %vm17756_vm1, %v23780_v1  ;;  %v3824_v51 = vld [vmem:[%s17894_s15 + $0x72] sm:$0xff] }
 0x243   : > { %v15366_v24 = vpop.f32.mrf.mxu0  ;;  %v15551_v3 = vpop.f32.mrf.mxu1 }
 0x245   : > { %v2171_v10 = vpop.f32.mrf.mxu0  ;;  %v2861_v34 = vpop.f32.mrf.mxu1  ;;  %15705 = vmatmul.mubr.msk.f32.gmra.mxu0 %vm567_vm2, %v3125_v58  ;;  %15890 = vmatmul.mubr.msk.f32.gmra.mxu1 %vm567_vm2, %v3823_v42  ;;  %v3127_v42 = vld [vmem:[%s17894_s15 + $0x89] sm:$0xff] }
 0x246   : > { %v2377_v33 = vadd.f32 %v2171_v10, %v18623_v35  ;;  %v19271_v27 = vadd.f32 %v2861_v34, %v2375_v29  ;;  %15707 = vmatprep.mubr.msk.f32.mxu0 %vm17756_vm1, %v23780_v1  ;;  %15892 = vmatprep.mubr.msk.f32.mxu1 %vm17756_vm1, %v23780_v1  ;;  %v3825_v10 = vld [vmem:[%s17894_s15 + $0x7a] sm:$0xff] }
 0x247   : > { %v15369_v36 = vpop.f32.mrf.mxu0  ;;  %v15554_v24 = vpop.f32.mrf.mxu1 }
 0x249   : > { %v2176_v3 = vpop.f32.mrf.mxu0  ;;  %v2866_v58 = vpop.f32.mrf.mxu1  ;;  %15708 = vmatmul.mubr.msk.f32.gmra.mxu0 %vm567_vm2, %v3126_v54  ;;  %15893 = vmatmul.mubr.msk.f32.gmra.mxu1 %vm567_vm2, %v3824_v51  ;;  %v3128_v51 = vld [vmem:[%s17894_s15 + $0x91] sm:$0xff] }
 0x24a   : > { %v2378_v35 = vadd.f32 %v2176_v3, %v18633_v37  ;;  %v19282_v29 = vadd.f32 %v2866_v58, %v2376_v31  ;;  %15710 = vmatprep.mubr.msk.f32.mxu0 %vm17756_vm1, %v23780_v1  ;;  %15895 = vmatprep.mubr.msk.f32.mxu1 %vm17756_vm1, %v23780_v1  ;;  %v3826_v3 = vld [vmem:[%s17894_s15 + $0x82] sm:$0xff] }
 0x24b   : > { %v15372_v34 = vpop.f32.mrf.mxu0  ;;  %v15557_v36 = vpop.f32.mrf.mxu1 }
 0x24d   : > { %v2181_v24 = vpop.f32.mrf.mxu0  ;;  %v2871_v54 = vpop.f32.mrf.mxu1  ;;  %15711 = vmatmul.mubr.msk.f32.gmra.mxu0 %vm567_vm2, %v3127_v42  ;;  %15896 = vmatmul.mubr.msk.f32.gmra.mxu1 %vm567_vm2, %v3825_v10  ;;  %v3129_v10 = vld [vmem:[%s17894_s15 + $0x99] sm:$0xff] }
 0x24e   : > { %v2379_v37 = vadd.f32 %v2181_v24, %v18643_v41  ;;  %v19293_v31 = vadd.f32 %v2871_v54, %v2377_v33  ;;  %15713 = vmatprep.mubr.msk.f32.mxu0 %vm17756_vm1, %v23780_v1  ;;  %15898 = vmatprep.mubr.msk.f32.mxu1 %vm17756_vm1, %v23780_v1  ;;  %v3827_v24 = vld [vmem:[%s17894_s15 + $0x8a] sm:$0xff] }
 0x24f   : > { %v15375_v58 = vpop.f32.mrf.mxu0  ;;  %v15560_v34 = vpop.f32.mrf.mxu1 }
 0x251   : > { %v2186_v36 = vpop.f32.mrf.mxu0  ;;  %v2876_v42 = vpop.f32.mrf.mxu1  ;;  %15714 = vmatmul.mubr.msk.f32.gmra.mxu0 %vm567_vm2, %v3128_v51  ;;  %15899 = vmatmul.mubr.msk.f32.gmra.mxu1 %vm567_vm2, %v3826_v3  ;;  %v3130_v3 = vld [vmem:[%s17894_s15 + $0xa1] sm:$0xff] }
 0x252   : > { %v2380_v41 = vadd.f32 %v2186_v36, %v18653_v50  ;;  %v19304_v33 = vadd.f32 %v2876_v42, %v2378_v35  ;;  %15716 = vmatprep.mubr.msk.f32.mxu0 %vm17756_vm1, %v23780_v1  ;;  %15901 = vmatprep.mubr.msk.f32.mxu1 %vm17756_vm1, %v23780_v1  ;;  %v3828_v36 = vld [vmem:[%s17894_s15 + $0x92] sm:$0xff] }
 0x253   : > { %v15378_v54 = vpop.f32.mrf.mxu0  ;;  %v15563_v58 = vpop.f32.mrf.mxu1 }
 0x255   : > { %v2191_v34 = vpop.f32.mrf.mxu0  ;;  %v2881_v51 = vpop.f32.mrf.mxu1  ;;  %15717 = vmatmul.mubr.msk.f32.gmra.mxu0 %vm567_vm2, %v3129_v10  ;;  %15902 = vmatmul.mubr.msk.f32.gmra.mxu1 %vm567_vm2, %v3827_v24  ;;  %v3131_v24 = vld [vmem:[%s17894_s15 + $0xa9] sm:$0xff] }
 0x256   : > { %v2381_v50 = vadd.f32 %v2191_v34, %v18663_v60  ;;  %v19315_v35 = vadd.f32 %v2881_v51, %v2379_v37  ;;  %15719 = vmatprep.mubr.msk.f32.mxu0 %vm17756_vm1, %v23780_v1  ;;  %15904 = vmatprep.mubr.msk.f32.mxu1 %vm17756_vm1, %v23780_v1  ;;  %v3829_v34 = vld [vmem:[%s17894_s15 + $0x9a] sm:$0xff] }
 0x257   : > { %v15381_v42 = vpop.f32.mrf.mxu0  ;;  %v15566_v54 = vpop.f32.mrf.mxu1 }
 0x259   : > { %v2196_v58 = vpop.f32.mrf.mxu0  ;;  %v2886_v10 = vpop.f32.mrf.mxu1  ;;  %15720 = vmatmul.mubr.msk.f32.gmra.mxu0 %vm567_vm2, %v3130_v3  ;;  %15905 = vmatmul.mubr.msk.f32.gmra.mxu1 %vm567_vm2, %v3828_v36  ;;  %v3132_v36 = vld [vmem:[%s17894_s15 + $0xb1] sm:$0xff] }
 0x25a   : > { %v2382_v60 = vadd.f32 %v2196_v58, %v18673_v9  ;;  %v19326_v37 = vadd.f32 %v2886_v10, %v2380_v41  ;;  %15722 = vmatprep.mubr.msk.f32.mxu0 %vm17756_vm1, %v23780_v1  ;;  %15907 = vmatprep.mubr.msk.f32.mxu1 %vm17756_vm1, %v23780_v1  ;;  %v3830_v58 = vld [vmem:[%s17894_s15 + $0xa2] sm:$0xff] }
 0x25b   : > { %v15384_v51 = vpop.f32.mrf.mxu0  ;;  %v15569_v42 = vpop.f32.mrf.mxu1 }
 0x25d   : > { %v2201_v54 = vpop.f32.mrf.mxu0  ;;  %v2891_v3 = vpop.f32.mrf.mxu1  ;;  %15723 = vmatmul.mubr.msk.f32.gmra.mxu0 %vm567_vm2, %v3131_v24  ;;  %15908 = vmatmul.mubr.msk.f32.gmra.mxu1 %vm567_vm2, %v3829_v34  ;;  %v3133_v34 = vld [vmem:[%s17894_s15 + $0xb9] sm:$0xff] }
 0x25e   : > { %v2383_v9 = vadd.f32 %v2201_v54, %v18683_v30  ;;  %v19337_v41 = vadd.f32 %v2891_v3, %v2381_v50  ;;  %15725 = vmatprep.mubr.msk.f32.mxu0 %vm17756_vm1, %v23780_v1  ;;  %15910 = vmatprep.mubr.msk.f32.mxu1 %vm17756_vm1, %v23780_v1  ;;  %v3831_v54 = vld [vmem:[%s17894_s15 + $0xaa] sm:$0xff] }
 0x25f   : > { %v15387_v10 = vpop.f32.mrf.mxu0  ;;  %v15572_v51 = vpop.f32.mrf.mxu1 }
 0x261   : > { %v2206_v42 = vpop.f32.mrf.mxu0  ;;  %v2896_v24 = vpop.f32.mrf.mxu1  ;;  %15726 = vmatmul.mubr.msk.f32.gmra.mxu0 %vm567_vm2, %v3132_v36  ;;  %15911 = vmatmul.mubr.msk.f32.gmra.mxu1 %vm567_vm2, %v3830_v58  ;;  %v3134_v58 = vld [vmem:[%s17894_s15 + $0xc1] sm:$0xff] }
 0x262   : > { %v2384_v30 = vadd.f32 %v2206_v42, %v18693_v45  ;;  %v19348_v50 = vadd.f32 %v2896_v24, %v2382_v60  ;;  %15728 = vmatprep.mubr.msk.f32.mxu0 %vm17756_vm1, %v23780_v1  ;;  %15913 = vmatprep.mubr.msk.f32.mxu1 %vm17756_vm1, %v23780_v1  ;;  %v3832_v42 = vld [vmem:[%s17894_s15 + $0xb2] sm:$0xff] }
 0x263   : > { %v15390_v3 = vpop.f32.mrf.mxu0  ;;  %v15575_v10 = vpop.f32.mrf.mxu1 }
 0x265   : > { %v2211_v51 = vpop.f32.mrf.mxu0  ;;  %v2901_v36 = vpop.f32.mrf.mxu1  ;;  %15729 = vmatmul.mubr.msk.f32.gmra.mxu0 %vm567_vm2, %v3133_v34  ;;  %15914 = vmatmul.mubr.msk.f32.gmra.mxu1 %vm567_vm2, %v3831_v54  ;;  %v3135_v54 = vld [vmem:[%s17894_s15 + $0xc9] sm:$0xff] }
 0x266   : > { %v2385_v45 = vadd.f32 %v2211_v51, %v18703_v57  ;;  %v19359_v60 = vadd.f32 %v2901_v36, %v2383_v9  ;;  %15731 = vmatprep.mubr.msk.f32.mxu0 %vm17756_vm1, %v23780_v1  ;;  %15916 = vmatprep.mubr.msk.f32.mxu1 %vm17756_vm1, %v23780_v1  ;;  %v3833_v51 = vld [vmem:[%s17894_s15 + $0xba] sm:$0xff] }
 0x267   : > { %v15393_v24 = vpop.f32.mrf.mxu0  ;;  %v15578_v3 = vpop.f32.mrf.mxu1 }
 0x269   : > { %v2216_v10 = vpop.f32.mrf.mxu0  ;;  %v2906_v34 = vpop.f32.mrf.mxu1  ;;  %15732 = vmatmul.mubr.msk.f32.gmra.mxu0 %vm567_vm2, %v3134_v58  ;;  %15917 = vmatmul.mubr.msk.f32.gmra.mxu1 %vm567_vm2, %v3832_v42  ;;  %v3136_v42 = vld [vmem:[%s17894_s15 + $0xd1] sm:$0xff] }
 0x26a   : > { %v2386_v57 = vadd.f32 %v2216_v10, %v18713_v6  ;;  %v19370_v9 = vadd.f32 %v2906_v34, %v2384_v30  ;;  %15734 = vmatprep.mubr.msk.f32.mxu0 %vm17756_vm1, %v23780_v1  ;;  %15919 = vmatprep.mubr.msk.f32.mxu1 %vm17756_vm1, %v23780_v1  ;;  %v3834_v10 = vld [vmem:[%s17894_s15 + $0xc2] sm:$0xff] }
 0x26b   : > { %v15396_v36 = vpop.f32.mrf.mxu0  ;;  %v15581_v24 = vpop.f32.mrf.mxu1 }
 0x26d   : > { %v2221_v3 = vpop.f32.mrf.mxu0  ;;  %v2911_v58 = vpop.f32.mrf.mxu1  ;;  %15735 = vmatmul.mubr.msk.f32.gmra.mxu0 %vm567_vm2, %v3135_v54  ;;  %15920 = vmatmul.mubr.msk.f32.gmra.mxu1 %vm567_vm2, %v3833_v51  ;;  %v3137_v51 = vld [vmem:[%s17894_s15 + $0xd9] sm:$0xff] }
 0x26e   : > { %v2387_v6 = vadd.f32 %v2221_v3, %v18723_v28  ;;  %v19381_v30 = vadd.f32 %v2911_v58, %v2385_v45  ;;  %15737 = vmatprep.mubr.msk.f32.mxu0 %vm17756_vm1, %v23780_v1  ;;  %15922 = vmatprep.mubr.msk.f32.mxu1 %vm17756_vm1, %v23780_v1  ;;  %v3835_v3 = vld [vmem:[%s17894_s15 + $0xca] sm:$0xff] }
 0x26f   : > { %v15399_v34 = vpop.f32.mrf.mxu0  ;;  %v15584_v36 = vpop.f32.mrf.mxu1 }
 0x271   : > { %v2226_v24 = vpop.f32.mrf.mxu0  ;;  %v2916_v54 = vpop.f32.mrf.mxu1  ;;  %15738 = vmatmul.mubr.msk.f32.gmra.mxu0 %vm567_vm2, %v3136_v42  ;;  %15923 = vmatmul.mubr.msk.f32.gmra.mxu1 %vm567_vm2, %v3834_v10  ;;  %v3138_v10 = vld [vmem:[%s17894_s15 + $0xe1] sm:$0xff] }
 0x272   : > { %v2388_v28 = vadd.f32 %v2226_v24, %v18733_v47  ;;  %v19392_v45 = vadd.f32 %v2916_v54, %v2386_v57  ;;  %15740 = vmatprep.mubr.msk.f32.mxu0 %vm17756_vm1, %v23780_v1  ;;  %15925 = vmatprep.mubr.msk.f32.mxu1 %vm17756_vm1, %v23780_v1  ;;  %v3836_v24 = vld [vmem:[%s17894_s15 + $0xd2] sm:$0xff] }
 0x273   : > { %v15402_v58 = vpop.f32.mrf.mxu0  ;;  %v15587_v34 = vpop.f32.mrf.mxu1 }
 0x275   : > { %v2231_v36 = vpop.f32.mrf.mxu0  ;;  %v2921_v42 = vpop.f32.mrf.mxu1  ;;  %15741 = vmatmul.mubr.msk.f32.gmra.mxu0 %vm567_vm2, %v3137_v51  ;;  %15926 = vmatmul.mubr.msk.f32.gmra.mxu1 %vm567_vm2, %v3835_v3  ;;  %v3139_v3 = vld [vmem:[%s17894_s15 + $0xe9] sm:$0xff] }
 0x276   : > { %v2389_v47 = vadd.f32 %v2231_v36, %v18743_v59  ;;  %v19403_v57 = vadd.f32 %v2921_v42, %v2387_v6  ;;  %15743 = vmatprep.mubr.msk.f32.mxu0 %vm17756_vm1, %v23780_v1  ;;  %15928 = vmatprep.mubr.msk.f32.mxu1 %vm17756_vm1, %v23780_v1  ;;  %v3837_v36 = vld [vmem:[%s17894_s15 + $0xda] sm:$0xff] }
 0x277   : > { %v15405_v54 = vpop.f32.mrf.mxu0  ;;  %v15590_v58 = vpop.f32.mrf.mxu1 }
 0x279   : > { %v2236_v34 = vpop.f32.mrf.mxu0  ;;  %v2926_v51 = vpop.f32.mrf.mxu1  ;;  %15744 = vmatmul.mubr.msk.f32.gmra.mxu0 %vm567_vm2, %v3138_v10  ;;  %15929 = vmatmul.mubr.msk.f32.gmra.mxu1 %vm567_vm2, %v3836_v24  ;;  %v3140_v24 = vld [vmem:[%s17894_s15 + $0xf1] sm:$0xff] }
 0x27a   : > { %v2390_v59 = vadd.f32 %v2236_v34, %v18753_v14  ;;  %v19414_v6 = vadd.f32 %v2926_v51, %v2388_v28  ;;  %15746 = vmatprep.mubr.msk.f32.mxu0 %vm17756_vm1, %v23780_v1  ;;  %15931 = vmatprep.mubr.msk.f32.mxu1 %vm17756_vm1, %v23780_v1  ;;  %v3838_v34 = vld [vmem:[%s17894_s15 + $0xe2] sm:$0xff] }
 0x27b   : > { %v15408_v42 = vpop.f32.mrf.mxu0  ;;  %v15593_v54 = vpop.f32.mrf.mxu1 }
 0x27d   : > { %v2241_v58 = vpop.f32.mrf.mxu0  ;;  %v2931_v10 = vpop.f32.mrf.mxu1  ;;  %15747 = vmatmul.mubr.msk.f32.gmra.mxu0 %vm567_vm2, %v3139_v3  ;;  %15932 = vmatmul.mubr.msk.f32.gmra.mxu1 %vm567_vm2, %v3837_v36  ;;  %v3141_v36 = vld [vmem:[%s17894_s15 + $0xf9] sm:$0xff] }
 0x27e   : > { %v2391_v14 = vadd.f32 %v2241_v58, %v18763_v40  ;;  %v19425_v28 = vadd.f32 %v2931_v10, %v2389_v47  ;;  %15749 = vmatprep.mubr.msk.f32.mxu0 %vm17756_vm1, %v23780_v1  ;;  %15934 = vmatprep.mubr.msk.f32.mxu1 %vm17756_vm1, %v23780_v1  ;;  %v3839_v58 = vld [vmem:[%s17894_s15 + $0xea] sm:$0xff] }
 0x27f   : > { %v15411_v51 = vpop.f32.mrf.mxu0  ;;  %v15596_v42 = vpop.f32.mrf.mxu1 }
 0x281   : > { %v2246_v54 = vpop.f32.mrf.mxu0  ;;  %v2936_v3 = vpop.f32.mrf.mxu1  ;;  %15750 = vmatmul.mubr.msk.f32.gmra.mxu0 %vm567_vm2, %v3140_v24  ;;  %15935 = vmatmul.mubr.msk.f32.gmra.mxu1 %vm567_vm2, %v3838_v34  ;;  %v3142_v34 = vld [vmem:[%s17894_s15 + $0x101] sm:$0xff] }
 0x282   : > { %v2392_v40 = vadd.f32 %v2246_v54, %v18773_v56  ;;  %v19436_v47 = vadd.f32 %v2936_v3, %v2390_v59  ;;  %15752 = vmatprep.mubr.msk.f32.mxu0 %vm17756_vm1, %v23780_v1  ;;  %15937 = vmatprep.mubr.msk.f32.mxu1 %vm17756_vm1, %v23780_v1  ;;  %v3840_v54 = vld [vmem:[%s17894_s15 + $0xf2] sm:$0xff] }
 0x283   : > { %v15414_v10 = vpop.f32.mrf.mxu0  ;;  %v15599_v51 = vpop.f32.mrf.mxu1 }
 0x285   : > { %v2251_v42 = vpop.f32.mrf.mxu0  ;;  %v2941_v24 = vpop.f32.mrf.mxu1  ;;  %15753 = vmatmul.mubr.msk.f32.gmra.mxu0 %vm567_vm2, %v3141_v36  ;;  %15938 = vmatmul.mubr.msk.f32.gmra.mxu1 %vm567_vm2, %v3839_v58  ;;  %v3143_v58 = vld [vmem:[%s17894_s15 + $0x109] sm:$0xff] }
 0x286   : > { %v2393_v56 = vadd.f32 %v2251_v42, %v18783_v11  ;;  %v19447_v59 = vadd.f32 %v2941_v24, %v2391_v14  ;;  %15755 = vmatprep.mubr.msk.f32.mxu0 %vm17756_vm1, %v23780_v1  ;;  %15940 = vmatprep.mubr.msk.f32.mxu1 %vm17756_vm1, %v23780_v1  ;;  %v3841_v42 = vld [vmem:[%s17894_s15 + $0xfa] sm:$0xff] }
 0x287   : > { %v15417_v3 = vpop.f32.mrf.mxu0  ;;  %v15602_v10 = vpop.f32.mrf.mxu1 }
 0x289   : > { %v2256_v51 = vpop.f32.mrf.mxu0  ;;  %v2946_v36 = vpop.f32.mrf.mxu1  ;;  %15756 = vmatmul.mubr.msk.f32.gmra.mxu0 %vm567_vm2, %v3142_v34  ;;  %15941 = vmatmul.mubr.msk.f32.gmra.mxu1 %vm567_vm2, %v3840_v54  ;;  %v3144_v54 = vld [vmem:[%s17894_s15 + $0x111] sm:$0xff] }
 0x28a   : > { %v2394_v11 = vadd.f32 %v2256_v51, %v18797_v43  ;;  %v19458_v14 = vadd.f32 %v2946_v36, %v2392_v40  ;;  %15758 = vmatprep.mubr.msk.f32.mxu0 %vm17756_vm1, %v23780_v1  ;;  %15943 = vmatprep.mubr.msk.f32.mxu1 %vm17756_vm1, %v23780_v1  ;;  %v3842_v51 = vld [vmem:[%s17894_s15 + $0x102] sm:$0xff] }
 0x28b   : > { %v15420_v24 = vpop.f32.mrf.mxu0  ;;  %v15605_v3 = vpop.f32.mrf.mxu1 }
 0x28d   : > { %v2261_v10 = vpop.f32.mrf.mxu0  ;;  %v2951_v34 = vpop.f32.mrf.mxu1  ;;  %15759 = vmatmul.mubr.msk.f32.gmra.mxu0 %vm567_vm2, %v3143_v58  ;;  %15944 = vmatmul.mubr.msk.f32.gmra.mxu1 %vm567_vm2, %v3841_v42  ;;  %v13243_v58 = vld [vmem:[%s23788_s1 + $0x1c] sm:$0x7] }
 0x28e   : > { %v2395_v43 = vadd.f32 %v2261_v10, %v18808_v2  ;;  %v19469_v40 = vadd.f32 %v2951_v34, %v2393_v56  ;;  %15761 = vmatprep.mubr.msk.f32.mxu0 %vm17756_vm1, %v23780_v1  ;;  %15946 = vmatprep.mubr.msk.f32.mxu1 %vm17756_vm1, %v23780_v1  ;;  %v3145_v10 = vld [vmem:[%s17894_s15 + $0x119] sm:$0xff]  ;;  %v3843_v34 = vld [vmem:[%s17894_s15 + $0x10a] sm:$0xff] }
 0x28f   : > { %v15423_v36 = vpop.f32.mrf.mxu0  ;;  %v15608_v24 = vpop.f32.mrf.mxu1  ;;  %16240 = vmatpush3.msk.msra.mxu1 %vm757_vm0, %v13243_v58 }
 0x291   : > { %v2266_v2 = vpop.f32.mrf.mxu0  ;;  %v2956_v56 = vpop.f32.mrf.mxu1  ;;  %15762 = vmatmul.mubr.msk.f32.gmra.mxu0 %vm567_vm2, %v3144_v54  ;;  %15947 = vmatmul.mubr.msk.f32.gmra.mxu1 %vm567_vm2, %v3842_v51  ;;  %v3146_v51 = vld [vmem:[%s17894_s15 + $0x121] sm:$0xff] }
 0x292   : > { %v2396_v42 = vadd.f32 %v2266_v2, %v18818_v32  ;;  %v19484_v3 = vadd.f32 %v2956_v56, %v2394_v11  ;;  %15764 = vmatprep.mubr.msk.f32.mxu0 %vm17756_vm1, %v23780_v1  ;;  %15949 = vmatprep.mubr.msk.f32.mxu1 %vm17756_vm1, %v23780_v1  ;;  %v3844_v2 = vld [vmem:[%s17894_s15 + $0x112] sm:$0xff] }
 0x293   : > { %v15426_v36 = vpop.f32.mrf.mxu0  ;;  %v15611_v24 = vpop.f32.mrf.mxu1 }
 0x295   : > { %v2271_v58 = vpop.f32.mrf.mxu0  ;;  %v2961_v54 = vpop.f32.mrf.mxu1  ;;  %15765 = vmatmul.mubr.msk.f32.gmra.mxu0 %vm567_vm2, %v3145_v10  ;;  %15950 = vmatmul.mubr.msk.f32.gmra.mxu1 %vm567_vm2, %v3843_v34  ;;  %v3147_v34 = vld [vmem:[%s17894_s15 + $0x129] sm:$0xff] }
 0x296   : > { %v2397_v32 = vadd.f32 %v2271_v58, %v18828_v55  ;;  %v19495_v11 = vadd.f32 %v2961_v54, %v2395_v43  ;;  %15767 = vmatprep.mubr.msk.f32.mxu0 %vm17756_vm1, %v23780_v1  ;;  %15952 = vmatprep.mubr.msk.f32.mxu1 %vm17756_vm1, %v23780_v1  ;;  %v3845_v58 = vld [vmem:[%s17894_s15 + $0x11a] sm:$0xff] }
 0x297   : > { %v15429_v56 = vpop.f32.mrf.mxu0  ;;  %v15614_v36 = vpop.f32.mrf.mxu1 }
 0x299   : > { %v2276_v24 = vpop.f32.mrf.mxu0  ;;  %v2966_v10 = vpop.f32.mrf.mxu1  ;;  %15768 = vmatmul.mubr.msk.f32.gmra.mxu0 %vm567_vm2, %v3146_v51  ;;  %15953 = vmatmul.mubr.msk.f32.gmra.mxu1 %vm567_vm2, %v3844_v2  ;;  %v3148_v2 = vld [vmem:[%s17894_s15 + $0x131] sm:$0xff] }
 0x29a   : > { %v2398_v55 = vadd.f32 %v2276_v24, %v18838_v20  ;;  %v19506_v43 = vadd.f32 %v2966_v10, %v2396_v42  ;;  %15770 = vmatprep.mubr.msk.f32.mxu0 %vm17756_vm1, %v23780_v1  ;;  %15955 = vmatprep.mubr.msk.f32.mxu1 %vm17756_vm1, %v23780_v1  ;;  %v3846_v24 = vld [vmem:[%s17894_s15 + $0x122] sm:$0xff] }
 0x29b   : > { %v15432_v54 = vpop.f32.mrf.mxu0  ;;  %v15617_v56 = vpop.f32.mrf.mxu1 }
 0x29d   : > { %v2281_v36 = vpop.f32.mrf.mxu0  ;;  %v2971_v51 = vpop.f32.mrf.mxu1  ;;  %15771 = vmatmul.mubr.msk.f32.gmra.mxu0 %vm567_vm2, %v3147_v34  ;;  %15956 = vmatmul.mubr.msk.f32.gmra.mxu1 %vm567_vm2, %v3845_v58  ;;  %v3149_v58 = vld [vmem:[%s17894_s15 + $0x139] sm:$0xff] }
 0x29e   : > { %v2399_v20 = vadd.f32 %v2281_v36, %v18848_v49  ;;  %v19517_v42 = vadd.f32 %v2971_v51, %v2397_v32  ;;  %15773 = vmatprep.mubr.msk.f32.mxu0 %vm17756_vm1, %v23780_v1  ;;  %15958 = vmatprep.mubr.msk.f32.mxu1 %vm17756_vm1, %v23780_v1  ;;  %v3847_v36 = vld [vmem:[%s17894_s15 + $0x12a] sm:$0xff] }
 0x29f   : > { %v15435_v10 = vpop.f32.mrf.mxu0  ;;  %v15620_v54 = vpop.f32.mrf.mxu1 }
 0x2a1   : > { %v2286_v56 = vpop.f32.mrf.mxu0  ;;  %v2976_v34 = vpop.f32.mrf.mxu1  ;;  %15774 = vmatmul.mubr.msk.f32.gmra.mxu0 %vm567_vm2, %v3148_v2  ;;  %15959 = vmatmul.mubr.msk.f32.gmra.mxu1 %vm567_vm2, %v3846_v24 }
 0x2a2   : > { %v2400_v49 = vadd.f32 %v2286_v56, %v18858_v8  ;;  %v19528_v32 = vadd.f32 %v2976_v34, %v2398_v55  ;;  %15776 = vmatprep.mubr.msk.f32.mxu0 %vm17756_vm1, %v23780_v1  ;;  %15961 = vmatprep.mubr.msk.f32.mxu1 %vm17756_vm1, %v23780_v1  ;;  %v23803_v8 = vld [vmem:[#allocation11_spill] sm:$0xff]  ;;  %v3150_v56 = vld [vmem:[%s17894_s15 + $0x141] sm:$0xff] }
 0x2a3   : > { %v15438_v51 = vpop.f32.mrf.mxu0  ;;  %v15623_v10 = vpop.f32.mrf.mxu1  ;;  %v3848_v34 = vld [vmem:[%s17894_s15 + $0x132] sm:$0xff] }
 0x2a4   : > { %23802 = vst [vmem:[#allocation22_spill] sm:$0xff] %v19528_v32 }
 0x2a5   : > { %v2291_v54 = vpop.f32.mrf.mxu0  ;;  %v2981_v2 = vpop.f32.mrf.mxu1  ;;  %15777 = vmatmul.mubr.msk.f32.gmra.mxu0 %vm567_vm2, %v3149_v58  ;;  %15962 = vmatmul.mubr.msk.f32.gmra.mxu1 %vm567_vm2, %v3847_v36  ;;  %v23805_v36 = vld [vmem:[#allocation12_spill] sm:$0xff] }
 0x2a6   : > { %v2401_v55 = vadd.f32 %v2291_v54, %v23803_v8  ;;  %v19539_v24 = vadd.f32 %v2981_v2, %v2399_v20  ;;  %15779 = vmatprep.mubr.msk.f32.mxu0 %vm17756_vm1, %v23780_v1  ;;  %15964 = vmatprep.mubr.msk.f32.mxu1 %vm17756_vm1, %v23780_v1  ;;  %v3151_v2 = vld [vmem:[%s17894_s15 + $0x149] sm:$0xff]  ;;  %v3849_v8 = vld [vmem:[%s17894_s15 + $0x13a] sm:$0xff] }
 0x2a7   : > { %v15441_v51 = vpop.f32.mrf.mxu0  ;;  %v15626_v10 = vpop.f32.mrf.mxu1 }
 0x2a8   : > { %23804 = vst [vmem:[#allocation11_spill] sm:$0xff] %v19539_v24 }
 0x2a9   : > { %v2296_v32 = vpop.f32.mrf.mxu0  ;;  %v2986_v58 = vpop.f32.mrf.mxu1  ;;  %15780 = vmatmul.mubr.msk.f32.gmra.mxu0 %vm567_vm2, %v3150_v56  ;;  %15965 = vmatmul.mubr.msk.f32.gmra.mxu1 %vm567_vm2, %v3848_v34 }
 0x2aa   : > { %v2402_v20 = vadd.f32 %v2296_v32, %v23805_v36  ;;  %v19550_v54 = vadd.f32 %v2986_v58, %v2400_v49  ;;  %15782 = vmatprep.mubr.msk.f32.mxu0 %vm17756_vm1, %v23780_v1  ;;  %15967 = vmatprep.mubr.msk.f32.mxu1 %vm17756_vm1, %v23780_v1  ;;  %v23807_v32 = vld [vmem:[#allocation13_spill] sm:$0xff]  ;;  %v3152_v58 = vld [vmem:[%s17894_s15 + $0x151] sm:$0xff] }
 0x2ab   : > { %v15444_v51 = vpop.f32.mrf.mxu0  ;;  %v15629_v10 = vpop.f32.mrf.mxu1  ;;  %v3850_v36 = vld [vmem:[%s17894_s15 + $0x142] sm:$0xff] }
 0x2ac   : > { %23806 = vst [vmem:[#allocation12_spill] sm:$0xff] %v19550_v54 }
 0x2ad   : > { %v2301_v24 = vpop.f32.mrf.mxu0  ;;  %v2991_v56 = vpop.f32.mrf.mxu1  ;;  %15783 = vmatmul.mubr.msk.f32.gmra.mxu0 %vm567_vm2, %v3151_v2  ;;  %15968 = vmatmul.mubr.msk.f32.gmra.mxu1 %vm567_vm2, %v3849_v8 }
 0x2ae   : > { %v2403_v49 = vadd.f32 %v2301_v24, %v23807_v32  ;;  %v19561_v34 = vadd.f32 %v2991_v56, %v2401_v55  ;;  %15785 = vmatprep.mubr.msk.f32.mxu0 %vm17756_vm1, %v23780_v1  ;;  %15970 = vmatprep.mubr.msk.f32.mxu1 %vm17756_vm1, %v23780_v1  ;;  %v23809_v24 = vld [vmem:[#allocation14_spill] sm:$0xff]  ;;  %v3153_v56 = vld [vmem:[%s17894_s15 + $0x159] sm:$0xff] }
 0x2af   : > { %v15447_v51 = vpop.f32.mrf.mxu0  ;;  %v15632_v10 = vpop.f32.mrf.mxu1  ;;  %v3851_v32 = vld [vmem:[%s17894_s15 + $0x14a] sm:$0xff] }
 0x2b0   : > { %23808 = vst [vmem:[#allocation13_spill] sm:$0xff] %v19561_v34 }
 0x2b1   : > { %v2306_v54 = vpop.f32.mrf.mxu0  ;;  %v2996_v2 = vpop.f32.mrf.mxu1  ;;  %15786 = vmatmul.mubr.msk.f32.gmra.mxu0 %vm567_vm2, %v3152_v58  ;;  %15971 = vmatmul.mubr.msk.f32.gmra.mxu1 %vm567_vm2, %v3850_v36 }
 0x2b2   : > { %v2404_v55 = vadd.f32 %v2306_v54, %v23809_v24  ;;  %v19572_v8 = vadd.f32 %v2996_v2, %v2402_v20  ;;  %15788 = vmatprep.mubr.msk.f32.mxu0 %vm17756_vm1, %v23780_v1  ;;  %15973 = vmatprep.mubr.msk.f32.mxu1 %vm17756_vm1, %v23780_v1  ;;  %v23811_v54 = vld [vmem:[#allocation15_spill] sm:$0xff]  ;;  %v3154_v2 = vld [vmem:[%s17894_s15 + $0x161] sm:$0xff] }
 0x2b3   : > { %v15450_v51 = vpop.f32.mrf.mxu0  ;;  %v15635_v10 = vpop.f32.mrf.mxu1  ;;  %v3852_v24 = vld [vmem:[%s17894_s15 + $0x152] sm:$0xff] }
 0x2b4   : > { %23810 = vst [vmem:[#allocation14_spill] sm:$0xff] %v19572_v8 }
 0x2b5   : > { %v2311_v34 = vpop.f32.mrf.mxu0  ;;  %v3001_v58 = vpop.f32.mrf.mxu1  ;;  %15789 = vmatmul.mubr.msk.f32.gmra.mxu0 %vm567_vm2, %v3153_v56  ;;  %15974 = vmatmul.mubr.msk.f32.gmra.mxu1 %vm567_vm2, %v3851_v32 }
 0x2b6   : > { %v2405_v20 = vadd.f32 %v2311_v34, %v23811_v54  ;;  %v19583_v36 = vadd.f32 %v3001_v58, %v2403_v49  ;;  %15791 = vmatprep.mubr.msk.f32.mxu0 %vm17756_vm1, %v23780_v1  ;;  %15976 = vmatprep.mubr.msk.f32.mxu1 %vm17756_vm1, %v23780_v1  ;;  %v23813_v34 = vld [vmem:[#allocation16_spill] sm:$0xff]  ;;  %v3155_v58 = vld [vmem:[%s17894_s15 + $0x169] sm:$0xff] }
 0x2b7   : > { %v15453_v51 = vpop.f32.mrf.mxu0  ;;  %v15638_v10 = vpop.f32.mrf.mxu1  ;;  %v3853_v54 = vld [vmem:[%s17894_s15 + $0x15a] sm:$0xff] }
 0x2b8   : > { %23812 = vst [vmem:[#allocation15_spill] sm:$0xff] %v19583_v36 }
 0x2b9   : > { %v2316_v8 = vpop.f32.mrf.mxu0  ;;  %v3006_v56 = vpop.f32.mrf.mxu1  ;;  %15792 = vmatmul.mubr.msk.f32.gmra.mxu0 %vm567_vm2, %v3154_v2  ;;  %15977 = vmatmul.mubr.msk.f32.gmra.mxu1 %vm567_vm2, %v3852_v24 }
 0x2ba   : > { %v2406_v49 = vadd.f32 %v2316_v8, %v23813_v34  ;;  %v19594_v32 = vadd.f32 %v3006_v56, %v2404_v55  ;;  %15794 = vmatprep.mubr.msk.f32.mxu0 %vm17756_vm1, %v23780_v1  ;;  %15979 = vmatprep.mubr.msk.f32.mxu1 %vm17756_vm1, %v23780_v1  ;;  %v23815_v8 = vld [vmem:[#allocation17_spill] sm:$0xff]  ;;  %v3156_v56 = vld [vmem:[%s17894_s15 + $0x171] sm:$0xff] }
 0x2bb   : > { %v15456_v51 = vpop.f32.mrf.mxu0  ;;  %v15641_v10 = vpop.f32.mrf.mxu1  ;;  %v3854_v34 = vld [vmem:[%s17894_s15 + $0x162] sm:$0xff] }
 0x2bc   : > { %23814 = vst [vmem:[#allocation16_spill] sm:$0xff] %v19594_v32 }
 0x2bd   : > { %v2321_v36 = vpop.f32.mrf.mxu0  ;;  %v3011_v2 = vpop.f32.mrf.mxu1  ;;  %15795 = vmatmul.mubr.msk.f32.gmra.mxu0 %vm567_vm2, %v3155_v58  ;;  %15980 = vmatmul.mubr.msk.f32.gmra.mxu1 %vm567_vm2, %v3853_v54 }
 0x2be   : > { %v2407_v55 = vadd.f32 %v2321_v36, %v23815_v8  ;;  %v19605_v24 = vadd.f32 %v3011_v2, %v2405_v20  ;;  %15797 = vmatprep.mubr.msk.f32.mxu0 %vm17756_vm1, %v23780_v1  ;;  %15982 = vmatprep.mubr.msk.f32.mxu1 %vm17756_vm1, %v23780_v1  ;;  %v23817_v36 = vld [vmem:[#allocation18_spill] sm:$0xff]  ;;  %v3157_v2 = vld [vmem:[%s17894_s15 + $0x179] sm:$0xff] }
 0x2bf   : > { %v15459_v51 = vpop.f32.mrf.mxu0  ;;  %v15644_v10 = vpop.f32.mrf.mxu1  ;;  %v3855_v8 = vld [vmem:[%s17894_s15 + $0x16a] sm:$0xff] }
 0x2c0   : > { %23816 = vst [vmem:[#allocation17_spill] sm:$0xff] %v19605_v24 }
 0x2c1   : > { %v2326_v32 = vpop.f32.mrf.mxu0  ;;  %v3016_v58 = vpop.f32.mrf.mxu1  ;;  %15798 = vmatmul.mubr.msk.f32.gmra.mxu0 %vm567_vm2, %v3156_v56  ;;  %15983 = vmatmul.mubr.msk.f32.gmra.mxu1 %vm567_vm2, %v3854_v34 }
 0x2c2   : > { %v2408_v20 = vadd.f32 %v2326_v32, %v23817_v36  ;;  %v19616_v54 = vadd.f32 %v3016_v58, %v2406_v49  ;;  %15800 = vmatprep.mubr.msk.f32.mxu0 %vm17756_vm1, %v23780_v1  ;;  %15985 = vmatprep.mubr.msk.f32.mxu1 %vm17756_vm1, %v23780_v1  ;;  %v23819_v32 = vld [vmem:[#allocation19_spill] sm:$0xff]  ;;  %v3158_v58 = vld [vmem:[%s17894_s15 + $0x181] sm:$0xff] }
 0x2c3   : > { %v15462_v51 = vpop.f32.mrf.mxu0  ;;  %v15647_v10 = vpop.f32.mrf.mxu1  ;;  %v3856_v36 = vld [vmem:[%s17894_s15 + $0x172] sm:$0xff] }
 0x2c4   : > { %23818 = vst [vmem:[#allocation18_spill] sm:$0xff] %v19616_v54 }
 0x2c5   : > { %v2331_v24 = vpop.f32.mrf.mxu0  ;;  %v3021_v56 = vpop.f32.mrf.mxu1  ;;  %15801 = vmatmul.mubr.msk.f32.gmra.mxu0 %vm567_vm2, %v3157_v2  ;;  %15986 = vmatmul.mubr.msk.f32.gmra.mxu1 %vm567_vm2, %v3855_v8 }
 0x2c6   : > { %v2409_v49 = vadd.f32 %v2331_v24, %v23819_v32  ;;  %v19627_v34 = vadd.f32 %v3021_v56, %v2407_v55  ;;  %15803 = vmatprep.mubr.msk.f32.mxu0 %vm17756_vm1, %v23780_v1  ;;  %15988 = vmatprep.mubr.msk.f32.mxu1 %vm17756_vm1, %v23780_v1  ;;  %v23821_v24 = vld [vmem:[#allocation20_spill] sm:$0xff]  ;;  %v3159_v56 = vld [vmem:[%s17894_s15 + $0x189] sm:$0xff] }
 0x2c7   : > { %v15465_v51 = vpop.f32.mrf.mxu0  ;;  %v15650_v10 = vpop.f32.mrf.mxu1  ;;  %v3857_v32 = vld [vmem:[%s17894_s15 + $0x17a] sm:$0xff] }
 0x2c8   : > { %23820 = vst [vmem:[#allocation19_spill] sm:$0xff] %v19627_v34 }
 0x2c9   : > { %v2336_v54 = vpop.f32.mrf.mxu0  ;;  %v3026_v2 = vpop.f32.mrf.mxu1  ;;  %15804 = vmatmul.mubr.msk.f32.gmra.mxu0 %vm567_vm2, %v3158_v58  ;;  %15989 = vmatmul.mubr.msk.f32.gmra.mxu1 %vm567_vm2, %v3856_v36  ;;  %v3160_v36 = vld [vmem:[%s17894_s15 + $0x191] sm:$0xff] }
 0x2ca   : > { %v2410_v55 = vadd.f32 %v2336_v54, %v23821_v24  ;;  %v19638_v8 = vadd.f32 %v3026_v2, %v2408_v20  ;;  %15806 = vmatprep.mubr.msk.f32.mxu0 %vm17756_vm1, %v23780_v1  ;;  %15991 = vmatprep.mubr.msk.f32.mxu1 %vm17756_vm1, %v23780_v1  ;;  %v3858_v2 = vld [vmem:[%s17894_s15 + $0x182] sm:$0xff] }
 0x2cb   : > { %v15468_v51 = vpop.f32.mrf.mxu0  ;;  %v15653_v10 = vpop.f32.mrf.mxu1 }
 0x2cc   : > { %23822 = vst [vmem:[#allocation20_spill] sm:$0xff] %v19638_v8  ;;  %v23823_v10 = vld [vmem:[#allocation10_spill] sm:$0xff] }
 0x2cd   : > { %v2341_v34 = vpop.f32.mrf.mxu0  ;;  %v3031_v58 = vpop.f32.mrf.mxu1  ;;  %15807 = vmatmul.mubr.msk.f32.gmra.mxu0 %vm567_vm2, %v3159_v56  ;;  %15992 = vmatmul.mubr.msk.f32.gmra.mxu1 %vm567_vm2, %v3857_v32  ;;  %v1710_v56 = vadd.f32 %v18977_v63, %v23823_v10 }
 0x2ce   : > { %v2411_v20 = vadd.f32 %v2341_v34, %v18968_v16  ;;  %v19649_v54 = vadd.f32 %v3031_v58, %v2409_v49  ;;  %15809 = vmatprep.mubr.msk.f32.mxu0 %vm17756_vm1, %v23780_v1  ;;  %15994 = vmatprep.mubr.msk.f32.mxu1 %vm17756_vm1, %v23780_v1  ;;  %v3161_v34 = vld [vmem:[%s17894_s15 + $0x199] sm:$0xff]  ;;  %v3859_v58 = vld [vmem:[%s17894_s15 + $0x18a] sm:$0xff] }
 0x2cf   : > { %v15471_v24 = vpop.f32.mrf.mxu0  ;;  %v15656_v51 = vpop.f32.mrf.mxu1 }
 0x2d1   : > { %v2346_v32 = vpop.f32.mrf.mxu0  ;;  %v3036_v8 = vpop.f32.mrf.mxu1  ;;  %15810 = vmatmul.mubr.msk.f32.gmra.mxu0 %vm567_vm2, %v3160_v36  ;;  %15995 = vmatmul.mubr.msk.f32.gmra.mxu1 %vm567_vm2, %v3858_v2  ;;  %v3860_v2 = vld [vmem:[%s17894_s15 + $0x192] sm:$0xff] }
 0x2d2   : > { %v2412_v16 = vadd.f32 %v2346_v32, %v1710_v56  ;;  %v19661_v49 = vadd.f32 %v3036_v8, %v2410_v55  ;;  %15812 = vmatprep.mubr.msk.f32.mxu0 %vm17756_vm1, %v23780_v1  ;;  %15997 = vmatprep.mubr.msk.f32.mxu1 %vm17756_vm1, %v23780_v1  ;;  %v3162_v8 = vld [vmem:[%s17894_s15 + $0x1a1] sm:$0xff] }
 0x2d3   : > { %v15474_v63 = vpop.f32.mrf.mxu0  ;;  %v15659_v24 = vpop.f32.mrf.mxu1 }
 0x2d4   : > { %v3861_v24 = vld [vmem:[%s17894_s15 + $0x19a] sm:$0xff] }
 0x2d5   : > { %v3041_v51 = vpop.f32.mrf.mxu1  ;;  %v3436_v10 = vpop.f32.mrf.mxu0  ;;  %15813 = vmatmul.mubr.msk.f32.gmra.mxu0 %vm567_vm2, %v3161_v34  ;;  %15998 = vmatmul.mubr.msk.f32.gmra.mxu1 %vm567_vm2, %v3859_v58  ;;  %v3163_v58 = vld [vmem:[%s17894_s15 + $0x1a9] sm:$0xff] }
 0x2d6   : > { %v19671_v36 = vadd.f32 %v3041_v51, %v2411_v20  ;;  %v3750_v55 = vadd.f32 %v3436_v10, %v18991_v5  ;;  %15815 = vmatprep.mubr.msk.f32.mxu0 %vm17756_vm1, %v23780_v1  ;;  %16000 = vmatprep.mubr.msk.f32.mxu1 %vm17756_vm1, %v23780_v1 }
 0x2d7   : > { %v15662_v56 = vpop.f32.mrf.mxu1  ;;  %v15670_v32 = vpop.f32.mrf.mxu0 }
 0x2d8   : > { %v3862_v32 = vld [vmem:[%s17894_s15 + $0x1a2] sm:$0xff] }
 0x2d9   : > { %v3046_v63 = vpop.f32.mrf.mxu1  ;;  %v3441_v34 = vpop.f32.mrf.mxu0  ;;  %15816 = vmatmul.mubr.msk.f32.gmra.mxu0 %vm567_vm2, %v3162_v8  ;;  %16001 = vmatmul.mubr.msk.f32.gmra.mxu1 %vm567_vm2, %v3860_v2  ;;  %v3164_v2 = vld [vmem:[%s17894_s15 + $0x1b1] sm:$0xff] }
 0x2da   : > { %v19682_v20 = vadd.f32 %v3046_v63, %v2412_v16  ;;  %v3751_v5 = vadd.f32 %v3441_v34, %v19002_v22  ;;  %15818 = vmatprep.mubr.msk.f32.mxu0 %vm17756_vm1, %v23780_v1  ;;  %16003 = vmatprep.mubr.msk.f32.mxu1 %vm17756_vm1, %v23780_v1 }
 0x2db   : > { %v15665_v51 = vpop.f32.mrf.mxu1  ;;  %v15673_v10 = vpop.f32.mrf.mxu0 }
 0x2dc   : > { %v3165_v51 = vld [vmem:[%s17894_s15 + $0x1b9] sm:$0xff]  ;;  %v3863_v10 = vld [vmem:[%s17894_s15 + $0x1aa] sm:$0xff] }
 0x2dd   : > { %v3446_v56 = vpop.f32.mrf.mxu0  ;;  %15819 = vmatmul.mubr.msk.f32.gmra.mxu0 %vm567_vm2, %v3163_v58  ;;  %v4136_v8 = vpop.f32.mrf.mxu1  ;;  %16004 = vmatmul.mubr.msk.f32.gmra.mxu1 %vm567_vm2, %v3861_v24 }
 0x2de   : > { %v3752_v16 = vadd.f32 %v3446_v56, %v19013_v61  ;;  %v19694_v22 = vadd.f32 %v4136_v8, %v3750_v55  ;;  %15821 = vmatprep.mubr.msk.f32.mxu0 %vm17756_vm1, %v23780_v1  ;;  %16006 = vmatprep.mubr.msk.f32.mxu1 %vm17756_vm1, %v23780_v1 }
 0x2df   : > { %v15676_v63 = vpop.f32.mrf.mxu0  ;;  %v15861_v34 = vpop.f32.mrf.mxu1 }
 0x2e0   : > { %v3166_v63 = vld [vmem:[%s17894_s15 + $0x1c1] sm:$0xff]  ;;  %v3864_v34 = vld [vmem:[%s17894_s15 + $0x1b2] sm:$0xff] }
 0x2e1   : > { %v3451_v58 = vpop.f32.mrf.mxu0  ;;  %15822 = vmatmul.mubr.msk.f32.gmra.mxu0 %vm567_vm2, %v3164_v2  ;;  %v4141_v24 = vpop.f32.mrf.mxu1  ;;  %16007 = vmatmul.mubr.msk.f32.gmra.mxu1 %vm567_vm2, %v3862_v32 }
 0x2e2   : > { %v3753_v61 = vadd.f32 %v3451_v58, %v19024_v4  ;;  %v19705_v55 = vadd.f32 %v4141_v24, %v3751_v5  ;;  %15824 = vmatprep.mubr.msk.f32.mxu0 %vm17756_vm1, %v23780_v1  ;;  %16009 = vmatprep.mubr.msk.f32.mxu1 %vm17756_vm1, %v23780_v1 }
 0x2e3   : > { %v15679_v56 = vpop.f32.mrf.mxu0  ;;  %v15864_v8 = vpop.f32.mrf.mxu1 }
 0x2e4   : > { %v3167_v56 = vld [vmem:[%s17894_s15 + $0x1c9] sm:$0xff]  ;;  %v3865_v8 = vld [vmem:[%s17894_s15 + $0x1ba] sm:$0xff] }
 0x2e5   : > { %v3456_v2 = vpop.f32.mrf.mxu0  ;;  %15825 = vmatmul.mubr.msk.f32.gmra.mxu0 %vm567_vm2, %v3165_v51  ;;  %v4146_v32 = vpop.f32.mrf.mxu1  ;;  %16010 = vmatmul.mubr.msk.f32.gmra.mxu1 %vm567_vm2, %v3863_v10 }
 0x2e6   : > { %v3754_v4 = vadd.f32 %v3456_v2, %v19035_v12  ;;  %v19716_v5 = vadd.f32 %v4146_v32, %v3752_v16  ;;  %15827 = vmatprep.mubr.msk.f32.mxu0 %vm17756_vm1, %v23780_v1  ;;  %16012 = vmatprep.mubr.msk.f32.mxu1 %vm17756_vm1, %v23780_v1 }
 0x2e7   : > { %v15682_v58 = vpop.f32.mrf.mxu0  ;;  %v15867_v24 = vpop.f32.mrf.mxu1 }
 0x2e8   : > { %v3168_v58 = vld [vmem:[%s17894_s15 + $0x1d1] sm:$0xff]  ;;  %v3866_v24 = vld [vmem:[%s17894_s15 + $0x1c2] sm:$0xff] }
 0x2e9   : > { %v3461_v51 = vpop.f32.mrf.mxu0  ;;  %15828 = vmatmul.mubr.msk.f32.gmra.mxu0 %vm567_vm2, %v3166_v63  ;;  %v4151_v10 = vpop.f32.mrf.mxu1  ;;  %16013 = vmatmul.mubr.msk.f32.gmra.mxu1 %vm567_vm2, %v3864_v34 }
 0x2ea   : > { %v3755_v12 = vadd.f32 %v3461_v51, %v19046_v26  ;;  %v19727_v16 = vadd.f32 %v4151_v10, %v3753_v61  ;;  %15830 = vmatprep.mubr.msk.f32.mxu0 %vm17756_vm1, %v23780_v1  ;;  %16015 = vmatprep.mubr.msk.f32.mxu1 %vm17756_vm1, %v23780_v1 }
 0x2eb   : > { %v15685_v2 = vpop.f32.mrf.mxu0  ;;  %v15870_v32 = vpop.f32.mrf.mxu1 }
 0x2ec   : > { %v3169_v2 = vld [vmem:[%s17894_s15 + $0x1d9] sm:$0xff]  ;;  %v3867_v32 = vld [vmem:[%s17894_s15 + $0x1ca] sm:$0xff] }
 0x2ed   : > { %v3466_v63 = vpop.f32.mrf.mxu0  ;;  %15831 = vmatmul.mubr.msk.f32.gmra.mxu0 %vm567_vm2, %v3167_v56  ;;  %v4156_v34 = vpop.f32.mrf.mxu1  ;;  %16016 = vmatmul.mubr.msk.f32.gmra.mxu1 %vm567_vm2, %v3865_v8 }
 0x2ee   : > { %v3756_v26 = vadd.f32 %v3466_v63, %v19057_v39  ;;  %v19738_v61 = vadd.f32 %v4156_v34, %v3754_v4  ;;  %15833 = vmatprep.mubr.msk.f32.mxu0 %vm17756_vm1, %v23780_v1  ;;  %16018 = vmatprep.mubr.msk.f32.mxu1 %vm17756_vm1, %v23780_v1 }
 0x2ef   : > { %v15688_v51 = vpop.f32.mrf.mxu0  ;;  %v15873_v10 = vpop.f32.mrf.mxu1 }
 0x2f0   : > { %v3170_v51 = vld [vmem:[%s17894_s15 + $0x1e1] sm:$0xff]  ;;  %v3868_v10 = vld [vmem:[%s17894_s15 + $0x1d2] sm:$0xff] }
 0x2f1   : > { %v3471_v56 = vpop.f32.mrf.mxu0  ;;  %15834 = vmatmul.mubr.msk.f32.gmra.mxu0 %vm567_vm2, %v3168_v58  ;;  %v4161_v8 = vpop.f32.mrf.mxu1  ;;  %16019 = vmatmul.mubr.msk.f32.gmra.mxu1 %vm567_vm2, %v3866_v24 }
 0x2f2   : > { %v3757_v39 = vadd.f32 %v3471_v56, %v19068_v46  ;;  %v19749_v4 = vadd.f32 %v4161_v8, %v3755_v12  ;;  %15836 = vmatprep.mubr.msk.f32.mxu0 %vm17756_vm1, %v23780_v1  ;;  %16021 = vmatprep.mubr.msk.f32.mxu1 %vm17756_vm1, %v23780_v1 }
 0x2f3   : > { %v15691_v63 = vpop.f32.mrf.mxu0  ;;  %v15876_v34 = vpop.f32.mrf.mxu1 }
 0x2f4   : > { %v3171_v63 = vld [vmem:[%s17894_s15 + $0x1e9] sm:$0xff]  ;;  %v3869_v34 = vld [vmem:[%s17894_s15 + $0x1da] sm:$0xff] }
 0x2f5   : > { %v3476_v58 = vpop.f32.mrf.mxu0  ;;  %15837 = vmatmul.mubr.msk.f32.gmra.mxu0 %vm567_vm2, %v3169_v2  ;;  %v4166_v24 = vpop.f32.mrf.mxu1  ;;  %16022 = vmatmul.mubr.msk.f32.gmra.mxu1 %vm567_vm2, %v3867_v32 }
 0x2f6   : > { %v3758_v46 = vadd.f32 %v3476_v58, %v19079_v53  ;;  %v19760_v12 = vadd.f32 %v4166_v24, %v3756_v26  ;;  %15839 = vmatprep.mubr.msk.f32.mxu0 %vm17756_vm1, %v23780_v1  ;;  %16024 = vmatprep.mubr.msk.f32.mxu1 %vm17756_vm1, %v23780_v1 }
 0x2f7   : > { %v15694_v56 = vpop.f32.mrf.mxu0  ;;  %v15879_v8 = vpop.f32.mrf.mxu1 }
 0x2f8   : > { %v3172_v56 = vld [vmem:[%s17894_s15 + $0x1f1] sm:$0xff]  ;;  %v3870_v8 = vld [vmem:[%s17894_s15 + $0x1e2] sm:$0xff] }
 0x2f9   : > { %v3481_v2 = vpop.f32.mrf.mxu0  ;;  %15840 = vmatmul.mubr.msk.f32.gmra.mxu0 %vm567_vm2, %v3170_v51  ;;  %v4171_v32 = vpop.f32.mrf.mxu1  ;;  %16025 = vmatmul.mubr.msk.f32.gmra.mxu1 %vm567_vm2, %v3868_v10 }
 0x2fa   : > { %v3759_v53 = vadd.f32 %v3481_v2, %v19090_v62  ;;  %v19771_v26 = vadd.f32 %v4171_v32, %v3757_v39  ;;  %15842 = vmatprep.mubr.msk.f32.mxu0 %vm17756_vm1, %v23780_v1  ;;  %16027 = vmatprep.mubr.msk.f32.mxu1 %vm17756_vm1, %v23780_v1 }
 0x2fb   : > { %v15697_v58 = vpop.f32.mrf.mxu0  ;;  %v15882_v24 = vpop.f32.mrf.mxu1 }
 0x2fc   : > { %v3173_v58 = vld [vmem:[%s17894_s15 + $0x1f9] sm:$0xff]  ;;  %v3871_v24 = vld [vmem:[%s17894_s15 + $0x1ea] sm:$0xff] }
 0x2fd   : > { %v3486_v51 = vpop.f32.mrf.mxu0  ;;  %15843 = vmatmul.mubr.msk.f32.gmra.mxu0 %vm567_vm2, %v3171_v63  ;;  %v4176_v10 = vpop.f32.mrf.mxu1  ;;  %16028 = vmatmul.mubr.msk.f32.gmra.mxu1 %vm567_vm2, %v3869_v34 }
 0x2fe   : > { %v3760_v62 = vadd.f32 %v3486_v51, %v19101_v7  ;;  %v19782_v39 = vadd.f32 %v4176_v10, %v3758_v46  ;;  %15845 = vmatprep.mubr.msk.f32.mxu0 %vm17756_vm1, %v23780_v1  ;;  %16030 = vmatprep.mubr.msk.f32.mxu1 %vm17756_vm1, %v23780_v1 }
 0x2ff   : > { %v15700_v2 = vpop.f32.mrf.mxu0  ;;  %v15885_v32 = vpop.f32.mrf.mxu1 }
 0x300   : > { %v3174_v32 = vld [vmem:[%s17894_s15 + $0x201] sm:$0xff] }
 0x301   : > { %v3491_v63 = vpop.f32.mrf.mxu0  ;;  %15846 = vmatmul.mubr.msk.f32.gmra.mxu0 %vm567_vm2, %v3172_v56  ;;  %v4181_v34 = vpop.f32.mrf.mxu1  ;;  %16031 = vmatmul.mubr.msk.f32.gmra.mxu1 %vm567_vm2, %v3870_v8 }
 0x302   : > { %v3761_v7 = vadd.f32 %v3491_v63, %v19112_v18  ;;  %v19793_v46 = vadd.f32 %v4181_v34, %v3759_v53  ;;  %15848 = vmatprep.mubr.msk.f32.mxu0 %vm17756_vm1, %v23780_v1  ;;  %16033 = vmatprep.mubr.msk.f32.mxu1 %vm17756_vm1, %v23780_v1  ;;  %v23824_v18 = vld [vmem:[#allocation21_spill] sm:$0xff]  ;;  %v3872_v63 = vld [vmem:[%s17894_s15 + $0x1f2] sm:$0xff] }
 0x303   : > { %v15703_v51 = vpop.f32.mrf.mxu0  ;;  %v15888_v10 = vpop.f32.mrf.mxu1 }
 0x305   : > { %v3496_v56 = vpop.f32.mrf.mxu0  ;;  %15849 = vmatmul.mubr.msk.f32.gmra.mxu0 %vm567_vm2, %v3173_v58  ;;  %v4186_v8 = vpop.f32.mrf.mxu1  ;;  %16034 = vmatmul.mubr.msk.f32.gmra.mxu1 %vm567_vm2, %v3871_v24 }
 0x306   : > { %v3762_v53 = vadd.f32 %v3496_v56, %v23824_v18  ;;  %v19804_v2 = vadd.f32 %v4186_v8, %v3760_v62  ;;  %15851 = vmatprep.mubr.msk.f32.mxu0 %vm17756_vm1, %v23780_v1  ;;  %16036 = vmatprep.mubr.msk.f32.mxu1 %vm17756_vm1, %v23780_v1  ;;  %v3175_v56 = vld [vmem:[%s17894_s15 + $0x209] sm:$0xff]  ;;  %v3873_v8 = vld [vmem:[%s17894_s15 + $0x1fa] sm:$0xff] }
 0x307   : > { %v15706_v34 = vpop.f32.mrf.mxu0  ;;  %v15891_v51 = vpop.f32.mrf.mxu1 }
 0x308   : > { %v3874_v51 = vld [vmem:[%s17894_s15 + $0x202] sm:$0xff] }
 0x309   : > { %v3501_v58 = vpop.f32.mrf.mxu0  ;;  %15852 = vmatmul.mubr.msk.f32.gmra.mxu0 %vm567_vm2, %v3174_v32  ;;  %v4191_v24 = vpop.f32.mrf.mxu1  ;;  %16037 = vmatmul.mubr.msk.f32.gmra.mxu1 %vm567_vm2, %v3872_v63 }
 0x30a   : > { %v3763_v62 = vadd.f32 %v3501_v58, %v19137_v38  ;;  %v19815_v10 = vadd.f32 %v4191_v24, %v3761_v7  ;;  %15854 = vmatprep.mubr.msk.f32.mxu0 %vm17756_vm1, %v23780_v1  ;;  %16039 = vmatprep.mubr.msk.f32.mxu1 %vm17756_vm1, %v23780_v1  ;;  %v4513_v58 = vld [vmem:[%s17894_s15 + $0x30] sm:$0xff] }
 0x30b   : > { %v15709_v18 = vpop.f32.mrf.mxu0  ;;  %v15894_v34 = vpop.f32.mrf.mxu1 }
 0x30d   : > { %v3506_v32 = vpop.f32.mrf.mxu0  ;;  %15855 = vmatmul.mubr.msk.f32.gmra.mxu0 %vm567_vm2, %v3175_v56  ;;  %v4196_v63 = vpop.f32.mrf.mxu1  ;;  %16040 = vmatmul.mubr.msk.f32.gmra.mxu1 %vm567_vm2, %v3873_v8  ;;  %v13308_v56 = vld [vmem:[%s23788_s1 + $0x20] sm:$0x7]  ;;  %s17757_s1 = smov [#allocation7]  }
 0x30e   : > { %v3764_v38 = vadd.f32 %v3506_v32, %v19150_v48  ;;  %v19826_v7 = vadd.f32 %v4196_v63, %v3762_v53  ;;  %16042 = vmatprep.mubr.msk.f32.mxu1 %vm17756_vm1, %v23780_v1  ;;  %16050 = vmatprep.mubr.msk.f32.mxu0 %vm17756_vm1, %v23780_v1  ;;  %v3875_v32 = vld [vmem:[%s17894_s15 + $0x20a] sm:$0xff]  ;;  %v4514_v63 = vld [vmem:[%s17894_s15 + $0x38] sm:$0xff] }
 0x30f   : > { %v15712_v24 = vpop.f32.mrf.mxu0  ;;  %v15897_v18 = vpop.f32.mrf.mxu1 }
 0x311   : > { %v3511_v8 = vpop.f32.mrf.mxu0  ;;  %v4201_v48 = vpop.f32.mrf.mxu1  ;;  %16043 = vmatmul.mubr.msk.f32.gmra.mxu1 %vm567_vm2, %v3874_v51  ;;  %16051 = vmatmul.mubr.msk.f32.vlgmr.msra.gmra.mxu0 %vm567_vm2, %v4513_v58 }
 0x312   : > { %v3765_v53 = vadd.f32 %v3511_v8, %v19161_v0  ;;  %v19840_v34 = vadd.f32 %v4201_v48, %v3763_v62  ;;  %16431 = vmatpush3.msk.msra.mxu0 %vm757_vm0, %v13308_v56  ;;  %16045 = vmatprep.mubr.msk.f32.mxu1 %vm17756_vm1, %v23780_v1  ;;  %v4515_v56 = vld [vmem:[%s17894_s15 + $0x40] sm:$0xff]  ;;  %v5213_v8 = vld [vmem:[%s17894_s15 + $0x31] sm:$0xff] }
 0x313   : > { %v15715_v24 = vpop.f32.mrf.mxu0  ;;  %v15900_v18 = vpop.f32.mrf.mxu1  ;;  %16053 = vmatprep.mubr.msk.f32.mxu0 %vm17756_vm1, %v23780_v1 }
 0x315   : > { %v3516_v51 = vpop.f32.mrf.mxu0  ;;  %v4206_v58 = vpop.f32.mrf.mxu1  ;;  %16046 = vmatmul.mubr.msk.f32.gmra.mxu1 %vm567_vm2, %v3875_v32  ;;  %16054 = vmatmul.mubr.msk.f32.gmra.mxu0 %vm567_vm2, %v4514_v63  ;;  %v4516_v63 = vld [vmem:[%s17894_s15 + $0x48] sm:$0xff] }
 0x316   : > { %v3766_v0 = vadd.f32 %v3516_v51, %v19172_v44  ;;  %v19852_v62 = vadd.f32 %v4206_v58, %v3764_v38  ;;  %16056 = vmatprep.mubr.msk.f32.mxu0 %vm17756_vm1, %v23780_v1  ;;  %16241 = vmatprep.mubr.msk.f32.mxu1 %vm17756_vm1, %v23780_v1  ;;  %v5214_v51 = vld [vmem:[%s17894_s15 + $0x39] sm:$0xff] }
 0x317   : > { %v15718_v48 = vpop.f32.mrf.mxu0  ;;  %v15903_v24 = vpop.f32.mrf.mxu1 }
 0x319   : > { %v3521_v18 = vpop.f32.mrf.mxu0  ;;  %v4211_v32 = vpop.f32.mrf.mxu1  ;;  %16057 = vmatmul.mubr.msk.f32.gmra.mxu0 %vm567_vm2, %v4515_v56  ;;  %16242 = vmatmul.mubr.msk.f32.vlgmr.msra.gmra.mxu1 %vm567_vm2, %v5213_v8  ;;  %v4517_v8 = vld [vmem:[%s17894_s15 + $0x50] sm:$0xff] }
 0x31a   : > { %v3767_v44 = vadd.f32 %v3521_v18, %v19183_v52  ;;  %v19863_v38 = vadd.f32 %v4211_v32, %v3765_v53  ;;  %16059 = vmatprep.mubr.msk.f32.mxu0 %vm17756_vm1, %v23780_v1  ;;  %16244 = vmatprep.mubr.msk.f32.mxu1 %vm17756_vm1, %v23780_v1  ;;  %v5215_v18 = vld [vmem:[%s17894_s15 + $0x41] sm:$0xff] }
 0x31b   : > { %v15721_v58 = vpop.f32.mrf.mxu0  ;;  %v15906_v48 = vpop.f32.mrf.mxu1 }
 0x31d   : > { %v3526_v24 = vpop.f32.mrf.mxu0  ;;  %v4216_v56 = vpop.f32.mrf.mxu1  ;;  %16060 = vmatmul.mubr.msk.f32.gmra.mxu0 %vm567_vm2, %v4516_v63  ;;  %16245 = vmatmul.mubr.msk.f32.gmra.mxu1 %vm567_vm2, %v5214_v51  ;;  %v4518_v51 = vld [vmem:[%s17894_s15 + $0x58] sm:$0xff] }
 0x31e   : > { %v3768_v52 = vadd.f32 %v3526_v24, %v19194_v13  ;;  %v19874_v53 = vadd.f32 %v4216_v56, %v3766_v0  ;;  %16062 = vmatprep.mubr.msk.f32.mxu0 %vm17756_vm1, %v23780_v1  ;;  %16247 = vmatprep.mubr.msk.f32.mxu1 %vm17756_vm1, %v23780_v1  ;;  %v5216_v24 = vld [vmem:[%s17894_s15 + $0x49] sm:$0xff] }
 0x31f   : > { %v15724_v32 = vpop.f32.mrf.mxu0  ;;  %v15909_v58 = vpop.f32.mrf.mxu1 }
 0x321   : > { %v3531_v48 = vpop.f32.mrf.mxu0  ;;  %v4221_v63 = vpop.f32.mrf.mxu1  ;;  %16063 = vmatmul.mubr.msk.f32.gmra.mxu0 %vm567_vm2, %v4517_v8  ;;  %16248 = vmatmul.mubr.msk.f32.gmra.mxu1 %vm567_vm2, %v5215_v18  ;;  %v4519_v18 = vld [vmem:[%s17894_s15 + $0x60] sm:$0xff] }
 0x322   : > { %v3769_v13 = vadd.f32 %v3531_v48, %v19205_v15  ;;  %v19885_v0 = vadd.f32 %v4221_v63, %v3767_v44  ;;  %16065 = vmatprep.mubr.msk.f32.mxu0 %vm17756_vm1, %v23780_v1  ;;  %16250 = vmatprep.mubr.msk.f32.mxu1 %vm17756_vm1, %v23780_v1  ;;  %v5217_v48 = vld [vmem:[%s17894_s15 + $0x51] sm:$0xff] }
 0x323   : > { %v15727_v56 = vpop.f32.mrf.mxu0  ;;  %v15912_v32 = vpop.f32.mrf.mxu1 }
 0x325   : > { %v3536_v58 = vpop.f32.mrf.mxu0  ;;  %v4226_v8 = vpop.f32.mrf.mxu1  ;;  %16066 = vmatmul.mubr.msk.f32.gmra.mxu0 %vm567_vm2, %v4518_v51  ;;  %16251 = vmatmul.mubr.msk.f32.gmra.mxu1 %vm567_vm2, %v5216_v24  ;;  %v4520_v24 = vld [vmem:[%s17894_s15 + $0x68] sm:$0xff] }
 0x326   : > { %v3770_v15 = vadd.f32 %v3536_v58, %v19216_v17  ;;  %v19896_v44 = vadd.f32 %v4226_v8, %v3768_v52  ;;  %16068 = vmatprep.mubr.msk.f32.mxu0 %vm17756_vm1, %v23780_v1  ;;  %16253 = vmatprep.mubr.msk.f32.mxu1 %vm17756_vm1, %v23780_v1  ;;  %v5218_v58 = vld [vmem:[%s17894_s15 + $0x59] sm:$0xff] }
 0x327   : > { %v15730_v63 = vpop.f32.mrf.mxu0  ;;  %v15915_v56 = vpop.f32.mrf.mxu1 }
 0x329   : > { %v3541_v32 = vpop.f32.mrf.mxu0  ;;  %v4231_v51 = vpop.f32.mrf.mxu1  ;;  %16069 = vmatmul.mubr.msk.f32.gmra.mxu0 %vm567_vm2, %v4519_v18  ;;  %16254 = vmatmul.mubr.msk.f32.gmra.mxu1 %vm567_vm2, %v5217_v48  ;;  %v4521_v48 = vld [vmem:[%s17894_s15 + $0x70] sm:$0xff] }
 0x32a   : > { %v3771_v17 = vadd.f32 %v3541_v32, %v19227_v19  ;;  %v19907_v52 = vadd.f32 %v4231_v51, %v3769_v13  ;;  %16071 = vmatprep.mubr.msk.f32.mxu0 %vm17756_vm1, %v23780_v1  ;;  %16256 = vmatprep.mubr.msk.f32.mxu1 %vm17756_vm1, %v23780_v1  ;;  %v5219_v32 = vld [vmem:[%s17894_s15 + $0x61] sm:$0xff] }
 0x32b   : > { %v15733_v8 = vpop.f32.mrf.mxu0  ;;  %v15918_v63 = vpop.f32.mrf.mxu1 }
 0x32d   : > { %v3546_v56 = vpop.f32.mrf.mxu0  ;;  %v4236_v18 = vpop.f32.mrf.mxu1  ;;  %16072 = vmatmul.mubr.msk.f32.gmra.mxu0 %vm567_vm2, %v4520_v24  ;;  %16257 = vmatmul.mubr.msk.f32.gmra.mxu1 %vm567_vm2, %v5218_v58  ;;  %v4522_v58 = vld [vmem:[%s17894_s15 + $0x78] sm:$0xff] }
 0x32e   : > { %v3772_v19 = vadd.f32 %v3546_v56, %v19238_v21  ;;  %v19918_v13 = vadd.f32 %v4236_v18, %v3770_v15  ;;  %16074 = vmatprep.mubr.msk.f32.mxu0 %vm17756_vm1, %v23780_v1  ;;  %16259 = vmatprep.mubr.msk.f32.mxu1 %vm17756_vm1, %v23780_v1  ;;  %v5220_v56 = vld [vmem:[%s17894_s15 + $0x69] sm:$0xff] }
 0x32f   : > { %v15736_v51 = vpop.f32.mrf.mxu0  ;;  %v15921_v8 = vpop.f32.mrf.mxu1 }
 0x331   : > { %v3551_v63 = vpop.f32.mrf.mxu0  ;;  %v4241_v24 = vpop.f32.mrf.mxu1  ;;  %16075 = vmatmul.mubr.msk.f32.gmra.mxu0 %vm567_vm2, %v4521_v48  ;;  %16260 = vmatmul.mubr.msk.f32.gmra.mxu1 %vm567_vm2, %v5219_v32  ;;  %v4523_v32 = vld [vmem:[%s17894_s15 + $0x80] sm:$0xff] }
 0x332   : > { %v3773_v21 = vadd.f32 %v3551_v63, %v19249_v23  ;;  %v19929_v15 = vadd.f32 %v4241_v24, %v3771_v17  ;;  %16077 = vmatprep.mubr.msk.f32.mxu0 %vm17756_vm1, %v23780_v1  ;;  %16262 = vmatprep.mubr.msk.f32.mxu1 %vm17756_vm1, %v23780_v1  ;;  %v5221_v63 = vld [vmem:[%s17894_s15 + $0x71] sm:$0xff] }
 0x333   : > { %v15739_v18 = vpop.f32.mrf.mxu0  ;;  %v15924_v51 = vpop.f32.mrf.mxu1 }
 0x335   : > { %v3556_v8 = vpop.f32.mrf.mxu0  ;;  %v4246_v48 = vpop.f32.mrf.mxu1  ;;  %16078 = vmatmul.mubr.msk.f32.gmra.mxu0 %vm567_vm2, %v4522_v58  ;;  %16263 = vmatmul.mubr.msk.f32.gmra.mxu1 %vm567_vm2, %v5220_v56  ;;  %v4524_v56 = vld [vmem:[%s17894_s15 + $0x88] sm:$0xff] }
 0x336   : > { %v3774_v23 = vadd.f32 %v3556_v8, %v19260_v25  ;;  %v19940_v17 = vadd.f32 %v4246_v48, %v3772_v19  ;;  %16080 = vmatprep.mubr.msk.f32.mxu0 %vm17756_vm1, %v23780_v1  ;;  %16265 = vmatprep.mubr.msk.f32.mxu1 %vm17756_vm1, %v23780_v1  ;;  %v5222_v8 = vld [vmem:[%s17894_s15 + $0x79] sm:$0xff] }
 0x337   : > { %v15742_v24 = vpop.f32.mrf.mxu0  ;;  %v15927_v18 = vpop.f32.mrf.mxu1 }
 0x339   : > { %v3561_v51 = vpop.f32.mrf.mxu0  ;;  %v4251_v58 = vpop.f32.mrf.mxu1  ;;  %16081 = vmatmul.mubr.msk.f32.gmra.mxu0 %vm567_vm2, %v4523_v32  ;;  %16266 = vmatmul.mubr.msk.f32.gmra.mxu1 %vm567_vm2, %v5221_v63  ;;  %v4525_v63 = vld [vmem:[%s17894_s15 + $0x90] sm:$0xff] }
 0x33a   : > { %v3775_v25 = vadd.f32 %v3561_v51, %v19271_v27  ;;  %v19951_v19 = vadd.f32 %v4251_v58, %v3773_v21  ;;  %16083 = vmatprep.mubr.msk.f32.mxu0 %vm17756_vm1, %v23780_v1  ;;  %16268 = vmatprep.mubr.msk.f32.mxu1 %vm17756_vm1, %v23780_v1  ;;  %v5223_v51 = vld [vmem:[%s17894_s15 + $0x81] sm:$0xff] }
 0x33b   : > { %v15745_v48 = vpop.f32.mrf.mxu0  ;;  %v15930_v24 = vpop.f32.mrf.mxu1 }
 0x33d   : > { %v3566_v18 = vpop.f32.mrf.mxu0  ;;  %v4256_v32 = vpop.f32.mrf.mxu1  ;;  %16084 = vmatmul.mubr.msk.f32.gmra.mxu0 %vm567_vm2, %v4524_v56  ;;  %16269 = vmatmul.mubr.msk.f32.gmra.mxu1 %vm567_vm2, %v5222_v8  ;;  %v4526_v8 = vld [vmem:[%s17894_s15 + $0x98] sm:$0xff] }
 0x33e   : > { %v3776_v27 = vadd.f32 %v3566_v18, %v19282_v29  ;;  %v19962_v21 = vadd.f32 %v4256_v32, %v3774_v23  ;;  %16086 = vmatprep.mubr.msk.f32.mxu0 %vm17756_vm1, %v23780_v1  ;;  %16271 = vmatprep.mubr.msk.f32.mxu1 %vm17756_vm1, %v23780_v1  ;;  %v5224_v18 = vld [vmem:[%s17894_s15 + $0x89] sm:$0xff] }
 0x33f   : > { %v15748_v58 = vpop.f32.mrf.mxu0  ;;  %v15933_v48 = vpop.f32.mrf.mxu1 }
 0x341   : > { %v3571_v24 = vpop.f32.mrf.mxu0  ;;  %v4261_v56 = vpop.f32.mrf.mxu1  ;;  %16087 = vmatmul.mubr.msk.f32.gmra.mxu0 %vm567_vm2, %v4525_v63  ;;  %16272 = vmatmul.mubr.msk.f32.gmra.mxu1 %vm567_vm2, %v5223_v51  ;;  %v4527_v51 = vld [vmem:[%s17894_s15 + $0xa0] sm:$0xff] }
 0x342   : > { %v3777_v29 = vadd.f32 %v3571_v24, %v19293_v31  ;;  %v19973_v23 = vadd.f32 %v4261_v56, %v3775_v25  ;;  %16089 = vmatprep.mubr.msk.f32.mxu0 %vm17756_vm1, %v23780_v1  ;;  %16274 = vmatprep.mubr.msk.f32.mxu1 %vm17756_vm1, %v23780_v1  ;;  %v5225_v24 = vld [vmem:[%s17894_s15 + $0x91] sm:$0xff] }
 0x343   : > { %v15751_v32 = vpop.f32.mrf.mxu0  ;;  %v15936_v58 = vpop.f32.mrf.mxu1 }
 0x345   : > { %v3576_v48 = vpop.f32.mrf.mxu0  ;;  %v4266_v63 = vpop.f32.mrf.mxu1  ;;  %16090 = vmatmul.mubr.msk.f32.gmra.mxu0 %vm567_vm2, %v4526_v8  ;;  %16275 = vmatmul.mubr.msk.f32.gmra.mxu1 %vm567_vm2, %v5224_v18  ;;  %v4528_v18 = vld [vmem:[%s17894_s15 + $0xa8] sm:$0xff] }
 0x346   : > { %v3778_v31 = vadd.f32 %v3576_v48, %v19304_v33  ;;  %v19984_v25 = vadd.f32 %v4266_v63, %v3776_v27  ;;  %16092 = vmatprep.mubr.msk.f32.mxu0 %vm17756_vm1, %v23780_v1  ;;  %16277 = vmatprep.mubr.msk.f32.mxu1 %vm17756_vm1, %v23780_v1  ;;  %v5226_v48 = vld [vmem:[%s17894_s15 + $0x99] sm:$0xff] }
 0x347   : > { %v15754_v56 = vpop.f32.mrf.mxu0  ;;  %v15939_v32 = vpop.f32.mrf.mxu1 }
 0x349   : > { %v3581_v58 = vpop.f32.mrf.mxu0  ;;  %v4271_v8 = vpop.f32.mrf.mxu1  ;;  %16093 = vmatmul.mubr.msk.f32.gmra.mxu0 %vm567_vm2, %v4527_v51  ;;  %16278 = vmatmul.mubr.msk.f32.gmra.mxu1 %vm567_vm2, %v5225_v24  ;;  %v4529_v24 = vld [vmem:[%s17894_s15 + $0xb0] sm:$0xff] }
 0x34a   : > { %v3779_v33 = vadd.f32 %v3581_v58, %v19315_v35  ;;  %v19995_v27 = vadd.f32 %v4271_v8, %v3777_v29  ;;  %16095 = vmatprep.mubr.msk.f32.mxu0 %vm17756_vm1, %v23780_v1  ;;  %16280 = vmatprep.mubr.msk.f32.mxu1 %vm17756_vm1, %v23780_v1  ;;  %v5227_v58 = vld [vmem:[%s17894_s15 + $0xa1] sm:$0xff] }
 0x34b   : > { %v15757_v63 = vpop.f32.mrf.mxu0  ;;  %v15942_v56 = vpop.f32.mrf.mxu1 }
 0x34d   : > { %v3586_v32 = vpop.f32.mrf.mxu0  ;;  %v4276_v51 = vpop.f32.mrf.mxu1  ;;  %16096 = vmatmul.mubr.msk.f32.gmra.mxu0 %vm567_vm2, %v4528_v18  ;;  %16281 = vmatmul.mubr.msk.f32.gmra.mxu1 %vm567_vm2, %v5226_v48  ;;  %v4530_v48 = vld [vmem:[%s17894_s15 + $0xb8] sm:$0xff] }
 0x34e   : > { %v3780_v35 = vadd.f32 %v3586_v32, %v19326_v37  ;;  %v20006_v29 = vadd.f32 %v4276_v51, %v3778_v31  ;;  %16098 = vmatprep.mubr.msk.f32.mxu0 %vm17756_vm1, %v23780_v1  ;;  %16283 = vmatprep.mubr.msk.f32.mxu1 %vm17756_vm1, %v23780_v1  ;;  %v5228_v32 = vld [vmem:[%s17894_s15 + $0xa9] sm:$0xff] }
 0x34f   : > { %v15760_v8 = vpop.f32.mrf.mxu0  ;;  %v15945_v63 = vpop.f32.mrf.mxu1 }
 0x351   : > { %v3591_v56 = vpop.f32.mrf.mxu0  ;;  %v4281_v18 = vpop.f32.mrf.mxu1  ;;  %16099 = vmatmul.mubr.msk.f32.gmra.mxu0 %vm567_vm2, %v4529_v24  ;;  %16284 = vmatmul.mubr.msk.f32.gmra.mxu1 %vm567_vm2, %v5227_v58  ;;  %v4531_v58 = vld [vmem:[%s17894_s15 + $0xc0] sm:$0xff] }
 0x352   : > { %v3781_v37 = vadd.f32 %v3591_v56, %v19337_v41  ;;  %v20017_v31 = vadd.f32 %v4281_v18, %v3779_v33  ;;  %16101 = vmatprep.mubr.msk.f32.mxu0 %vm17756_vm1, %v23780_v1  ;;  %16286 = vmatprep.mubr.msk.f32.mxu1 %vm17756_vm1, %v23780_v1  ;;  %v5229_v56 = vld [vmem:[%s17894_s15 + $0xb1] sm:$0xff] }
 0x353   : > { %v15763_v51 = vpop.f32.mrf.mxu0  ;;  %v15948_v8 = vpop.f32.mrf.mxu1 }
 0x355   : > { %v3596_v63 = vpop.f32.mrf.mxu0  ;;  %v4286_v24 = vpop.f32.mrf.mxu1  ;;  %16102 = vmatmul.mubr.msk.f32.gmra.mxu0 %vm567_vm2, %v4530_v48  ;;  %16287 = vmatmul.mubr.msk.f32.gmra.mxu1 %vm567_vm2, %v5228_v32  ;;  %v4532_v32 = vld [vmem:[%s17894_s15 + $0xc8] sm:$0xff] }
 0x356   : > { %v3782_v41 = vadd.f32 %v3596_v63, %v19348_v50  ;;  %v20028_v33 = vadd.f32 %v4286_v24, %v3780_v35  ;;  %16104 = vmatprep.mubr.msk.f32.mxu0 %vm17756_vm1, %v23780_v1  ;;  %16289 = vmatprep.mubr.msk.f32.mxu1 %vm17756_vm1, %v23780_v1  ;;  %v5230_v63 = vld [vmem:[%s17894_s15 + $0xb9] sm:$0xff] }
 0x357   : > { %v15766_v18 = vpop.f32.mrf.mxu0  ;;  %v15951_v51 = vpop.f32.mrf.mxu1 }
 0x359   : > { %v3601_v8 = vpop.f32.mrf.mxu0  ;;  %v4291_v48 = vpop.f32.mrf.mxu1  ;;  %16105 = vmatmul.mubr.msk.f32.gmra.mxu0 %vm567_vm2, %v4531_v58  ;;  %16290 = vmatmul.mubr.msk.f32.gmra.mxu1 %vm567_vm2, %v5229_v56  ;;  %v4533_v56 = vld [vmem:[%s17894_s15 + $0xd0] sm:$0xff] }
 0x35a   : > { %v3783_v50 = vadd.f32 %v3601_v8, %v19359_v60  ;;  %v20039_v35 = vadd.f32 %v4291_v48, %v3781_v37  ;;  %16107 = vmatprep.mubr.msk.f32.mxu0 %vm17756_vm1, %v23780_v1  ;;  %16292 = vmatprep.mubr.msk.f32.mxu1 %vm17756_vm1, %v23780_v1  ;;  %v5231_v8 = vld [vmem:[%s17894_s15 + $0xc1] sm:$0xff] }
 0x35b   : > { %v15769_v24 = vpop.f32.mrf.mxu0  ;;  %v15954_v18 = vpop.f32.mrf.mxu1 }
 0x35d   : > { %v3606_v51 = vpop.f32.mrf.mxu0  ;;  %v4296_v58 = vpop.f32.mrf.mxu1  ;;  %16108 = vmatmul.mubr.msk.f32.gmra.mxu0 %vm567_vm2, %v4532_v32  ;;  %16293 = vmatmul.mubr.msk.f32.gmra.mxu1 %vm567_vm2, %v5230_v63  ;;  %v4534_v63 = vld [vmem:[%s17894_s15 + $0xd8] sm:$0xff] }
 0x35e   : > { %v3784_v60 = vadd.f32 %v3606_v51, %v19370_v9  ;;  %v20050_v37 = vadd.f32 %v4296_v58, %v3782_v41  ;;  %16110 = vmatprep.mubr.msk.f32.mxu0 %vm17756_vm1, %v23780_v1  ;;  %16295 = vmatprep.mubr.msk.f32.mxu1 %vm17756_vm1, %v23780_v1  ;;  %v5232_v51 = vld [vmem:[%s17894_s15 + $0xc9] sm:$0xff] }
 0x35f   : > { %v15772_v48 = vpop.f32.mrf.mxu0  ;;  %v15957_v24 = vpop.f32.mrf.mxu1 }
 0x361   : > { %v3611_v18 = vpop.f32.mrf.mxu0  ;;  %v4301_v32 = vpop.f32.mrf.mxu1  ;;  %16111 = vmatmul.mubr.msk.f32.gmra.mxu0 %vm567_vm2, %v4533_v56  ;;  %16296 = vmatmul.mubr.msk.f32.gmra.mxu1 %vm567_vm2, %v5231_v8  ;;  %v4535_v8 = vld [vmem:[%s17894_s15 + $0xe0] sm:$0xff] }
 0x362   : > { %v3785_v9 = vadd.f32 %v3611_v18, %v19381_v30  ;;  %v20061_v41 = vadd.f32 %v4301_v32, %v3783_v50  ;;  %16113 = vmatprep.mubr.msk.f32.mxu0 %vm17756_vm1, %v23780_v1  ;;  %16298 = vmatprep.mubr.msk.f32.mxu1 %vm17756_vm1, %v23780_v1  ;;  %v5233_v18 = vld [vmem:[%s17894_s15 + $0xd1] sm:$0xff] }
 0x363   : > { %v15775_v58 = vpop.f32.mrf.mxu0  ;;  %v15960_v48 = vpop.f32.mrf.mxu1 }
 0x365   : > { %v3616_v24 = vpop.f32.mrf.mxu0  ;;  %v4306_v56 = vpop.f32.mrf.mxu1  ;;  %16114 = vmatmul.mubr.msk.f32.gmra.mxu0 %vm567_vm2, %v4534_v63  ;;  %16299 = vmatmul.mubr.msk.f32.gmra.mxu1 %vm567_vm2, %v5232_v51  ;;  %v4536_v51 = vld [vmem:[%s17894_s15 + $0xe8] sm:$0xff] }
 0x366   : > { %v3786_v30 = vadd.f32 %v3616_v24, %v19392_v45  ;;  %v20072_v50 = vadd.f32 %v4306_v56, %v3784_v60  ;;  %16116 = vmatprep.mubr.msk.f32.mxu0 %vm17756_vm1, %v23780_v1  ;;  %16301 = vmatprep.mubr.msk.f32.mxu1 %vm17756_vm1, %v23780_v1  ;;  %v5234_v24 = vld [vmem:[%s17894_s15 + $0xd9] sm:$0xff] }
 0x367   : > { %v15778_v32 = vpop.f32.mrf.mxu0  ;;  %v15963_v58 = vpop.f32.mrf.mxu1 }
 0x369   : > { %v3621_v48 = vpop.f32.mrf.mxu0  ;;  %v4311_v63 = vpop.f32.mrf.mxu1  ;;  %16117 = vmatmul.mubr.msk.f32.gmra.mxu0 %vm567_vm2, %v4535_v8  ;;  %16302 = vmatmul.mubr.msk.f32.gmra.mxu1 %vm567_vm2, %v5233_v18  ;;  %v4537_v18 = vld [vmem:[%s17894_s15 + $0xf0] sm:$0xff] }
 0x36a   : > { %v3787_v45 = vadd.f32 %v3621_v48, %v19403_v57  ;;  %v20083_v60 = vadd.f32 %v4311_v63, %v3785_v9  ;;  %16119 = vmatprep.mubr.msk.f32.mxu0 %vm17756_vm1, %v23780_v1  ;;  %16304 = vmatprep.mubr.msk.f32.mxu1 %vm17756_vm1, %v23780_v1  ;;  %v5235_v48 = vld [vmem:[%s17894_s15 + $0xe1] sm:$0xff] }
 0x36b   : > { %v15781_v56 = vpop.f32.mrf.mxu0  ;;  %v15966_v32 = vpop.f32.mrf.mxu1 }
 0x36d   : > { %v3626_v58 = vpop.f32.mrf.mxu0  ;;  %v4316_v8 = vpop.f32.mrf.mxu1  ;;  %16120 = vmatmul.mubr.msk.f32.gmra.mxu0 %vm567_vm2, %v4536_v51  ;;  %16305 = vmatmul.mubr.msk.f32.gmra.mxu1 %vm567_vm2, %v5234_v24  ;;  %v4538_v24 = vld [vmem:[%s17894_s15 + $0xf8] sm:$0xff] }
 0x36e   : > { %v3788_v57 = vadd.f32 %v3626_v58, %v19414_v6  ;;  %v20094_v9 = vadd.f32 %v4316_v8, %v3786_v30  ;;  %16122 = vmatprep.mubr.msk.f32.mxu0 %vm17756_vm1, %v23780_v1  ;;  %16307 = vmatprep.mubr.msk.f32.mxu1 %vm17756_vm1, %v23780_v1  ;;  %v5236_v58 = vld [vmem:[%s17894_s15 + $0xe9] sm:$0xff] }
 0x36f   : > { %v15784_v63 = vpop.f32.mrf.mxu0  ;;  %v15969_v56 = vpop.f32.mrf.mxu1 }
 0x371   : > { %v3631_v32 = vpop.f32.mrf.mxu0  ;;  %v4321_v51 = vpop.f32.mrf.mxu1  ;;  %16123 = vmatmul.mubr.msk.f32.gmra.mxu0 %vm567_vm2, %v4537_v18  ;;  %16308 = vmatmul.mubr.msk.f32.gmra.mxu1 %vm567_vm2, %v5235_v48  ;;  %v4539_v48 = vld [vmem:[%s17894_s15 + $0x100] sm:$0xff] }
 0x372   : > { %v3789_v6 = vadd.f32 %v3631_v32, %v19425_v28  ;;  %v20105_v30 = vadd.f32 %v4321_v51, %v3787_v45  ;;  %16125 = vmatprep.mubr.msk.f32.mxu0 %vm17756_vm1, %v23780_v1  ;;  %16310 = vmatprep.mubr.msk.f32.mxu1 %vm17756_vm1, %v23780_v1  ;;  %v5237_v32 = vld [vmem:[%s17894_s15 + $0xf1] sm:$0xff] }
 0x373   : > { %v15787_v8 = vpop.f32.mrf.mxu0  ;;  %v15972_v63 = vpop.f32.mrf.mxu1 }
 0x375   : > { %v3636_v56 = vpop.f32.mrf.mxu0  ;;  %v4326_v18 = vpop.f32.mrf.mxu1  ;;  %16126 = vmatmul.mubr.msk.f32.gmra.mxu0 %vm567_vm2, %v4538_v24  ;;  %16311 = vmatmul.mubr.msk.f32.gmra.mxu1 %vm567_vm2, %v5236_v58  ;;  %v4540_v58 = vld [vmem:[%s17894_s15 + $0x108] sm:$0xff] }
 0x376   : > { %v3790_v28 = vadd.f32 %v3636_v56, %v19436_v47  ;;  %v20116_v45 = vadd.f32 %v4326_v18, %v3788_v57  ;;  %16128 = vmatprep.mubr.msk.f32.mxu0 %vm17756_vm1, %v23780_v1  ;;  %16313 = vmatprep.mubr.msk.f32.mxu1 %vm17756_vm1, %v23780_v1  ;;  %v5238_v56 = vld [vmem:[%s17894_s15 + $0xf9] sm:$0xff] }
 0x377   : > { %v15790_v51 = vpop.f32.mrf.mxu0  ;;  %v15975_v8 = vpop.f32.mrf.mxu1 }
 0x379   : > { %v3641_v63 = vpop.f32.mrf.mxu0  ;;  %v4331_v24 = vpop.f32.mrf.mxu1  ;;  %16129 = vmatmul.mubr.msk.f32.gmra.mxu0 %vm567_vm2, %v4539_v48  ;;  %16314 = vmatmul.mubr.msk.f32.gmra.mxu1 %vm567_vm2, %v5237_v32  ;;  %v4541_v32 = vld [vmem:[%s17894_s15 + $0x110] sm:$0xff] }
 0x37a   : > { %v3791_v47 = vadd.f32 %v3641_v63, %v19447_v59  ;;  %v20127_v57 = vadd.f32 %v4331_v24, %v3789_v6  ;;  %16131 = vmatprep.mubr.msk.f32.mxu0 %vm17756_vm1, %v23780_v1  ;;  %16316 = vmatprep.mubr.msk.f32.mxu1 %vm17756_vm1, %v23780_v1  ;;  %v5239_v63 = vld [vmem:[%s17894_s15 + $0x101] sm:$0xff] }
 0x37b   : > { %v15793_v18 = vpop.f32.mrf.mxu0  ;;  %v15978_v51 = vpop.f32.mrf.mxu1 }
 0x37d   : > { %v3646_v8 = vpop.f32.mrf.mxu0  ;;  %v4336_v48 = vpop.f32.mrf.mxu1  ;;  %16132 = vmatmul.mubr.msk.f32.gmra.mxu0 %vm567_vm2, %v4540_v58  ;;  %16317 = vmatmul.mubr.msk.f32.gmra.mxu1 %vm567_vm2, %v5238_v56  ;;  %v4542_v56 = vld [vmem:[%s17894_s15 + $0x118] sm:$0xff] }
 0x37e   : > { %v3792_v59 = vadd.f32 %v3646_v8, %v19458_v14  ;;  %v20138_v6 = vadd.f32 %v4336_v48, %v3790_v28  ;;  %16134 = vmatprep.mubr.msk.f32.mxu0 %vm17756_vm1, %v23780_v1  ;;  %16319 = vmatprep.mubr.msk.f32.mxu1 %vm17756_vm1, %v23780_v1  ;;  %v5240_v8 = vld [vmem:[%s17894_s15 + $0x109] sm:$0xff] }
 0x37f   : > { %v15796_v24 = vpop.f32.mrf.mxu0  ;;  %v15981_v18 = vpop.f32.mrf.mxu1 }
 0x381   : > { %v3651_v51 = vpop.f32.mrf.mxu0  ;;  %v4341_v58 = vpop.f32.mrf.mxu1  ;;  %16135 = vmatmul.mubr.msk.f32.gmra.mxu0 %vm567_vm2, %v4541_v32  ;;  %16320 = vmatmul.mubr.msk.f32.gmra.mxu1 %vm567_vm2, %v5239_v63  ;;  %v4543_v63 = vld [vmem:[%s17894_s15 + $0x120] sm:$0xff] }
 0x382   : > { %v3793_v14 = vadd.f32 %v3651_v51, %v19469_v40  ;;  %v20149_v28 = vadd.f32 %v4341_v58, %v3791_v47  ;;  %16137 = vmatprep.mubr.msk.f32.mxu0 %vm17756_vm1, %v23780_v1  ;;  %16322 = vmatprep.mubr.msk.f32.mxu1 %vm17756_vm1, %v23780_v1  ;;  %v5241_v51 = vld [vmem:[%s17894_s15 + $0x111] sm:$0xff] }
 0x383   : > { %v15799_v48 = vpop.f32.mrf.mxu0  ;;  %v15984_v24 = vpop.f32.mrf.mxu1 }
 0x385   : > { %v3656_v18 = vpop.f32.mrf.mxu0  ;;  %v4346_v32 = vpop.f32.mrf.mxu1  ;;  %16138 = vmatmul.mubr.msk.f32.gmra.mxu0 %vm567_vm2, %v4542_v56  ;;  %16323 = vmatmul.mubr.msk.f32.gmra.mxu1 %vm567_vm2, %v5240_v8  ;;  %v4544_v8 = vld [vmem:[%s17894_s15 + $0x128] sm:$0xff] }
 0x386   : > { %v3794_v40 = vadd.f32 %v3656_v18, %v19484_v3  ;;  %v20160_v47 = vadd.f32 %v4346_v32, %v3792_v59  ;;  %16140 = vmatprep.mubr.msk.f32.mxu0 %vm17756_vm1, %v23780_v1  ;;  %16325 = vmatprep.mubr.msk.f32.mxu1 %vm17756_vm1, %v23780_v1  ;;  %v5242_v18 = vld [vmem:[%s17894_s15 + $0x119] sm:$0xff] }
 0x387   : > { %v15802_v58 = vpop.f32.mrf.mxu0  ;;  %v15987_v48 = vpop.f32.mrf.mxu1 }
 0x389   : > { %v3661_v24 = vpop.f32.mrf.mxu0  ;;  %v4351_v56 = vpop.f32.mrf.mxu1  ;;  %16141 = vmatmul.mubr.msk.f32.gmra.mxu0 %vm567_vm2, %v4543_v63  ;;  %16326 = vmatmul.mubr.msk.f32.gmra.mxu1 %vm567_vm2, %v5241_v51  ;;  %v4545_v51 = vld [vmem:[%s17894_s15 + $0x130] sm:$0xff] }
 0x38a   : > { %v3795_v3 = vadd.f32 %v3661_v24, %v19495_v11  ;;  %v20171_v59 = vadd.f32 %v4351_v56, %v3793_v14  ;;  %16143 = vmatprep.mubr.msk.f32.mxu0 %vm17756_vm1, %v23780_v1  ;;  %16328 = vmatprep.mubr.msk.f32.mxu1 %vm17756_vm1, %v23780_v1  ;;  %v5243_v24 = vld [vmem:[%s17894_s15 + $0x121] sm:$0xff] }
 0x38b   : > { %v15805_v32 = vpop.f32.mrf.mxu0  ;;  %v15990_v58 = vpop.f32.mrf.mxu1 }
 0x38d   : > { %v3666_v48 = vpop.f32.mrf.mxu0  ;;  %v4356_v63 = vpop.f32.mrf.mxu1  ;;  %16144 = vmatmul.mubr.msk.f32.gmra.mxu0 %vm567_vm2, %v4544_v8  ;;  %16329 = vmatmul.mubr.msk.f32.gmra.mxu1 %vm567_vm2, %v5242_v18  ;;  %v4546_v18 = vld [vmem:[%s17894_s15 + $0x138] sm:$0xff] }
 0x38e   : > { %v3796_v11 = vadd.f32 %v3666_v48, %v19506_v43  ;;  %v20182_v14 = vadd.f32 %v4356_v63, %v3794_v40  ;;  %16146 = vmatprep.mubr.msk.f32.mxu0 %vm17756_vm1, %v23780_v1  ;;  %16331 = vmatprep.mubr.msk.f32.mxu1 %vm17756_vm1, %v23780_v1  ;;  %v5244_v48 = vld [vmem:[%s17894_s15 + $0x129] sm:$0xff] }
 0x38f   : > { %v15808_v56 = vpop.f32.mrf.mxu0  ;;  %v15993_v32 = vpop.f32.mrf.mxu1 }
 0x391   : > { %v3671_v58 = vpop.f32.mrf.mxu0  ;;  %v4361_v8 = vpop.f32.mrf.mxu1  ;;  %16147 = vmatmul.mubr.msk.f32.gmra.mxu0 %vm567_vm2, %v4545_v51  ;;  %16332 = vmatmul.mubr.msk.f32.gmra.mxu1 %vm567_vm2, %v5243_v24 }
 0x392   : > { %v3797_v43 = vadd.f32 %v3671_v58, %v19517_v42  ;;  %v20193_v40 = vadd.f32 %v4361_v8, %v3795_v3  ;;  %16149 = vmatprep.mubr.msk.f32.mxu0 %vm17756_vm1, %v23780_v1  ;;  %16334 = vmatprep.mubr.msk.f32.mxu1 %vm17756_vm1, %v23780_v1  ;;  %v23826_v42 = vld [vmem:[#allocation22_spill] sm:$0xff]  ;;  %v4547_v58 = vld [vmem:[%s17894_s15 + $0x140] sm:$0xff] }
 0x393   : > { %v15811_v63 = vpop.f32.mrf.mxu0  ;;  %v15996_v56 = vpop.f32.mrf.mxu1  ;;  %v5245_v8 = vld [vmem:[%s17894_s15 + $0x131] sm:$0xff] }
 0x394   : > { %23825 = vst [vmem:[#allocation10_spill] sm:$0xff] %v20193_v40 }
 0x395   : > { %v3676_v32 = vpop.f32.mrf.mxu0  ;;  %v4366_v51 = vpop.f32.mrf.mxu1  ;;  %16150 = vmatmul.mubr.msk.f32.gmra.mxu0 %vm567_vm2, %v4546_v18  ;;  %16335 = vmatmul.mubr.msk.f32.gmra.mxu1 %vm567_vm2, %v5244_v48  ;;  %v23828_v48 = vld [vmem:[#allocation11_spill] sm:$0xff] }
 0x396   : > { %v3798_v3 = vadd.f32 %v3676_v32, %v23826_v42  ;;  %v20204_v24 = vadd.f32 %v4366_v51, %v3796_v11  ;;  %16152 = vmatprep.mubr.msk.f32.mxu0 %vm17756_vm1, %v23780_v1  ;;  %16337 = vmatprep.mubr.msk.f32.mxu1 %vm17756_vm1, %v23780_v1  ;;  %v4548_v51 = vld [vmem:[%s17894_s15 + $0x148] sm:$0xff]  ;;  %v5246_v42 = vld [vmem:[%s17894_s15 + $0x139] sm:$0xff] }
 0x397   : > { %v15814_v63 = vpop.f32.mrf.mxu0  ;;  %v15999_v56 = vpop.f32.mrf.mxu1 }
 0x398   : > { %23827 = vst [vmem:[#allocation21_spill] sm:$0xff] %v20204_v24 }
 0x399   : > { %v3681_v40 = vpop.f32.mrf.mxu0  ;;  %v4371_v18 = vpop.f32.mrf.mxu1  ;;  %16153 = vmatmul.mubr.msk.f32.gmra.mxu0 %vm567_vm2, %v4547_v58  ;;  %16338 = vmatmul.mubr.msk.f32.gmra.mxu1 %vm567_vm2, %v5245_v8 }
 0x39a   : > { %v3799_v11 = vadd.f32 %v3681_v40, %v23828_v48  ;;  %v20215_v32 = vadd.f32 %v4371_v18, %v3797_v43  ;;  %16155 = vmatprep.mubr.msk.f32.mxu0 %vm17756_vm1, %v23780_v1  ;;  %16340 = vmatprep.mubr.msk.f32.mxu1 %vm17756_vm1, %v23780_v1  ;;  %v23830_v40 = vld [vmem:[#allocation12_spill] sm:$0xff]  ;;  %v4549_v18 = vld [vmem:[%s17894_s15 + $0x150] sm:$0xff] }
 0x39b   : > { %v15817_v63 = vpop.f32.mrf.mxu0  ;;  %v16002_v56 = vpop.f32.mrf.mxu1  ;;  %v5247_v48 = vld [vmem:[%s17894_s15 + $0x141] sm:$0xff] }
 0x39c   : > { %23829 = vst [vmem:[#allocation22_spill] sm:$0xff] %v20215_v32 }
 0x39d   : > { %v3686_v24 = vpop.f32.mrf.mxu0  ;;  %v4376_v58 = vpop.f32.mrf.mxu1  ;;  %16156 = vmatmul.mubr.msk.f32.gmra.mxu0 %vm567_vm2, %v4548_v51  ;;  %16341 = vmatmul.mubr.msk.f32.gmra.mxu1 %vm567_vm2, %v5246_v42 }
 0x39e   : > { %v3800_v43 = vadd.f32 %v3686_v24, %v23830_v40  ;;  %v20226_v8 = vadd.f32 %v4376_v58, %v3798_v3  ;;  %16158 = vmatprep.mubr.msk.f32.mxu0 %vm17756_vm1, %v23780_v1  ;;  %16343 = vmatprep.mubr.msk.f32.mxu1 %vm17756_vm1, %v23780_v1  ;;  %v23832_v24 = vld [vmem:[#allocation13_spill] sm:$0xff]  ;;  %v4550_v58 = vld [vmem:[%s17894_s15 + $0x158] sm:$0xff] }
 0x39f   : > { %v15820_v63 = vpop.f32.mrf.mxu0  ;;  %v16005_v56 = vpop.f32.mrf.mxu1  ;;  %v5248_v40 = vld [vmem:[%s17894_s15 + $0x149] sm:$0xff] }
 0x3a0   : > { %23831 = vst [vmem:[#allocation11_spill] sm:$0xff] %v20226_v8 }
 0x3a1   : > { %v3691_v32 = vpop.f32.mrf.mxu0  ;;  %v4381_v51 = vpop.f32.mrf.mxu1  ;;  %16159 = vmatmul.mubr.msk.f32.gmra.mxu0 %vm567_vm2, %v4549_v18  ;;  %16344 = vmatmul.mubr.msk.f32.gmra.mxu1 %vm567_vm2, %v5247_v48 }
 0x3a2   : > { %v3801_v3 = vadd.f32 %v3691_v32, %v23832_v24  ;;  %v20237_v42 = vadd.f32 %v4381_v51, %v3799_v11  ;;  %16161 = vmatprep.mubr.msk.f32.mxu0 %vm17756_vm1, %v23780_v1  ;;  %16346 = vmatprep.mubr.msk.f32.mxu1 %vm17756_vm1, %v23780_v1  ;;  %v23834_v32 = vld [vmem:[#allocation14_spill] sm:$0xff]  ;;  %v4551_v51 = vld [vmem:[%s17894_s15 + $0x160] sm:$0xff] }
 0x3a3   : > { %v15823_v63 = vpop.f32.mrf.mxu0  ;;  %v16008_v56 = vpop.f32.mrf.mxu1  ;;  %v5249_v24 = vld [vmem:[%s17894_s15 + $0x151] sm:$0xff] }
 0x3a4   : > { %23833 = vst [vmem:[#allocation12_spill] sm:$0xff] %v20237_v42 }
 0x3a5   : > { %v3696_v8 = vpop.f32.mrf.mxu0  ;;  %v4386_v18 = vpop.f32.mrf.mxu1  ;;  %16162 = vmatmul.mubr.msk.f32.gmra.mxu0 %vm567_vm2, %v4550_v58  ;;  %16347 = vmatmul.mubr.msk.f32.gmra.mxu1 %vm567_vm2, %v5248_v40 }
 0x3a6   : > { %v3802_v11 = vadd.f32 %v3696_v8, %v23834_v32  ;;  %v20248_v48 = vadd.f32 %v4386_v18, %v3800_v43  ;;  %16164 = vmatprep.mubr.msk.f32.mxu0 %vm17756_vm1, %v23780_v1  ;;  %16349 = vmatprep.mubr.msk.f32.mxu1 %vm17756_vm1, %v23780_v1  ;;  %v23836_v8 = vld [vmem:[#allocation15_spill] sm:$0xff]  ;;  %v4552_v18 = vld [vmem:[%s17894_s15 + $0x168] sm:$0xff] }
 0x3a7   : > { %v15826_v63 = vpop.f32.mrf.mxu0  ;;  %v16011_v56 = vpop.f32.mrf.mxu1  ;;  %v5250_v32 = vld [vmem:[%s17894_s15 + $0x159] sm:$0xff] }
 0x3a8   : > { %23835 = vst [vmem:[#allocation13_spill] sm:$0xff] %v20248_v48 }
 0x3a9   : > { %v3701_v42 = vpop.f32.mrf.mxu0  ;;  %v4391_v58 = vpop.f32.mrf.mxu1  ;;  %16165 = vmatmul.mubr.msk.f32.gmra.mxu0 %vm567_vm2, %v4551_v51  ;;  %16350 = vmatmul.mubr.msk.f32.gmra.mxu1 %vm567_vm2, %v5249_v24 }
 0x3aa   : > { %v3803_v43 = vadd.f32 %v3701_v42, %v23836_v8  ;;  %v20259_v40 = vadd.f32 %v4391_v58, %v3801_v3  ;;  %16167 = vmatprep.mubr.msk.f32.mxu0 %vm17756_vm1, %v23780_v1  ;;  %16352 = vmatprep.mubr.msk.f32.mxu1 %vm17756_vm1, %v23780_v1  ;;  %v23838_v42 = vld [vmem:[#allocation16_spill] sm:$0xff]  ;;  %v4553_v58 = vld [vmem:[%s17894_s15 + $0x170] sm:$0xff] }
 0x3ab   : > { %v15829_v63 = vpop.f32.mrf.mxu0  ;;  %v16014_v56 = vpop.f32.mrf.mxu1  ;;  %v5251_v8 = vld [vmem:[%s17894_s15 + $0x161] sm:$0xff] }
 0x3ac   : > { %23837 = vst [vmem:[#allocation14_spill] sm:$0xff] %v20259_v40 }
 0x3ad   : > { %v3706_v48 = vpop.f32.mrf.mxu0  ;;  %v4396_v51 = vpop.f32.mrf.mxu1  ;;  %16168 = vmatmul.mubr.msk.f32.gmra.mxu0 %vm567_vm2, %v4552_v18  ;;  %16353 = vmatmul.mubr.msk.f32.gmra.mxu1 %vm567_vm2, %v5250_v32 }
 0x3ae   : > { %v3804_v3 = vadd.f32 %v3706_v48, %v23838_v42  ;;  %v20270_v24 = vadd.f32 %v4396_v51, %v3802_v11  ;;  %16170 = vmatprep.mubr.msk.f32.mxu0 %vm17756_vm1, %v23780_v1  ;;  %16355 = vmatprep.mubr.msk.f32.mxu1 %vm17756_vm1, %v23780_v1  ;;  %v23840_v48 = vld [vmem:[#allocation17_spill] sm:$0xff]  ;;  %v4554_v51 = vld [vmem:[%s17894_s15 + $0x178] sm:$0xff] }
 0x3af   : > { %v15832_v63 = vpop.f32.mrf.mxu0  ;;  %v16017_v56 = vpop.f32.mrf.mxu1  ;;  %v5252_v42 = vld [vmem:[%s17894_s15 + $0x169] sm:$0xff] }
 0x3b0   : > { %23839 = vst [vmem:[#allocation15_spill] sm:$0xff] %v20270_v24 }
 0x3b1   : > { %v3711_v40 = vpop.f32.mrf.mxu0  ;;  %v4401_v18 = vpop.f32.mrf.mxu1  ;;  %16171 = vmatmul.mubr.msk.f32.gmra.mxu0 %vm567_vm2, %v4553_v58  ;;  %16356 = vmatmul.mubr.msk.f32.gmra.mxu1 %vm567_vm2, %v5251_v8 }
 0x3b2   : > { %v3805_v11 = vadd.f32 %v3711_v40, %v23840_v48  ;;  %v20281_v32 = vadd.f32 %v4401_v18, %v3803_v43  ;;  %16173 = vmatprep.mubr.msk.f32.mxu0 %vm17756_vm1, %v23780_v1  ;;  %16358 = vmatprep.mubr.msk.f32.mxu1 %vm17756_vm1, %v23780_v1  ;;  %v23842_v40 = vld [vmem:[#allocation18_spill] sm:$0xff]  ;;  %v4555_v18 = vld [vmem:[%s17894_s15 + $0x180] sm:$0xff] }
 0x3b3   : > { %v15835_v63 = vpop.f32.mrf.mxu0  ;;  %v16020_v56 = vpop.f32.mrf.mxu1  ;;  %v5253_v48 = vld [vmem:[%s17894_s15 + $0x171] sm:$0xff] }
 0x3b4   : > { %23841 = vst [vmem:[#allocation16_spill] sm:$0xff] %v20281_v32 }
 0x3b5   : > { %v3716_v24 = vpop.f32.mrf.mxu0  ;;  %v4406_v58 = vpop.f32.mrf.mxu1  ;;  %16174 = vmatmul.mubr.msk.f32.gmra.mxu0 %vm567_vm2, %v4554_v51  ;;  %16359 = vmatmul.mubr.msk.f32.gmra.mxu1 %vm567_vm2, %v5252_v42 }
 0x3b6   : > { %v3806_v43 = vadd.f32 %v3716_v24, %v23842_v40  ;;  %v20292_v8 = vadd.f32 %v4406_v58, %v3804_v3  ;;  %16176 = vmatprep.mubr.msk.f32.mxu0 %vm17756_vm1, %v23780_v1  ;;  %16361 = vmatprep.mubr.msk.f32.mxu1 %vm17756_vm1, %v23780_v1  ;;  %v23844_v24 = vld [vmem:[#allocation19_spill] sm:$0xff]  ;;  %v4556_v58 = vld [vmem:[%s17894_s15 + $0x188] sm:$0xff] }
 0x3b7   : > { %v15838_v63 = vpop.f32.mrf.mxu0  ;;  %v16023_v56 = vpop.f32.mrf.mxu1  ;;  %v5254_v40 = vld [vmem:[%s17894_s15 + $0x179] sm:$0xff] }
 0x3b8   : > { %23843 = vst [vmem:[#allocation17_spill] sm:$0xff] %v20292_v8 }
 0x3b9   : > { %v3721_v32 = vpop.f32.mrf.mxu0  ;;  %v4411_v51 = vpop.f32.mrf.mxu1  ;;  %16177 = vmatmul.mubr.msk.f32.gmra.mxu0 %vm567_vm2, %v4555_v18  ;;  %16362 = vmatmul.mubr.msk.f32.gmra.mxu1 %vm567_vm2, %v5253_v48 }
 0x3ba   : > { %v3807_v3 = vadd.f32 %v3721_v32, %v23844_v24  ;;  %v20303_v42 = vadd.f32 %v4411_v51, %v3805_v11  ;;  %16179 = vmatprep.mubr.msk.f32.mxu0 %vm17756_vm1, %v23780_v1  ;;  %16364 = vmatprep.mubr.msk.f32.mxu1 %vm17756_vm1, %v23780_v1  ;;  %v23846_v32 = vld [vmem:[#allocation20_spill] sm:$0xff]  ;;  %v4557_v51 = vld [vmem:[%s17894_s15 + $0x190] sm:$0xff] }
 0x3bb   : > { %v15841_v63 = vpop.f32.mrf.mxu0  ;;  %v16026_v56 = vpop.f32.mrf.mxu1  ;;  %v5255_v24 = vld [vmem:[%s17894_s15 + $0x181] sm:$0xff] }
 0x3bc   : > { %23845 = vst [vmem:[#allocation18_spill] sm:$0xff] %v20303_v42 }
 0x3bd   : > { %v3726_v8 = vpop.f32.mrf.mxu0  ;;  %v4416_v18 = vpop.f32.mrf.mxu1  ;;  %16180 = vmatmul.mubr.msk.f32.gmra.mxu0 %vm567_vm2, %v4556_v58  ;;  %16365 = vmatmul.mubr.msk.f32.gmra.mxu1 %vm567_vm2, %v5254_v40  ;;  %v4558_v40 = vld [vmem:[%s17894_s15 + $0x198] sm:$0xff] }
 0x3be   : > { %v3808_v11 = vadd.f32 %v3726_v8, %v23846_v32  ;;  %v20314_v48 = vadd.f32 %v4416_v18, %v3806_v43  ;;  %16182 = vmatprep.mubr.msk.f32.mxu0 %vm17756_vm1, %v23780_v1  ;;  %16367 = vmatprep.mubr.msk.f32.mxu1 %vm17756_vm1, %v23780_v1  ;;  %v5256_v18 = vld [vmem:[%s17894_s15 + $0x189] sm:$0xff] }
 0x3bf   : > { %v15844_v63 = vpop.f32.mrf.mxu0  ;;  %v16029_v56 = vpop.f32.mrf.mxu1 }
 0x3c1   : > { %v3731_v42 = vpop.f32.mrf.mxu0  ;;  %v4421_v58 = vpop.f32.mrf.mxu1  ;;  %16183 = vmatmul.mubr.msk.f32.gmra.mxu0 %vm567_vm2, %v4557_v51  ;;  %16368 = vmatmul.mubr.msk.f32.gmra.mxu1 %vm567_vm2, %v5255_v24  ;;  %v5257_v24 = vld [vmem:[%s17894_s15 + $0x191] sm:$0xff] }
 0x3c2   : > { %v3809_v43 = vadd.f32 %v3731_v42, %v19649_v54  ;;  %v20325_v8 = vadd.f32 %v4421_v58, %v3807_v3  ;;  %16185 = vmatprep.mubr.msk.f32.mxu0 %vm17756_vm1, %v23780_v1  ;;  %16370 = vmatprep.mubr.msk.f32.mxu1 %vm17756_vm1, %v23780_v1  ;;  %v4559_v42 = vld [vmem:[%s17894_s15 + $0x1a0] sm:$0xff] }
 0x3c3   : > { %v15847_v32 = vpop.f32.mrf.mxu0  ;;  %v16032_v63 = vpop.f32.mrf.mxu1 }
 0x3c5   : > { %v3736_v56 = vpop.f32.mrf.mxu0  ;;  %v4426_v51 = vpop.f32.mrf.mxu1  ;;  %16186 = vmatmul.mubr.msk.f32.gmra.mxu0 %vm567_vm2, %v4558_v40  ;;  %16371 = vmatmul.mubr.msk.f32.gmra.mxu1 %vm567_vm2, %v5256_v18  ;;  %v4560_v18 = vld [vmem:[%s17894_s15 + $0x1a8] sm:$0xff] }
 0x3c6   : > { %v3810_v54 = vadd.f32 %v3736_v56, %v19661_v49  ;;  %v20336_v3 = vadd.f32 %v4426_v51, %v3808_v11  ;;  %16188 = vmatprep.mubr.msk.f32.mxu0 %vm17756_vm1, %v23780_v1  ;;  %16373 = vmatprep.mubr.msk.f32.mxu1 %vm17756_vm1, %v23780_v1  ;;  %v5258_v56 = vld [vmem:[%s17894_s15 + $0x199] sm:$0xff] }
 0x3c7   : > { %v15850_v58 = vpop.f32.mrf.mxu0  ;;  %v16035_v32 = vpop.f32.mrf.mxu1 }
 0x3c9   : > { %v3741_v63 = vpop.f32.mrf.mxu0  ;;  %v4431_v40 = vpop.f32.mrf.mxu1  ;;  %16189 = vmatmul.mubr.msk.f32.gmra.mxu0 %vm567_vm2, %v4559_v42  ;;  %16374 = vmatmul.mubr.msk.f32.gmra.mxu1 %vm567_vm2, %v5257_v24  ;;  %v4561_v24 = vld [vmem:[%s17894_s15 + $0x1b0] sm:$0xff] }
 0x3ca   : > { %v3811_v49 = vadd.f32 %v3741_v63, %v19671_v36  ;;  %v20347_v11 = vadd.f32 %v4431_v40, %v3809_v43  ;;  %16191 = vmatprep.mubr.msk.f32.mxu0 %vm17756_vm1, %v23780_v1  ;;  %16376 = vmatprep.mubr.msk.f32.mxu1 %vm17756_vm1, %v23780_v1  ;;  %v5259_v63 = vld [vmem:[%s17894_s15 + $0x1a1] sm:$0xff] }
 0x3cb   : > { %v15853_v51 = vpop.f32.mrf.mxu0  ;;  %v16038_v58 = vpop.f32.mrf.mxu1 }
 0x3cd   : > { %v3746_v32 = vpop.f32.mrf.mxu0  ;;  %v4436_v42 = vpop.f32.mrf.mxu1  ;;  %16192 = vmatmul.mubr.msk.f32.gmra.mxu0 %vm567_vm2, %v4560_v18  ;;  %16377 = vmatmul.mubr.msk.f32.gmra.mxu1 %vm567_vm2, %v5258_v56  ;;  %v4562_v56 = vld [vmem:[%s17894_s15 + $0x1b8] sm:$0xff] }
 0x3ce   : > { %v3812_v36 = vadd.f32 %v3746_v32, %v19682_v20  ;;  %v20358_v43 = vadd.f32 %v4436_v42, %v3810_v54  ;;  %16194 = vmatprep.mubr.msk.f32.mxu0 %vm17756_vm1, %v23780_v1  ;;  %16379 = vmatprep.mubr.msk.f32.mxu1 %vm17756_vm1, %v23780_v1  ;;  %v5260_v32 = vld [vmem:[%s17894_s15 + $0x1a9] sm:$0xff] }
 0x3cf   : > { %v15856_v40 = vpop.f32.mrf.mxu0  ;;  %v16041_v51 = vpop.f32.mrf.mxu1 }
 0x3d1   : > { %v4441_v58 = vpop.f32.mrf.mxu1  ;;  %v4836_v18 = vpop.f32.mrf.mxu0  ;;  %16195 = vmatmul.mubr.msk.f32.gmra.mxu0 %vm567_vm2, %v4561_v24  ;;  %16380 = vmatmul.mubr.msk.f32.gmra.mxu1 %vm567_vm2, %v5259_v63  ;;  %v4563_v63 = vld [vmem:[%s17894_s15 + $0x1c0] sm:$0xff] }
 0x3d2   : > { %v20368_v20 = vadd.f32 %v4441_v58, %v3811_v49  ;;  %v5150_v54 = vadd.f32 %v4836_v18, %v19694_v22  ;;  %16197 = vmatprep.mubr.msk.f32.mxu0 %vm17756_vm1, %v23780_v1  ;;  %16382 = vmatprep.mubr.msk.f32.mxu1 %vm17756_vm1, %v23780_v1  ;;  %v5261_v58 = vld [vmem:[%s17894_s15 + $0x1b1] sm:$0xff] }
 0x3d3   : > { %v16044_v42 = vpop.f32.mrf.mxu1  ;;  %v16052_v40 = vpop.f32.mrf.mxu0 }
 0x3d5   : > { %v4446_v51 = vpop.f32.mrf.mxu1  ;;  %v4841_v24 = vpop.f32.mrf.mxu0  ;;  %16198 = vmatmul.mubr.msk.f32.gmra.mxu0 %vm567_vm2, %v4562_v56  ;;  %16383 = vmatmul.mubr.msk.f32.gmra.mxu1 %vm567_vm2, %v5260_v32  ;;  %v4564_v32 = vld [vmem:[%s17894_s15 + $0x1c8] sm:$0xff] }
 0x3d6   : > { %v20379_v49 = vadd.f32 %v4446_v51, %v3812_v36  ;;  %v5151_v22 = vadd.f32 %v4841_v24, %v19705_v55  ;;  %16200 = vmatprep.mubr.msk.f32.mxu0 %vm17756_vm1, %v23780_v1  ;;  %16385 = vmatprep.mubr.msk.f32.mxu1 %vm17756_vm1, %v23780_v1  ;;  %v5262_v51 = vld [vmem:[%s17894_s15 + $0x1b9] sm:$0xff] }
 0x3d7   : > { %v16047_v18 = vpop.f32.mrf.mxu1  ;;  %v16055_v42 = vpop.f32.mrf.mxu0 }
 0x3d9   : > { %v4846_v40 = vpop.f32.mrf.mxu0  ;;  %16201 = vmatmul.mubr.msk.f32.gmra.mxu0 %vm567_vm2, %v4563_v63  ;;  %v5536_v56 = vpop.f32.mrf.mxu1  ;;  %16386 = vmatmul.mubr.msk.f32.gmra.mxu1 %vm567_vm2, %v5261_v58  ;;  %v13375_v63 = vld [vmem:[%s23847_s3 + $0x18] sm:$0x3] }
 0x3da   : > { %v5152_v36 = vadd.f32 %v4846_v40, %v19716_v5  ;;  %v20391_v55 = vadd.f32 %v5536_v56, %v5150_v54  ;;  %16203 = vmatprep.mubr.msk.f32.mxu0 %vm17756_vm1, %v23780_v1  ;;  %16388 = vmatprep.mubr.msk.f32.mxu1 %vm17756_vm1, %v23780_v1  ;;  %v4565_v40 = vld [vmem:[%s17894_s15 + $0x1d0] sm:$0xff]  ;;  %v5263_v56 = vld [vmem:[%s17894_s15 + $0x1c1] sm:$0xff] }
 0x3db   : > { %v16058_v24 = vpop.f32.mrf.mxu0  ;;  %v16243_v18 = vpop.f32.mrf.mxu1  ;;  %16621 = vmatprep.subr.msk.mxu1 %vm7115_vm3, %v13375_v63 }
 0x3dc   : > { %16622 = vmatpush3.msk.msra.mxu1 %vm7115_vm3, %v13375_v63  ;;  %v5264_v63 = vld [vmem:[%s17894_s15 + $0x1c9] sm:$0xff] }
 0x3dd   : > { %v4851_v5 = vpop.f32.mrf.mxu0  ;;  %16204 = vmatmul.mubr.msk.f32.gmra.mxu0 %vm567_vm2, %v4564_v32  ;;  %v5541_v54 = vpop.f32.mrf.mxu1  ;;  %16389 = vmatmul.mubr.msk.f32.gmra.mxu1 %vm567_vm2, %v5262_v51 }
 0x3de   : > { %v5153_v58 = vadd.f32 %v4851_v5, %v19727_v16  ;;  %v20406_v42 = vadd.f32 %v5541_v54, %v5151_v22  ;;  %16206 = vmatprep.mubr.msk.f32.mxu0 %vm17756_vm1, %v23780_v1  ;;  %16391 = vmatprep.mubr.msk.f32.mxu1 %vm17756_vm1, %v23780_v1  ;;  %v4566_v5 = vld [vmem:[%s17894_s15 + $0x1d8] sm:$0xff] }
 0x3df   : > { %v16061_v24 = vpop.f32.mrf.mxu0  ;;  %v16246_v18 = vpop.f32.mrf.mxu1 }
 0x3e0   : > { %v4567_v18 = vld [vmem:[%s17894_s15 + $0x1e0] sm:$0xff] }
 0x3e1   : > { %v4856_v32 = vpop.f32.mrf.mxu0  ;;  %16207 = vmatmul.mubr.msk.f32.gmra.mxu0 %vm567_vm2, %v4565_v40  ;;  %v5546_v16 = vpop.f32.mrf.mxu1  ;;  %16392 = vmatmul.mubr.msk.f32.gmra.mxu1 %vm567_vm2, %v5263_v56 }
 0x3e2   : > { %v5154_v22 = vadd.f32 %v4856_v32, %v19738_v61  ;;  %v20418_v51 = vadd.f32 %v5546_v16, %v5152_v36  ;;  %16209 = vmatprep.mubr.msk.f32.mxu0 %vm17756_vm1, %v23780_v1  ;;  %16394 = vmatprep.mubr.msk.f32.mxu1 %vm17756_vm1, %v23780_v1  ;;  %v5265_v32 = vld [vmem:[%s17894_s15 + $0x1d1] sm:$0xff] }
 0x3e3   : > { %v16064_v54 = vpop.f32.mrf.mxu0  ;;  %v16249_v24 = vpop.f32.mrf.mxu1 }
 0x3e4   : > { %v4568_v24 = vld [vmem:[%s17894_s15 + $0x1e8] sm:$0xff] }
 0x3e5   : > { %v4861_v40 = vpop.f32.mrf.mxu0  ;;  %16210 = vmatmul.mubr.msk.f32.gmra.mxu0 %vm567_vm2, %v4566_v5  ;;  %v5551_v56 = vpop.f32.mrf.mxu1  ;;  %16395 = vmatmul.mubr.msk.f32.gmra.mxu1 %vm567_vm2, %v5264_v63 }
 0x3e6   : > { %v5155_v61 = vadd.f32 %v4861_v40, %v19749_v4  ;;  %v20429_v36 = vadd.f32 %v5551_v56, %v5153_v58  ;;  %16212 = vmatprep.mubr.msk.f32.mxu0 %vm17756_vm1, %v23780_v1  ;;  %16397 = vmatprep.mubr.msk.f32.mxu1 %vm17756_vm1, %v23780_v1  ;;  %v5266_v40 = vld [vmem:[%s17894_s15 + $0x1d9] sm:$0xff] }
 0x3e7   : > { %v16067_v16 = vpop.f32.mrf.mxu0  ;;  %v16252_v54 = vpop.f32.mrf.mxu1 }
 0x3e8   : > { %v4569_v54 = vld [vmem:[%s17894_s15 + $0x1f0] sm:$0xff] }
 0x3e9   : > { %v4866_v5 = vpop.f32.mrf.mxu0  ;;  %16213 = vmatmul.mubr.msk.f32.gmra.mxu0 %vm567_vm2, %v4567_v18  ;;  %v5556_v63 = vpop.f32.mrf.mxu1  ;;  %16398 = vmatmul.mubr.msk.f32.gmra.mxu1 %vm567_vm2, %v5265_v32 }
 0x3ea   : > { %v5156_v4 = vadd.f32 %v4866_v5, %v19760_v12  ;;  %v20440_v58 = vadd.f32 %v5556_v63, %v5154_v22  ;;  %16215 = vmatprep.mubr.msk.f32.mxu0 %vm17756_vm1, %v23780_v1  ;;  %16400 = vmatprep.mubr.msk.f32.mxu1 %vm17756_vm1, %v23780_v1  ;;  %v5267_v5 = vld [vmem:[%s17894_s15 + $0x1e1] sm:$0xff] }
 0x3eb   : > { %v16070_v56 = vpop.f32.mrf.mxu0  ;;  %v16255_v16 = vpop.f32.mrf.mxu1 }
 0x3ec   : > { %v4570_v16 = vld [vmem:[%s17894_s15 + $0x1f8] sm:$0xff] }
 0x3ed   : > { %v4871_v18 = vpop.f32.mrf.mxu0  ;;  %16216 = vmatmul.mubr.msk.f32.gmra.mxu0 %vm567_vm2, %v4568_v24  ;;  %v5561_v32 = vpop.f32.mrf.mxu1  ;;  %16401 = vmatmul.mubr.msk.f32.gmra.mxu1 %vm567_vm2, %v5266_v40 }
 0x3ee   : > { %v5157_v12 = vadd.f32 %v4871_v18, %v19771_v26  ;;  %v20451_v22 = vadd.f32 %v5561_v32, %v5155_v61  ;;  %16218 = vmatprep.mubr.msk.f32.mxu0 %vm17756_vm1, %v23780_v1  ;;  %16403 = vmatprep.mubr.msk.f32.mxu1 %vm17756_vm1, %v23780_v1  ;;  %v5268_v18 = vld [vmem:[%s17894_s15 + $0x1e9] sm:$0xff] }
 0x3ef   : > { %v16073_v63 = vpop.f32.mrf.mxu0  ;;  %v16258_v56 = vpop.f32.mrf.mxu1 }
 0x3f0   : > { %v4571_v56 = vld [vmem:[%s17894_s15 + $0x200] sm:$0xff] }
 0x3f1   : > { %v4876_v24 = vpop.f32.mrf.mxu0  ;;  %16219 = vmatmul.mubr.msk.f32.gmra.mxu0 %vm567_vm2, %v4569_v54  ;;  %v5566_v40 = vpop.f32.mrf.mxu1  ;;  %16404 = vmatmul.mubr.msk.f32.gmra.mxu1 %vm567_vm2, %v5267_v5 }
 0x3f2   : > { %v5158_v26 = vadd.f32 %v4876_v24, %v19782_v39  ;;  %v20462_v61 = vadd.f32 %v5566_v40, %v5156_v4  ;;  %16221 = vmatprep.mubr.msk.f32.mxu0 %vm17756_vm1, %v23780_v1  ;;  %16406 = vmatprep.mubr.msk.f32.mxu1 %vm17756_vm1, %v23780_v1  ;;  %v5269_v24 = vld [vmem:[%s17894_s15 + $0x1f1] sm:$0xff] }
 0x3f3   : > { %v16076_v32 = vpop.f32.mrf.mxu0  ;;  %v16261_v63 = vpop.f32.mrf.mxu1 }
 0x3f4   : > { %v4572_v63 = vld [vmem:[%s17894_s15 + $0x208] sm:$0xff] }
 0x3f5   : > { %v4881_v54 = vpop.f32.mrf.mxu0  ;;  %16222 = vmatmul.mubr.msk.f32.gmra.mxu0 %vm567_vm2, %v4570_v16  ;;  %v5571_v5 = vpop.f32.mrf.mxu1  ;;  %16407 = vmatmul.mubr.msk.f32.gmra.mxu1 %vm567_vm2, %v5268_v18 }
 0x3f6   : > { %v5159_v39 = vadd.f32 %v4881_v54, %v19793_v46  ;;  %v20473_v4 = vadd.f32 %v5571_v5, %v5157_v12  ;;  %16224 = vmatprep.mubr.msk.f32.mxu0 %vm17756_vm1, %v23780_v1  ;;  %16409 = vmatprep.mubr.msk.f32.mxu1 %vm17756_vm1, %v23780_v1  ;;  %v5270_v54 = vld [vmem:[%s17894_s15 + $0x1f9] sm:$0xff] }
 0x3f7   : > { %v16079_v40 = vpop.f32.mrf.mxu0  ;;  %v16264_v32 = vpop.f32.mrf.mxu1 }
 0x3f8   : > { %v4573_v32 = vld [vmem:[%s17894_s15 + $0x210] sm:$0xff] }
 0x3f9   : > { %v4886_v16 = vpop.f32.mrf.mxu0  ;;  %16225 = vmatmul.mubr.msk.f32.gmra.mxu0 %vm567_vm2, %v4571_v56  ;;  %v5576_v18 = vpop.f32.mrf.mxu1  ;;  %16410 = vmatmul.mubr.msk.f32.gmra.mxu1 %vm567_vm2, %v5269_v24 }
 0x3fa   : > { %v5160_v46 = vadd.f32 %v4886_v16, %v19804_v2  ;;  %v20484_v12 = vadd.f32 %v5576_v18, %v5158_v26  ;;  %16227 = vmatprep.mubr.msk.f32.mxu0 %vm17756_vm1, %v23780_v1  ;;  %16412 = vmatprep.mubr.msk.f32.mxu1 %vm17756_vm1, %v23780_v1  ;;  %v5271_v16 = vld [vmem:[%s17894_s15 + $0x201] sm:$0xff] }
 0x3fb   : > { %v16082_v5 = vpop.f32.mrf.mxu0  ;;  %v16267_v40 = vpop.f32.mrf.mxu1 }
 0x3fc   : > { %v4574_v40 = vld [vmem:[%s17894_s15 + $0x218] sm:$0xff] }
 0x3fd   : > { %v4891_v56 = vpop.f32.mrf.mxu0  ;;  %16228 = vmatmul.mubr.msk.f32.gmra.mxu0 %vm567_vm2, %v4572_v63  ;;  %v5581_v24 = vpop.f32.mrf.mxu1  ;;  %16413 = vmatmul.mubr.msk.f32.gmra.mxu1 %vm567_vm2, %v5270_v54 }
 0x3fe   : > { %v5161_v2 = vadd.f32 %v4891_v56, %v19815_v10  ;;  %v20495_v26 = vadd.f32 %v5581_v24, %v5159_v39  ;;  %16230 = vmatprep.mubr.msk.f32.mxu0 %vm17756_vm1, %v23780_v1  ;;  %16415 = vmatprep.mubr.msk.f32.mxu1 %vm17756_vm1, %v23780_v1  ;;  %v5272_v56 = vld [vmem:[%s17894_s15 + $0x209] sm:$0xff] }
 0x3ff   : > { %v16085_v18 = vpop.f32.mrf.mxu0  ;;  %v16270_v5 = vpop.f32.mrf.mxu1 }
 0x400   : > { %v4575_v5 = vld [vmem:[%s17894_s15 + $0x220] sm:$0xff] }
 0x401   : > { %v4896_v63 = vpop.f32.mrf.mxu0  ;;  %16231 = vmatmul.mubr.msk.f32.gmra.mxu0 %vm567_vm2, %v4573_v32  ;;  %v5586_v54 = vpop.f32.mrf.mxu1  ;;  %16416 = vmatmul.mubr.msk.f32.gmra.mxu1 %vm567_vm2, %v5271_v16 }
 0x402   : > { %v5162_v10 = vadd.f32 %v4896_v63, %v19826_v7  ;;  %v20506_v39 = vadd.f32 %v5586_v54, %v5160_v46  ;;  %16233 = vmatprep.mubr.msk.f32.mxu0 %vm17756_vm1, %v23780_v1  ;;  %16418 = vmatprep.mubr.msk.f32.mxu1 %vm17756_vm1, %v23780_v1  ;;  %v5273_v63 = vld [vmem:[%s17894_s15 + $0x211] sm:$0xff] }
 0x403   : > { %v16088_v24 = vpop.f32.mrf.mxu0  ;;  %v16273_v18 = vpop.f32.mrf.mxu1 }
 0x404   : > { %v5274_v18 = vld [vmem:[%s17894_s15 + $0x219] sm:$0xff] }
 0x405   : > { %v4901_v32 = vpop.f32.mrf.mxu0  ;;  %16234 = vmatmul.mubr.msk.f32.gmra.mxu0 %vm567_vm2, %v4574_v40  ;;  %v5591_v16 = vpop.f32.mrf.mxu1  ;;  %16419 = vmatmul.mubr.msk.f32.gmra.mxu1 %vm567_vm2, %v5272_v56 }
 0x406   : > { %v5163_v7 = vadd.f32 %v4901_v32, %v19840_v34  ;;  %v20517_v46 = vadd.f32 %v5591_v16, %v5161_v2  ;;  %16236 = vmatprep.mubr.msk.f32.mxu0 %vm17756_vm1, %v23780_v1  ;;  %16421 = vmatprep.mubr.msk.f32.mxu1 %vm17756_vm1, %v23780_v1  ;;  %v5913_v32 = vld [vmem:[%s17894_s15 + $0x32] sm:$0xff] }
 0x407   : > { %v16091_v54 = vpop.f32.mrf.mxu0  ;;  %v16276_v24 = vpop.f32.mrf.mxu1 }
 0x409   : > { %v4906_v40 = vpop.f32.mrf.mxu0  ;;  %16237 = vmatmul.mubr.msk.f32.gmra.mxu0 %vm567_vm2, %v4575_v5  ;;  %v5596_v56 = vpop.f32.mrf.mxu1  ;;  %16422 = vmatmul.mubr.msk.f32.gmra.mxu1 %vm567_vm2, %v5273_v63  ;;  %v5275_v63 = vld [vmem:[%s17894_s15 + $0x221] sm:$0xff] }
 0x40a   : > { %v5164_v34 = vadd.f32 %v4906_v40, %v19852_v62  ;;  %v20528_v2 = vadd.f32 %v5596_v56, %v5162_v10  ;;  %16424 = vmatprep.mubr.msk.f32.mxu1 %vm17756_vm1, %v23780_v1  ;;  %16432 = vmatprep.mubr.msk.f32.mxu0 %vm17756_vm1, %v23780_v1  ;;  %v5914_v40 = vld [vmem:[%s17894_s15 + $0x3a] sm:$0xff] }
 0x40b   : > { %v16094_v16 = vpop.f32.mrf.mxu0  ;;  %v16279_v54 = vpop.f32.mrf.mxu1 }
 0x40d   : > { %v4911_v5 = vpop.f32.mrf.mxu0  ;;  %v5601_v24 = vpop.f32.mrf.mxu1  ;;  %16425 = vmatmul.mubr.msk.f32.gmra.mxu1 %vm567_vm2, %v5274_v18  ;;  %16433 = vmatmul.mubr.msk.f32.vlgmr.msra.gmra.mxu0 %vm567_vm2, %v5913_v32  ;;  %v5915_v32 = vld [vmem:[%s17894_s15 + $0x42] sm:$0xff] }
 0x40e   : > { %v5165_v62 = vadd.f32 %v4911_v5, %v19863_v38  ;;  %v20539_v10 = vadd.f32 %v5601_v24, %v5163_v7  ;;  %16427 = vmatprep.mubr.msk.f32.mxu1 %vm17756_vm1, %v23780_v1  ;;  %16435 = vmatprep.mubr.msk.f32.mxu0 %vm17756_vm1, %v23780_v1 }
 0x40f   : > { %v16097_v56 = vpop.f32.mrf.mxu0  ;;  %v16282_v16 = vpop.f32.mrf.mxu1 }
 0x410   : > { %23848 = vst [vmem:[#allocation19_spill] sm:$0xff] %v20539_v10 }
 0x411   : > { %v4916_v54 = vpop.f32.mrf.mxu0  ;;  %v5606_v18 = vpop.f32.mrf.mxu1  ;;  %16428 = vmatmul.mubr.msk.f32.gmra.mxu1 %vm567_vm2, %v5275_v63  ;;  %16436 = vmatmul.mubr.msk.f32.gmra.mxu0 %vm567_vm2, %v5914_v40 }
 0x412   : > { %v5166_v38 = vadd.f32 %v4916_v54, %v19874_v53  ;;  %v20550_v7 = vadd.f32 %v5606_v18, %v5164_v34  ;;  %16438 = vmatprep.mubr.msk.f32.mxu0 %vm17756_vm1, %v23780_v1  ;;  %v5916_v53 = vld [vmem:[%s17894_s15 + $0x4a] sm:$0xff] }
 0x413   : > { %v16100_v5 = vpop.f32.mrf.mxu0  ;;  %v16285_v24 = vpop.f32.mrf.mxu1 }
 0x415   : > { %v4921_v56 = vpop.f32.mrf.mxu0  ;;  %v5611_v16 = vpop.f32.mrf.mxu1  ;;  %16439 = vmatmul.mubr.msk.f32.gmra.mxu0 %vm567_vm2, %v5915_v32 }
 0x416   : > { %v5167_v10 = vadd.f32 %v4921_v56, %v19885_v0  ;;  %v20557_v63 = vadd.f32 %v5611_v16, %v5165_v62  ;;  %16441 = vmatprep.mubr.msk.f32.mxu0 %vm17756_vm1, %v23780_v1  ;;  %v5917_v0 = vld [vmem:[%s17894_s15 + $0x52] sm:$0xff] }
 0x417   : > { %v16103_v34 = vpop.f32.mrf.mxu0  ;;  %v16288_v40 = vpop.f32.mrf.mxu1 }
 0x419   : > { %v4926_v54 = vpop.f32.mrf.mxu0  ;;  %v5616_v18 = vpop.f32.mrf.mxu1  ;;  %16442 = vmatmul.mubr.msk.f32.gmra.mxu0 %vm567_vm2, %v5916_v53 }
 0x41a   : > { %v5168_v5 = vadd.f32 %v4926_v54, %v19896_v44  ;;  %v20564_v24 = vadd.f32 %v5616_v18, %v5166_v38  ;;  %16444 = vmatprep.mubr.msk.f32.mxu0 %vm17756_vm1, %v23780_v1  ;;  %v5918_v44 = vld [vmem:[%s17894_s15 + $0x5a] sm:$0xff] }
 0x41b   : > { %v16106_v62 = vpop.f32.mrf.mxu0  ;;  %v16291_v32 = vpop.f32.mrf.mxu1 }
 0x41d   : > { %v4931_v56 = vpop.f32.mrf.mxu0  ;;  %v5621_v16 = vpop.f32.mrf.mxu1  ;;  %16445 = vmatmul.mubr.msk.f32.gmra.mxu0 %vm567_vm2, %v5917_v0 }
 0x41e   : > { %v5169_v34 = vadd.f32 %v4931_v56, %v19907_v52  ;;  %v20571_v40 = vadd.f32 %v5621_v16, %v5167_v10  ;;  %16447 = vmatprep.mubr.msk.f32.mxu0 %vm17756_vm1, %v23780_v1  ;;  %v5919_v52 = vld [vmem:[%s17894_s15 + $0x62] sm:$0xff] }
 0x41f   : > { %v16109_v38 = vpop.f32.mrf.mxu0  ;;  %v16294_v53 = vpop.f32.mrf.mxu1 }
 0x421   : > { %v4936_v54 = vpop.f32.mrf.mxu0  ;;  %v5626_v18 = vpop.f32.mrf.mxu1  ;;  %16448 = vmatmul.mubr.msk.f32.gmra.mxu0 %vm567_vm2, %v5918_v44 }
 0x422   : > { %v5170_v62 = vadd.f32 %v4936_v54, %v19918_v13  ;;  %v20578_v32 = vadd.f32 %v5626_v18, %v5168_v5  ;;  %16450 = vmatprep.mubr.msk.f32.mxu0 %vm17756_vm1, %v23780_v1  ;;  %v5920_v13 = vld [vmem:[%s17894_s15 + $0x6a] sm:$0xff] }
 0x423   : > { %v16112_v10 = vpop.f32.mrf.mxu0  ;;  %v16297_v0 = vpop.f32.mrf.mxu1 }
 0x425   : > { %v4941_v56 = vpop.f32.mrf.mxu0  ;;  %v5631_v16 = vpop.f32.mrf.mxu1  ;;  %16451 = vmatmul.mubr.msk.f32.gmra.mxu0 %vm567_vm2, %v5919_v52 }
 0x426   : > { %v5171_v38 = vadd.f32 %v4941_v56, %v19929_v15  ;;  %v20585_v53 = vadd.f32 %v5631_v16, %v5169_v34  ;;  %16453 = vmatprep.mubr.msk.f32.mxu0 %vm17756_vm1, %v23780_v1  ;;  %v5921_v15 = vld [vmem:[%s17894_s15 + $0x72] sm:$0xff] }
 0x427   : > { %v16115_v5 = vpop.f32.mrf.mxu0  ;;  %v16300_v44 = vpop.f32.mrf.mxu1 }
 0x429   : > { %v4946_v54 = vpop.f32.mrf.mxu0  ;;  %v5636_v18 = vpop.f32.mrf.mxu1  ;;  %16454 = vmatmul.mubr.msk.f32.gmra.mxu0 %vm567_vm2, %v5920_v13 }
 0x42a   : > { %v5172_v10 = vadd.f32 %v4946_v54, %v19940_v17  ;;  %v20592_v0 = vadd.f32 %v5636_v18, %v5170_v62  ;;  %16456 = vmatprep.mubr.msk.f32.mxu0 %vm17756_vm1, %v23780_v1  ;;  %v5922_v17 = vld [vmem:[%s17894_s15 + $0x7a] sm:$0xff] }
 0x42b   : > { %v16118_v34 = vpop.f32.mrf.mxu0  ;;  %v16303_v52 = vpop.f32.mrf.mxu1 }
 0x42d   : > { %v4951_v56 = vpop.f32.mrf.mxu0  ;;  %v5641_v16 = vpop.f32.mrf.mxu1  ;;  %16457 = vmatmul.mubr.msk.f32.gmra.mxu0 %vm567_vm2, %v5921_v15 }
 0x42e   : > { %v5173_v5 = vadd.f32 %v4951_v56, %v19951_v19  ;;  %v20599_v44 = vadd.f32 %v5641_v16, %v5171_v38  ;;  %16459 = vmatprep.mubr.msk.f32.mxu0 %vm17756_vm1, %v23780_v1  ;;  %v5923_v19 = vld [vmem:[%s17894_s15 + $0x82] sm:$0xff] }
 0x42f   : > { %v16121_v62 = vpop.f32.mrf.mxu0  ;;  %v16306_v13 = vpop.f32.mrf.mxu1 }
 0x431   : > { %v4956_v54 = vpop.f32.mrf.mxu0  ;;  %v5646_v18 = vpop.f32.mrf.mxu1  ;;  %16460 = vmatmul.mubr.msk.f32.gmra.mxu0 %vm567_vm2, %v5922_v17 }
 0x432   : > { %v5174_v34 = vadd.f32 %v4956_v54, %v19962_v21  ;;  %v20606_v52 = vadd.f32 %v5646_v18, %v5172_v10  ;;  %16462 = vmatprep.mubr.msk.f32.mxu0 %vm17756_vm1, %v23780_v1  ;;  %v5924_v21 = vld [vmem:[%s17894_s15 + $0x8a] sm:$0xff] }
 0x433   : > { %v16124_v38 = vpop.f32.mrf.mxu0  ;;  %v16309_v15 = vpop.f32.mrf.mxu1 }
 0x435   : > { %v4961_v56 = vpop.f32.mrf.mxu0  ;;  %v5651_v16 = vpop.f32.mrf.mxu1  ;;  %16463 = vmatmul.mubr.msk.f32.gmra.mxu0 %vm567_vm2, %v5923_v19 }
 0x436   : > { %v5175_v62 = vadd.f32 %v4961_v56, %v19973_v23  ;;  %v20613_v13 = vadd.f32 %v5651_v16, %v5173_v5  ;;  %16465 = vmatprep.mubr.msk.f32.mxu0 %vm17756_vm1, %v23780_v1  ;;  %v5925_v23 = vld [vmem:[%s17894_s15 + $0x92] sm:$0xff] }
 0x437   : > { %v16127_v10 = vpop.f32.mrf.mxu0  ;;  %v16312_v17 = vpop.f32.mrf.mxu1 }
 0x439   : > { %v4966_v54 = vpop.f32.mrf.mxu0  ;;  %v5656_v18 = vpop.f32.mrf.mxu1  ;;  %16466 = vmatmul.mubr.msk.f32.gmra.mxu0 %vm567_vm2, %v5924_v21 }
 0x43a   : > { %v5176_v38 = vadd.f32 %v4966_v54, %v19984_v25  ;;  %v20620_v15 = vadd.f32 %v5656_v18, %v5174_v34  ;;  %16468 = vmatprep.mubr.msk.f32.mxu0 %vm17756_vm1, %v23780_v1  ;;  %v5926_v25 = vld [vmem:[%s17894_s15 + $0x9a] sm:$0xff] }
 0x43b   : > { %v16130_v5 = vpop.f32.mrf.mxu0  ;;  %v16315_v19 = vpop.f32.mrf.mxu1 }
 0x43d   : > { %v4971_v56 = vpop.f32.mrf.mxu0  ;;  %v5661_v16 = vpop.f32.mrf.mxu1  ;;  %16469 = vmatmul.mubr.msk.f32.gmra.mxu0 %vm567_vm2, %v5925_v23 }
 0x43e   : > { %v5177_v10 = vadd.f32 %v4971_v56, %v19995_v27  ;;  %v20627_v17 = vadd.f32 %v5661_v16, %v5175_v62  ;;  %16471 = vmatprep.mubr.msk.f32.mxu0 %vm17756_vm1, %v23780_v1  ;;  %v5927_v27 = vld [vmem:[%s17894_s15 + $0xa2] sm:$0xff] }
 0x43f   : > { %v16133_v34 = vpop.f32.mrf.mxu0  ;;  %v16318_v21 = vpop.f32.mrf.mxu1 }
 0x441   : > { %v4976_v54 = vpop.f32.mrf.mxu0  ;;  %v5666_v18 = vpop.f32.mrf.mxu1  ;;  %16472 = vmatmul.mubr.msk.f32.gmra.mxu0 %vm567_vm2, %v5926_v25 }
 0x442   : > { %v5178_v5 = vadd.f32 %v4976_v54, %v20006_v29  ;;  %v20634_v19 = vadd.f32 %v5666_v18, %v5176_v38  ;;  %16474 = vmatprep.mubr.msk.f32.mxu0 %vm17756_vm1, %v23780_v1  ;;  %v5928_v29 = vld [vmem:[%s17894_s15 + $0xaa] sm:$0xff] }
 0x443   : > { %v16136_v62 = vpop.f32.mrf.mxu0  ;;  %v16321_v23 = vpop.f32.mrf.mxu1 }
 0x445   : > { %v4981_v56 = vpop.f32.mrf.mxu0  ;;  %v5671_v16 = vpop.f32.mrf.mxu1  ;;  %16475 = vmatmul.mubr.msk.f32.gmra.mxu0 %vm567_vm2, %v5927_v27 }
 0x446   : > { %v5179_v34 = vadd.f32 %v4981_v56, %v20017_v31  ;;  %v20641_v21 = vadd.f32 %v5671_v16, %v5177_v10  ;;  %16477 = vmatprep.mubr.msk.f32.mxu0 %vm17756_vm1, %v23780_v1  ;;  %v5929_v31 = vld [vmem:[%s17894_s15 + $0xb2] sm:$0xff] }
 0x447   : > { %v16139_v38 = vpop.f32.mrf.mxu0  ;;  %v16324_v25 = vpop.f32.mrf.mxu1 }
 0x449   : > { %v4986_v54 = vpop.f32.mrf.mxu0  ;;  %v5676_v18 = vpop.f32.mrf.mxu1  ;;  %16478 = vmatmul.mubr.msk.f32.gmra.mxu0 %vm567_vm2, %v5928_v29 }
 0x44a   : > { %v5180_v62 = vadd.f32 %v4986_v54, %v20028_v33  ;;  %v20648_v23 = vadd.f32 %v5676_v18, %v5178_v5  ;;  %16480 = vmatprep.mubr.msk.f32.mxu0 %vm17756_vm1, %v23780_v1  ;;  %v5930_v33 = vld [vmem:[%s17894_s15 + $0xba] sm:$0xff] }
 0x44b   : > { %v16142_v10 = vpop.f32.mrf.mxu0  ;;  %v16327_v27 = vpop.f32.mrf.mxu1 }
 0x44d   : > { %v4991_v56 = vpop.f32.mrf.mxu0  ;;  %v5681_v16 = vpop.f32.mrf.mxu1  ;;  %16481 = vmatmul.mubr.msk.f32.gmra.mxu0 %vm567_vm2, %v5929_v31 }
 0x44e   : > { %v5181_v38 = vadd.f32 %v4991_v56, %v20039_v35  ;;  %v20655_v25 = vadd.f32 %v5681_v16, %v5179_v34  ;;  %16483 = vmatprep.mubr.msk.f32.mxu0 %vm17756_vm1, %v23780_v1  ;;  %v5931_v35 = vld [vmem:[%s17894_s15 + $0xc2] sm:$0xff] }
 0x44f   : > { %v16145_v5 = vpop.f32.mrf.mxu0  ;;  %v16330_v29 = vpop.f32.mrf.mxu1 }
 0x451   : > { %v4996_v54 = vpop.f32.mrf.mxu0  ;;  %v5686_v18 = vpop.f32.mrf.mxu1  ;;  %16484 = vmatmul.mubr.msk.f32.gmra.mxu0 %vm567_vm2, %v5930_v33 }
 0x452   : > { %v5182_v10 = vadd.f32 %v4996_v54, %v20050_v37  ;;  %v20662_v27 = vadd.f32 %v5686_v18, %v5180_v62  ;;  %16486 = vmatprep.mubr.msk.f32.mxu0 %vm17756_vm1, %v23780_v1  ;;  %v5932_v37 = vld [vmem:[%s17894_s15 + $0xca] sm:$0xff] }
 0x453   : > { %v16148_v34 = vpop.f32.mrf.mxu0  ;;  %v16333_v31 = vpop.f32.mrf.mxu1 }
 0x455   : > { %v5001_v56 = vpop.f32.mrf.mxu0  ;;  %v5691_v16 = vpop.f32.mrf.mxu1  ;;  %16487 = vmatmul.mubr.msk.f32.gmra.mxu0 %vm567_vm2, %v5931_v35 }
 0x456   : > { %v5183_v5 = vadd.f32 %v5001_v56, %v20061_v41  ;;  %v20669_v29 = vadd.f32 %v5691_v16, %v5181_v38  ;;  %16489 = vmatprep.mubr.msk.f32.mxu0 %vm17756_vm1, %v23780_v1  ;;  %v5933_v41 = vld [vmem:[%s17894_s15 + $0xd2] sm:$0xff] }
 0x457   : > { %v16151_v62 = vpop.f32.mrf.mxu0  ;;  %v16336_v33 = vpop.f32.mrf.mxu1 }
 0x459   : > { %v5006_v54 = vpop.f32.mrf.mxu0  ;;  %v5696_v18 = vpop.f32.mrf.mxu1  ;;  %16490 = vmatmul.mubr.msk.f32.gmra.mxu0 %vm567_vm2, %v5932_v37 }
 0x45a   : > { %v5184_v34 = vadd.f32 %v5006_v54, %v20072_v50  ;;  %v20676_v31 = vadd.f32 %v5696_v18, %v5182_v10  ;;  %16492 = vmatprep.mubr.msk.f32.mxu0 %vm17756_vm1, %v23780_v1  ;;  %v5934_v50 = vld [vmem:[%s17894_s15 + $0xda] sm:$0xff]  ;;  %v13374_v54 = vld [vmem:[%s23847_s3 + $0x10] sm:$0xff] }
 0x45b   : > { %v16154_v38 = vpop.f32.mrf.mxu0  ;;  %v16339_v35 = vpop.f32.mrf.mxu1  ;;  %16623 = vmatprep.subr.mxu1 %v13374_v54 }
 0x45c   : > { %16624 = vmatpush3.msra.mxu1 %v13374_v54 }
 0x45d   : > { %v5011_v56 = vpop.f32.mrf.mxu0  ;;  %v5701_v16 = vpop.f32.mrf.mxu1  ;;  %16493 = vmatmul.mubr.msk.f32.gmra.mxu0 %vm567_vm2, %v5933_v41  ;;  %v5935_v41 = vld [vmem:[%s17894_s15 + $0xe2] sm:$0xff] }
 0x45e   : > { %v5185_v62 = vadd.f32 %v5011_v56, %v20083_v60  ;;  %v20683_v33 = vadd.f32 %v5701_v16, %v5183_v5  ;;  %16495 = vmatprep.mubr.msk.f32.mxu0 %vm17756_vm1, %v23780_v1 }
 0x45f   : > { %v16157_v10 = vpop.f32.mrf.mxu0  ;;  %v16342_v37 = vpop.f32.mrf.mxu1 }
 0x461   : > { %v5016_v18 = vpop.f32.mrf.mxu0  ;;  %v5706_v38 = vpop.f32.mrf.mxu1  ;;  %16496 = vmatmul.mubr.msk.f32.gmra.mxu0 %vm567_vm2, %v5934_v50 }
 0x462   : > { %v5186_v60 = vadd.f32 %v5016_v18, %v20094_v9  ;;  %v20693_v5 = vadd.f32 %v5706_v38, %v5184_v34  ;;  %16498 = vmatprep.mubr.msk.f32.mxu0 %vm17756_vm1, %v23780_v1  ;;  %v5936_v9 = vld [vmem:[%s17894_s15 + $0xea] sm:$0xff] }
 0x463   : > { %v16160_v35 = vpop.f32.mrf.mxu0  ;;  %v16345_v56 = vpop.f32.mrf.mxu1 }
 0x465   : > { %v5021_v16 = vpop.f32.mrf.mxu0  ;;  %v5711_v10 = vpop.f32.mrf.mxu1  ;;  %16499 = vmatmul.mubr.msk.f32.gmra.mxu0 %vm567_vm2, %v5935_v41 }
 0x466   : > { %v5187_v37 = vadd.f32 %v5021_v16, %v20105_v30  ;;  %v20700_v50 = vadd.f32 %v5711_v10, %v5185_v62  ;;  %16501 = vmatprep.mubr.msk.f32.mxu0 %vm17756_vm1, %v23780_v1  ;;  %v5937_v30 = vld [vmem:[%s17894_s15 + $0xf2] sm:$0xff] }
 0x467   : > { %v16163_v34 = vpop.f32.mrf.mxu0  ;;  %v16348_v18 = vpop.f32.mrf.mxu1 }
 0x469   : > { %v5026_v38 = vpop.f32.mrf.mxu0  ;;  %v5716_v54 = vpop.f32.mrf.mxu1  ;;  %16502 = vmatmul.mubr.msk.f32.gmra.mxu0 %vm567_vm2, %v5936_v9 }
 0x46a   : > { %v5188_v35 = vadd.f32 %v5026_v38, %v20116_v45  ;;  %v20707_v56 = vadd.f32 %v5716_v54, %v5186_v60  ;;  %16504 = vmatprep.mubr.msk.f32.mxu0 %vm17756_vm1, %v23780_v1  ;;  %v5938_v45 = vld [vmem:[%s17894_s15 + $0xfa] sm:$0xff] }
 0x46b   : > { %v16166_v62 = vpop.f32.mrf.mxu0  ;;  %v16351_v41 = vpop.f32.mrf.mxu1 }
 0x46d   : > { %v5031_v16 = vpop.f32.mrf.mxu0  ;;  %v5721_v10 = vpop.f32.mrf.mxu1  ;;  %16505 = vmatmul.mubr.msk.f32.gmra.mxu0 %vm567_vm2, %v5937_v30 }
 0x46e   : > { %v5189_v34 = vadd.f32 %v5031_v16, %v20127_v57  ;;  %v20714_v18 = vadd.f32 %v5721_v10, %v5187_v37  ;;  %16507 = vmatprep.mubr.msk.f32.mxu0 %vm17756_vm1, %v23780_v1  ;;  %v5939_v57 = vld [vmem:[%s17894_s15 + $0x102] sm:$0xff] }
 0x46f   : > { %v16169_v60 = vpop.f32.mrf.mxu0  ;;  %v16354_v9 = vpop.f32.mrf.mxu1 }
 0x471   : > { %v5036_v38 = vpop.f32.mrf.mxu0  ;;  %v5726_v54 = vpop.f32.mrf.mxu1  ;;  %16508 = vmatmul.mubr.msk.f32.gmra.mxu0 %vm567_vm2, %v5938_v45 }
 0x472   : > { %v5190_v62 = vadd.f32 %v5036_v38, %v20138_v6  ;;  %v20721_v41 = vadd.f32 %v5726_v54, %v5188_v35  ;;  %16510 = vmatprep.mubr.msk.f32.mxu0 %vm17756_vm1, %v23780_v1  ;;  %v5940_v6 = vld [vmem:[%s17894_s15 + $0x10a] sm:$0xff] }
 0x473   : > { %v16172_v37 = vpop.f32.mrf.mxu0  ;;  %v16357_v30 = vpop.f32.mrf.mxu1 }
 0x475   : > { %v5041_v16 = vpop.f32.mrf.mxu0  ;;  %v5731_v10 = vpop.f32.mrf.mxu1  ;;  %16511 = vmatmul.mubr.msk.f32.gmra.mxu0 %vm567_vm2, %v5939_v57 }
 0x476   : > { %v5191_v60 = vadd.f32 %v5041_v16, %v20149_v28  ;;  %v20728_v9 = vadd.f32 %v5731_v10, %v5189_v34  ;;  %16513 = vmatprep.mubr.msk.f32.mxu0 %vm17756_vm1, %v23780_v1  ;;  %v5941_v28 = vld [vmem:[%s17894_s15 + $0x112] sm:$0xff] }
 0x477   : > { %v16175_v35 = vpop.f32.mrf.mxu0  ;;  %v16360_v45 = vpop.f32.mrf.mxu1 }
 0x479   : > { %v5046_v38 = vpop.f32.mrf.mxu0  ;;  %v5736_v54 = vpop.f32.mrf.mxu1  ;;  %16514 = vmatmul.mubr.msk.f32.gmra.mxu0 %vm567_vm2, %v5940_v6 }
 0x47a   : > { %v5192_v37 = vadd.f32 %v5046_v38, %v20160_v47  ;;  %v20735_v30 = vadd.f32 %v5736_v54, %v5190_v62  ;;  %16516 = vmatprep.mubr.msk.f32.mxu0 %vm17756_vm1, %v23780_v1  ;;  %v5942_v47 = vld [vmem:[%s17894_s15 + $0x11a] sm:$0xff] }
 0x47b   : > { %v16178_v34 = vpop.f32.mrf.mxu0  ;;  %v16363_v57 = vpop.f32.mrf.mxu1 }
 0x47d   : > { %v5051_v16 = vpop.f32.mrf.mxu0  ;;  %v5741_v10 = vpop.f32.mrf.mxu1  ;;  %16517 = vmatmul.mubr.msk.f32.gmra.mxu0 %vm567_vm2, %v5941_v28 }
 0x47e   : > { %v5193_v35 = vadd.f32 %v5051_v16, %v20171_v59  ;;  %v20742_v45 = vadd.f32 %v5741_v10, %v5191_v60  ;;  %16519 = vmatprep.mubr.msk.f32.mxu0 %vm17756_vm1, %v23780_v1  ;;  %v5943_v59 = vld [vmem:[%s17894_s15 + $0x122] sm:$0xff]  ;;  %v13562_v16 = vld [vmem:[%s23847_s3 + $0x38] sm:$0x3] }
 0x47f   : > { %v16181_v62 = vpop.f32.mrf.mxu0  ;;  %v16366_v6 = vpop.f32.mrf.mxu1  ;;  %16903 = vmatprep.subr.msk.mxu0 %vm7115_vm3, %v13562_v16 }
 0x480   : > { %23849 = vst [vmem:[#allocation20_spill] sm:$0xff] %v20742_v45  ;;  %v5944_v6 = vld [vmem:[%s17894_s15 + $0x12a] sm:$0xff]  ;;  %16904 = vmatpush3.msk.msra.mxu0 %vm7115_vm3, %v13562_v16  ;;  %v5945_v16 = vld [vmem:[%s17894_s15 + $0x132] sm:$0xff] }
 0x481   : > { %v5056_v38 = vpop.f32.mrf.mxu0  ;;  %v5746_v54 = vpop.f32.mrf.mxu1  ;;  %16520 = vmatmul.mubr.msk.f32.gmra.mxu0 %vm567_vm2, %v5942_v47  ;;  %v23851_v47 = vld [vmem:[#allocation10_spill] sm:$0xff] }
 0x482   : > { %v5194_v34 = vadd.f32 %v5056_v38, %v20182_v14  ;;  %v20749_v57 = vadd.f32 %v5746_v54, %v5192_v37  ;;  %16522 = vmatprep.mubr.msk.f32.mxu0 %vm17756_vm1, %v23780_v1  ;;  %v13561_v38 = vld [vmem:[%s23847_s3 + $0x30] sm:$0xff] }
 0x483   : > { %v16184_v60 = vpop.f32.mrf.mxu0  ;;  %v16369_v28 = vpop.f32.mrf.mxu1  ;;  %16905 = vmatprep.subr.mxu0 %v13561_v38 }
 0x484   : > { %23850 = vst [vmem:[#allocation23_spill] sm:$0xff] %v20749_v57  ;;  %16906 = vmatpush3.msra.mxu0 %v13561_v38 }
 0x485   : > { %v5061_v10 = vpop.f32.mrf.mxu0  ;;  %v5751_v62 = vpop.f32.mrf.mxu1  ;;  %16523 = vmatmul.mubr.msk.f32.gmra.mxu0 %vm567_vm2, %v5943_v59  ;;  %17084 = vmatprep.subr.mxu0 %v23780_v1 }
 0x486   : > { %v5195_v14 = vadd.f32 %v5061_v10, %v23851_v47  ;;  %v20760_v37 = vadd.f32 %v5751_v62, %v5193_v35  ;;  %16525 = vmatprep.mubr.msk.f32.mxu0 %vm17756_vm1, %v23780_v1  ;;  %v23853_v35 = vld [vmem:[#allocation21_spill] sm:$0xff] }
 0x487   : > { %v16187_v54 = vpop.f32.mrf.mxu0  ;;  %v16372_v60 = vpop.f32.mrf.mxu1 }
 0x488   : > { %23852 = vst [vmem:[#allocation10_spill] sm:$0xff] %v20760_v37  ;;  %v23855_v37 = vld [vmem:[#allocation22_spill] sm:$0xff] }
 0x489   : > { %v5066_v59 = vpop.f32.mrf.mxu0  ;;  %v5756_v28 = vpop.f32.mrf.mxu1  ;;  %16526 = vmatmul.mubr.msk.f32.gmra.mxu0 %vm567_vm2, %v5944_v6 }
 0x48a   : > { %v5196_v10 = vadd.f32 %v5066_v59, %v23853_v35  ;;  %v20772_v62 = vadd.f32 %v5756_v28, %v5194_v34  ;;  %16528 = vmatprep.mubr.msk.f32.mxu0 %vm17756_vm1, %v23780_v1  ;;  %v5946_v34 = vld [vmem:[%s17894_s15 + $0x13a] sm:$0xff] }
 0x48b   : > { %v16190_v47 = vpop.f32.mrf.mxu0  ;;  %v16375_v54 = vpop.f32.mrf.mxu1 }
 0x48c   : > { %23854 = vst [vmem:[#allocation21_spill] sm:$0xff] %v20772_v62  ;;  %v23857_v47 = vld [vmem:[#allocation11_spill] sm:$0xff] }
 0x48d   : > { %v5071_v60 = vpop.f32.mrf.mxu0  ;;  %v5761_v38 = vpop.f32.mrf.mxu1  ;;  %16529 = vmatmul.mubr.msk.f32.gmra.mxu0 %vm567_vm2, %v5945_v16 }
 0x48e   : > { %v5197_v57 = vadd.f32 %v5071_v60, %v23855_v37  ;;  %v20779_v6 = vadd.f32 %v5761_v38, %v5195_v14  ;;  %16531 = vmatprep.mubr.msk.f32.mxu0 %vm17756_vm1, %v23780_v1  ;;  %v5947_v14 = vld [vmem:[%s17894_s15 + $0x142] sm:$0xff] }
 0x48f   : > { %v16193_v59 = vpop.f32.mrf.mxu0  ;;  %v16378_v28 = vpop.f32.mrf.mxu1 }
 0x490   : > { %23856 = vst [vmem:[#allocation22_spill] sm:$0xff] %v20779_v6  ;;  %v23859_v59 = vld [vmem:[#allocation12_spill] sm:$0xff] }
 0x491   : > { %v5076_v35 = vpop.f32.mrf.mxu0  ;;  %v5766_v62 = vpop.f32.mrf.mxu1  ;;  %16532 = vmatmul.mubr.msk.f32.gmra.mxu0 %vm567_vm2, %v5946_v34 }
 0x492   : > { %v5198_v54 = vadd.f32 %v5076_v35, %v23857_v47  ;;  %v20786_v45 = vadd.f32 %v5766_v62, %v5196_v10  ;;  %16534 = vmatprep.mubr.msk.f32.mxu0 %vm17756_vm1, %v23780_v1  ;;  %v5948_v10 = vld [vmem:[%s17894_s15 + $0x14a] sm:$0xff] }
 0x493   : > { %v16196_v37 = vpop.f32.mrf.mxu0  ;;  %v16381_v16 = vpop.f32.mrf.mxu1 }
 0x494   : > { %23858 = vst [vmem:[#allocation11_spill] sm:$0xff] %v20786_v45  ;;  %v23861_v37 = vld [vmem:[#allocation13_spill] sm:$0xff] }
 0x495   : > { %v5081_v60 = vpop.f32.mrf.mxu0  ;;  %v5771_v38 = vpop.f32.mrf.mxu1  ;;  %16535 = vmatmul.mubr.msk.f32.gmra.mxu0 %vm567_vm2, %v5947_v14 }
 0x496   : > { %v5199_v28 = vadd.f32 %v5081_v60, %v23859_v59  ;;  %v20793_v6 = vadd.f32 %v5771_v38, %v5197_v57  ;;  %16537 = vmatprep.mubr.msk.f32.mxu0 %vm17756_vm1, %v23780_v1  ;;  %v5949_v57 = vld [vmem:[%s17894_s15 + $0x152] sm:$0xff] }
 0x497   : > { %v16199_v62 = vpop.f32.mrf.mxu0  ;;  %v16384_v34 = vpop.f32.mrf.mxu1 }
 0x498   : > { %23860 = vst [vmem:[#allocation12_spill] sm:$0xff] %v20793_v6  ;;  %v23863_v62 = vld [vmem:[#allocation14_spill] sm:$0xff] }
 0x499   : > { %v5086_v35 = vpop.f32.mrf.mxu0  ;;  %v5776_v47 = vpop.f32.mrf.mxu1  ;;  %16538 = vmatmul.mubr.msk.f32.gmra.mxu0 %vm567_vm2, %v5948_v10 }
 0x49a   : > { %v5200_v16 = vadd.f32 %v5086_v35, %v23861_v37  ;;  %v20800_v45 = vadd.f32 %v5776_v47, %v5198_v54  ;;  %16540 = vmatprep.mubr.msk.f32.mxu0 %vm17756_vm1, %v23780_v1  ;;  %v5950_v54 = vld [vmem:[%s17894_s15 + $0x15a] sm:$0xff] }
 0x49b   : > { %v16202_v14 = vpop.f32.mrf.mxu0  ;;  %v16387_v60 = vpop.f32.mrf.mxu1 }
 0x49c   : > { %23862 = vst [vmem:[#allocation13_spill] sm:$0xff] %v20800_v45  ;;  %v23865_v14 = vld [vmem:[#allocation15_spill] sm:$0xff] }
 0x49d   : > { %v5091_v38 = vpop.f32.mrf.mxu0  ;;  %v5781_v59 = vpop.f32.mrf.mxu1  ;;  %16541 = vmatmul.mubr.msk.f32.gmra.mxu0 %vm567_vm2, %v5949_v57 }
 0x49e   : > { %v5201_v34 = vadd.f32 %v5091_v38, %v23863_v62  ;;  %v20807_v6 = vadd.f32 %v5781_v59, %v5199_v28  ;;  %16543 = vmatprep.mubr.msk.f32.mxu0 %vm17756_vm1, %v23780_v1  ;;  %v5951_v28 = vld [vmem:[%s17894_s15 + $0x162] sm:$0xff] }
 0x49f   : > { %v16205_v10 = vpop.f32.mrf.mxu0  ;;  %v16390_v35 = vpop.f32.mrf.mxu1 }
 0x4a0   : > { %23864 = vst [vmem:[#allocation14_spill] sm:$0xff] %v20807_v6  ;;  %v23867_v10 = vld [vmem:[#allocation16_spill] sm:$0xff] }
 0x4a1   : > { %v5096_v47 = vpop.f32.mrf.mxu0  ;;  %v5786_v37 = vpop.f32.mrf.mxu1  ;;  %16544 = vmatmul.mubr.msk.f32.gmra.mxu0 %vm567_vm2, %v5950_v54 }
 0x4a2   : > { %v5202_v60 = vadd.f32 %v5096_v47, %v23865_v14  ;;  %v20814_v45 = vadd.f32 %v5786_v37, %v5200_v16  ;;  %16546 = vmatprep.mubr.msk.f32.mxu0 %vm17756_vm1, %v23780_v1  ;;  %v5952_v16 = vld [vmem:[%s17894_s15 + $0x16a] sm:$0xff] }
 0x4a3   : > { %v16208_v57 = vpop.f32.mrf.mxu0  ;;  %v16393_v38 = vpop.f32.mrf.mxu1 }
 0x4a4   : > { %23866 = vst [vmem:[#allocation15_spill] sm:$0xff] %v20814_v45  ;;  %v23869_v57 = vld [vmem:[#allocation17_spill] sm:$0xff] }
 0x4a5   : > { %v5101_v59 = vpop.f32.mrf.mxu0  ;;  %v5791_v62 = vpop.f32.mrf.mxu1  ;;  %16547 = vmatmul.mubr.msk.f32.gmra.mxu0 %vm567_vm2, %v5951_v28 }
 0x4a6   : > { %v5203_v35 = vadd.f32 %v5101_v59, %v23867_v10  ;;  %v20821_v6 = vadd.f32 %v5791_v62, %v5201_v34  ;;  %16549 = vmatprep.mubr.msk.f32.mxu0 %vm17756_vm1, %v23780_v1  ;;  %v5953_v34 = vld [vmem:[%s17894_s15 + $0x172] sm:$0xff] }
 0x4a7   : > { %v16211_v54 = vpop.f32.mrf.mxu0  ;;  %v16396_v47 = vpop.f32.mrf.mxu1 }
 0x4a8   : > { %23868 = vst [vmem:[#allocation16_spill] sm:$0xff] %v20821_v6  ;;  %v23870_v54 = vld [vmem:[#allocation18_spill] sm:$0xff] }
 0x4a9   : > { %v5106_v37 = vpop.f32.mrf.mxu0  ;;  %v5796_v14 = vpop.f32.mrf.mxu1  ;;  %16550 = vmatmul.mubr.msk.f32.gmra.mxu0 %vm567_vm2, %v5952_v16 }
 0x4aa   : > { %v5204_v38 = vadd.f32 %v5106_v37, %v23869_v57  ;;  %v20828_v45 = vadd.f32 %v5796_v14, %v5202_v60  ;;  %16552 = vmatprep.mubr.msk.f32.mxu0 %vm17756_vm1, %v23780_v1  ;;  %v5954_v60 = vld [vmem:[%s17894_s15 + $0x17a] sm:$0xff] }
 0x4ab   : > { %v16214_v28 = vpop.f32.mrf.mxu0  ;;  %v16399_v59 = vpop.f32.mrf.mxu1 }
 0x4ad   : > { %v5111_v62 = vpop.f32.mrf.mxu0  ;;  %v5801_v10 = vpop.f32.mrf.mxu1  ;;  %16553 = vmatmul.mubr.msk.f32.gmra.mxu0 %vm567_vm2, %v5953_v34 }
 0x4ae   : > { %v5205_v47 = vadd.f32 %v5111_v62, %v23870_v54  ;;  %v20835_v6 = vadd.f32 %v5801_v10, %v5203_v35  ;;  %16555 = vmatprep.mubr.msk.f32.mxu0 %vm17756_vm1, %v23780_v1  ;;  %v5955_v35 = vld [vmem:[%s17894_s15 + $0x182] sm:$0xff] }
 0x4af   : > { %v16217_v16 = vpop.f32.mrf.mxu0  ;;  %v16402_v37 = vpop.f32.mrf.mxu1 }
 0x4b1   : > { %v5116_v14 = vpop.f32.mrf.mxu0  ;;  %v5806_v57 = vpop.f32.mrf.mxu1  ;;  %16556 = vmatmul.mubr.msk.f32.gmra.mxu0 %vm567_vm2, %v5954_v60 }
 0x4b2   : > { %v5206_v28 = vadd.f32 %v5116_v14, %v20314_v48  ;;  %v20842_v59 = vadd.f32 %v5806_v57, %v5204_v38  ;;  %16558 = vmatprep.mubr.msk.f32.mxu0 %vm17756_vm1, %v23780_v1  ;;  %v5956_v48 = vld [vmem:[%s17894_s15 + $0x18a] sm:$0xff] }
 0x4b3   : > { %v16220_v34 = vpop.f32.mrf.mxu0  ;;  %v16405_v62 = vpop.f32.mrf.mxu1 }
 0x4b5   : > { %v5121_v10 = vpop.f32.mrf.mxu0  ;;  %v5811_v54 = vpop.f32.mrf.mxu1  ;;  %16559 = vmatmul.mubr.msk.f32.gmra.mxu0 %vm567_vm2, %v5955_v35 }
 0x4b6   : > { %v5207_v16 = vadd.f32 %v5121_v10, %v20325_v8  ;;  %v20849_v37 = vadd.f32 %v5811_v54, %v5205_v47  ;;  %16561 = vmatprep.mubr.msk.f32.mxu0 %vm17756_vm1, %v23780_v1  ;;  %v5957_v8 = vld [vmem:[%s17894_s15 + $0x192] sm:$0xff] }
 0x4b7   : > { %v16223_v38 = vpop.f32.mrf.mxu0  ;;  %v16408_v60 = vpop.f32.mrf.mxu1 }
 0x4b9   : > { %v5126_v14 = vpop.f32.mrf.mxu0  ;;  %v5816_v57 = vpop.f32.mrf.mxu1  ;;  %16562 = vmatmul.mubr.msk.f32.gmra.mxu0 %vm567_vm2, %v5956_v48 }
 0x4ba   : > { %v5208_v34 = vadd.f32 %v5126_v14, %v20336_v3  ;;  %v20856_v62 = vadd.f32 %v5816_v57, %v5206_v28  ;;  %16564 = vmatprep.mubr.msk.f32.mxu0 %vm17756_vm1, %v23780_v1  ;;  %v5958_v3 = vld [vmem:[%s17894_s15 + $0x19a] sm:$0xff] }
 0x4bb   : > { %v16226_v47 = vpop.f32.mrf.mxu0  ;;  %v16411_v35 = vpop.f32.mrf.mxu1 }
 0x4bd   : > { %v5131_v10 = vpop.f32.mrf.mxu0  ;;  %v5821_v54 = vpop.f32.mrf.mxu1  ;;  %16565 = vmatmul.mubr.msk.f32.gmra.mxu0 %vm567_vm2, %v5957_v8 }
 0x4be   : > { %v5209_v38 = vadd.f32 %v5131_v10, %v20347_v11  ;;  %v20863_v60 = vadd.f32 %v5821_v54, %v5207_v16  ;;  %16567 = vmatprep.mubr.msk.f32.mxu0 %vm17756_vm1, %v23780_v1  ;;  %v5959_v11 = vld [vmem:[%s17894_s15 + $0x1a2] sm:$0xff] }
 0x4bf   : > { %v16229_v28 = vpop.f32.mrf.mxu0  ;;  %v16414_v48 = vpop.f32.mrf.mxu1 }
 0x4c1   : > { %v5136_v14 = vpop.f32.mrf.mxu0  ;;  %v5826_v57 = vpop.f32.mrf.mxu1  ;;  %16568 = vmatmul.mubr.msk.f32.gmra.mxu0 %vm567_vm2, %v5958_v3 }
 0x4c2   : > { %v5210_v47 = vadd.f32 %v5136_v14, %v20358_v43  ;;  %v20870_v35 = vadd.f32 %v5826_v57, %v5208_v34  ;;  %16570 = vmatprep.mubr.msk.f32.mxu0 %vm17756_vm1, %v23780_v1  ;;  %v5960_v43 = vld [vmem:[%s17894_s15 + $0x1aa] sm:$0xff] }
 0x4c3   : > { %v16232_v16 = vpop.f32.mrf.mxu0  ;;  %v16417_v8 = vpop.f32.mrf.mxu1 }
 0x4c5   : > { %v5141_v10 = vpop.f32.mrf.mxu0  ;;  %v5831_v54 = vpop.f32.mrf.mxu1  ;;  %16571 = vmatmul.mubr.msk.f32.gmra.mxu0 %vm567_vm2, %v5959_v11 }
 0x4c6   : > { %v5211_v28 = vadd.f32 %v5141_v10, %v20368_v20  ;;  %v20877_v48 = vadd.f32 %v5831_v54, %v5209_v38  ;;  %16573 = vmatprep.mubr.msk.f32.mxu0 %vm17756_vm1, %v23780_v1  ;;  %v5961_v20 = vld [vmem:[%s17894_s15 + $0x1b2] sm:$0xff] }
 0x4c7   : > { %v16235_v34 = vpop.f32.mrf.mxu0  ;;  %v16420_v3 = vpop.f32.mrf.mxu1 }
 0x4c8   : > { %v20892_v34 = vld [vmem:[%s23872_s2] ss:$0 sm:$0xff] }
 0x4c9   : > { %v5146_v14 = vpop.f32.mrf.mxu0  ;;  %v5836_v57 = vpop.f32.mrf.mxu1  ;;  %16574 = vmatmul.mubr.msk.f32.gmra.mxu0 %vm567_vm2, %v5960_v43 }
 0x4ca   : > { %v5212_v16 = vadd.f32 %v5146_v14, %v20379_v49  ;;  %v20884_v8 = vadd.f32 %v5836_v57, %v5210_v47  ;;  %16576 = vmatprep.mubr.msk.f32.mxu0 %vm17756_vm1, %v23780_v1  ;;  %v5962_v47 = vld [vmem:[%s17894_s15 + $0x1ba] sm:$0xff] }
 0x4cb   : > { %v16238_v38 = vpop.f32.mrf.mxu0  ;;  %v16423_v11 = vpop.f32.mrf.mxu1 }
 0x4cc   : > { %23871 = vst [vmem:[#allocation17_spill] sm:$0xff] %v20884_v8 }
 0x4cd   : > { %v5841_v10 = vpop.f32.mrf.mxu1  ;;  %v6236_v54 = vpop.f32.mrf.mxu0  ;;  %16577 = vmatmul.mubr.msk.f32.gmra.mxu0 %vm567_vm2, %v5961_v20 }
 0x4ce   : > { %v20895_v43 = vadd.f32 %v5841_v10, %v5211_v28  ;;  %v6550_v49 = vadd.f32 %v6236_v54, %v20391_v55  ;;  %16579 = vmatprep.mubr.msk.f32.mxu0 %vm17756_vm1, %v23780_v1  ;;  %v5963_v55 = vld [vmem:[%s17894_s15 + $0x1c2] sm:$0xff] }
 0x4cf   : > { %v16426_v3 = vpop.f32.mrf.mxu1  ;;  %v16434_v14 = vpop.f32.mrf.mxu0 }
 0x4d0   : > { %v6620_v57 = vadd.f32 %v20892_v34, %v6550_v49 }
 0x4d1   : > { %v5846_v38 = vpop.f32.mrf.mxu1  ;;  %v6241_v11 = vpop.f32.mrf.mxu0  ;;  %16580 = vmatmul.mubr.msk.f32.gmra.mxu0 %vm567_vm2, %v5962_v47 }
 0x4d2   : > { %v6683_v20 = vmax.f32 %v6620_v57, 0.0  ;;  %v20903_v8 = vadd.f32 %v5846_v38, %v5212_v16  ;;  %v6551_v28 = vadd.f32 %v6241_v11, %v20406_v42  ;;  %16582 = vmatprep.mubr.msk.f32.mxu0 %vm17756_vm1, %v23780_v1  ;;  %v5964_v42 = vld [vmem:[%s17894_s15 + $0x1ca] sm:$0xff] }
 0x4d3   : > { %v16437_v10 = vpop.f32.mrf.mxu0  ;;  %v16429_v54 = vpop.f32.mrf.mxu1 }
 0x4d4   : > { %6747 = vst.msk [vmem:[#allocation2] sm:$0xff] %vm6746_vm4, %v6683_v20  ;;  %v6621_v49 = vadd.f32 %v20892_v34, %v6551_v28  ;;  %v6871_v10 = vld [vmem:[%s23847_s3 + $0x8] sm:$0x3] }
 0x4d5   : > { %v6246_v3 = vpop.f32.mrf.mxu0  ;;  %16583 = vmatmul.mubr.msk.f32.gmra.mxu0 %vm567_vm2, %v5963_v55  ;;  %16715 = vmatprep.subr.msk.mxu1 %vm7115_vm3, %v6871_v10 }
 0x4d6   : > { %v6684_v47 = vmax.f32 %v6621_v49, 0.0  ;;  %v6552_v16 = vadd.f32 %v6246_v3, %v20418_v51  ;;  %16585 = vmatprep.mubr.msk.f32.mxu0 %vm17756_vm1, %v23780_v1  ;;  %v5965_v51 = vld [vmem:[%s17894_s15 + $0x1d2] sm:$0xff]  ;;  %v5966_v3 = vld [vmem:[%s17894_s15 + $0x1da] sm:$0xff] }
 0x4d7   : > { %v16440_v14 = vpop.f32.mrf.mxu0 }
 0x4d8   : > { %6748 = vst.msk [vmem:[#allocation2 + $0x8] sm:$0xff] %vm6746_vm4, %v6684_v47  ;;  %v6622_v57 = vadd.f32 %v20892_v34, %v6552_v16 }
 0x4d9   : > { %v6251_v38 = vpop.f32.mrf.mxu0  ;;  %16586 = vmatmul.mubr.msk.f32.gmra.mxu0 %vm567_vm2, %v5964_v42 }
 0x4da   : > { %v6685_v11 = vmax.f32 %v6622_v57, 0.0  ;;  %v6553_v20 = vadd.f32 %v6251_v38, %v20429_v36  ;;  %16588 = vmatprep.mubr.msk.f32.mxu0 %vm17756_vm1, %v23780_v1 }
 0x4db   : > { %v16443_v28 = vpop.f32.mrf.mxu0 }
 0x4dc   : > { %6749 = vst.msk [vmem:[#allocation2 + $0x10] sm:$0xff] %vm6746_vm4, %v6685_v11  ;;  %v6623_v55 = vadd.f32 %v20892_v34, %v6553_v20 }
 0x4dd   : > { %v6256_v54 = vpop.f32.mrf.mxu0  ;;  %16589 = vmatmul.mubr.msk.f32.gmra.mxu0 %vm567_vm2, %v5965_v51 }
 0x4de   : > { %v6686_v36 = vmax.f32 %v6623_v55, 0.0  ;;  %v6554_v49 = vadd.f32 %v6256_v54, %v20440_v58  ;;  %16591 = vmatprep.mubr.msk.f32.mxu0 %vm17756_vm1, %v23780_v1  ;;  %v5967_v58 = vld [vmem:[%s17894_s15 + $0x1e2] sm:$0xff]  ;;  %v5968_v54 = vld [vmem:[%s17894_s15 + $0x1ea] sm:$0xff] }
 0x4df   : > { %v16446_v47 = vpop.f32.mrf.mxu0  ;;  %v6872_v16 = vld [vmem:[#allocation2 + $0x1] sm:$0xff] }
 0x4e0   : > { %6750 = vst.msk [vmem:[#allocation2 + $0x18] sm:$0xff] %vm6746_vm4, %v6686_v36  ;;  %v6624_v42 = vadd.f32 %v20892_v34, %v6554_v49  ;;  %16625 = vmatprep.mubr.msk.f32.mxu1 %vm6746_vm4, %v6872_v16 }
 0x4e1   : > { %v6261_v14 = vpop.f32.mrf.mxu0  ;;  %16592 = vmatmul.mubr.msk.f32.gmra.mxu0 %vm567_vm2, %v5966_v3 }
 0x4e2   : > { %v6687_v57 = vmax.f32 %v6624_v42, 0.0  ;;  %v6555_v38 = vadd.f32 %v6261_v14, %v20451_v22  ;;  %16594 = vmatprep.mubr.msk.f32.mxu0 %vm17756_vm1, %v23780_v1 }
 0x4e3   : > { %v16449_v11 = vpop.f32.mrf.mxu0  ;;  %v6873_v20 = vld [vmem:[#allocation2 + $0x9] sm:$0xff] }
 0x4e4   : > { %6751 = vst.msk [vmem:[#allocation2 + $0x20] sm:$0xff] %vm6746_vm4, %v6687_v57  ;;  %v6625_v51 = vadd.f32 %v20892_v34, %v6555_v38  ;;  %16626 = vmatmul.mubr.msk.f32.vlgmr.msra.gmra.mxu1 %vm6746_vm4, %v6873_v20  ;;  %v5970_v11 = vld [vmem:[%s17894_s15 + $0x1fa] sm:$0xff] }
 0x4e5   : > { %v6266_v28 = vpop.f32.mrf.mxu0  ;;  %16595 = vmatmul.mubr.msk.f32.gmra.mxu0 %vm567_vm2, %v5967_v58  ;;  %16716 = vmatpush3.msk.msra.mxu1 %vm7115_vm3, %v6871_v10 }
 0x4e6   : > { %v6688_v55 = vmax.f32 %v6625_v51, 0.0  ;;  %v6556_v22 = vadd.f32 %v6266_v28, %v20462_v61  ;;  %16597 = vmatprep.mubr.msk.f32.mxu0 %vm17756_vm1, %v23780_v1  ;;  %v5969_v61 = vld [vmem:[%s17894_s15 + $0x1f2] sm:$0xff] }
 0x4e7   : > { %v16452_v36 = vpop.f32.mrf.mxu0  ;;  %v6874_v49 = vld [vmem:[#allocation2 + $0x11] sm:$0xff] }
 0x4e8   : > { %6752 = vst.msk [vmem:[#allocation2 + $0x28] sm:$0xff] %vm6746_vm4, %v6688_v55  ;;  %v6626_v3 = vadd.f32 %v20892_v34, %v6556_v22  ;;  %16628 = vmatprep.mubr.msk.f32.mxu1 %vm6746_vm4, %v6874_v49 }
 0x4e9   : > { %v6271_v47 = vpop.f32.mrf.mxu0  ;;  %16598 = vmatmul.mubr.msk.f32.gmra.mxu0 %vm567_vm2, %v5968_v54  ;;  %v5971_v54 = vld [vmem:[%s17894_s15 + $0x202] sm:$0xff] }
 0x4ea   : > { %v6689_v10 = vmax.f32 %v6626_v3, 0.0  ;;  %v6557_v16 = vadd.f32 %v6271_v47, %v20473_v4  ;;  %16600 = vmatprep.mubr.msk.f32.mxu0 %vm17756_vm1, %v23780_v1 }
 0x4eb   : > { %v16455_v42 = vpop.f32.mrf.mxu0  ;;  %v20959_v14 = vld [vmem:[#allocation2 + $0x19] sm:$0xff] }
 0x4ec   : > { %6753 = vst.msk [vmem:[#allocation2 + $0x30] sm:$0xff] %vm6746_vm4, %v6689_v10  ;;  %v6627_v57 = vadd.f32 %v20892_v34, %v6557_v16  ;;  %16629 = vmatmul.mubr.msk.f32.gmra.mxu1 %vm6746_vm4, %v20959_v14 }
 0x4ed   : > { %v6276_v38 = vpop.f32.mrf.mxu0  ;;  %16601 = vmatmul.mubr.msk.f32.gmra.mxu0 %vm567_vm2, %v5969_v61 }
 0x4ee   : > { %v6690_v58 = vmax.f32 %v6627_v57, 0.0  ;;  %v6558_v4 = vadd.f32 %v6276_v38, %v20484_v12  ;;  %16603 = vmatprep.mubr.msk.f32.mxu0 %vm17756_vm1, %v23780_v1 }
 0x4ef   : > { %v16458_v20 = vpop.f32.mrf.mxu0  ;;  %v20970_v51 = vld [vmem:[#allocation2 + $0x21] sm:$0xff] }
 0x4f0   : > { %6754 = vst.msk [vmem:[#allocation2 + $0x38] sm:$0xff] %vm6746_vm4, %v6690_v58  ;;  %v6628_v28 = vadd.f32 %v20892_v34, %v6558_v4  ;;  %16631 = vmatprep.mubr.msk.f32.mxu1 %vm6746_vm4, %v20970_v51 }
 0x4f1   : > { %v6281_v55 = vpop.f32.mrf.mxu0  ;;  %16604 = vmatmul.mubr.msk.f32.gmra.mxu0 %vm567_vm2, %v5970_v11 }
 0x4f2   : > { %v6691_v22 = vmax.f32 %v6628_v28, 0.0  ;;  %v6559_v12 = vadd.f32 %v6281_v55, %v20495_v26  ;;  %16606 = vmatprep.mubr.msk.f32.mxu0 %vm17756_vm1, %v23780_v1  ;;  %v5972_v26 = vld [vmem:[%s17894_s15 + $0x20a] sm:$0xff] }
 0x4f3   : > { %v16461_v36 = vpop.f32.mrf.mxu0  ;;  %v6877_v49 = vld [vmem:[#allocation2 + $0x29] sm:$0xff] }
 0x4f4   : > { %6755 = vst.msk [vmem:[#allocation2 + $0x40] sm:$0xff] %vm6746_vm4, %v6691_v22  ;;  %v6629_v3 = vadd.f32 %v20892_v34, %v6559_v12  ;;  %16632 = vmatmul.mubr.msk.f32.gmra.mxu1 %vm6746_vm4, %v6877_v49 }
 0x4f5   : > { %v6286_v47 = vpop.f32.mrf.mxu0  ;;  %16607 = vmatmul.mubr.msk.f32.gmra.mxu0 %vm567_vm2, %v5971_v54 }
 0x4f6   : > { %v6692_v10 = vmax.f32 %v6629_v3, 0.0  ;;  %v6560_v16 = vadd.f32 %v6286_v47, %v20506_v39  ;;  %16609 = vmatprep.mubr.msk.f32.mxu0 %vm17756_vm1, %v23780_v1  ;;  %v5973_v39 = vld [vmem:[%s17894_s15 + $0x212] sm:$0xff] }
 0x4f7   : > { %v16464_v61 = vpop.f32.mrf.mxu0  ;;  %v6878_v42 = vld [vmem:[#allocation2 + $0x31] sm:$0xff] }
 0x4f8   : > { %6756 = vst.msk [vmem:[#allocation2 + $0x48] sm:$0xff] %vm6746_vm4, %v6692_v10  ;;  %v6630_v57 = vadd.f32 %v20892_v34, %v6560_v16  ;;  %16634 = vmatprep.mubr.msk.f32.mxu1 %vm6746_vm4, %v6878_v42  ;;  %v23873_v16 = vld [vmem:[#allocation19_spill] sm:$0xff] }
 0x4f9   : > { %v6291_v38 = vpop.f32.mrf.mxu0  ;;  %16610 = vmatmul.mubr.msk.f32.gmra.mxu0 %vm567_vm2, %v5972_v26 }
 0x4fa   : > { %v6693_v58 = vmax.f32 %v6630_v57, 0.0  ;;  %v6561_v4 = vadd.f32 %v6291_v38, %v20517_v46  ;;  %16612 = vmatprep.mubr.msk.f32.mxu0 %vm17756_vm1, %v23780_v1  ;;  %v5974_v46 = vld [vmem:[%s17894_s15 + $0x21a] sm:$0xff] }
 0x4fb   : > { %v16467_v11 = vpop.f32.mrf.mxu0  ;;  %v6879_v20 = vld [vmem:[#allocation2 + $0x39] sm:$0xff] }
 0x4fc   : > { %6757 = vst.msk [vmem:[#allocation2 + $0x50] sm:$0xff] %vm6746_vm4, %v6693_v58  ;;  %v6631_v28 = vadd.f32 %v20892_v34, %v6561_v4  ;;  %16635 = vmatmul.mubr.msk.f32.gmra.mxu1 %vm6746_vm4, %v6879_v20 }
 0x4fd   : > { %v6296_v55 = vpop.f32.mrf.mxu0  ;;  %16613 = vmatmul.mubr.msk.f32.gmra.mxu0 %vm567_vm2, %v5973_v39 }
 0x4fe   : > { %v6694_v22 = vmax.f32 %v6631_v28, 0.0  ;;  %v6562_v12 = vadd.f32 %v6296_v55, %v20528_v2  ;;  %16615 = vmatprep.mubr.msk.f32.mxu0 %vm17756_vm1, %v23780_v1  ;;  %v5975_v2 = vld [vmem:[%s17894_s15 + $0x222] sm:$0xff]  ;;  %s432_s15 = scalar_lea.vmem [#allocation7], %s431_s24 }
 0x4ff   : > { %v16470_v54 = vpop.f32.mrf.mxu0  ;;  %v6880_v36 = vld [vmem:[#allocation2 + $0x41] sm:$0xff]  ;;  %s12729_s16 = sshll.u32 %s432_s15, 4  ;;  %s12730_s16 = int_to_ptr.vmem [resolvable:$true] %s12729_s16 }
 0x500   : > { %6758 = vst.msk [vmem:[#allocation2 + $0x58] sm:$0xff] %vm6746_vm4, %v6694_v22  ;;  %v6632_v3 = vadd.f32 %v20892_v34, %v6562_v12  ;;  %16637 = vmatprep.mubr.msk.f32.mxu1 %vm6746_vm4, %v6880_v36  ;;  %s17693_s0 = scalar_lea.vmem %s12730_s16, 16 }
 0x501   : > { %v6301_v47 = vpop.f32.mrf.mxu0  ;;  %16616 = vmatmul.mubr.msk.f32.gmra.mxu0 %vm567_vm2, %v5974_v46  ;;  %p17694_p11 = scmp.ne.s32.totalorder %s12730_s16, %s17693_s0 }
 0x502   : > { %v6695_v10 = vmax.f32 %v6632_v3, 0.0  ;;  %v6563_v26 = vadd.f32 %v6301_v47, %v23873_v16  ;;  %16618 = vmatprep.mubr.msk.f32.mxu0 %vm17756_vm1, %v23780_v1 }
 0x503   : > { %v16473_v61 = vpop.f32.mrf.mxu0  ;;  %v6881_v57 = vld [vmem:[#allocation2 + $0x49] sm:$0xff]  ;;  %p17695_p12 = pnand %p17694_p11, %p17866_p5 }
 0x504   : > { %6759 = vst.msk [vmem:[#allocation2 + $0x60] sm:$0xff] %vm6746_vm4, %v6695_v10  ;;  %v6633_v38 = vadd.f32 %v20892_v34, %v6563_v26  ;;  %16638 = vmatmul.mubr.msk.f32.gmra.mxu1 %vm6746_vm4, %v6881_v57 }
 0x505   : > { %v6306_v58 = vpop.f32.mrf.mxu0  ;;  %16619 = vmatmul.mubr.msk.f32.gmra.mxu0 %vm567_vm2, %v5975_v2  ;;  %p17696_p13 = pneg %p17695_p12 }
 0x506   : > { %v6696_v4 = vmax.f32 %v6633_v38, 0.0  ;;  %v6564_v39 = vadd.f32 %v6306_v58, %v20550_v7  ;;  %16907 = vmatprep.mubr.msk.f32.mxu0 %vm6746_vm4, %v20959_v14 }
 0x507   : > { %v16476_v11 = vpop.f32.mrf.mxu0  ;;  %v6882_v28 = vld [vmem:[#allocation2 + $0x51] sm:$0xff] }
 0x508   : > { %6760 = vst.msk [vmem:[#allocation2 + $0x68] sm:$0xff] %vm6746_vm4, %v6696_v4  ;;  %v6634_v55 = vadd.f32 %v20892_v34, %v6564_v39  ;;  %16640 = vmatprep.mubr.msk.f32.mxu1 %vm6746_vm4, %v6882_v28  ;;  %v6870_v4 = vld [vmem:[%s23847_s3] sm:$0xff] }
 0x509   : > { %v6311_v22 = vpop.f32.mrf.mxu0  ;;  %16908 = vmatmul.mubr.msk.f32.vlgmr.msra.gmra.mxu0 %vm6746_vm4, %v20970_v51  ;;  %16717 = vmatprep.subr.mxu1 %v6870_v4 }
 0x50a   : > { %v6697_v12 = vmax.f32 %v6634_v55, 0.0  ;;  %v6565_v46 = vadd.f32 %v6311_v22, %v20557_v63  ;;  %16910 = vmatprep.mubr.msk.f32.mxu0 %vm6746_vm4, %v6877_v49  ;;  %16718 = vmatpush3.msra.mxu1 %v6870_v4 }
 0x50b   : > { %v16479_v7 = vpop.f32.mrf.mxu0  ;;  %v6883_v54 = vld [vmem:[#allocation2 + $0x59] sm:$0xff] }
 0x50c   : > { %6761 = vst.msk [vmem:[#allocation2 + $0x70] sm:$0xff] %vm6746_vm4, %v6697_v12  ;;  %v6635_v14 = vadd.f32 %v20892_v34, %v6565_v46  ;;  %16641 = vmatmul.mubr.msk.f32.gmra.mxu1 %vm6746_vm4, %v6883_v54 }
 0x50d   : > { %v6316_v3 = vpop.f32.mrf.mxu0  ;;  %16911 = vmatmul.mubr.msk.f32.gmra.mxu0 %vm6746_vm4, %v6878_v42 }
 0x50e   : > { %v6698_v47 = vmax.f32 %v6635_v14, 0.0  ;;  %v6566_v10 = vadd.f32 %v6316_v3, %v20564_v24  ;;  %16913 = vmatprep.mubr.msk.f32.mxu0 %vm6746_vm4, %v6879_v20 }
 0x50f   : > { %v16482_v51 = vpop.f32.mrf.mxu0  ;;  %v6884_v63 = vld [vmem:[#allocation2 + $0x61] sm:$0xff] }
 0x510   : > { %6762 = vst.msk [vmem:[#allocation2 + $0x78] sm:$0xff] %vm6746_vm4, %v6698_v47  ;;  %v6636_v49 = vadd.f32 %v20892_v34, %v6566_v10  ;;  %16643 = vmatprep.mubr.msk.f32.mxu1 %vm6746_vm4, %v6884_v63 }
 0x511   : > { %v6321_v16 = vpop.f32.mrf.mxu0  ;;  %16914 = vmatmul.mubr.msk.f32.gmra.mxu0 %vm6746_vm4, %v6880_v36 }
 0x512   : > { %v6699_v26 = vmax.f32 %v6636_v49, 0.0  ;;  %v6567_v2 = vadd.f32 %v6321_v16, %v20571_v40  ;;  %16916 = vmatprep.mubr.msk.f32.mxu0 %vm6746_vm4, %v6881_v57 }
 0x513   : > { %v16485_v42 = vpop.f32.mrf.mxu0  ;;  %v6885_v24 = vld [vmem:[#allocation2 + $0x69] sm:$0xff] }
 0x514   : > { %6763 = vst.msk [vmem:[#allocation2 + $0x80] sm:$0xff] %vm6746_vm4, %v6699_v26  ;;  %v6637_v20 = vadd.f32 %v20892_v34, %v6567_v2  ;;  %16644 = vmatmul.mubr.msk.f32.gmra.mxu1 %vm6746_vm4, %v6885_v24 }
 0x515   : > { %v6326_v61 = vpop.f32.mrf.mxu0  ;;  %16917 = vmatmul.mubr.msk.f32.gmra.mxu0 %vm6746_vm4, %v6882_v28 }
 0x516   : > { %v6700_v38 = vmax.f32 %v6637_v20, 0.0  ;;  %v6568_v58 = vadd.f32 %v6326_v61, %v20578_v32  ;;  %16919 = vmatprep.mubr.msk.f32.mxu0 %vm6746_vm4, %v6883_v54 }
 0x517   : > { %v16488_v36 = vpop.f32.mrf.mxu0  ;;  %v6886_v40 = vld [vmem:[#allocation2 + $0x71] sm:$0xff] }
 0x518   : > { %6764 = vst.msk [vmem:[#allocation2 + $0x88] sm:$0xff] %vm6746_vm4, %v6700_v38  ;;  %v6638_v57 = vadd.f32 %v20892_v34, %v6568_v58  ;;  %16646 = vmatprep.mubr.msk.f32.mxu1 %vm6746_vm4, %v6886_v40 }
 0x519   : > { %v6331_v39 = vpop.f32.mrf.mxu0  ;;  %16920 = vmatmul.mubr.msk.f32.gmra.mxu0 %vm6746_vm4, %v6884_v63 }
 0x51a   : > { %v6701_v11 = vmax.f32 %v6638_v57, 0.0  ;;  %v6569_v32 = vadd.f32 %v6331_v39, %v20585_v53  ;;  %16922 = vmatprep.mubr.msk.f32.mxu0 %vm6746_vm4, %v6885_v24 }
 0x51b   : > { %v16491_v28 = vpop.f32.mrf.mxu0  ;;  %v6887_v55 = vld [vmem:[#allocation2 + $0x79] sm:$0xff] }
 0x51c   : > { %6765 = vst.msk [vmem:[#allocation2 + $0x90] sm:$0xff] %vm6746_vm4, %v6701_v11  ;;  %v6639_v22 = vadd.f32 %v20892_v34, %v6569_v32  ;;  %16647 = vmatmul.mubr.msk.f32.gmra.mxu1 %vm6746_vm4, %v6887_v55 }
 0x51d   : > { %v6336_v12 = vpop.f32.mrf.mxu0  ;;  %16923 = vmatmul.mubr.msk.f32.gmra.mxu0 %vm6746_vm4, %v6886_v40 }
 0x51e   : > { %v6702_v46 = vmax.f32 %v6639_v22, 0.0  ;;  %v6570_v7 = vadd.f32 %v6336_v12, %v20592_v0  ;;  %16925 = vmatprep.mubr.msk.f32.mxu0 %vm6746_vm4, %v6887_v55 }
 0x51f   : > { %v16494_v53 = vpop.f32.mrf.mxu0  ;;  %v6888_v54 = vld [vmem:[#allocation2 + $0x81] sm:$0xff] }
 0x520   : > { %6766 = vst.msk [vmem:[#allocation2 + $0x98] sm:$0xff] %vm6746_vm4, %v6702_v46  ;;  %v6640_v14 = vadd.f32 %v20892_v34, %v6570_v7  ;;  %16649 = vmatprep.mubr.msk.f32.mxu1 %vm6746_vm4, %v6888_v54 }
 0x521   : > { %v6341_v3 = vpop.f32.mrf.mxu0  ;;  %16926 = vmatmul.mubr.msk.f32.gmra.mxu0 %vm6746_vm4, %v6888_v54 }
 0x522   : > { %v6703_v47 = vmax.f32 %v6640_v14, 0.0  ;;  %v6571_v10 = vadd.f32 %v6341_v3, %v20599_v44 }
 0x523   : > { %v16497_v51 = vpop.f32.mrf.mxu0  ;;  %v6889_v63 = vld [vmem:[#allocation2 + $0x89] sm:$0xff] }
 0x524   : > { %6767 = vst.msk [vmem:[#allocation2 + $0xa0] sm:$0xff] %vm6746_vm4, %v6703_v47  ;;  %v6641_v0 = vadd.f32 %v20892_v34, %v6571_v10  ;;  %16650 = vmatmul.mubr.msk.f32.gmra.mxu1 %vm6746_vm4, %v6889_v63  ;;  %16928 = vmatprep.mubr.msk.f32.mxu0 %vm6746_vm4, %v6889_v63 }
 0x525   : > { %v6346_v49 = vpop.f32.mrf.mxu0 }
 0x526   : > { %v6704_v16 = vmax.f32 %v6641_v0, 0.0  ;;  %v6572_v26 = vadd.f32 %v6346_v49, %v20606_v52 }
 0x527   : > { %v16500_v2 = vpop.f32.mrf.mxu0  ;;  %v6890_v42 = vld [vmem:[#allocation2 + $0x91] sm:$0xff] }
 0x528   : > { %6768 = vst.msk [vmem:[#allocation2 + $0xa8] sm:$0xff] %vm6746_vm4, %v6704_v16  ;;  %v6642_v44 = vadd.f32 %v20892_v34, %v6572_v26  ;;  %16652 = vmatprep.mubr.msk.f32.mxu1 %vm6746_vm4, %v6890_v42  ;;  %16929 = vmatmul.mubr.msk.f32.gmra.mxu0 %vm6746_vm4, %v6890_v42 }
 0x529   : > { %v6351_v24 = vpop.f32.mrf.mxu0 }
 0x52a   : > { %v6705_v20 = vmax.f32 %v6642_v44, 0.0  ;;  %v6573_v61 = vadd.f32 %v6351_v24, %v20613_v13 }
 0x52b   : > { %v16503_v38 = vpop.f32.mrf.mxu0  ;;  %v6891_v58 = vld [vmem:[#allocation2 + $0x99] sm:$0xff] }
 0x52c   : > { %6769 = vst.msk [vmem:[#allocation2 + $0xb0] sm:$0xff] %vm6746_vm4, %v6705_v20  ;;  %v6643_v52 = vadd.f32 %v20892_v34, %v6573_v61  ;;  %16653 = vmatmul.mubr.msk.f32.gmra.mxu1 %vm6746_vm4, %v6891_v58  ;;  %16931 = vmatprep.mubr.msk.f32.mxu0 %vm6746_vm4, %v6891_v58 }
 0x52d   : > { %v6356_v36 = vpop.f32.mrf.mxu0 }
 0x52e   : > { %v6706_v40 = vmax.f32 %v6643_v52, 0.0  ;;  %v6574_v57 = vadd.f32 %v6356_v36, %v20620_v15 }
 0x52f   : > { %v16506_v4 = vpop.f32.mrf.mxu0  ;;  %v6892_v39 = vld [vmem:[#allocation2 + $0xa1] sm:$0xff] }
 0x530   : > { %6770 = vst.msk [vmem:[#allocation2 + $0xb8] sm:$0xff] %vm6746_vm4, %v6706_v40  ;;  %v6644_v13 = vadd.f32 %v20892_v34, %v6574_v57  ;;  %16655 = vmatprep.mubr.msk.f32.mxu1 %vm6746_vm4, %v6892_v39  ;;  %16932 = vmatmul.mubr.msk.f32.gmra.mxu0 %vm6746_vm4, %v6892_v39 }
 0x531   : > { %v6361_v11 = vpop.f32.mrf.mxu0 }
 0x532   : > { %v6707_v32 = vmax.f32 %v6644_v13, 0.0  ;;  %v6575_v28 = vadd.f32 %v6361_v11, %v20627_v17 }
 0x533   : > { %v16509_v55 = vpop.f32.mrf.mxu0  ;;  %v6893_v22 = vld [vmem:[#allocation2 + $0xa9] sm:$0xff] }
 0x534   : > { %6771 = vst.msk [vmem:[#allocation2 + $0xc0] sm:$0xff] %vm6746_vm4, %v6707_v32  ;;  %v6645_v15 = vadd.f32 %v20892_v34, %v6575_v28  ;;  %16656 = vmatmul.mubr.msk.f32.gmra.mxu1 %vm6746_vm4, %v6893_v22  ;;  %16934 = vmatprep.mubr.msk.f32.mxu0 %vm6746_vm4, %v6893_v22  ;;  %v21123_v55 = vld [vmem:[%s23847_s3 + $0x28] sm:$0x3] }
 0x535   : > { %v6366_v12 = vpop.f32.mrf.mxu0  ;;  %16809 = vmatprep.subr.msk.mxu1 %vm7115_vm3, %v21123_v55 }
 0x536   : > { %v6708_v46 = vmax.f32 %v6645_v15, 0.0  ;;  %v6576_v7 = vadd.f32 %v6366_v12, %v20634_v19 }
 0x537   : > { %v16512_v53 = vpop.f32.mrf.mxu0  ;;  %v6894_v54 = vld [vmem:[#allocation2 + $0xb1] sm:$0xff] }
 0x538   : > { %6772 = vst.msk [vmem:[#allocation2 + $0xc8] sm:$0xff] %vm6746_vm4, %v6708_v46  ;;  %v6646_v17 = vadd.f32 %v20892_v34, %v6576_v7  ;;  %16658 = vmatprep.mubr.msk.f32.mxu1 %vm6746_vm4, %v6894_v54  ;;  %16935 = vmatmul.mubr.msk.f32.gmra.mxu0 %vm6746_vm4, %v6894_v54 }
 0x539   : > { %v6371_v14 = vpop.f32.mrf.mxu0 }
 0x53a   : > { %v6709_v3 = vmax.f32 %v6646_v17, 0.0  ;;  %v6577_v47 = vadd.f32 %v6371_v14, %v20641_v21 }
 0x53b   : > { %v16515_v10 = vpop.f32.mrf.mxu0  ;;  %v6895_v51 = vld [vmem:[#allocation2 + $0xb9] sm:$0xff] }
 0x53c   : > { %6773 = vst.msk [vmem:[#allocation2 + $0xd0] sm:$0xff] %vm6746_vm4, %v6709_v3  ;;  %v6647_v19 = vadd.f32 %v20892_v34, %v6577_v47  ;;  %16659 = vmatmul.mubr.msk.f32.gmra.mxu1 %vm6746_vm4, %v6895_v51  ;;  %16937 = vmatprep.mubr.msk.f32.mxu0 %vm6746_vm4, %v6895_v51 }
 0x53d   : > { %v6376_v63 = vpop.f32.mrf.mxu0 }
 0x53e   : > { %v6710_v0 = vmax.f32 %v6647_v19, 0.0  ;;  %v6578_v49 = vadd.f32 %v6376_v63, %v20648_v23 }
 0x53f   : > { %v16518_v16 = vpop.f32.mrf.mxu0  ;;  %v6896_v26 = vld [vmem:[#allocation2 + $0xc1] sm:$0xff] }
 0x540   : > { %6774 = vst.msk [vmem:[#allocation2 + $0xd8] sm:$0xff] %vm6746_vm4, %v6710_v0  ;;  %v6648_v21 = vadd.f32 %v20892_v34, %v6578_v49  ;;  %16661 = vmatprep.mubr.msk.f32.mxu1 %vm6746_vm4, %v6896_v26  ;;  %16938 = vmatmul.mubr.msk.f32.gmra.mxu0 %vm6746_vm4, %v6896_v26 }
 0x541   : > { %v6381_v2 = vpop.f32.mrf.mxu0 }
 0x542   : > { %v6711_v42 = vmax.f32 %v6648_v21, 0.0  ;;  %v6579_v44 = vadd.f32 %v6381_v2, %v20655_v25 }
 0x543   : > { %v16521_v24 = vpop.f32.mrf.mxu0  ;;  %v6897_v20 = vld [vmem:[#allocation2 + $0xc9] sm:$0xff] }
 0x544   : > { %6775 = vst.msk [vmem:[#allocation2 + $0xe0] sm:$0xff] %vm6746_vm4, %v6711_v42  ;;  %v6649_v23 = vadd.f32 %v20892_v34, %v6579_v44  ;;  %16662 = vmatmul.mubr.msk.f32.gmra.mxu1 %vm6746_vm4, %v6897_v20  ;;  %16940 = vmatprep.mubr.msk.f32.mxu0 %vm6746_vm4, %v6897_v20 }
 0x545   : > { %v6386_v61 = vpop.f32.mrf.mxu0 }
 0x546   : > { %v6712_v38 = vmax.f32 %v6649_v23, 0.0  ;;  %v6580_v58 = vadd.f32 %v6386_v61, %v20662_v27 }
 0x547   : > { %v16524_v52 = vpop.f32.mrf.mxu0  ;;  %v6898_v36 = vld [vmem:[#allocation2 + $0xd1] sm:$0xff] }
 0x548   : > { %6776 = vst.msk [vmem:[#allocation2 + $0xe8] sm:$0xff] %vm6746_vm4, %v6712_v38  ;;  %v6650_v25 = vadd.f32 %v20892_v34, %v6580_v58  ;;  %16664 = vmatprep.mubr.msk.f32.mxu1 %vm6746_vm4, %v6898_v36  ;;  %16941 = vmatmul.mubr.msk.f32.gmra.mxu0 %vm6746_vm4, %v6898_v36 }
 0x549   : > { %v6391_v40 = vpop.f32.mrf.mxu0 }
 0x54a   : > { %v6713_v57 = vmax.f32 %v6650_v25, 0.0  ;;  %v6581_v4 = vadd.f32 %v6391_v40, %v20669_v29 }
 0x54b   : > { %v16527_v39 = vpop.f32.mrf.mxu0  ;;  %v6899_v13 = vld [vmem:[#allocation2 + $0xd9] sm:$0xff] }
 0x54c   : > { %6777 = vst.msk [vmem:[#allocation2 + $0xf0] sm:$0xff] %vm6746_vm4, %v6713_v57  ;;  %v6651_v27 = vadd.f32 %v20892_v34, %v6581_v4  ;;  %16665 = vmatmul.mubr.msk.f32.gmra.mxu1 %vm6746_vm4, %v6899_v13  ;;  %16943 = vmatprep.mubr.msk.f32.mxu0 %vm6746_vm4, %v6899_v13 }
 0x54d   : > { %v6396_v11 = vpop.f32.mrf.mxu0 }
 0x54e   : > { %v6714_v32 = vmax.f32 %v6651_v27, 0.0  ;;  %v6582_v28 = vadd.f32 %v6396_v11, %v20676_v31 }
 0x54f   : > { %v16530_v29 = vpop.f32.mrf.mxu0  ;;  %v6900_v22 = vld [vmem:[#allocation2 + $0xe1] sm:$0xff] }
 0x550   : > { %6778 = vst.msk [vmem:[#allocation2 + $0xf8] sm:$0xff] %vm6746_vm4, %v6714_v32  ;;  %v6652_v15 = vadd.f32 %v20892_v34, %v6582_v28  ;;  %16667 = vmatprep.mubr.msk.f32.mxu1 %vm6746_vm4, %v6900_v22  ;;  %16944 = vmatmul.mubr.msk.f32.gmra.mxu0 %vm6746_vm4, %v6900_v22 }
 0x551   : > { %v6401_v12 = vpop.f32.mrf.mxu0 }
 0x552   : > { %v6715_v31 = vmax.f32 %v6652_v15, 0.0  ;;  %v6583_v46 = vadd.f32 %v6401_v12, %v20683_v33  ;;  %v23874_v12 = vld [vmem:[#allocation20_spill] sm:$0xff] }
 0x553   : > { %v16533_v7 = vpop.f32.mrf.mxu0  ;;  %v6901_v53 = vld [vmem:[#allocation2 + $0xe9] sm:$0xff] }
 0x554   : > { %6779 = vst.msk [vmem:[#allocation2 + $0x100] sm:$0xff] %vm6746_vm4, %v6715_v31  ;;  %v6653_v54 = vadd.f32 %v20892_v34, %v6583_v46  ;;  %16668 = vmatmul.mubr.msk.f32.gmra.mxu1 %vm6746_vm4, %v6901_v53  ;;  %16946 = vmatprep.mubr.msk.f32.mxu0 %vm6746_vm4, %v6901_v53 }
 0x555   : > { %v6406_v17 = vpop.f32.mrf.mxu0 }
 0x556   : > { %v6716_v14 = vmax.f32 %v6653_v54, 0.0  ;;  %v6584_v3 = vadd.f32 %v6406_v17, %v20693_v5  ;;  %v23875_v17 = vld [vmem:[#allocation23_spill] sm:$0xff] }
 0x557   : > { %v16536_v47 = vpop.f32.mrf.mxu0  ;;  %v6902_v10 = vld [vmem:[#allocation2 + $0xf1] sm:$0xff] }
 0x558   : > { %6780 = vst.msk [vmem:[#allocation2 + $0x108] sm:$0xff] %vm6746_vm4, %v6716_v14  ;;  %v6654_v33 = vadd.f32 %v20892_v34, %v6584_v3  ;;  %16670 = vmatprep.mubr.msk.f32.mxu1 %vm6746_vm4, %v6902_v10  ;;  %16947 = vmatmul.mubr.msk.f32.gmra.mxu0 %vm6746_vm4, %v6902_v10 }
 0x559   : > { %v6411_v51 = vpop.f32.mrf.mxu0 }
 0x55a   : > { %v6717_v19 = vmax.f32 %v6654_v33, 0.0  ;;  %v6585_v63 = vadd.f32 %v6411_v51, %v20700_v50 }
 0x55b   : > { %v16539_v0 = vpop.f32.mrf.mxu0  ;;  %v6903_v49 = vld [vmem:[#allocation2 + $0xf9] sm:$0xff] }
 0x55c   : > { %6781 = vst.msk [vmem:[#allocation2 + $0x110] sm:$0xff] %vm6746_vm4, %v6717_v19  ;;  %v6655_v5 = vadd.f32 %v20892_v34, %v6585_v63  ;;  %16671 = vmatmul.mubr.msk.f32.gmra.mxu1 %vm6746_vm4, %v6903_v49  ;;  %16949 = vmatprep.mubr.msk.f32.mxu0 %vm6746_vm4, %v6903_v49  ;;  %v23876_v19 = vld [vmem:[#allocation10_spill] sm:$0xff] }
 0x55d   : > { %v6416_v16 = vpop.f32.mrf.mxu0 }
 0x55e   : > { %v6718_v26 = vmax.f32 %v6655_v5, 0.0  ;;  %v6586_v21 = vadd.f32 %v6416_v16, %v20707_v56 }
 0x55f   : > { %v16542_v2 = vpop.f32.mrf.mxu0  ;;  %v6904_v42 = vld [vmem:[#allocation2 + $0x101] sm:$0xff] }
 0x560   : > { %6782 = vst.msk [vmem:[#allocation2 + $0x118] sm:$0xff] %vm6746_vm4, %v6718_v26  ;;  %v6656_v50 = vadd.f32 %v20892_v34, %v6586_v21  ;;  %16673 = vmatprep.mubr.msk.f32.mxu1 %vm6746_vm4, %v6904_v42  ;;  %16950 = vmatmul.mubr.msk.f32.gmra.mxu0 %vm6746_vm4, %v6904_v42  ;;  %v23877_v21 = vld [vmem:[#allocation21_spill] sm:$0xff] }
 0x561   : > { %v6421_v44 = vpop.f32.mrf.mxu0 }
 0x562   : > { %v6719_v24 = vmax.f32 %v6656_v50, 0.0  ;;  %v6587_v20 = vadd.f32 %v6421_v44, %v20714_v18 }
 0x563   : > { %v16545_v23 = vpop.f32.mrf.mxu0  ;;  %v6905_v61 = vld [vmem:[#allocation2 + $0x109] sm:$0xff] }
 0x564   : > { %6783 = vst.msk [vmem:[#allocation2 + $0x120] sm:$0xff] %vm6746_vm4, %v6719_v24  ;;  %v6657_v56 = vadd.f32 %v20892_v34, %v6587_v20  ;;  %16674 = vmatmul.mubr.msk.f32.gmra.mxu1 %vm6746_vm4, %v6905_v61  ;;  %16952 = vmatprep.mubr.msk.f32.mxu0 %vm6746_vm4, %v6905_v61  ;;  %v23878_v23 = vld [vmem:[#allocation22_spill] sm:$0xff] }
 0x565   : > { %v6426_v38 = vpop.f32.mrf.mxu0 }
 0x566   : > { %v6720_v58 = vmax.f32 %v6657_v56, 0.0  ;;  %v6588_v52 = vadd.f32 %v6426_v38, %v20721_v41 }
 0x567   : > { %v16548_v36 = vpop.f32.mrf.mxu0  ;;  %v6906_v25 = vld [vmem:[#allocation2 + $0x111] sm:$0xff] }
 0x568   : > { %6784 = vst.msk [vmem:[#allocation2 + $0x128] sm:$0xff] %vm6746_vm4, %v6720_v58  ;;  %v6658_v18 = vadd.f32 %v20892_v34, %v6588_v52  ;;  %16676 = vmatprep.mubr.msk.f32.mxu1 %vm6746_vm4, %v6906_v25  ;;  %16953 = vmatmul.mubr.msk.f32.gmra.mxu0 %vm6746_vm4, %v6906_v25  ;;  %v23879_v25 = vld [vmem:[#allocation11_spill] sm:$0xff] }
 0x569   : > { %v6431_v40 = vpop.f32.mrf.mxu0 }
 0x56a   : > { %v6721_v57 = vmax.f32 %v6658_v18, 0.0  ;;  %v6589_v4 = vadd.f32 %v6431_v40, %v20728_v9 }
 0x56b   : > { %v16551_v39 = vpop.f32.mrf.mxu0  ;;  %v6907_v13 = vld [vmem:[#allocation2 + $0x119] sm:$0xff] }
 0x56c   : > { %6785 = vst.msk [vmem:[#allocation2 + $0x130] sm:$0xff] %vm6746_vm4, %v6721_v57  ;;  %v6659_v41 = vadd.f32 %v20892_v34, %v6589_v4  ;;  %16677 = vmatmul.mubr.msk.f32.gmra.mxu1 %vm6746_vm4, %v6907_v13  ;;  %16955 = vmatprep.mubr.msk.f32.mxu0 %vm6746_vm4, %v6907_v13 }
 0x56d   : > { %v6436_v27 = vpop.f32.mrf.mxu0 }
 0x56e   : > { %v6722_v11 = vmax.f32 %v6659_v41, 0.0  ;;  %v6590_v32 = vadd.f32 %v6436_v27, %v20735_v30  ;;  %v23880_v41 = vld [vmem:[#allocation12_spill] sm:$0xff] }
 0x56f   : > { %v16554_v28 = vpop.f32.mrf.mxu0  ;;  %v6908_v29 = vld [vmem:[#allocation2 + $0x121] sm:$0xff] }
 0x570   : > { %6786 = vst.msk [vmem:[#allocation2 + $0x138] sm:$0xff] %vm6746_vm4, %v6722_v11  ;;  %v6660_v9 = vadd.f32 %v20892_v34, %v6590_v32  ;;  %16679 = vmatprep.mubr.msk.f32.mxu1 %vm6746_vm4, %v6908_v29  ;;  %16956 = vmatmul.mubr.msk.f32.gmra.mxu0 %vm6746_vm4, %v6908_v29 }
 0x571   : > { %v6441_v22 = vpop.f32.mrf.mxu0 }
 0x572   : > { %v6723_v15 = vmax.f32 %v6660_v9, 0.0  ;;  %v6591_v31 = vadd.f32 %v6441_v22, %v23874_v12  ;;  %v23881_v22 = vld [vmem:[#allocation13_spill] sm:$0xff] }
 0x573   : > { %v16557_v46 = vpop.f32.mrf.mxu0  ;;  %v6909_v7 = vld [vmem:[#allocation2 + $0x129] sm:$0xff] }
 0x574   : > { %6787 = vst.msk [vmem:[#allocation2 + $0x140] sm:$0xff] %vm6746_vm4, %v6723_v15  ;;  %v6661_v30 = vadd.f32 %v20892_v34, %v6591_v31  ;;  %16680 = vmatmul.mubr.msk.f32.gmra.mxu1 %vm6746_vm4, %v6909_v7  ;;  %16958 = vmatprep.mubr.msk.f32.mxu0 %vm6746_vm4, %v6909_v7 }
 0x575   : > { %v6446_v53 = vpop.f32.mrf.mxu0 }
 0x576   : > { %v6724_v54 = vmax.f32 %v6661_v30, 0.0  ;;  %v6592_v14 = vadd.f32 %v6446_v53, %v23875_v17  ;;  %v23882_v53 = vld [vmem:[#allocation14_spill] sm:$0xff] }
 0x577   : > { %v16560_v3 = vpop.f32.mrf.mxu0  ;;  %v6910_v47 = vld [vmem:[#allocation2 + $0x131] sm:$0xff] }
 0x578   : > { %6788 = vst.msk [vmem:[#allocation2 + $0x148] sm:$0xff] %vm6746_vm4, %v6724_v54  ;;  %v6662_v10 = vadd.f32 %v20892_v34, %v6592_v14  ;;  %16682 = vmatprep.mubr.msk.f32.mxu1 %vm6746_vm4, %v6910_v47  ;;  %16959 = vmatmul.mubr.msk.f32.gmra.mxu0 %vm6746_vm4, %v6910_v47 }
 0x579   : > { %v6451_v33 = vpop.f32.mrf.mxu0 }
 0x57a   : > { %v6725_v51 = vmax.f32 %v6662_v10, 0.0  ;;  %v6593_v63 = vadd.f32 %v6451_v33, %v23876_v19  ;;  %v23883_v33 = vld [vmem:[#allocation15_spill] sm:$0xff] }
 0x57b   : > { %v16563_v0 = vpop.f32.mrf.mxu0  ;;  %v6911_v49 = vld [vmem:[#allocation2 + $0x139] sm:$0xff] }
 0x57c   : > { %6789 = vst.msk [vmem:[#allocation2 + $0x150] sm:$0xff] %vm6746_vm4, %v6725_v51  ;;  %v6663_v5 = vadd.f32 %v20892_v34, %v6593_v63  ;;  %16683 = vmatmul.mubr.msk.f32.gmra.mxu1 %vm6746_vm4, %v6911_v49  ;;  %16961 = vmatprep.mubr.msk.f32.mxu0 %vm6746_vm4, %v6911_v49 }
 0x57d   : > { %v6456_v16 = vpop.f32.mrf.mxu0 }
 0x57e   : > { %v6726_v26 = vmax.f32 %v6663_v5, 0.0  ;;  %v6594_v2 = vadd.f32 %v6456_v16, %v23877_v21  ;;  %v23884_v16 = vld [vmem:[#allocation16_spill] sm:$0xff] }
 0x57f   : > { %v16566_v42 = vpop.f32.mrf.mxu0  ;;  %v6912_v50 = vld [vmem:[#allocation2 + $0x141] sm:$0xff] }
 0x580   : > { %6790 = vst.msk [vmem:[#allocation2 + $0x158] sm:$0xff] %vm6746_vm4, %v6726_v26  ;;  %v6664_v44 = vadd.f32 %v20892_v34, %v6594_v2  ;;  %16685 = vmatprep.mubr.msk.f32.mxu1 %vm6746_vm4, %v6912_v50  ;;  %16962 = vmatmul.mubr.msk.f32.gmra.mxu0 %vm6746_vm4, %v6912_v50 }
 0x581   : > { %v6461_v24 = vpop.f32.mrf.mxu0 }
 0x582   : > { %v6727_v20 = vmax.f32 %v6664_v44, 0.0  ;;  %v6595_v61 = vadd.f32 %v6461_v24, %v23878_v23 }
 0x583   : > { %v16569_v56 = vpop.f32.mrf.mxu0  ;;  %v6913_v38 = vld [vmem:[#allocation2 + $0x149] sm:$0xff] }
 0x584   : > { %6791 = vst.msk [vmem:[#allocation2 + $0x160] sm:$0xff] %vm6746_vm4, %v6727_v20  ;;  %v6665_v58 = vadd.f32 %v20892_v34, %v6595_v61  ;;  %16686 = vmatmul.mubr.msk.f32.gmra.mxu1 %vm6746_vm4, %v6913_v38  ;;  %16964 = vmatprep.mubr.msk.f32.mxu0 %vm6746_vm4, %v6913_v38  ;;  %v21231_v61 = vld [vmem:[%s23872_s2] ss:$0 sm:$0xff]  ;;  %s17697_s2 = sshll.u32 %s17757_s1, 4  ;;  %s17698_s2 = int_to_ptr.vmem [resolvable:$false] %s17697_s2 }
 0x585   : > { %v6466_v52 = vpop.f32.mrf.mxu0  ;;  %s17699_s29 = scalar_lea.vmem %s17698_s2, 32  ;;  %p17700_p0 = scmp.lt.s32.totalorder %s12730_s16, %s17698_s2 }
 0x586   : > { %v6728_v36 = vmax.f32 %v6665_v58, 0.0  ;;  %v6596_v18 = vadd.f32 %v6466_v52, %v23879_v25  ;;  %p17701_p1 = scmp.lt.s32.totalorder %s17699_s29, %s17693_s0 }
 0x587   : > { %v16572_v40 = vpop.f32.mrf.mxu0  ;;  %v6914_v57 = vld [vmem:[#allocation2 + $0x151] sm:$0xff] }
 0x588   : > { %6792 = vst.msk [vmem:[#allocation2 + $0x168] sm:$0xff] %vm6746_vm4, %v6728_v36  ;;  %v6666_v4 = vadd.f32 %v20892_v34, %v6596_v18  ;;  %16688 = vmatprep.mubr.msk.f32.mxu1 %vm6746_vm4, %v6914_v57  ;;  %16965 = vmatmul.mubr.msk.f32.gmra.mxu0 %vm6746_vm4, %v6914_v57  ;;  %p17702_p2 = por %p17701_p1, %p17700_p0 }
 0x589   : > { %v6471_v39 = vpop.f32.mrf.mxu0 }
 0x58a   : > { %v6729_v13 = vmax.f32 %v6666_v4, 0.0  ;;  %v6597_v27 = vadd.f32 %v6471_v39, %v23880_v41  ;;  %p17703_p3 = pnand %p17702_p2, %p17696_p13 }
 0x58b   : > { %v16575_v11 = vpop.f32.mrf.mxu0  ;;  %v6915_v32 = vld [vmem:[#allocation2 + $0x159] sm:$0xff] }
 0x58c   : > { %6793 = vst.msk [vmem:[#allocation2 + $0x170] sm:$0xff] %vm6746_vm4, %v6729_v13  ;;  %v6667_v28 = vadd.f32 %v20892_v34, %v6597_v27  ;;  %16689 = vmatmul.mubr.msk.f32.gmra.mxu1 %vm6746_vm4, %v6915_v32  ;;  %16967 = vmatprep.mubr.msk.f32.mxu0 %vm6746_vm4, %v6915_v32 }
 0x58d   : > { %v6476_v29 = vpop.f32.mrf.mxu0 }
 0x58e   : > { %v6730_v9 = vmax.f32 %v6667_v28, 0.0  ;;  %v6598_v15 = vadd.f32 %v6476_v29, %v23881_v22 }
 0x58f   : > { %v16578_v12 = vpop.f32.mrf.mxu0  ;;  %v6916_v31 = vld [vmem:[#allocation2 + $0x161] sm:$0xff] }
 0x590   : > { %6794 = vst.msk [vmem:[#allocation2 + $0x178] sm:$0xff] %vm6746_vm4, %v6730_v9  ;;  %v6668_v46 = vadd.f32 %v20892_v34, %v6598_v15  ;;  %16691 = vmatprep.mubr.msk.f32.mxu1 %vm6746_vm4, %v6916_v31  ;;  %16968 = vmatmul.mubr.msk.f32.gmra.mxu0 %vm6746_vm4, %v6916_v31 }
 0x591   : > { %v6481_v7 = vpop.f32.mrf.mxu0 }
 0x592   : > { %v6731_v30 = vmax.f32 %v6668_v46, 0.0  ;;  %v6599_v54 = vadd.f32 %v6481_v7, %v23882_v53 }
 0x593   : > { %v16581_v17 = vpop.f32.mrf.mxu0  ;;  %v6917_v14 = vld [vmem:[#allocation2 + $0x169] sm:$0xff] }
 0x594   : > { %6795 = vst.msk [vmem:[#allocation2 + $0x180] sm:$0xff] %vm6746_vm4, %v6731_v30  ;;  %v6669_v3 = vadd.f32 %v20892_v34, %v6599_v54  ;;  %16692 = vmatmul.mubr.msk.f32.gmra.mxu1 %vm6746_vm4, %v6917_v14  ;;  %16970 = vmatprep.mubr.msk.f32.mxu0 %vm6746_vm4, %v6917_v14 }
 0x595   : > { %v6486_v47 = vpop.f32.mrf.mxu0 }
 0x596   : > { %v6732_v10 = vmax.f32 %v6669_v3, 0.0  ;;  %v6600_v51 = vadd.f32 %v6486_v47, %v23883_v33 }
 0x597   : > { %v16584_v19 = vpop.f32.mrf.mxu0  ;;  %v6918_v63 = vld [vmem:[#allocation2 + $0x171] sm:$0xff] }
 0x598   : > { %6796 = vst.msk [vmem:[#allocation2 + $0x188] sm:$0xff] %vm6746_vm4, %v6732_v10  ;;  %v6670_v0 = vadd.f32 %v20892_v34, %v6600_v51  ;;  %16694 = vmatprep.mubr.msk.f32.mxu1 %vm6746_vm4, %v6918_v63  ;;  %16971 = vmatmul.mubr.msk.f32.gmra.mxu0 %vm6746_vm4, %v6918_v63 }
 0x599   : > { %v6491_v49 = vpop.f32.mrf.mxu0 }
 0x59a   : > { %v6733_v5 = vmax.f32 %v6670_v0, 0.0  ;;  %v6601_v26 = vadd.f32 %v6491_v49, %v23884_v16  ;;  %v23885_v0 = vld [vmem:[#allocation17_spill] sm:$0xff] }
 0x59b   : > { %v16587_v21 = vpop.f32.mrf.mxu0  ;;  %v6919_v2 = vld [vmem:[#allocation2 + $0x179] sm:$0xff] }
 0x59c   : > { %6797 = vst.msk [vmem:[#allocation2 + $0x190] sm:$0xff] %vm6746_vm4, %v6733_v5  ;;  %v6671_v42 = vadd.f32 %v20892_v34, %v6601_v26  ;;  %16695 = vmatmul.mubr.msk.f32.gmra.mxu1 %vm6746_vm4, %v6919_v2  ;;  %16973 = vmatprep.mubr.msk.f32.mxu0 %vm6746_vm4, %v6919_v2 }
 0x59d   : > { %v6496_v50 = vpop.f32.mrf.mxu0 }
 0x59e   : > { %v6734_v44 = vmax.f32 %v6671_v42, 0.0  ;;  %v6602_v24 = vadd.f32 %v6496_v50, %v20828_v45 }
 0x59f   : > { %v16590_v20 = vpop.f32.mrf.mxu0  ;;  %v6920_v23 = vld [vmem:[#allocation2 + $0x181] sm:$0xff] }
 0x5a0   : > { %6798 = vst.msk [vmem:[#allocation2 + $0x198] sm:$0xff] %vm6746_vm4, %v6734_v44  ;;  %v6672_v56 = vadd.f32 %v21231_v61, %v6602_v24  ;;  %16697 = vmatprep.mubr.msk.f32.mxu1 %vm6746_vm4, %v6920_v23  ;;  %16974 = vmatmul.mubr.msk.f32.gmra.mxu0 %vm6746_vm4, %v6920_v23 }
 0x5a1   : > { %v6501_v34 = vpop.f32.mrf.mxu0 }
 0x5a2   : > { %v6735_v38 = vmax.f32 %v6672_v56, 0.0  ;;  %v6603_v58 = vadd.f32 %v6501_v34, %v20835_v6 }
 0x5a3   : > { %v16593_v45 = vpop.f32.mrf.mxu0  ;;  %v6921_v52 = vld [vmem:[#allocation2 + $0x189] sm:$0xff] }
 0x5a4   : > { %6799 = vst.msk [vmem:[#allocation2 + $0x1a0] sm:$0xff] %vm6746_vm4, %v6735_v38  ;;  %v6673_v36 = vadd.f32 %v21231_v61, %v6603_v58  ;;  %16698 = vmatmul.mubr.msk.f32.gmra.mxu1 %vm6746_vm4, %v6921_v52  ;;  %16976 = vmatprep.mubr.msk.f32.mxu0 %vm6746_vm4, %v6921_v52  ;;  %v6810_v45 = vld [vmem:[#allocation2] sm:$0xff] }
 0x5a5   : > { %v6506_v25 = vpop.f32.mrf.mxu0 }
 0x5a6   : > { %v6736_v18 = vmax.f32 %v6673_v36, 0.0  ;;  %v6604_v40 = vadd.f32 %v6506_v25, %v20842_v59  ;;  %v6812_v36 = vld [vmem:[#allocation2 + $0x10] sm:$0xff]  ;;  %v21298_v25 = vld [vmem:[#allocation2 + $0x18] sm:$0xff] }
 0x5a7   : > { %v16596_v57 = vpop.f32.mrf.mxu0  ;;  %v6922_v4 = vld [vmem:[#allocation2 + $0x191] sm:$0xff] }
 0x5a8   : > { %6800 = vst.msk [vmem:[#allocation2 + $0x1a8] sm:$0xff] %vm6746_vm4, %v6736_v18  ;;  %v6674_v6 = vadd.f32 %v21231_v61, %v6604_v40  ;;  %16700 = vmatprep.mubr.msk.f32.mxu1 %vm6746_vm4, %v6922_v4  ;;  %16977 = vmatmul.mubr.msk.f32.gmra.mxu0 %vm6746_vm4, %v6922_v4  ;;  %v21303_v57 = vld [vmem:[#allocation2 + $0x20] sm:$0xff]  ;;  %v21315_v4 = vld [vmem:[#allocation2 + $0x30] sm:$0xff] }
 0x5a9   : > { %v6511_v39 = vpop.f32.mrf.mxu0 }
 0x5aa   : > { %v6737_v13 = vmax.f32 %v6674_v6, 0.0  ;;  %v6605_v41 = vadd.f32 %v6511_v39, %v20849_v37  ;;  %v21319_v6 = vld [vmem:[#allocation2 + $0x38] sm:$0xff]  ;;  %v21323_v39 = vld [vmem:[#allocation2 + $0x40] sm:$0xff] }
 0x5ab   : > { %v16599_v27 = vpop.f32.mrf.mxu0  ;;  %v6923_v11 = vld [vmem:[#allocation2 + $0x199] sm:$0xff] }
 0x5ac   : > { %6801 = vst.msk [vmem:[#allocation2 + $0x1b0] sm:$0xff] %vm6746_vm4, %v6737_v13  ;;  %v6675_v59 = vadd.f32 %v21231_v61, %v6605_v41  ;;  %16701 = vmatmul.mubr.msk.f32.gmra.mxu1 %vm6746_vm4, %v6923_v11  ;;  %16979 = vmatprep.mubr.msk.f32.mxu0 %vm6746_vm4, %v6923_v11  ;;  %v21327_v13 = vpop.f32.mrf.mxu1  ;;  %v21329_v41 = vld [vmem:[#allocation2 + $0x48] sm:$0xff]  ;;  %v21333_v27 = vld [vmem:[#allocation2 + $0x50] sm:$0xff] }
 0x5ad   : > { %v6516_v32 = vpop.f32.mrf.mxu0 }
 0x5ae   : > { %v6738_v28 = vmax.f32 %v6675_v59, 0.0  ;;  %v6606_v29 = vadd.f32 %v6516_v32, %v20856_v62  ;;  %v21337_v11 = vpop.f32.mrf.mxu1  ;;  %v21339_v59 = vld [vmem:[#allocation2 + $0x58] sm:$0xff] }
 0x5af   : > { %v16602_v9 = vpop.f32.mrf.mxu0  ;;  %v6924_v22 = vld [vmem:[#allocation2 + $0x1a1] sm:$0xff] }
 0x5b0   : > { %6802 = vst.msk [vmem:[#allocation2 + $0x1b8] sm:$0xff] %vm6746_vm4, %v6738_v28  ;;  %v6676_v37 = vadd.f32 %v21231_v61, %v6606_v29  ;;  %16703 = vmatprep.mubr.msk.f32.mxu1 %vm6746_vm4, %v6924_v22  ;;  %16980 = vmatmul.mubr.msk.f32.gmra.mxu0 %vm6746_vm4, %v6924_v22  ;;  %v21341_v32 = vpop.f32.mrf.mxu1  ;;  %v21345_v28 = vld [vmem:[#allocation2 + $0x60] sm:$0xff]  ;;  %v21349_v29 = vld [vmem:[#allocation2 + $0x68] sm:$0xff]  ;;  %v21355_v22 = vld [vmem:[#allocation2 + $0x70] sm:$0xff] }
 0x5b1   : > { %v6521_v15 = vpop.f32.mrf.mxu0  ;;  %23886 = vst [vmem:[#allocation18_spill] sm:$0xff] %v21341_v32 }
 0x5b2   : > { %v6739_v12 = vmax.f32 %v6676_v37, 0.0  ;;  %v6607_v31 = vadd.f32 %v6521_v15, %v20863_v60  ;;  %v21351_v9 = vpop.f32.mrf.mxu1  ;;  %v21361_v15 = vld [vmem:[#allocation2 + $0x78] sm:$0xff] }
 0x5b3   : > { %v16605_v46 = vpop.f32.mrf.mxu0  ;;  %v6925_v7 = vld [vmem:[#allocation2 + $0x1a9] sm:$0xff]  ;;  %23887 = vst [vmem:[#allocation19_spill] sm:$0xff] %v21351_v9 }
 0x5b4   : > { %6803 = vst.msk [vmem:[#allocation2 + $0x1c0] sm:$0xff] %vm6746_vm4, %v6739_v12  ;;  %v6677_v62 = vadd.f32 %v21231_v61, %v6607_v31  ;;  %16704 = vmatmul.mubr.msk.f32.gmra.mxu1 %vm6746_vm4, %v6925_v7  ;;  %16982 = vmatprep.mubr.msk.f32.mxu0 %vm6746_vm4, %v6925_v7  ;;  %v21359_v37 = vpop.f32.mrf.mxu1  ;;  %v21365_v12 = vld [vmem:[#allocation2 + $0x80] sm:$0xff]  ;;  %v21371_v46 = vld [vmem:[#allocation2 + $0x88] sm:$0xff] }
 0x5b5   : > { %v6526_v30 = vpop.f32.mrf.mxu0  ;;  %23888 = vst [vmem:[#allocation20_spill] sm:$0xff] %v21359_v37 }
 0x5b6   : > { %v6740_v53 = vmax.f32 %v6677_v62, 0.0  ;;  %v6608_v54 = vadd.f32 %v6526_v30, %v20870_v35  ;;  %v21369_v31 = vpop.f32.mrf.mxu1  ;;  %v21377_v62 = vld [vmem:[#allocation2 + $0x90] sm:$0xff]  ;;  %v21381_v30 = vld [vmem:[#allocation2 + $0x98] sm:$0xff] }
 0x5b7   : > { %v16608_v17 = vpop.f32.mrf.mxu0  ;;  %v6926_v14 = vld [vmem:[#allocation2 + $0x1b1] sm:$0xff]  ;;  %23889 = vst [vmem:[#allocation23_spill] sm:$0xff] %v21369_v31  ;;  %v23917_v31 = vmov 0.0  }
 0x5b8   : > { %6804 = vst.msk [vmem:[#allocation2 + $0x1c8] sm:$0xff] %vm6746_vm4, %v6740_v53  ;;  %v6678_v60 = vadd.f32 %v21231_v61, %v6608_v54  ;;  %16706 = vmatprep.mubr.msk.f32.mxu1 %vm6746_vm4, %v6926_v14  ;;  %16983 = vmatmul.mubr.msk.f32.gmra.mxu0 %vm6746_vm4, %v6926_v14  ;;  %v21387_v54 = vld [vmem:[#allocation2 + $0xa0] sm:$0xff]  ;;  %v21393_v14 = vld [vmem:[#allocation2 + $0xa8] sm:$0xff] }
 0x5b9   : > { %v6531_v3 = vpop.f32.mrf.mxu0 }
 0x5ba   : > { %v6741_v47 = vmax.f32 %v6678_v60, 0.0  ;;  %v6609_v10 = vadd.f32 %v6531_v3, %v20877_v48  ;;  %v21397_v60 = vld [vmem:[#allocation2 + $0xb0] sm:$0xff] }
 0x5bb   : > { %v16611_v33 = vpop.f32.mrf.mxu0  ;;  %v6927_v51 = vld [vmem:[#allocation2 + $0x1b9] sm:$0xff] }
 0x5bc   : > { %6805 = vst.msk [vmem:[#allocation2 + $0x1d0] sm:$0xff] %vm6746_vm4, %v6741_v47  ;;  %v6679_v35 = vadd.f32 %v21231_v61, %v6609_v10  ;;  %16707 = vmatmul.mubr.msk.f32.gmra.mxu1 %vm6746_vm4, %v6927_v51  ;;  %16985 = vmatprep.mubr.msk.f32.mxu0 %vm6746_vm4, %v6927_v51  ;;  %v21373_v7 = vpop.f32.mrf.mxu1  ;;  %v21403_v47 = vld [vmem:[#allocation2 + $0xb8] sm:$0xff]  ;;  %v21409_v33 = vld [vmem:[#allocation2 + $0xc0] sm:$0xff]  ;;  %v21413_v51 = vld [vmem:[#allocation2 + $0xc8] sm:$0xff] }
 0x5bd   : > { %v6536_v19 = vpop.f32.mrf.mxu0  ;;  %23890 = vst [vmem:[#allocation10_spill] sm:$0xff] %v21373_v7 }
 0x5be   : > { %v6742_v63 = vmax.f32 %v6679_v35, 0.0  ;;  %v6610_v49 = vadd.f32 %v6536_v19, %v23885_v0  ;;  %v21383_v53 = vpop.f32.mrf.mxu1  ;;  %v21419_v19 = vld [vmem:[#allocation2 + $0xd0] sm:$0xff]  ;;  %v21425_v0 = vld [vmem:[#allocation2 + $0xd8] sm:$0xff] }
 0x5bf   : > { %v16614_v5 = vpop.f32.mrf.mxu0  ;;  %v6928_v16 = vld [vmem:[#allocation2 + $0x1c1] sm:$0xff]  ;;  %23891 = vst [vmem:[#allocation21_spill] sm:$0xff] %v21383_v53 }
 0x5c0   : > { %6806 = vst.msk [vmem:[#allocation2 + $0x1d8] sm:$0xff] %vm6746_vm4, %v6742_v63  ;;  %v6680_v48 = vadd.f32 %v21231_v61, %v6610_v49  ;;  %16709 = vmatprep.mubr.msk.f32.mxu1 %vm6746_vm4, %v6928_v16  ;;  %16986 = vmatmul.mubr.msk.f32.gmra.mxu0 %vm6746_vm4, %v6928_v16  ;;  %v21429_v49 = vld [vmem:[#allocation2 + $0xe0] sm:$0xff]  ;;  %v21435_v16 = vld [vmem:[#allocation2 + $0xe8] sm:$0xff] }
 0x5c1   : > { %v6541_v26 = vpop.f32.mrf.mxu0  ;;  %v21589_v7 = vld [vmem:[#allocation2 + $0x1c8] sm:$0xff] }
 0x5c2   : > { %v6743_v21 = vmax.f32 %v6680_v48, 0.0  ;;  %v6611_v2 = vadd.f32 %v6541_v26, %v20895_v43  ;;  %v21441_v26 = vld [vmem:[#allocation2 + $0xf0] sm:$0xff] }
 0x5c3   : > { %v16617_v42 = vpop.f32.mrf.mxu0  ;;  %v6929_v50 = vld [vmem:[#allocation2 + $0x1c9] sm:$0xff] }
 0x5c4   : > { %6807 = vst.msk [vmem:[#allocation2 + $0x1e0] sm:$0xff] %vm6746_vm4, %v6743_v21  ;;  %v6681_v44 = vadd.f32 %v21231_v61, %v6611_v2  ;;  %16710 = vmatmul.mubr.msk.f32.gmra.mxu1 %vm6746_vm4, %v6929_v50  ;;  %16988 = vmatprep.mubr.msk.f32.mxu0 %vm6746_vm4, %v6929_v50  ;;  %v21391_v17 = vpop.f32.mrf.mxu1  ;;  %v21445_v21 = vld [vmem:[#allocation2 + $0xf8] sm:$0xff]  ;;  %v21451_v42 = vld [vmem:[#allocation2 + $0x100] sm:$0xff] }
 0x5c5   : > { %v6546_v24 = vpop.f32.mrf.mxu0  ;;  %23892 = vst [vmem:[#allocation22_spill] sm:$0xff] %v21391_v17 }
 0x5c6   : > { %v6744_v20 = vmax.f32 %v6681_v44, 0.0  ;;  %v6612_v23 = vadd.f32 %v6546_v24, %v20903_v8  ;;  %v6811_v8 = vld [vmem:[#allocation2 + $0x8] sm:$0xff]  ;;  %v21401_v3 = vpop.f32.mrf.mxu1  ;;  %v21461_v24 = vld [vmem:[#allocation2 + $0x110] sm:$0xff] }
 0x5c7   : > { %v16620_v56 = vpop.f32.mrf.mxu0  ;;  %v6930_v34 = vld [vmem:[#allocation2 + $0x1d1] sm:$0xff]  ;;  %23893 = vst [vmem:[#allocation11_spill] sm:$0xff] %v21401_v3  ;;  %v21457_v44 = vld [vmem:[#allocation2 + $0x108] sm:$0xff] }
 0x5c8   : > { %6808 = vst.msk [vmem:[#allocation2 + $0x1e8] sm:$0xff] %vm6746_vm4, %v6744_v20  ;;  %v6682_v43 = vadd.f32 %v21231_v61, %v6612_v23  ;;  %16712 = vmatprep.mubr.msk.f32.mxu1 %vm6746_vm4, %v6930_v34  ;;  %16989 = vmatmul.mubr.msk.f32.gmra.mxu0 %vm6746_vm4, %v6930_v34  ;;  %v13498_v61 = vld [vmem:[%s23847_s3 + $0x20] sm:$0xff]  ;;  %v21467_v23 = vld [vmem:[#allocation2 + $0x118] sm:$0xff] }
 0x5c9   : > { %v21473_v34 = vld [vmem:[#allocation2 + $0x120] sm:$0xff]  ;;  %v21573_v3 = vld [vmem:[#allocation2 + $0x1b8] sm:$0xff] }
 0x5ca   : > { %v6745_v38 = vmax.f32 %v6682_v43, 0.0  ;;  %v21477_v43 = vld [vmem:[#allocation2 + $0x128] sm:$0xff]  ;;  %v21600_v9 = vld [vmem:[#allocation2 + $0x1d8] sm:$0xff] }
 0x5cb   : > { %v6931_v58 = vld [vmem:[#allocation2 + $0x1d9] sm:$0xff] }
 0x5cc   : > { %6809 = vst.msk [vmem:[#allocation2 + $0x1f0] sm:$0xff] %vm6746_vm4, %v6745_v38  ;;  %16713 = vmatmul.mubr.msk.f32.gmra.mxu1 %vm6746_vm4, %v6931_v58  ;;  %16991 = vmatprep.mubr.msk.f32.mxu0 %vm6746_vm4, %v6931_v58  ;;  %v21405_v10 = vpop.f32.mrf.mxu1  ;;  %v21483_v58 = vld [vmem:[#allocation2 + $0x130] sm:$0xff] }
 0x5cd   : > { %16719 = vmatprep.mubr.msk.f32.mxu1 %vm6746_vm4, %v6810_v45  ;;  %23894 = vst [vmem:[#allocation12_spill] sm:$0xff] %v21405_v10 }
 0x5ce   : > { %v21415_v35 = vpop.f32.mrf.mxu1 }
 0x5cf   : > { %v8760_v52 = vld [vmem:[#allocation2 + $0x1e1] sm:$0xff]  ;;  %23895 = vst [vmem:[#allocation13_spill] sm:$0xff] %v21415_v35 }
 0x5d0   : > { %16720 = vmatmul.mubr.msk.f32.vlgmr.msra.gmra.mxu1 %vm6746_vm4, %v6811_v8  ;;  %16992 = vmatmul.mubr.msk.f32.gmra.mxu0 %vm6746_vm4, %v8760_v52  ;;  %v21489_v8 = vld [vmem:[#allocation2 + $0x138] sm:$0xff]  ;;  %v21493_v52 = vld [vmem:[#allocation2 + $0x140] sm:$0xff]  ;;  %v21563_v35 = vld [vmem:[#allocation2 + $0x1a8] sm:$0xff] }
 0x5d1   : > { %16810 = vmatpush3.msk.msra.mxu1 %vm7115_vm3, %v21123_v55  ;;  %16722 = vmatprep.mubr.msk.f32.mxu1 %vm6746_vm4, %v6812_v36  ;;  %v21311_v55 = vld [vmem:[#allocation2 + $0x28] sm:$0xff] }
 0x5d2   : > { %16811 = vmatprep.subr.mxu1 %v13498_v61  ;;  %v21499_v36 = vld [vmem:[#allocation2 + $0x148] sm:$0xff] }
 0x5d3   : > { %v8761_v18 = vld [vmem:[#allocation2 + $0x1e9] sm:$0xff]  ;;  %v8762_v40 = vld [vmem:[#allocation2 + $0x1f1] sm:$0xff]  ;;  %16812 = vmatpush3.msra.mxu1 %v13498_v61 }
 0x5d4   : > { %16723 = vmatmul.mubr.msk.f32.gmra.mxu1 %vm6746_vm4, %v21298_v25  ;;  %16994 = vmatprep.mubr.msk.f32.mxu0 %vm6746_vm4, %v8761_v18  ;;  %v21423_v63 = vpop.f32.mrf.mxu1 }
 0x5d5   : > { %16725 = vmatprep.mubr.msk.f32.mxu1 %vm6746_vm4, %v21303_v57  ;;  %16995 = vmatmul.mubr.msk.f32.gmra.mxu0 %vm6746_vm4, %v8762_v40  ;;  %23896 = vst [vmem:[#allocation14_spill] sm:$0xff] %v21423_v63  ;;  %v21505_v40 = vld [vmem:[#allocation2 + $0x150] sm:$0xff]  ;;  %v21557_v63 = vld [vmem:[#allocation2 + $0x1a0] sm:$0xff] }
 0x5d6   : > { %16997 = vmatprep.subr.mxu1 %v23780_v1  ;;  %17090 = vmatprep.mubr.msk.f32.mxu0 %vm17756_vm1, %v23780_v1  ;;  %v21433_v5 = vpop.f32.mrf.mxu1  ;;  %v21509_v1 = vld [vmem:[#allocation2 + $0x158] sm:$0xff] }
 0x5d7   : > { %23897 = vst [vmem:[#allocation15_spill] sm:$0xff] %v21433_v5  ;;  %v21553_v5 = vld [vmem:[#allocation2 + $0x198] sm:$0xff] }
 0x5d8   : > { %16726 = vmatmul.mubr.msk.f32.gmra.mxu1 %vm6746_vm4, %v21311_v55 }
 0x5d9   : > { %16728 = vmatprep.mubr.msk.f32.mxu1 %vm6746_vm4, %v21315_v4 }
 0x5dc   : > { %16729 = vmatmul.mubr.msk.f32.gmra.mxu1 %vm6746_vm4, %v21319_v6  ;;  %v21437_v48 = vpop.f32.mrf.mxu1 }
 0x5dd   : > { %16731 = vmatprep.mubr.msk.f32.mxu1 %vm6746_vm4, %v21323_v39  ;;  %23898 = vst [vmem:[#allocation16_spill] sm:$0xff] %v21437_v48 }
 0x5de   : > { %v21447_v2 = vpop.f32.mrf.mxu1 }
 0x5df   : > { %23899 = vst [vmem:[#allocation17_spill] sm:$0xff] %v21447_v2  ;;  %v21541_v2 = vld [vmem:[#allocation2 + $0x188] sm:$0xff] }
 0x5e0   : > { %16732 = vmatmul.mubr.msk.f32.gmra.mxu1 %vm6746_vm4, %v21329_v41 }
 0x5e1   : > { %16734 = vmatprep.mubr.msk.f32.mxu1 %vm6746_vm4, %v21333_v27 }
 0x5e4   : > { %16735 = vmatmul.mubr.msk.f32.gmra.mxu1 %vm6746_vm4, %v21339_v59  ;;  %v21455_v50 = vpop.f32.mrf.mxu1 }
 0x5e5   : > { %16737 = vmatprep.mubr.msk.f32.mxu1 %vm6746_vm4, %v21345_v28  ;;  %23900 = vst [vmem:[#allocation24_spill] sm:$0xff] %v21455_v50 }
 0x5e6   : > { %v21465_v20 = vpop.f32.mrf.mxu1 }
 0x5e7   : > { %23901 = vst [vmem:[#allocation25_spill] sm:$0xff] %v21465_v20  ;;  %v21531_v20 = vld [vmem:[#allocation2 + $0x178] sm:$0xff] }
 0x5e8   : > { %16738 = vmatmul.mubr.msk.f32.gmra.mxu1 %vm6746_vm4, %v21349_v29 }
 0x5e9   : > { %16740 = vmatprep.mubr.msk.f32.mxu1 %vm6746_vm4, %v21355_v22 }
 0x5ec   : > { %16741 = vmatmul.mubr.msk.f32.gmra.mxu1 %vm6746_vm4, %v21361_v15  ;;  %v21469_v56 = vpop.f32.mrf.mxu1 }
 0x5ed   : > { %16743 = vmatprep.mubr.msk.f32.mxu1 %vm6746_vm4, %v21365_v12  ;;  %23902 = vst [vmem:[#allocation26_spill] sm:$0xff] %v21469_v56  ;;  %v21525_v56 = vld [vmem:[#allocation2 + $0x170] sm:$0xff] }
 0x5ee   : > { %v21479_v38 = vpop.f32.mrf.mxu1 }
 0x5ef   : > { %23903 = vst [vmem:[#allocation27_spill] sm:$0xff] %v21479_v38  ;;  %v21521_v38 = vld [vmem:[#allocation2 + $0x168] sm:$0xff] }
 0x5f0   : > { %16744 = vmatmul.mubr.msk.f32.gmra.mxu1 %vm6746_vm4, %v21371_v46 }
 0x5f1   : > { %16746 = vmatprep.mubr.msk.f32.mxu1 %vm6746_vm4, %v21377_v62 }
 0x5f4   : > { %16747 = vmatmul.mubr.msk.f32.gmra.mxu1 %vm6746_vm4, %v21381_v30  ;;  %v21487_v45 = vpop.f32.mrf.mxu1 }
 0x5f5   : > { %16749 = vmatprep.mubr.msk.f32.mxu1 %vm6746_vm4, %v21387_v54  ;;  %23904 = vst [vmem:[#allocation28_spill] sm:$0xff] %v21487_v45 }
 0x5f6   : > { %v21497_v61 = vpop.f32.mrf.mxu1 }
 0x5f7   : > { %23905 = vst [vmem:[#allocation29_spill] sm:$0xff] %v21497_v61  ;;  %v21515_v61 = vld [vmem:[#allocation2 + $0x160] sm:$0xff] }
 0x5f8   : > { %16750 = vmatmul.mubr.msk.f32.gmra.mxu1 %vm6746_vm4, %v21393_v14 }
 0x5f9   : > { %16752 = vmatprep.mubr.msk.f32.mxu1 %vm6746_vm4, %v21397_v60 }
 0x5fc   : > { %16753 = vmatmul.mubr.msk.f32.gmra.mxu1 %vm6746_vm4, %v21403_v47  ;;  %v21501_v18 = vpop.f32.mrf.mxu1 }
 0x5fd   : > { %16755 = vmatprep.mubr.msk.f32.mxu1 %vm6746_vm4, %v21409_v33  ;;  %23906 = vst [vmem:[#allocation30_spill] sm:$0xff] %v21501_v18 }
 0x5fe   : > { %v21511_v45 = vpop.f32.mrf.mxu1 }
 0x5ff   : > { %23907 = vst [vmem:[#allocation31_spill] sm:$0xff] %v21511_v45 }
 0x600   : > { %16756 = vmatmul.mubr.msk.f32.gmra.mxu1 %vm6746_vm4, %v21413_v51 }
 0x601   : > { %16758 = vmatprep.mubr.msk.f32.mxu1 %vm6746_vm4, %v21419_v19 }
 0x604   : > { %16759 = vmatmul.mubr.msk.f32.gmra.mxu1 %vm6746_vm4, %v21425_v0  ;;  %v21519_v18 = vpop.f32.mrf.mxu1 }
 0x605   : > { %16761 = vmatprep.mubr.msk.f32.mxu1 %vm6746_vm4, %v21429_v49  ;;  %23908 = vst [vmem:[#allocation32_spill] sm:$0xff] %v21519_v18  ;;  %v21537_v18 = vld [vmem:[#allocation2 + $0x180] sm:$0xff] }
 0x606   : > { %v21529_v45 = vpop.f32.mrf.mxu1 }
 0x607   : > { %23909 = vst [vmem:[#allocation33_spill] sm:$0xff] %v21529_v45  ;;  %v21547_v45 = vld [vmem:[#allocation2 + $0x190] sm:$0xff] }
 0x608   : > { %16762 = vmatmul.mubr.msk.f32.gmra.mxu1 %vm6746_vm4, %v21435_v16 }
 0x609   : > { %16764 = vmatprep.mubr.msk.f32.mxu1 %vm6746_vm4, %v21441_v26 }
 0x60c   : > { %16765 = vmatmul.mubr.msk.f32.gmra.mxu1 %vm6746_vm4, %v21445_v21  ;;  %v21533_v50 = vpop.f32.mrf.mxu1 }
 0x60d   : > { %16767 = vmatprep.mubr.msk.f32.mxu1 %vm6746_vm4, %v21451_v42  ;;  %23910 = vst [vmem:[#allocation34_spill] sm:$0xff] %v21533_v50 }
 0x60e   : > { %v21543_v48 = vpop.f32.mrf.mxu1 }
 0x60f   : > { %23911 = vst [vmem:[#allocation35_spill] sm:$0xff] %v21543_v48 }
 0x610   : > { %16768 = vmatmul.mubr.msk.f32.gmra.mxu1 %vm6746_vm4, %v21457_v44 }
 0x611   : > { %16770 = vmatprep.mubr.msk.f32.mxu1 %vm6746_vm4, %v21461_v24 }
 0x614   : > { %16771 = vmatmul.mubr.msk.f32.gmra.mxu1 %vm6746_vm4, %v21467_v23  ;;  %v21551_v50 = vpop.f32.mrf.mxu1 }
 0x615   : > { %16773 = vmatprep.mubr.msk.f32.mxu1 %vm6746_vm4, %v21473_v34  ;;  %23912 = vst [vmem:[#allocation36_spill] sm:$0xff] %v21551_v50  ;;  %v21569_v50 = vld [vmem:[#allocation2 + $0x1b0] sm:$0xff] }
 0x616   : > { %v21561_v48 = vpop.f32.mrf.mxu1 }
 0x617   : > { %23913 = vst [vmem:[#allocation37_spill] sm:$0xff] %v21561_v48  ;;  %v21579_v48 = vld [vmem:[#allocation2 + $0x1c0] sm:$0xff] }
 0x618   : > { %16774 = vmatmul.mubr.msk.f32.gmra.mxu1 %vm6746_vm4, %v21477_v43 }
 0x619   : > { %16776 = vmatprep.mubr.msk.f32.mxu1 %vm6746_vm4, %v21483_v58 }
 0x61c   : > { %16777 = vmatmul.mubr.msk.f32.gmra.mxu1 %vm6746_vm4, %v21489_v8  ;;  %v21565_v10 = vpop.f32.mrf.mxu1 }
 0x61d   : > { %16779 = vmatprep.mubr.msk.f32.mxu1 %vm6746_vm4, %v21493_v52  ;;  %23914 = vst [vmem:[#allocation38_spill] sm:$0xff] %v21565_v10  ;;  %v9832_v10 = vld [vmem:[%s23771_s5 + $0x10] sm:$0xf] }
 0x61e   : > { %v21575_v17 = vpop.f32.mrf.mxu1  ;;  %17085 = vmatpush3.msk.msra.mxu0 %vm9945_vm5, %v9832_v10  ;;  %v13627_v10 = vld [vmem:[%s23771_s5 + $0x28] sm:$0xf] }
 0x61f   : > { %23915 = vst [vmem:[#allocation39_spill] sm:$0xff] %v21575_v17  ;;  %17086 = vmatprep.subr.mxu0 %v23917_v31  ;;  %v21594_v17 = vld [vmem:[#allocation2 + $0x1d0] sm:$0xff] }
 0x620   : > { %16780 = vmatmul.mubr.msk.f32.gmra.mxu1 %vm6746_vm4, %v21499_v36 }
 0x621   : > { %16782 = vmatprep.mubr.msk.f32.mxu1 %vm6746_vm4, %v21505_v40 }
 0x624   : > { %16783 = vmatmul.mubr.msk.f32.gmra.mxu1 %vm6746_vm4, %v21509_v1  ;;  %v21586_v53 = vpop.f32.mrf.mxu1 }
 0x625   : > { %16785 = vmatprep.mubr.msk.f32.mxu1 %vm6746_vm4, %v21515_v61  ;;  %23916 = vst [vmem:[#allocation40_spill] sm:$0xff] %v21586_v53 }
 0x626   : > { %v21598_v37 = vpop.f32.mrf.mxu1 }
 0x627   : > { %23918 = vst [vmem:[#allocation41_spill] sm:$0xff] %v21598_v37 }
 0x628   : > { %16786 = vmatmul.mubr.msk.f32.gmra.mxu1 %vm6746_vm4, %v21521_v38 }
 0x629   : > { %16788 = vmatprep.mubr.msk.f32.mxu1 %vm6746_vm4, %v21525_v56 }
 0x62c   : > { %16789 = vmatmul.mubr.msk.f32.gmra.mxu1 %vm6746_vm4, %v21531_v20  ;;  %v21602_v32 = vpop.f32.mrf.mxu1 }
 0x62d   : > { %16791 = vmatprep.mubr.msk.f32.mxu1 %vm6746_vm4, %v21537_v18  ;;  %23919 = vst [vmem:[#allocation42_spill] sm:$0xff] %v21602_v32 }
 0x62e   : > { %v21611_v53 = vpop.f32.mrf.mxu1 }
 0x62f   : > { %23920 = vst [vmem:[#allocation43_spill] sm:$0xff] %v21611_v53 }
 0x630   : > { %16792 = vmatmul.mubr.msk.f32.gmra.mxu1 %vm6746_vm4, %v21541_v2 }
 0x631   : > { %16794 = vmatprep.mubr.msk.f32.mxu1 %vm6746_vm4, %v21547_v45 }
 0x634   : > { %16795 = vmatmul.mubr.msk.f32.gmra.mxu1 %vm6746_vm4, %v21553_v5  ;;  %v21618_v32 = vpop.f32.mrf.mxu1 }
 0x635   : > { %16797 = vmatprep.mubr.msk.f32.mxu1 %vm6746_vm4, %v21557_v63  ;;  %23921 = vst [vmem:[#allocation44_spill] sm:$0xff] %v21618_v32 }
 0x638   : > { %16798 = vmatmul.mubr.msk.f32.gmra.mxu1 %vm6746_vm4, %v21563_v35 }
 0x639   : > { %16800 = vmatprep.mubr.msk.f32.mxu1 %vm6746_vm4, %v21569_v50 }
 0x63c   : > { %16801 = vmatmul.mubr.msk.f32.gmra.mxu1 %vm6746_vm4, %v21573_v3 }
 0x63d   : > { %16803 = vmatprep.mubr.msk.f32.mxu1 %vm6746_vm4, %v21579_v48 }
 0x640   : > { %16804 = vmatmul.mubr.msk.f32.gmra.mxu1 %vm6746_vm4, %v21589_v7 }
 0x641   : > { %16806 = vmatprep.mubr.msk.f32.mxu1 %vm6746_vm4, %v21594_v17 }
 0x644   : > { %16807 = vmatmul.mubr.msk.f32.gmra.mxu1 %vm6746_vm4, %v21600_v9 }
 0x645   : > { %16813 = vmatprep.mubr.msk.f32.mxu1 %vm6746_vm4, %v21298_v25  ;;  %v21625_v25 = vpop.f32.mrf.mxu1 }
 0x646   : > { %23922 = vst [vmem:[#allocation45_spill] sm:$0xff] %v21625_v25 }
 0x647   : > { %v21627_v53 = vpop.f32.mrf.mxu1 }
 0x648   : > { %16814 = vmatmul.mubr.msk.f32.vlgmr.msra.gmra.mxu1 %vm6746_vm4, %v21303_v57  ;;  %23923 = vst [vmem:[#allocation46_spill] sm:$0xff] %v21627_v53 }
 0x649   : > { %16816 = vmatprep.mubr.msk.f32.mxu1 %vm6746_vm4, %v21311_v55  ;;  %16998 = vmatpush3.msk.msra.mxu1 %vm9945_vm5, %v13627_v10  ;;  %v21633_v57 = vpop.f32.mrf.mxu1 }
 0x64a   : > { %16999 = vmatprep.subr.mxu1 %v23917_v31  ;;  %23924 = vst [vmem:[#allocation47_spill] sm:$0xff] %v21633_v57 }
 0x64b   : > { %v21639_v55 = vpop.f32.mrf.mxu1 }
 0x64c   : > { %16817 = vmatmul.mubr.msk.f32.gmra.mxu1 %vm6746_vm4, %v21315_v4  ;;  %23925 = vst [vmem:[#allocation48_spill] sm:$0xff] %v21639_v55 }
 0x64d   : > { %16819 = vmatprep.mubr.msk.f32.mxu1 %vm6746_vm4, %v21319_v6  ;;  %v21645_v4 = vpop.f32.mrf.mxu1 }
 0x64e   : > { %23926 = vst [vmem:[#allocation49_spill] sm:$0xff] %v21645_v4 }
 0x64f   : > { %v21647_v6 = vpop.f32.mrf.mxu1 }
 0x650   : > { %16820 = vmatmul.mubr.msk.f32.gmra.mxu1 %vm6746_vm4, %v21323_v39  ;;  %23927 = vst [vmem:[#allocation50_spill] sm:$0xff] %v21647_v6 }
 0x651   : > { %16822 = vmatprep.mubr.msk.f32.mxu1 %vm6746_vm4, %v21329_v41  ;;  %v21653_v39 = vpop.f32.mrf.mxu1 }
 0x652   : > { %23928 = vst [vmem:[#allocation51_spill] sm:$0xff] %v21653_v39 }
 0x654   : > { %16823 = vmatmul.mubr.msk.f32.gmra.mxu1 %vm6746_vm4, %v21333_v27  ;;  %v21659_v41 = vpop.f32.mrf.mxu1  ;;  %v13626_v27 = vld [vmem:[%s23771_s5 + $0x20] sm:$0xff] }
 0x655   : > { %16825 = vmatprep.mubr.msk.f32.mxu1 %vm6746_vm4, %v21339_v59  ;;  %23929 = vst [vmem:[#allocation52_spill] sm:$0xff] %v21659_v41  ;;  %17000 = vmatpush3.msra.mxu1 %v13626_v27  ;;  %v9831_v59 = vld [vmem:[%s23771_s5 + $0x8] sm:$0xff] }
 0x656   : > { %17087 = vmatpush3.msra.mxu0 %v9831_v59  ;;  %17001 = vmatprep.subr.mxu1 %v23917_v31 }
 0x657   : > { %17088 = vmatprep.subr.mxu0 %v23917_v31 }
 0x658   : > { %16826 = vmatmul.mubr.msk.f32.gmra.mxu1 %vm6746_vm4, %v21345_v28  ;;  %v21671_v28 = vpop.f32.mrf.mxu1 }
 0x659   : > { %16828 = vmatprep.mubr.msk.f32.mxu1 %vm6746_vm4, %v21349_v29  ;;  %23930 = vst [vmem:[#allocation53_spill] sm:$0xff] %v21671_v28 }
 0x65c   : > { %16829 = vmatmul.mubr.msk.f32.gmra.mxu1 %vm6746_vm4, %v21355_v22  ;;  %v21675_v29 = vpop.f32.mrf.mxu1 }
 0x65d   : > { %16831 = vmatprep.mubr.msk.f32.mxu1 %vm6746_vm4, %v21361_v15  ;;  %23931 = vst [vmem:[#allocation54_spill] sm:$0xff] %v21675_v29 }
 0x65e   : > { %v21681_v22 = vpop.f32.mrf.mxu1 }
 0x65f   : > { %23932 = vst [vmem:[#allocation55_spill] sm:$0xff] %v21681_v22 }
 0x660   : > { %16832 = vmatmul.mubr.msk.f32.gmra.mxu1 %vm6746_vm4, %v21365_v12 }
 0x661   : > { %16834 = vmatprep.mubr.msk.f32.mxu1 %vm6746_vm4, %v21371_v46 }
 0x664   : > { %16835 = vmatmul.mubr.msk.f32.gmra.mxu1 %vm6746_vm4, %v21377_v62  ;;  %v21687_v15 = vpop.f32.mrf.mxu1 }
 0x665   : > { %16837 = vmatprep.mubr.msk.f32.mxu1 %vm6746_vm4, %v21381_v30  ;;  %23933 = vst [vmem:[#allocation56_spill] sm:$0xff] %v21687_v15 }
 0x666   : > { %v21693_v12 = vpop.f32.mrf.mxu1 }
 0x667   : > { %23934 = vst [vmem:[#allocation57_spill] sm:$0xff] %v21693_v12 }
 0x668   : > { %16838 = vmatmul.mubr.msk.f32.gmra.mxu1 %vm6746_vm4, %v21387_v54 }
 0x669   : > { %16840 = vmatprep.mubr.msk.f32.mxu1 %vm6746_vm4, %v21393_v14 }
 0x66c   : > { %16841 = vmatmul.mubr.msk.f32.gmra.mxu1 %vm6746_vm4, %v21397_v60  ;;  %v21695_v46 = vpop.f32.mrf.mxu1 }
 0x66d   : > { %16843 = vmatprep.mubr.msk.f32.mxu1 %vm6746_vm4, %v21403_v47  ;;  %23935 = vst [vmem:[#allocation58_spill] sm:$0xff] %v21695_v46 }
 0x66e   : > { %v21701_v62 = vpop.f32.mrf.mxu1 }
 0x66f   : > { %23936 = vst [vmem:[#allocation59_spill] sm:$0xff] %v21701_v62 }
 0x670   : > { %16844 = vmatmul.mubr.msk.f32.gmra.mxu1 %vm6746_vm4, %v21409_v33 }
 0x671   : > { %16846 = vmatprep.mubr.msk.f32.mxu1 %vm6746_vm4, %v21413_v51 }
 0x674   : > { %16847 = vmatmul.mubr.msk.f32.gmra.mxu1 %vm6746_vm4, %v21419_v19  ;;  %v21707_v30 = vpop.f32.mrf.mxu1 }
 0x675   : > { %16849 = vmatprep.mubr.msk.f32.mxu1 %vm6746_vm4, %v21425_v0  ;;  %23937 = vst [vmem:[#allocation60_spill] sm:$0xff] %v21707_v30 }
 0x676   : > { %v21713_v54 = vpop.f32.mrf.mxu1 }
 0x677   : > { %23938 = vst [vmem:[#allocation61_spill] sm:$0xff] %v21713_v54 }
 0x678   : > { %16850 = vmatmul.mubr.msk.f32.gmra.mxu1 %vm6746_vm4, %v21429_v49 }
 0x679   : > { %16852 = vmatprep.mubr.msk.f32.mxu1 %vm6746_vm4, %v21435_v16 }
 0x67c   : > { %16853 = vmatmul.mubr.msk.f32.gmra.mxu1 %vm6746_vm4, %v21441_v26  ;;  %v21715_v14 = vpop.f32.mrf.mxu1 }
 0x67d   : > { %16855 = vmatprep.mubr.msk.f32.mxu1 %vm6746_vm4, %v21445_v21  ;;  %23939 = vst [vmem:[#allocation62_spill] sm:$0xff] %v21715_v14 }
 0x67e   : > { %v21721_v60 = vpop.f32.mrf.mxu1 }
 0x67f   : > { %23940 = vst [vmem:[#allocation63_spill] sm:$0xff] %v21721_v60 }
 0x680   : > { %16856 = vmatmul.mubr.msk.f32.gmra.mxu1 %vm6746_vm4, %v21451_v42 }
 0x681   : > { %16858 = vmatprep.mubr.msk.f32.mxu1 %vm6746_vm4, %v21457_v44  ;;  %v13625_v44 = vld [vmem:[%s23771_s5 + $0x18] sm:$0xff] }
 0x682   : > { %17002 = vmatpush3.msra.mxu1 %v13625_v44 }
 0x683   : > { %17171 = vmatprep.subr.mxu1 %v23917_v31 }
 0x684   : > { %16859 = vmatmul.mubr.msk.f32.gmra.mxu1 %vm6746_vm4, %v21461_v24  ;;  %v21727_v47 = vpop.f32.mrf.mxu1 }
 0x685   : > { %16861 = vmatprep.mubr.msk.f32.mxu1 %vm6746_vm4, %v21467_v23  ;;  %23941 = vst [vmem:[#allocation64_spill] sm:$0xff] %v21727_v47 }
 0x686   : > { %v21733_v33 = vpop.f32.mrf.mxu1 }
 0x687   : > { %23942 = vst [vmem:[#allocation65_spill] sm:$0xff] %v21733_v33 }
 0x688   : > { %16862 = vmatmul.mubr.msk.f32.gmra.mxu1 %vm6746_vm4, %v21473_v34 }
 0x689   : > { %16864 = vmatprep.mubr.msk.f32.mxu1 %vm6746_vm4, %v21477_v43 }
 0x68c   : > { %v21735_v51 = vpop.f32.mrf.mxu1  ;;  %16865 = vmatmul.mubr.msk.f32.gmra.mxu1 %vm6746_vm4, %v21483_v58 }
 0x68d   : > { %23943 = vst [vmem:[#allocation66_spill] sm:$0xff] %v21735_v51  ;;  %16867 = vmatprep.mubr.msk.f32.mxu1 %vm6746_vm4, %v21489_v8 }
 0x68e   : > { %v21741_v19 = vpop.f32.mrf.mxu1 }
 0x68f   : > { %23944 = vst [vmem:[#allocation67_spill] sm:$0xff] %v21741_v19 }
 0x690   : > { %v21743_v0 = vpop.f32.mrf.mxu1  ;;  %16868 = vmatmul.mubr.msk.f32.gmra.mxu1 %vm6746_vm4, %v21493_v52  ;;  %v8091_v52 = vld [vmem:[#allocation2 + $0x1f0] sm:$0xff] }
 0x691   : > { %16870 = vmatprep.mubr.msk.f32.mxu1 %vm6746_vm4, %v21499_v36  ;;  %v21846_v36 = vpop.f32.mrf.mxu0 }
 0x692   : > { %v21749_v49 = vpop.f32.mrf.mxu1 }
 0x693   : > { %v21852_v10 = vpop.f32.mrf.mxu0 }
 0x694   : > { %v21751_v16 = vpop.f32.mrf.mxu1  ;;  %16871 = vmatmul.mubr.msk.f32.gmra.mxu1 %vm6746_vm4, %v21505_v40 }
 0x695   : > { %16873 = vmatprep.mubr.msk.f32.mxu1 %vm6746_vm4, %v21509_v1  ;;  %v9830_v1 = vld [vmem:[%s23771_s5] sm:$0xff]  ;;  %v21858_v44 = vpop.f32.mrf.mxu0 }
 0x696   : > { %v21757_v26 = vpop.f32.mrf.mxu1  ;;  %17089 = vmatpush3.msra.mxu0 %v9830_v1 }
 0x697   : > { %17258 = vmatprep.subr.mxu0 %v23917_v31 }
 0x698   : > { %v21759_v21 = vpop.f32.mrf.mxu1  ;;  %16874 = vmatmul.mubr.msk.f32.gmra.mxu1 %vm6746_vm4, %v21515_v61 }
 0x699   : > { %16876 = vmatprep.mubr.msk.f32.mxu1 %vm6746_vm4, %v21521_v38 }
 0x69a   : > { %v21765_v42 = vpop.f32.mrf.mxu1 }
 0x69c   : > { %v21770_v24 = vpop.f32.mrf.mxu1  ;;  %16877 = vmatmul.mubr.msk.f32.gmra.mxu1 %vm6746_vm4, %v21525_v56 }
 0x69d   : > { %16879 = vmatprep.mubr.msk.f32.mxu1 %vm6746_vm4, %v21531_v20 }
 0x69e   : > { %v21779_v23 = vpop.f32.mrf.mxu1 }
 0x6a0   : > { %v21783_v34 = vpop.f32.mrf.mxu1  ;;  %16880 = vmatmul.mubr.msk.f32.gmra.mxu1 %vm6746_vm4, %v21537_v18 }
 0x6a1   : > { %16882 = vmatprep.mubr.msk.f32.mxu1 %vm6746_vm4, %v21541_v2 }
 0x6a2   : > { %v21789_v56 = vpop.f32.mrf.mxu1 }
 0x6a4   : > { %v21791_v43 = vpop.f32.mrf.mxu1  ;;  %16883 = vmatmul.mubr.msk.f32.gmra.mxu1 %vm6746_vm4, %v21547_v45 }
 0x6a5   : > { %16885 = vmatprep.mubr.msk.f32.mxu1 %vm6746_vm4, %v21553_v5 }
 0x6a6   : > { %v21797_v20 = vpop.f32.mrf.mxu1 }
 0x6a8   : > { %v21799_v38 = vpop.f32.mrf.mxu1  ;;  %16886 = vmatmul.mubr.msk.f32.gmra.mxu1 %vm6746_vm4, %v21557_v63 }
 0x6a9   : > { %16888 = vmatprep.mubr.msk.f32.mxu1 %vm6746_vm4, %v21563_v35 }
 0x6aa   : > { %v21805_v2 = vpop.f32.mrf.mxu1 }
 0x6ac   : > { %v21807_v58 = vpop.f32.mrf.mxu1  ;;  %16889 = vmatmul.mubr.msk.f32.gmra.mxu1 %vm6746_vm4, %v21569_v50  ;;  %v8089_v50 = vld [vmem:[#allocation2 + $0x1e0] sm:$0xff] }
 0x6ad   : > { %16891 = vmatprep.mubr.msk.f32.mxu1 %vm6746_vm4, %v21573_v3 }
 0x6ae   : > { %v21813_v5 = vpop.f32.mrf.mxu1 }
 0x6b0   : > { %v21815_v45 = vpop.f32.mrf.mxu1  ;;  %16892 = vmatmul.mubr.msk.f32.gmra.mxu1 %vm6746_vm4, %v21579_v48  ;;  %v8090_v48 = vld [vmem:[#allocation2 + $0x1e8] sm:$0xff] }
 0x6b1   : > { %16894 = vmatprep.mubr.msk.f32.mxu1 %vm6746_vm4, %v21589_v7 }
 0x6b2   : > { %v21821_v35 = vpop.f32.mrf.mxu1 }
 0x6b4   : > { %v21823_v63 = vpop.f32.mrf.mxu1  ;;  %16895 = vmatmul.mubr.msk.f32.gmra.mxu1 %vm6746_vm4, %v21594_v17 }
 0x6b5   : > { %16897 = vmatprep.mubr.msk.f32.mxu1 %vm6746_vm4, %v21600_v9 }
 0x6b6   : > { %v21829_v3 = vpop.f32.mrf.mxu1 }
 0x6b8   : > { %v21831_v8 = vpop.f32.mrf.mxu1  ;;  %16898 = vmatmul.mubr.msk.f32.gmra.mxu1 %vm6746_vm4, %v8089_v50 }
 0x6b9   : > { %16900 = vmatprep.mubr.msk.f32.mxu1 %vm6746_vm4, %v8090_v48  ;;  %v21864_v48 = vpop.f32.mrf.mxu0 }
 0x6ba   : > { %v21835_v7 = vpop.f32.mrf.mxu1 }
 0x6bb   : > { %v21870_v51 = vpop.f32.mrf.mxu0 }
 0x6bc   : > { %v21837_v61 = vpop.f32.mrf.mxu1  ;;  %16901 = vmatmul.mubr.msk.f32.gmra.mxu1 %vm6746_vm4, %v8091_v52 }
 0x6bd   : > { %17003 = vmatprep.mubr.msk.f32.mxu1 %vm17756_vm1, %v23917_v31  ;;  %v21876_v60 = vpop.f32.mrf.mxu0 }
 0x6be   : > { %v21842_v9 = vpop.f32.mrf.mxu1 }
 0x6bf   : > { %v21882_v30 = vpop.f32.mrf.mxu0 }
 0x6c0   : > { %v21844_v17 = vpop.f32.mrf.mxu1 }
 0x6c1   : > { %v21888_v12 = vpop.f32.mrf.mxu0 }
 0x6c2   : > { %v21848_v18 = vpop.f32.mrf.mxu1 }
 0x6c3   : > { %v21894_v29 = vpop.f32.mrf.mxu0 }
 0x6c4   : > { %v21850_v40 = vpop.f32.mrf.mxu1 }
 0x6c5   : > { %23945 = vst [vmem:[#allocation68_spill] sm:$0xff] %v21850_v40  ;;  %v21900_v39 = vpop.f32.mrf.mxu0 }
 0x6c6   : > { %v21854_v27 = vpop.f32.mrf.mxu1 }
 0x6c7   : > { %23946 = vst [vmem:[#allocation69_spill] sm:$0xff] %v21854_v27  ;;  %v21906_v55 = vpop.f32.mrf.mxu0 }
 0x6c8   : > { %v21856_v59 = vpop.f32.mrf.mxu1 }
 0x6c9   : > { %23947 = vst [vmem:[#allocation70_spill] sm:$0xff] %v21856_v59 }
 0x6ca   : > { %v21860_v1 = vpop.f32.mrf.mxu1 }
 0x6cb   : > { %23948 = vst [vmem:[#allocation71_spill] sm:$0xff] %v21860_v1  ;;  %v23980_v1 = vld [vmem:[#allocation19_spill] sm:$0xff] }
 0x6cc   : > { %v21862_v50 = vpop.f32.mrf.mxu1  ;;  %v7744_v59 = vadd.f32 %v21757_v26, %v23980_v1 }
 0x6cd   : > { %23949 = vst [vmem:[#allocation72_spill] sm:$0xff] %v21862_v50 }
 0x6ce   : > { %v21866_v52 = vpop.f32.mrf.mxu1 }
 0x6cf   : > { %23950 = vst [vmem:[#allocation73_spill] sm:$0xff] %v21866_v52 }
 0x6d0   : > { %v21868_v19 = vpop.f32.mrf.mxu1 }
 0x6d1   : > { %23951 = vst [vmem:[#allocation74_spill] sm:$0xff] %v21868_v19  ;;  %v23979_v19 = vld [vmem:[#allocation18_spill] sm:$0xff] }
 0x6d2   : > { %v21872_v33 = vpop.f32.mrf.mxu1 }
 0x6d3   : > { %23952 = vst [vmem:[#allocation75_spill] sm:$0xff] %v21872_v33 }
 0x6d4   : > { %v21874_v47 = vpop.f32.mrf.mxu1 }
 0x6d5   : > { %23953 = vst [vmem:[#allocation76_spill] sm:$0xff] %v21874_v47 }
 0x6d6   : > { %v21878_v14 = vpop.f32.mrf.mxu1 }
 0x6d7   : > { %23954 = vst [vmem:[#allocation77_spill] sm:$0xff] %v21878_v14 }
 0x6d8   : > { %v21880_v54 = vpop.f32.mrf.mxu1 }
 0x6d9   : > { %23955 = vst [vmem:[#allocation78_spill] sm:$0xff] %v21880_v54 }
 0x6da   : > { %v21884_v62 = vpop.f32.mrf.mxu1 }
 0x6db   : > { %23956 = vst [vmem:[#allocation79_spill] sm:$0xff] %v21884_v62 }
 0x6dc   : > { %v21886_v46 = vpop.f32.mrf.mxu1 }
 0x6dd   : > { %23957 = vst [vmem:[#allocation80_spill] sm:$0xff] %v21886_v46 }
 0x6de   : > { %v21890_v15 = vpop.f32.mrf.mxu1 }
 0x6df   : > { %23958 = vst [vmem:[#allocation81_spill] sm:$0xff] %v21890_v15  ;;  %v21912_v15 = vpop.f32.mrf.mxu0 }
 0x6e0   : > { %v21892_v22 = vpop.f32.mrf.mxu1 }
 0x6e1   : > { %23959 = vst [vmem:[#allocation82_spill] sm:$0xff] %v21892_v22 }
 0x6e2   : > { %v21896_v28 = vpop.f32.mrf.mxu1 }
 0x6e3   : > { %23960 = vst [vmem:[#allocation83_spill] sm:$0xff] %v21896_v28  ;;  %v21918_v28 = vpop.f32.mrf.mxu0 }
 0x6e4   : > { %v21898_v41 = vpop.f32.mrf.mxu1 }
 0x6e5   : > { %23961 = vst [vmem:[#allocation84_spill] sm:$0xff] %v21898_v41 }
 0x6e6   : > { %v21902_v6 = vpop.f32.mrf.mxu1 }
 0x6e7   : > { %23962 = vst [vmem:[#allocation85_spill] sm:$0xff] %v21902_v6  ;;  %v21924_v6 = vpop.f32.mrf.mxu0 }
 0x6e8   : > { %v21904_v4 = vpop.f32.mrf.mxu1 }
 0x6e9   : > { %23963 = vst [vmem:[#allocation86_spill] sm:$0xff] %v21904_v4  ;;  %v21928_v25 = vpop.f32.mrf.mxu0 }
 0x6ea   : > { %v21908_v57 = vpop.f32.mrf.mxu1 }
 0x6eb   : > { %23964 = vst [vmem:[#allocation87_spill] sm:$0xff] %v21908_v57  ;;  %v21934_v54 = vpop.f32.mrf.mxu0 }
 0x6ec   : > { %v21910_v46 = vpop.f32.mrf.mxu1 }
 0x6ed   : > { %23965 = vst [vmem:[#allocation88_spill] sm:$0xff] %v21910_v46 }
 0x6ee   : > { %v21914_v22 = vpop.f32.mrf.mxu1 }
 0x6ef   : > { %23966 = vst [vmem:[#allocation89_spill] sm:$0xff] %v21914_v22 }
 0x6f0   : > { %v21916_v53 = vpop.f32.mrf.mxu1 }
 0x6f1   : > { %23967 = vst [vmem:[#allocation90_spill] sm:$0xff] %v21916_v53  ;;  %v21938_v53 = vpop.f32.mrf.mxu0 }
 0x6f2   : > { %v21920_v41 = vpop.f32.mrf.mxu1 }
 0x6f3   : > { %23968 = vst [vmem:[#allocation91_spill] sm:$0xff] %v21920_v41 }
 0x6f4   : > { %v21922_v62 = vpop.f32.mrf.mxu1 }
 0x6f5   : > { %23969 = vst [vmem:[#allocation92_spill] sm:$0xff] %v21922_v62  ;;  %v21944_v62 = vpop.f32.mrf.mxu0 }
 0x6f6   : > { %v21926_v4 = vpop.f32.mrf.mxu1 }
 0x6f7   : > { %23970 = vst [vmem:[#allocation93_spill] sm:$0xff] %v21926_v4  ;;  %v21948_v4 = vpop.f32.mrf.mxu0 }
 0x6f8   : > { %v21930_v57 = vpop.f32.mrf.mxu1 }
 0x6f9   : > { %23971 = vst [vmem:[#allocation94_spill] sm:$0xff] %v21930_v57 }
 0x6fa   : > { %v21932_v46 = vpop.f32.mrf.mxu1 }
 0x6fb   : > { %23972 = vst [vmem:[#allocation95_spill] sm:$0xff] %v21932_v46  ;;  %v21954_v46 = vpop.f32.mrf.mxu0 }
 0x6fc   : > { %v21936_v22 = vpop.f32.mrf.mxu1 }
 0x6fd   : > { %23973 = vst [vmem:[#allocation96_spill] sm:$0xff] %v21936_v22  ;;  %v7739_v22 = vadd.f32 %v21743_v0, %v21327_v13  ;;  %v21958_v37 = vpop.f32.mrf.mxu0 }
 0x6fe   : > { %v21940_v32 = vpop.f32.mrf.mxu1 }
 0x6ff   : > { %23974 = vst [vmem:[#allocation97_spill] sm:$0xff] %v21940_v32  ;;  %v21970_v0 = vpop.f32.mrf.mxu0 }
 0x700   : > { %v21942_v41 = vpop.f32.mrf.mxu1 }
 0x701   : > { %23975 = vst [vmem:[#allocation98_spill] sm:$0xff] %v21942_v41  ;;  %v7734_v41 = vadd.f32 %v21749_v49, %v21337_v11  ;;  %v23981_v49 = vld [vmem:[#allocation20_spill] sm:$0xff] }
 0x702   : > { %v21946_v14 = vpop.f32.mrf.mxu1  ;;  %v7759_v27 = vadd.f32 %v21759_v21, %v23981_v49 }
 0x703   : > { %23976 = vst [vmem:[#allocation99_spill] sm:$0xff] %v21946_v14  ;;  %v21965_v14 = vld [vmem:[%s23770_s4] ss:$0 sm:$0xff] }
 0x704   : > { %v21950_v47 = vpop.f32.mrf.mxu1 }
 0x705   : > { %23977 = vst [vmem:[#allocation100_spill] sm:$0xff] %v21950_v47 }
 0x706   : > { %v21952_v57 = vpop.f32.mrf.mxu1 }
 0x707   : > { %23978 = vst [vmem:[#allocation101_spill] sm:$0xff] %v21952_v57  ;;  %v7749_v57 = vadd.f32 %v21751_v16, %v23979_v19  ;;  %v21978_v19 = vpop.f32.mrf.mxu0 }
 0x708   : > { %v16815_v33 = vpop.f32.mrf.mxu1 }
 0x709   : > { %v8644_v32 = vadd.f32 %v16815_v33, %v7739_v22 }
 0x70a   : > { %v8344_v47 = vpop.f32.mrf.mxu1 }
 0x70b   : > { %v9315_v52 = vadd.f32 %v21846_v36, %v8644_v32  ;;  %v8643_v50 = vadd.f32 %v8344_v47, %v7734_v41  ;;  %v23982_v36 = vld [vmem:[#allocation23_spill] sm:$0xff] }
 0x70c   : > { %v16818_v13 = vpop.f32.mrf.mxu1  ;;  %v7754_v26 = vadd.f32 %v21765_v42, %v23982_v36 }
 0x70d   : > { %v9382_v11 = vadd.f32 %v21965_v14, %v9315_v52  ;;  %v9314_v22 = vadd.f32 %v21852_v10, %v8643_v50  ;;  %v8646_v33 = vadd.f32 %v16818_v13, %v7749_v57  ;;  %v23983_v52 = vld [vmem:[#allocation10_spill] sm:$0xff] }
 0x70e   : > { %v8354_v40 = vpop.f32.mrf.mxu1  ;;  %v7769_v13 = vadd.f32 %v21770_v24, %v23983_v52 }
 0x70f   : > { %v9442_v32 = vmax.f32 %v9382_v11, 0.0  ;;  %v9381_v41 = vadd.f32 %v21965_v14, %v9314_v22  ;;  %v9317_v47 = vadd.f32 %v21858_v44, %v8646_v33  ;;  %v8645_v16 = vadd.f32 %v8354_v40, %v7744_v59  ;;  %v21989_v22 = vpop.f32.mrf.mxu0  ;;  %v23984_v33 = vld [vmem:[#allocation21_spill] sm:$0xff] }
 0x710   : > { %v16821_v1 = vpop.f32.mrf.mxu1  ;;  %v7764_v49 = vadd.f32 %v21779_v23, %v23984_v33 }
 0x711   : > { %9503 = vst.msk [vmem:[#allocation3 + $0x8] sm:$0xff] %vm9501_vm6, %v9442_v32  ;;  %v9441_v57 = vmax.f32 %v9381_v41, 0.0  ;;  %v9384_v10 = vadd.f32 %v21965_v14, %v9317_v47  ;;  %v9316_v21 = vadd.f32 %v21864_v48, %v8645_v16  ;;  %v8648_v50 = vadd.f32 %v16821_v1, %v7759_v27  ;;  %v21996_v48 = vpop.f32.mrf.mxu0  ;;  %v23985_v16 = vld [vmem:[#allocation22_spill] sm:$0xff] }
 0x712   : > { %v8364_v11 = vpop.f32.mrf.mxu1  ;;  %v7779_v36 = vadd.f32 %v21783_v34, %v23985_v16 }
 0x713   : > { %9502 = vst.msk [vmem:[#allocation3] sm:$0xff] %vm9501_vm6, %v9441_v57  ;;  %v9444_v40 = vmax.f32 %v9384_v10, 0.0  ;;  %v9383_v42 = vadd.f32 %v21965_v14, %v9316_v21  ;;  %v9319_v59 = vadd.f32 %v21870_v51, %v8648_v50  ;;  %v8647_v44 = vadd.f32 %v8364_v11, %v7754_v26  ;;  %v22006_v21 = vpop.f32.mrf.mxu0 }
 0x714   : > { %v16824_v32 = vpop.f32.mrf.mxu1 }
 0x715   : > { %9505 = vst.msk [vmem:[#allocation3 + $0x18] sm:$0xff] %vm9501_vm6, %v9444_v40  ;;  %v9443_v24 = vmax.f32 %v9383_v42, 0.0  ;;  %v9386_v27 = vadd.f32 %v21965_v14, %v9319_v59  ;;  %v9318_v41 = vadd.f32 %v21876_v60, %v8647_v44  ;;  %v8650_v47 = vadd.f32 %v16824_v32, %v7769_v13  ;;  %v23986_v13 = vld [vmem:[#allocation11_spill] sm:$0xff]  ;;  %v22013_v42 = vpop.f32.mrf.mxu0  ;;  %v23987_v59 = vld [vmem:[#allocation12_spill] sm:$0xff] }
 0x716   : > { %v8374_v1 = vpop.f32.mrf.mxu1  ;;  %v7774_v11 = vadd.f32 %v21789_v56, %v23986_v13 }
 0x717   : > { %9504 = vst.msk [vmem:[#allocation3 + $0x10] sm:$0xff] %vm9501_vm6, %v9443_v24  ;;  %v9446_v51 = vmax.f32 %v9386_v27, 0.0  ;;  %v9385_v23 = vadd.f32 %v21965_v14, %v9318_v41  ;;  %v9321_v26 = vadd.f32 %v21882_v30, %v8650_v47  ;;  %v8649_v57 = vadd.f32 %v8374_v1, %v7764_v49  ;;  %v23988_v41 = vld [vmem:[#allocation13_spill] sm:$0xff] }
 0x718   : > { %v16827_v10 = vpop.f32.mrf.mxu1  ;;  %v7789_v30 = vadd.f32 %v21791_v43, %v23987_v59  ;;  %v7784_v47 = vadd.f32 %v21797_v20, %v23988_v41  ;;  %v23990_v20 = vld [vmem:[#allocation15_spill] sm:$0xff] }
 0x719   : > { %9507 = vst.msk [vmem:[#allocation3 + $0x28] sm:$0xff] %vm9501_vm6, %v9446_v51  ;;  %v9445_v50 = vmax.f32 %v9385_v23, 0.0  ;;  %v9388_v60 = vadd.f32 %v21965_v14, %v9321_v26  ;;  %v9320_v52 = vadd.f32 %v21888_v12, %v8649_v57  ;;  %v8652_v34 = vadd.f32 %v16827_v10, %v7779_v36  ;;  %v22025_v51 = vpop.f32.mrf.mxu0 }
 0x71a   : > { %v8384_v40 = vpop.f32.mrf.mxu1  ;;  %v9562_v16 = vld [vmem:[#allocation3] sm:$0xff] }
 0x71b   : > { %9506 = vst.msk [vmem:[#allocation3 + $0x20] sm:$0xff] %vm9501_vm6, %v9445_v50  ;;  %v9448_v44 = vmax.f32 %v9388_v60, 0.0  ;;  %v9387_v33 = vadd.f32 %v21965_v14, %v9320_v52  ;;  %v9323_v49 = vadd.f32 %v21894_v29, %v8652_v34  ;;  %v8651_v32 = vadd.f32 %v8384_v40, %v7774_v11  ;;  %v9565_v43 = vld [vmem:[#allocation3 + $0x1] sm:$0xff]  ;;  %v23989_v29 = vld [vmem:[#allocation14_spill] sm:$0xff] }
 0x71c   : > { %v16830_v24 = vpop.f32.mrf.mxu1  ;;  %v7799_v23 = vadd.f32 %v21799_v38, %v23989_v29  ;;  %v7794_v52 = vadd.f32 %v21805_v2, %v23990_v20  ;;  %v23991_v34 = vld [vmem:[#allocation16_spill] sm:$0xff] }
 0x71d   : > { %9509 = vst.msk [vmem:[#allocation3 + $0x38] sm:$0xff] %vm9501_vm6, %v9448_v44  ;;  %v9447_v12 = vmax.f32 %v9387_v33, 0.0  ;;  %v9390_v56 = vadd.f32 %v21965_v14, %v9323_v49  ;;  %v8654_v27 = vadd.f32 %v16830_v24, %v7789_v30  ;;  %v9322_v36 = vadd.f32 %v21900_v39, %v8651_v32  ;;  %v22036_v30 = vpop.f32.mrf.mxu0  ;;  %v9563_v44 = vld [vmem:[#allocation3 + $0x8] sm:$0xff]  ;;  %v9571_v49 = vld [vmem:[#allocation3 + $0x18] sm:$0xff] }
 0x71e   : > { %v8394_v1 = vpop.f32.mrf.mxu1  ;;  %v9564_v26 = vld [vmem:[#allocation3 + $0x10] sm:$0xf]  ;;  %v7809_v39 = vadd.f32 %v21807_v58, %v23991_v34  ;;  %v9568_v33 = vmax.f32 %v9562_v16, %v9565_v43  ;;  %v23992_v43 = vld [vmem:[#allocation17_spill] sm:$0xff] }
 0x71f   : > { %v9566_v57 = vld [vmem:[#allocation3 + $0x9] sm:$0xff]  ;;  %v9567_v10 = vld [vmem:[#allocation3 + $0x11] sm:$0xf]  ;;  %9508 = vst.msk [vmem:[#allocation3 + $0x30] sm:$0xff] %vm9501_vm6, %v9447_v12  ;;  %v9450_v50 = vmax.f32 %v9390_v56, 0.0  ;;  %v9325_v60 = vadd.f32 %v21906_v55, %v8654_v27  ;;  %v9389_v40 = vadd.f32 %v21965_v14, %v9322_v36  ;;  %v8653_v59 = vadd.f32 %v8394_v1, %v7784_v47 }
 0x720   : > { %v9573_v13 = vld [vmem:[#allocation3 + $0x28] sm:$0xf]  ;;  %v16833_v38 = vpop.f32.mrf.mxu1  ;;  %v9569_v24 = vmax.f32 %v9563_v44, %v9566_v57  ;;  %v9570_v12 = vmax.f32 %v9564_v26, %v9567_v10 }
 0x721   : > { %v9576_v11 = vld [vmem:[#allocation3 + $0x29] sm:$0xf]  ;;  %9511 = vst.msk [vmem:[#allocation3 + $0x48] sm:$0xff] %vm9501_vm6, %v9450_v50  ;;  %v9392_v55 = vadd.f32 %v21965_v14, %v9325_v60  ;;  %v8656_v2 = vadd.f32 %v16833_v38, %v7799_v23  ;;  %v9449_v41 = vmax.f32 %v9389_v40, 0.0  ;;  %v9324_v47 = vadd.f32 %v21912_v15, %v8653_v59  ;;  %v22046_v60 = vpop.f32.mrf.mxu0 }
 0x722   : > { %v9579_v32 = vmax.f32 %v9573_v13, %v9576_v11  ;;  %v9572_v58 = vld [vmem:[#allocation3 + $0x20] sm:$0xff]  ;;  %v8404_v36 = vpop.f32.mrf.mxu1  ;;  %v7804_v50 = vadd.f32 %v21813_v5, %v23992_v43  ;;  %v23996_v43 = vld [vmem:[#allocation27_spill] sm:$0xff] }
 0x723   : > { %v9574_v56 = vld [vmem:[#allocation3 + $0x19] sm:$0xff]  ;;  %v9575_v27 = vld [vmem:[#allocation3 + $0x21] sm:$0xff]  ;;  %v9452_v20 = vmax.f32 %v9392_v55, 0.0  ;;  %v9327_v16 = vadd.f32 %v21918_v28, %v8656_v2  ;;  %9510 = vst.msk [vmem:[#allocation3 + $0x40] sm:$0xff] %vm9501_vm6, %v9449_v41  ;;  %v9391_v23 = vadd.f32 %v21965_v14, %v9324_v47  ;;  %v8655_v26 = vadd.f32 %v8404_v36, %v7794_v52  ;;  %v22052_v59 = vpop.f32.mrf.mxu0 }
 0x724   : > { %v9577_v1 = vmax.f32 %v9571_v49, %v9574_v56  ;;  %v9578_v29 = vmax.f32 %v9572_v58, %v9575_v27  ;;  %v16836_v57 = vpop.f32.mrf.mxu1  ;;  %v9582_v10 = vmax.f32 %v9570_v12, %v9579_v32  ;;  %v23993_v52 = vld [vmem:[#allocation24_spill] sm:$0xff]  ;;  %v23994_v32 = vld [vmem:[#allocation25_spill] sm:$0xff] }
 0x725   : > { %9513 = vst.msk [vmem:[#allocation3 + $0x58] sm:$0xff] %vm9501_vm6, %v9452_v20  ;;  %v9394_v13 = vadd.f32 %v21965_v14, %v9327_v16  ;;  %v8658_v11 = vadd.f32 %v16836_v57, %v7809_v39  ;;  %v9451_v28 = vmax.f32 %v9391_v23, 0.0  ;;  %v9326_v40 = vadd.f32 %v21924_v6, %v8655_v26  ;;  %v22070_v27 = vpop.f32.mrf.mxu0  ;;  %v23997_v23 = vld [vmem:[#allocation28_spill] sm:$0xff] }
 0x726   : > { %v9580_v34 = vmax.f32 %v9568_v33, %v9577_v1  ;;  %v9581_v15 = vmax.f32 %v9569_v24, %v9578_v29  ;;  %v8414_v5 = vpop.f32.mrf.mxu1  ;;  %9586 = vst.msk [vmem:[#allocation4 + $0x10] sm:$0xf] %vm9585_vm7, %v9582_v10  ;;  %v7819_v38 = vadd.f32 %v21815_v45, %v23993_v52  ;;  %v7814_v55 = vadd.f32 %v21821_v35, %v23994_v32  ;;  %v22066_v12 = vld [vmem:[#allocation3 + $0x30] sm:$0xff] }
 0x727   : > { %v9454_v44 = vmax.f32 %v9394_v13, 0.0  ;;  %v9329_v33 = vadd.f32 %v21928_v25, %v8658_v11  ;;  %v8657_v49 = vadd.f32 %v8414_v5, %v7804_v50  ;;  %9512 = vst.msk [vmem:[#allocation3 + $0x50] sm:$0xff] %vm9501_vm6, %v9451_v28  ;;  %v9393_v6 = vadd.f32 %v21965_v14, %v9326_v40  ;;  %v22068_v58 = vld [vmem:[#allocation3 + $0x31] sm:$0xff]  ;;  %v22083_v13 = vpop.f32.mrf.mxu0  ;;  %v23998_v5 = vld [vmem:[#allocation29_spill] sm:$0xff] }
 0x728   : > { %9583 = vst.msk [vmem:[#allocation4] sm:$0xff] %vm9501_vm6, %v9580_v34  ;;  %9584 = vst.msk [vmem:[#allocation4 + $0x8] sm:$0xff] %vm9501_vm6, %v9581_v15  ;;  %v16839_v39 = vpop.f32.mrf.mxu1  ;;  %v7824_v50 = vadd.f32 %v21829_v3, %v23996_v43  ;;  %v7839_v26 = vadd.f32 %v21831_v8, %v23997_v23  ;;  %v9588_v11 = vld [vmem:[#allocation3 + $0x38] sm:$0xff]  ;;  %v13686_v8 = vld [vmem:[%s23771_s5 + $0x40] sm:$0xf]  ;;  %v7834_v52 = vadd.f32 %v21835_v7, %v23998_v5 }
 0x729   : > { %9515 = vst.msk [vmem:[#allocation3 + $0x68] sm:$0xff] %vm9501_vm6, %v9454_v44  ;;  %v9396_v45 = vadd.f32 %v21965_v14, %v9329_v33  ;;  %v9328_v2 = vadd.f32 %v21934_v54, %v8657_v49  ;;  %v8660_v24 = vadd.f32 %v16839_v39, %v7819_v38  ;;  %v9453_v25 = vmax.f32 %v9393_v6, 0.0  ;;  %v23995_v54 = vld [vmem:[#allocation26_spill] sm:$0xff]  ;;  %v13717_v40 = vld [vmem:[%s23771_s5 + $0x58] sm:$0xf] }
 0x72a   : > { %v8424_v56 = vpop.f32.mrf.mxu1  ;;  %v9589_v41 = vld [vmem:[#allocation3 + $0x40] sm:$0xf]  ;;  %v7829_v16 = vadd.f32 %v21823_v63, %v23995_v54  ;;  %v9593_v38 = vmax.f32 %v22066_v12, %v22068_v58  ;;  %v9596_v44 = vld [vmem:[#allocation3 + $0x48] sm:$0xff] }
 0x72b   : > { %v22072_v47 = vld [vmem:[#allocation3 + $0x39] sm:$0xff]  ;;  %v9592_v36 = vld [vmem:[#allocation3 + $0x41] sm:$0xf]  ;;  %v9456_v35 = vmax.f32 %v9396_v45, 0.0  ;;  %v9395_v1 = vadd.f32 %v21965_v14, %v9328_v2  ;;  %v9331_v29 = vadd.f32 %v21938_v53, %v8660_v24  ;;  %v8659_v20 = vadd.f32 %v8424_v56, %v7814_v55  ;;  %9514 = vst.msk [vmem:[#allocation3 + $0x60] sm:$0xff] %vm9501_vm6, %v9453_v25 }
 0x72c   : > { %v9595_v57 = vmax.f32 %v9589_v41, %v9592_v36  ;;  %v9598_v10 = vld [vmem:[#allocation3 + $0x58] sm:$0xf]  ;;  %v16842_v15 = vpop.f32.mrf.mxu1  ;;  %v9594_v33 = vmax.f32 %v9588_v11, %v22072_v47  ;;  %v22108_v47 = vpop.f32.mrf.mxu0  ;;  %v23999_v36 = vld [vmem:[#allocation30_spill] sm:$0xff] }
 0x72d   : > { %v9601_v34 = vld [vmem:[#allocation3 + $0x59] sm:$0xf]  ;;  %9517 = vst.msk [vmem:[#allocation3 + $0x78] sm:$0xff] %vm9501_vm6, %v9456_v35  ;;  %v9455_v28 = vmax.f32 %v9395_v1, 0.0  ;;  %v9398_v63 = vadd.f32 %v21965_v14, %v9331_v29  ;;  %v9330_v3 = vadd.f32 %v21944_v62, %v8659_v20  ;;  %v8662_v49 = vadd.f32 %v16842_v15, %v7829_v16 }
 0x72e   : > { %v9604_v53 = vmax.f32 %v9598_v10, %v9601_v34  ;;  %v8434_v6 = vpop.f32.mrf.mxu1  ;;  %v9597_v32 = vld [vmem:[#allocation3 + $0x50] sm:$0xff]  ;;  %v7849_v35 = vadd.f32 %v21837_v61, %v23999_v36 }
 0x72f   : > { %v9833_v62 = vld [vmem:[#allocation4 + $0x2] sm:$0xff]  ;;  %v9600_v45 = vld [vmem:[#allocation3 + $0x51] sm:$0xff]  ;;  %9516 = vst.msk [vmem:[#allocation3 + $0x70] sm:$0xff] %vm9501_vm6, %v9455_v28  ;;  %v9458_v2 = vmax.f32 %v9398_v63, 0.0  ;;  %v9397_v24 = vadd.f32 %v21965_v14, %v9330_v3  ;;  %v8661_v25 = vadd.f32 %v8434_v6, %v7824_v50  ;;  %v9333_v56 = vadd.f32 %v21948_v4, %v8662_v49 }
 0x730   : > { %v9803_v39 = vld [vmem:[#allocation4] sm:$0xff]  ;;  %v9599_v55 = vld [vmem:[#allocation3 + $0x49] sm:$0xff]  ;;  %17004 = vmatmul.mubr.msk.f32.vlgmr.msra.gmra.mxu1 %vm9501_vm6, %v9833_v62  ;;  %v9607_v7 = vmax.f32 %v9595_v57, %v9604_v53  ;;  %v9603_v58 = vmax.f32 %v9597_v32, %v9600_v45  ;;  %v16845_v41 = vpop.f32.mrf.mxu1  ;;  %v13685_v4 = vld [vmem:[%s23771_s5 + $0x38] sm:$0xff] }
 0x731   : > { %17091 = vmatmul.mubr.msk.f32.vlgmr.msra.gmra.mxu0 %vm9501_vm6, %v9803_v39  ;;  %v9602_v12 = vmax.f32 %v9596_v44, %v9599_v55  ;;  %17006 = vmatprep.mubr.msk.f32.mxu1 %vm17756_vm1, %v23917_v31  ;;  %9519 = vst.msk [vmem:[#allocation3 + $0x88] sm:$0xff] %vm9501_vm6, %v9458_v2  ;;  %v9457_v1 = vmax.f32 %v9397_v24, 0.0  ;;  %v9332_v29 = vadd.f32 %v21954_v46, %v8661_v25  ;;  %v9834_v61 = vld [vmem:[#allocation4 + $0xa] sm:$0xff]  ;;  %v24002_v55 = vld [vmem:[#allocation33_spill] sm:$0xff] }
 0x732   : > { %17093 = vmatprep.mubr.msk.f32.mxu0 %vm17756_vm1, %v23917_v31  ;;  %v8664_v20 = vadd.f32 %v16845_v41, %v7839_v26  ;;  %17172 = vmatpush3.msk.msra.mxu1 %vm9945_vm5, %v13686_v8  ;;  %9610 = vst.msk [vmem:[#allocation4 + $0x28] sm:$0xf] %vm9585_vm7, %v9607_v7  ;;  %v9400_v54 = vadd.f32 %v21965_v14, %v9333_v56  ;;  %v8444_v16 = vpop.f32.mrf.mxu1  ;;  %v9804_v43 = vld [vmem:[#allocation4 + $0x8] sm:$0xff]  ;;  %v13716_v46 = vld [vmem:[%s23771_s5 + $0x50] sm:$0xff]  ;;  %v22126_v26 = vpop.f32.mrf.mxu0  ;;  %v24004_v56 = vld [vmem:[#allocation68_spill] sm:$0xff] }
 0x733   : > { %17259 = vmatpush3.msk.msra.mxu0 %vm9945_vm5, %v13717_v40  ;;  %v9605_v50 = vmax.f32 %v9593_v38, %v9602_v12  ;;  %v9606_v23 = vmax.f32 %v9594_v33, %v9603_v58  ;;  %17173 = vmatprep.subr.mxu1 %v23917_v31  ;;  %9518 = vst.msk [vmem:[#allocation3 + $0x80] sm:$0xff] %vm9501_vm6, %v9457_v1  ;;  %v13715_v8 = vld [vmem:[%s23771_s5 + $0x48] sm:$0xff]  ;;  %v24000_v40 = vld [vmem:[#allocation31_spill] sm:$0xff]  ;;  %v24001_v33 = vld [vmem:[#allocation32_spill] sm:$0xff] }
 0x734   : > { %17260 = vmatprep.subr.mxu0 %v23917_v31  ;;  %v9399_v57 = vadd.f32 %v21965_v14, %v9332_v29  ;;  %v9335_v10 = vadd.f32 %v21958_v37, %v8664_v20  ;;  %v8663_v34 = vadd.f32 %v8444_v16, %v7834_v52  ;;  %17007 = vmatmul.mubr.msk.f32.gmra.mxu1 %vm9501_vm6, %v9834_v61  ;;  %v9460_v15 = vmax.f32 %v9400_v54, 0.0  ;;  %v16848_v11 = vpop.f32.mrf.mxu1  ;;  %v13684_v37 = vld [vmem:[%s23771_s5 + $0x30] sm:$0xff]  ;;  %v22149_v52 = vld [vmem:[#allocation3 + $0x60] sm:$0xff]  ;;  %v9620_v36 = vld [vmem:[#allocation3 + $0x78] sm:$0xff] }
 0x735   : > { %17094 = vmatmul.mubr.msk.f32.gmra.mxu0 %vm9501_vm6, %v9804_v43  ;;  %17009 = vmatprep.mubr.msk.f32.mxu1 %vm17756_vm1, %v23917_v31  ;;  %9608 = vst.msk [vmem:[#allocation4 + $0x18] sm:$0xff] %vm9501_vm6, %v9605_v50  ;;  %9609 = vst.msk [vmem:[#allocation4 + $0x20] sm:$0xff] %vm9501_vm6, %v9606_v23  ;;  %v8666_v3 = vadd.f32 %v16848_v11, %v7849_v35  ;;  %v7844_v5 = vadd.f32 %v21842_v9, %v24000_v40  ;;  %v9805_v44 = vld [vmem:[#allocation4 + $0x10] sm:$0xff]  ;;  %v9614_v6 = vld [vmem:[#allocation3 + $0x61] sm:$0xff] }
 0x736   : > { %17096 = vmatprep.mubr.msk.f32.mxu0 %vm17756_vm1, %v23917_v31  ;;  %v9459_v53 = vmax.f32 %v9399_v57, 0.0  ;;  %v9402_v28 = vadd.f32 %v21965_v14, %v9335_v10  ;;  %v9334_v63 = vadd.f32 %v21970_v0, %v8663_v34  ;;  %17174 = vmatpush3.msra.mxu1 %v13685_v4  ;;  %9521 = vst.msk [vmem:[#allocation3 + $0x98] sm:$0xff] %vm9501_vm6, %v9460_v15  ;;  %v8454_v38 = vpop.f32.mrf.mxu1  ;;  %v22154_v0 = vpop.f32.mrf.mxu0  ;;  %v9613_v62 = vld [vmem:[#allocation3 + $0x70] sm:$0xf]  ;;  %v9612_v23 = vld [vmem:[#allocation3 + $0x68] sm:$0xff] }
 0x737   : > { %17261 = vmatpush3.msra.mxu0 %v13716_v46  ;;  %17175 = vmatprep.subr.mxu1 %v23917_v31  ;;  %v7859_v49 = vadd.f32 %v21844_v17, %v24001_v33  ;;  %v9616_v39 = vld [vmem:[#allocation3 + $0x71] sm:$0xf]  ;;  %v7854_v45 = vadd.f32 %v21848_v18, %v24002_v55  ;;  %v9337_v25 = vadd.f32 %v21978_v19, %v8666_v3  ;;  %v9615_v35 = vld [vmem:[#allocation3 + $0x69] sm:$0xff] }
 0x738   : > { %17262 = vmatprep.subr.mxu0 %v23917_v31  ;;  %9520 = vst.msk [vmem:[#allocation3 + $0x90] sm:$0xff] %vm9501_vm6, %v9459_v53  ;;  %v9462_v9 = vmax.f32 %v9402_v28, 0.0  ;;  %v9401_v32 = vadd.f32 %v21965_v14, %v9334_v63  ;;  %17176 = vmatpush3.msra.mxu1 %v13684_v37  ;;  %v9622_v2 = vld [vmem:[#allocation3 + $0x88] sm:$0xf]  ;;  %v8665_v7 = vadd.f32 %v8454_v38, %v7844_v5  ;;  %v16851_v17 = vpop.f32.mrf.mxu1  ;;  %v22166_v12 = vpop.f32.mrf.mxu0  ;;  %v24005_v5 = vld [vmem:[#allocation35_spill] sm:$0xff] }
 0x739   : > { %17097 = vmatmul.mubr.msk.f32.gmra.mxu0 %vm9501_vm6, %v9805_v44  ;;  %v9625_v24 = vld [vmem:[#allocation3 + $0x89] sm:$0xf]  ;;  %v8668_v29 = vadd.f32 %v16851_v17, %v7859_v49  ;;  %17345 = vmatprep.subr.mxu1 %v23917_v31  ;;  %v9617_v19 = vmax.f32 %v22149_v52, %v9614_v6  ;;  %v9619_v20 = vmax.f32 %v9613_v62, %v9616_v39 }
 0x73a   : > { %17099 = vmatprep.mubr.msk.f32.mxu0 %vm17756_vm1, %v23917_v31  ;;  %17263 = vmatpush3.msra.mxu0 %v13715_v8  ;;  %v24003_v58 = vld [vmem:[#allocation34_spill] sm:$0xff]  ;;  %v9628_v1 = vmax.f32 %v9622_v2, %v9625_v24  ;;  %9523 = vst.msk [vmem:[#allocation3 + $0xa8] sm:$0xff] %vm9501_vm6, %v9462_v9  ;;  %v9461_v18 = vmax.f32 %v9401_v32, 0.0  ;;  %v9621_v4 = vld [vmem:[#allocation3 + $0x80] sm:$0xff]  ;;  %v9404_v61 = vadd.f32 %v21965_v14, %v9337_v25  ;;  %v8464_v50 = vpop.f32.mrf.mxu1  ;;  %v22181_v3 = vpop.f32.mrf.mxu0 }
 0x73b   : > { %v7869_v41 = vadd.f32 %v24004_v56, %v24003_v58  ;;  %17418 = vmatprep.subr.mxu0 %v23917_v31  ;;  %v9623_v54 = vld [vmem:[#allocation3 + $0x79] sm:$0xff]  ;;  %v9624_v16 = vld [vmem:[#allocation3 + $0x81] sm:$0xff]  ;;  %v9336_v43 = vadd.f32 %v21989_v22, %v8665_v7  ;;  %v9339_v10 = vadd.f32 %v21996_v48, %v8668_v29  ;;  %v8667_v34 = vadd.f32 %v8464_v50, %v7854_v45  ;;  %v24008_v39 = vld [vmem:[#allocation70_spill] sm:$0xff] }
 0x73c   : > { %v9626_v46 = vmax.f32 %v9620_v36, %v9623_v54  ;;  %v9627_v57 = vmax.f32 %v9621_v4, %v9624_v16  ;;  %9522 = vst.msk [vmem:[#allocation3 + $0xa0] sm:$0xff] %vm9501_vm6, %v9461_v18  ;;  %v9835_v15 = vld [vmem:[#allocation4 + $0x12] sm:$0xff]  ;;  %v9618_v37 = vmax.f32 %v9612_v23, %v9615_v35  ;;  %v9464_v53 = vmax.f32 %v9404_v61, 0.0  ;;  %v16854_v22 = vpop.f32.mrf.mxu1  ;;  %v24006_v52 = vld [vmem:[#allocation69_spill] sm:$0xff]  ;;  %v22193_v62 = vpop.f32.mrf.mxu0  ;;  %v9836_v2 = vld [vmem:[#allocation4 + $0x1a] sm:$0xff] }
 0x73d   : > { %v9806_v11 = vld [vmem:[#allocation4 + $0x18] sm:$0xff]  ;;  %v9403_v28 = vadd.f32 %v21965_v14, %v9336_v43  ;;  %17010 = vmatmul.mubr.msk.f32.gmra.mxu1 %vm9501_vm6, %v9835_v15  ;;  %v9631_v63 = vmax.f32 %v9619_v20, %v9628_v1  ;;  %v9406_v8 = vadd.f32 %v21965_v14, %v9339_v10  ;;  %v9338_v40 = vadd.f32 %v22006_v21, %v8667_v34  ;;  %v9807_v24 = vld [vmem:[#allocation4 + $0x20] sm:$0xff]  ;;  %v24011_v4 = vld [vmem:[#allocation38_spill] sm:$0xff] }
 0x73e   : > { %17100 = vmatmul.mubr.msk.f32.gmra.mxu0 %vm9501_vm6, %v9806_v11  ;;  %v8670_v48 = vadd.f32 %v16854_v22, %v7869_v41  ;;  %17012 = vmatprep.mubr.msk.f32.mxu1 %vm17756_vm1, %v23917_v31  ;;  %v7864_v38 = vadd.f32 %v24006_v52, %v24005_v5  ;;  %9525 = vst.msk [vmem:[#allocation3 + $0xb8] sm:$0xff] %vm9501_vm6, %v9464_v53  ;;  %v8474_v33 = vpop.f32.mrf.mxu1  ;;  %v24007_v21 = vld [vmem:[#allocation36_spill] sm:$0xff]  ;;  %v24009_v56 = vld [vmem:[#allocation37_spill] sm:$0xff]  ;;  %v24010_v41 = vld [vmem:[#allocation71_spill] sm:$0xff]  ;;  %v22217_v20 = vpop.f32.mrf.mxu0 }
 0x73f   : > { %17102 = vmatprep.mubr.msk.f32.mxu0 %vm17756_vm1, %v23917_v31  ;;  %v9463_v44 = vmax.f32 %v9403_v28, 0.0  ;;  %v9629_v49 = vmax.f32 %v9617_v19, %v9626_v46  ;;  %v9630_v6 = vmax.f32 %v9618_v37, %v9627_v57  ;;  %9634 = vst.msk [vmem:[#allocation4 + $0x40] sm:$0xf] %vm9585_vm7, %v9631_v63  ;;  %v7879_v9 = vadd.f32 %v24008_v39, %v24007_v21  ;;  %v22212_v35 = vld [vmem:[#allocation3 + $0x90] sm:$0xff]  ;;  %v9808_v19 = vld [vmem:[#allocation4 + $0x28] sm:$0xff]  ;;  %v24012_v54 = vld [vmem:[#allocation72_spill] sm:$0xff] }
 0x740   : > { %v9466_v32 = vmax.f32 %v9406_v8, 0.0  ;;  %v9405_v55 = vadd.f32 %v21965_v14, %v9338_v40  ;;  %v9341_v45 = vadd.f32 %v22013_v42, %v8670_v48  ;;  %v8669_v25 = vadd.f32 %v8474_v33, %v7864_v38  ;;  %v16857_v7 = vpop.f32.mrf.mxu1  ;;  %v22214_v1 = vld [vmem:[#allocation3 + $0x91] sm:$0xff]  ;;  %v24014_v43 = vld [vmem:[#allocation73_spill] sm:$0xff]  ;;  %v24015_v15 = vld [vmem:[#allocation40_spill] sm:$0xff]  ;;  %v22230_v63 = vpop.f32.mrf.mxu0 }
 0x741   : > { %9524 = vst.msk [vmem:[#allocation3 + $0xb0] sm:$0xff] %vm9501_vm6, %v9463_v44  ;;  %17013 = vmatmul.mubr.msk.f32.gmra.mxu1 %vm9501_vm6, %v9836_v2  ;;  %9632 = vst.msk [vmem:[#allocation4 + $0x30] sm:$0xff] %vm9501_vm6, %v9629_v49  ;;  %v8672_v42 = vadd.f32 %v16857_v7, %v7879_v9  ;;  %v7874_v36 = vadd.f32 %v24010_v41, %v24009_v56  ;;  %v7889_v16 = vadd.f32 %v24012_v54, %v24011_v4  ;;  %v24013_v61 = vld [vmem:[#allocation39_spill] sm:$0xff]  ;;  %v9837_v34 = vld [vmem:[#allocation4 + $0x22] sm:$0xff] }
 0x742   : > { %17103 = vmatmul.mubr.msk.f32.gmra.mxu0 %vm9501_vm6, %v9807_v24  ;;  %9633 = vst.msk [vmem:[#allocation4 + $0x38] sm:$0xff] %vm9501_vm6, %v9630_v6  ;;  %9527 = vst.msk [vmem:[#allocation3 + $0xc8] sm:$0xff] %vm9501_vm6, %v9466_v32  ;;  %v9465_v17 = vmax.f32 %v9405_v55, 0.0  ;;  %v9408_v58 = vadd.f32 %v21965_v14, %v9341_v45  ;;  %17015 = vmatprep.mubr.msk.f32.mxu1 %vm17756_vm1, %v23917_v31  ;;  %v9340_v18 = vadd.f32 %v22025_v51, %v8669_v25  ;;  %v8484_v29 = vpop.f32.mrf.mxu1  ;;  %v24016_v51 = vld [vmem:[#allocation74_spill] sm:$0xff]  ;;  %v9636_v52 = vld [vmem:[#allocation3 + $0x98] sm:$0xff] }
 0x743   : > { %17105 = vmatprep.mubr.msk.f32.mxu0 %vm17756_vm1, %v23917_v31  ;;  %v7884_v50 = vadd.f32 %v24014_v43, %v24013_v61  ;;  %v9637_v23 = vld [vmem:[#allocation3 + $0xa0] sm:$0xf]  ;;  %v9343_v10 = vadd.f32 %v22036_v30, %v8672_v42  ;;  %v7899_v11 = vadd.f32 %v24016_v51, %v24015_v15  ;;  %v8671_v28 = vadd.f32 %v8484_v29, %v7874_v36  ;;  %v9644_v38 = vld [vmem:[#allocation3 + $0xa8] sm:$0xff] }
 0x744   : > { %v9640_v46 = vld [vmem:[#allocation3 + $0xa1] sm:$0xf]  ;;  %9526 = vst.msk [vmem:[#allocation3 + $0xc0] sm:$0xff] %vm9501_vm6, %v9465_v17  ;;  %v9468_v57 = vmax.f32 %v9408_v58, 0.0  ;;  %v9639_v37 = vld [vmem:[#allocation3 + $0x99] sm:$0xff]  ;;  %v9407_v53 = vadd.f32 %v21965_v14, %v9340_v18  ;;  %v16860_v22 = vpop.f32.mrf.mxu1  ;;  %v9641_v8 = vmax.f32 %v22212_v35, %v22214_v1  ;;  %v24019_v61 = vld [vmem:[#allocation42_spill] sm:$0xff] }
 0x745   : > { %17016 = vmatmul.mubr.msk.f32.gmra.mxu1 %vm9501_vm6, %v9837_v34  ;;  %v9646_v40 = vld [vmem:[#allocation3 + $0xb8] sm:$0xf]  ;;  %v9410_v48 = vadd.f32 %v21965_v14, %v9343_v10  ;;  %v8674_v5 = vadd.f32 %v16860_v22, %v7889_v16  ;;  %v9643_v44 = vmax.f32 %v9637_v23, %v9640_v46  ;;  %v9342_v6 = vadd.f32 %v22046_v60, %v8671_v28  ;;  %v22244_v60 = vpop.f32.mrf.mxu0  ;;  %v24017_v1 = vld [vmem:[#allocation41_spill] sm:$0xff] }
 0x746   : > { %17106 = vmatmul.mubr.msk.f32.gmra.mxu0 %vm9501_vm6, %v9808_v19  ;;  %v9649_v30 = vld [vmem:[#allocation3 + $0xb9] sm:$0xf]  ;;  %9529 = vst.msk [vmem:[#allocation3 + $0xd8] sm:$0xff] %vm9501_vm6, %v9468_v57  ;;  %17018 = vmatprep.mubr.msk.f32.mxu1 %vm17756_vm1, %v23917_v31  ;;  %v9467_v49 = vmax.f32 %v9407_v53, 0.0  ;;  %v8494_v21 = vpop.f32.mrf.mxu1  ;;  %v9642_v39 = vmax.f32 %v9636_v52, %v9639_v37  ;;  %v24022_v37 = vld [vmem:[#allocation77_spill] sm:$0xff] }
 0x747   : > { %17108 = vmatprep.mubr.msk.f32.mxu0 %vm17756_vm1, %v23917_v31  ;;  %v9652_v33 = vmax.f32 %v9646_v40, %v9649_v30  ;;  %v9470_v45 = vmax.f32 %v9410_v48, 0.0  ;;  %v9345_v2 = vadd.f32 %v22052_v59, %v8674_v5  ;;  %v8673_v24 = vadd.f32 %v8494_v21, %v7884_v50  ;;  %v24018_v18 = vld [vmem:[#allocation75_spill] sm:$0xff]  ;;  %v24020_v43 = vld [vmem:[#allocation76_spill] sm:$0xff]  ;;  %v24024_v21 = vld [vmem:[#allocation78_spill] sm:$0xff] }
 0x748   : > { %v9645_v9 = vld [vmem:[#allocation3 + $0xb0] sm:$0xff]  ;;  %9528 = vst.msk [vmem:[#allocation3 + $0xd0] sm:$0xff] %vm9501_vm6, %v9467_v49  ;;  %v9409_v17 = vadd.f32 %v21965_v14, %v9342_v6  ;;  %v16863_v56 = vpop.f32.mrf.mxu1  ;;  %v7894_v29 = vadd.f32 %v24018_v18, %v24017_v1  ;;  %v7909_v50 = vadd.f32 %v24020_v43, %v24019_v61  ;;  %v22286_v48 = vld [vmem:[#allocation4 + $0x40] sm:$0xff] }
 0x749   : > { %v9647_v32 = vld [vmem:[#allocation3 + $0xa9] sm:$0xff]  ;;  %v9648_v55 = vld [vmem:[#allocation3 + $0xb1] sm:$0xff]  ;;  %v9655_v41 = vmax.f32 %v9643_v44, %v9652_v33  ;;  %9531 = vst.msk [vmem:[#allocation3 + $0xe8] sm:$0xff] %vm9501_vm6, %v9470_v45  ;;  %v9412_v36 = vadd.f32 %v21965_v14, %v9345_v2  ;;  %v9344_v35 = vadd.f32 %v22070_v27, %v8673_v24  ;;  %v8676_v59 = vadd.f32 %v16863_v56, %v7899_v11  ;;  %v22258_v27 = vpop.f32.mrf.mxu0  ;;  %v24023_v6 = vld [vmem:[#allocation44_spill] sm:$0xff] }
 0x74a   : > { %v9650_v25 = vmax.f32 %v9644_v38, %v9647_v32  ;;  %v9651_v7 = vmax.f32 %v9645_v9, %v9648_v55  ;;  %v9838_v58 = vld [vmem:[#allocation4 + $0x2a] sm:$0xff]  ;;  %v9469_v19 = vmax.f32 %v9409_v17, 0.0  ;;  %v8504_v4 = vpop.f32.mrf.mxu1  ;;  %v22265_v34 = vld [vmem:[#allocation4 + $0x32] sm:$0xff]  ;;  %v24025_v9 = vld [vmem:[#allocation45_spill] sm:$0xff] }
 0x74b   : > { %v9809_v42 = vld [vmem:[#allocation4 + $0x30] sm:$0xff]  ;;  %17019 = vmatmul.mubr.msk.f32.gmra.mxu1 %vm9501_vm6, %v9838_v58  ;;  %9658 = vst.msk [vmem:[#allocation4 + $0x58] sm:$0xf] %vm9585_vm7, %v9655_v41  ;;  %v9472_v23 = vmax.f32 %v9412_v36, 0.0  ;;  %v9411_v46 = vadd.f32 %v21965_v14, %v9344_v35  ;;  %v9347_v57 = vadd.f32 %v22083_v13, %v8676_v59  ;;  %v8675_v10 = vadd.f32 %v8504_v4, %v7894_v29  ;;  %v22267_v15 = vld [vmem:[#allocation4 + $0x38] sm:$0xff]  ;;  %v22288_v5 = vpop.f32.mrf.mxu0  ;;  %v9662_v52 = vld [vmem:[#allocation3 + $0xc1] sm:$0xff] }
 0x74c   : > { %17109 = vmatmul.mubr.msk.f32.gmra.mxu0 %vm9501_vm6, %v9809_v42  ;;  %17021 = vmatprep.mubr.msk.f32.mxu1 %vm17756_vm1, %v23917_v31  ;;  %v9653_v54 = vmax.f32 %v9641_v8, %v9650_v25  ;;  %v9654_v16 = vmax.f32 %v9642_v39, %v9651_v7  ;;  %9530 = vst.msk [vmem:[#allocation3 + $0xe0] sm:$0xff] %vm9501_vm6, %v9469_v19  ;;  %v16866_v51 = vpop.f32.mrf.mxu1  ;;  %v24021_v11 = vld [vmem:[#allocation43_spill] sm:$0xff]  ;;  %v22279_v8 = vld [vmem:[#allocation3 + $0xc0] sm:$0xff]  ;;  %v24027_v36 = vld [vmem:[#allocation46_spill] sm:$0xff] }
 0x74d   : > { %17111 = vmatprep.mubr.msk.f32.mxu0 %vm17756_vm1, %v23917_v31  ;;  %v7904_v53 = vadd.f32 %v24022_v37, %v24021_v11  ;;  %9533 = vst.msk [vmem:[#allocation3 + $0xf8] sm:$0xff] %vm9501_vm6, %v9472_v23  ;;  %v9471_v28 = vmax.f32 %v9411_v46, 0.0  ;;  %v9414_v13 = vadd.f32 %v21965_v14, %v9347_v57  ;;  %v8678_v22 = vadd.f32 %v16866_v51, %v7909_v50  ;;  %v24026_v32 = vld [vmem:[#allocation79_spill] sm:$0xff]  ;;  %v22297_v7 = vld [vmem:[#allocation4 + $0x3a] sm:$0xff]  ;;  %v22299_v58 = vpop.f32.mrf.mxu0  ;;  %v9660_v1 = vld [vmem:[#allocation3 + $0xc8] sm:$0xff] }
 0x74e   : > { %9656 = vst.msk [vmem:[#allocation4 + $0x48] sm:$0xff] %vm9501_vm6, %v9653_v54  ;;  %9657 = vst.msk [vmem:[#allocation4 + $0x50] sm:$0xff] %vm9501_vm6, %v9654_v16  ;;  %v9346_v40 = vadd.f32 %v22108_v47, %v8675_v10  ;;  %v8514_v30 = vpop.f32.mrf.mxu1  ;;  %v7919_v39 = vadd.f32 %v24024_v21, %v24023_v6  ;;  %v7914_v55 = vadd.f32 %v24026_v32, %v24025_v9  ;;  %v24028_v35 = vld [vmem:[#allocation80_spill] sm:$0xff]  ;;  %v24032_v6 = vld [vmem:[#allocation82_spill] sm:$0xff] }
 0x74f   : > { %17022 = vmatmul.mubr.msk.f32.gmra.mxu1 %vm9501_vm6, %v22265_v34  ;;  %v9661_v38 = vld [vmem:[#allocation3 + $0xd0] sm:$0xf]  ;;  %9532 = vst.msk [vmem:[#allocation3 + $0xf0] sm:$0xff] %vm9501_vm6, %v9471_v28  ;;  %v9474_v33 = vmax.f32 %v9414_v13, 0.0  ;;  %v9349_v49 = vadd.f32 %v22126_v26, %v8678_v22  ;;  %v8677_v47 = vadd.f32 %v8514_v30, %v7904_v53  ;;  %v7929_v59 = vadd.f32 %v24028_v35, %v24027_v36  ;;  %v9668_v29 = vld [vmem:[#allocation3 + $0xd8] sm:$0xff]  ;;  %v22322_v13 = vpop.f32.mrf.mxu0 }
 0x750   : > { %17112 = vmatmul.mubr.msk.f32.gmra.mxu0 %vm9501_vm6, %v22267_v15  ;;  %17024 = vmatprep.mubr.msk.f32.mxu1 %vm17756_vm1, %v23917_v31  ;;  %v9664_v44 = vld [vmem:[#allocation3 + $0xd1] sm:$0xf]  ;;  %v9670_v2 = vld [vmem:[#allocation3 + $0xe8] sm:$0xf]  ;;  %v9413_v25 = vadd.f32 %v21965_v14, %v9346_v40  ;;  %v16869_v17 = vpop.f32.mrf.mxu1  ;;  %v9665_v18 = vmax.f32 %v22279_v8, %v9662_v52 }
 0x751   : > { %17114 = vmatprep.mubr.msk.f32.mxu0 %vm17756_vm1, %v23917_v31  ;;  %v9667_v45 = vmax.f32 %v9661_v38, %v9664_v44  ;;  %v9673_v24 = vld [vmem:[#allocation3 + $0xe9] sm:$0xf]  ;;  %9535 = vst.msk [vmem:[#allocation3 + $0x108] sm:$0xff] %vm9501_vm6, %v9474_v33  ;;  %v9416_v26 = vadd.f32 %v21965_v14, %v9349_v49  ;;  %v9348_v41 = vadd.f32 %v22154_v0, %v8677_v47  ;;  %v24029_v22 = vld [vmem:[#allocation47_spill] sm:$0xff]  ;;  %v22338_v49 = vpop.f32.mrf.mxu0  ;;  %v24031_v47 = vld [vmem:[#allocation48_spill] sm:$0xff] }
 0x752   : > { %v9663_v42 = vld [vmem:[#allocation3 + $0xc9] sm:$0xff]  ;;  %v9676_v56 = vmax.f32 %v9670_v2, %v9673_v24  ;;  %v9473_v19 = vmax.f32 %v9413_v25, 0.0  ;;  %v8680_v4 = vadd.f32 %v16869_v17, %v7919_v39  ;;  %v8524_v54 = vpop.f32.mrf.mxu1  ;;  %v7939_v21 = vadd.f32 %v24032_v6, %v24031_v47 }
 0x753   : > { %17025 = vmatmul.mubr.msk.f32.gmra.mxu1 %vm9501_vm6, %v22297_v7  ;;  %v9669_v0 = vld [vmem:[#allocation3 + $0xe0] sm:$0xff]  ;;  %v9476_v43 = vmax.f32 %v9416_v26, 0.0  ;;  %v9415_v50 = vadd.f32 %v21965_v14, %v9348_v41  ;;  %v8679_v23 = vadd.f32 %v8524_v54, %v7914_v55  ;;  %v9666_v57 = vmax.f32 %v9660_v1, %v9663_v42  ;;  %v22368_v1 = vld [vmem:[#allocation4 + $0x58] sm:$0xff] }
 0x754   : > { %17115 = vmatmul.mubr.msk.f32.gmra.mxu0 %vm9501_vm6, %v22286_v48  ;;  %17027 = vmatprep.mubr.msk.f32.mxu1 %vm17756_vm1, %v23917_v31  ;;  %v9671_v16 = vld [vmem:[#allocation3 + $0xd9] sm:$0xff]  ;;  %v9672_v61 = vld [vmem:[#allocation3 + $0xe1] sm:$0xff]  ;;  %v9679_v46 = vmax.f32 %v9667_v45, %v9676_v56  ;;  %9534 = vst.msk [vmem:[#allocation3 + $0x100] sm:$0xff] %vm9501_vm6, %v9473_v19  ;;  %v9351_v11 = vadd.f32 %v22166_v12, %v8680_v4  ;;  %v16872_v28 = vpop.f32.mrf.mxu1 }
 0x755   : > { %17117 = vmatprep.mubr.msk.f32.mxu0 %vm17756_vm1, %v23917_v31  ;;  %v9674_v10 = vmax.f32 %v9668_v29, %v9671_v16  ;;  %v9675_v51 = vmax.f32 %v9669_v0, %v9672_v61  ;;  %v22318_v37 = vld [vmem:[#allocation4 + $0x42] sm:$0xff]  ;;  %9537 = vst.msk [vmem:[#allocation3 + $0x118] sm:$0xff] %vm9501_vm6, %v9476_v43  ;;  %v9475_v30 = vmax.f32 %v9415_v50, 0.0  ;;  %v9350_v52 = vadd.f32 %v22181_v3, %v8679_v23  ;;  %v24034_v45 = vld [vmem:[#allocation83_spill] sm:$0xff]  ;;  %v22347_v25 = vld [vmem:[#allocation4 + $0x4a] sm:$0xff] }
 0x756   : > { %v22320_v53 = vld [vmem:[#allocation4 + $0x48] sm:$0xff]  ;;  %v8682_v12 = vadd.f32 %v16872_v28, %v7929_v59  ;;  %9682 = vst.msk [vmem:[#allocation4 + $0x70] sm:$0xf] %vm9585_vm7, %v9679_v46  ;;  %v9418_v38 = vadd.f32 %v21965_v14, %v9351_v11  ;;  %v8534_v44 = vpop.f32.mrf.mxu1  ;;  %v22349_v17 = vld [vmem:[#allocation4 + $0x50] sm:$0xff]  ;;  %v22376_v4 = vld [vmem:[%s23770_s4] ss:$0 sm:$0xff] }
 0x757   : > { %v24030_v8 = vld [vmem:[#allocation81_spill] sm:$0xff]  ;;  %17028 = vmatmul.mubr.msk.f32.gmra.mxu1 %vm9501_vm6, %v22318_v37  ;;  %v9677_v33 = vmax.f32 %v9665_v18, %v9674_v10  ;;  %v9678_v3 = vmax.f32 %v9666_v57, %v9675_v51  ;;  %9536 = vst.msk [vmem:[#allocation3 + $0x110] sm:$0xff] %vm9501_vm6, %v9475_v30  ;;  %v9417_v39 = vadd.f32 %v21965_v14, %v9350_v52  ;;  %v22353_v56 = vld [vmem:[#allocation3 + $0xf0] sm:$0xff]  ;;  %v24036_v43 = vld [vmem:[#allocation84_spill] sm:$0xff] }
 0x758   : > { %v7924_v40 = vadd.f32 %v24030_v8, %v24029_v22  ;;  %17118 = vmatmul.mubr.msk.f32.gmra.mxu0 %vm9501_vm6, %v22320_v53  ;;  %17030 = vmatprep.mubr.msk.f32.mxu1 %vm17756_vm1, %v23917_v31  ;;  %v9353_v9 = vadd.f32 %v22193_v62, %v8682_v12  ;;  %v24033_v55 = vld [vmem:[#allocation49_spill] sm:$0xff]  ;;  %v9478_v24 = vmax.f32 %v9418_v38, 0.0  ;;  %v16875_v42 = vpop.f32.mrf.mxu1  ;;  %v22355_v26 = vld [vmem:[#allocation3 + $0xf1] sm:$0xff]  ;;  %v24039_v10 = vld [vmem:[#allocation52_spill] sm:$0xff] }
 0x759   : > { %17120 = vmatprep.mubr.msk.f32.mxu0 %vm17756_vm1, %v23917_v31  ;;  %v7934_v2 = vadd.f32 %v24034_v45, %v24033_v55  ;;  %9680 = vst.msk [vmem:[#allocation4 + $0x60] sm:$0xff] %vm9501_vm6, %v9677_v33  ;;  %9681 = vst.msk [vmem:[#allocation4 + $0x68] sm:$0xff] %vm9501_vm6, %v9678_v3  ;;  %v9477_v41 = vmax.f32 %v9417_v39, 0.0  ;;  %v8684_v35 = vadd.f32 %v16875_v42, %v7939_v21  ;;  %v24035_v61 = vld [vmem:[#allocation50_spill] sm:$0xff]  ;;  %v24037_v23 = vld [vmem:[#allocation51_spill] sm:$0xff] }
 0x75a   : > { %v8681_v32 = vadd.f32 %v8534_v44, %v7924_v40  ;;  %v9420_v62 = vadd.f32 %v21965_v14, %v9353_v9  ;;  %9539 = vst.msk [vmem:[#allocation3 + $0x128] sm:$0xff] %vm9501_vm6, %v9478_v24  ;;  %v8544_v59 = vpop.f32.mrf.mxu1  ;;  %v22370_v14 = vpop.f32.mrf.mxu0  ;;  %v7949_v50 = vadd.f32 %v24036_v43, %v24035_v61  ;;  %v24038_v46 = vld [vmem:[#allocation85_spill] sm:$0xff]  ;;  %v24040_v51 = vld [vmem:[#allocation86_spill] sm:$0xff]  ;;  %v9689_v28 = vmax.f32 %v22353_v56, %v22355_v26  ;;  %v22388_v40 = vld [vmem:[#allocation4 + $0x52] sm:$0xff] }
 0x75b   : > { %17031 = vmatmul.mubr.msk.f32.gmra.mxu1 %vm9501_vm6, %v22347_v25  ;;  %v9687_v18 = vld [vmem:[#allocation3 + $0xf9] sm:$0xff]  ;;  %v9688_v29 = vld [vmem:[#allocation3 + $0x101] sm:$0xf]  ;;  %9538 = vst.msk [vmem:[#allocation3 + $0x120] sm:$0xff] %vm9501_vm6, %v9477_v41  ;;  %v9355_v0 = vadd.f32 %v22230_v63, %v8684_v35  ;;  %v8683_v16 = vadd.f32 %v8544_v59, %v7934_v2  ;;  %v7944_v57 = vadd.f32 %v24038_v46, %v24037_v23  ;;  %v9692_v12 = vld [vmem:[#allocation3 + $0x108] sm:$0xff] }
 0x75c   : > { %v9352_v36 = vadd.f32 %v22217_v20, %v8681_v32  ;;  %17121 = vmatmul.mubr.msk.f32.gmra.mxu0 %vm9501_vm6, %v22349_v17  ;;  %17033 = vmatprep.mubr.msk.f32.mxu1 %vm17756_vm1, %v23917_v31  ;;  %v9685_v20 = vld [vmem:[#allocation3 + $0x100] sm:$0xf]  ;;  %v9480_v19 = vmax.f32 %v9420_v62, 0.0  ;;  %v7959_v11 = vadd.f32 %v24040_v51, %v24039_v10  ;;  %v9694_v22 = vld [vmem:[#allocation3 + $0x118] sm:$0xf]  ;;  %v16878_v30 = vpop.f32.mrf.mxu1  ;;  %v22390_v52 = vpop.f32.mrf.mxu0 }
 0x75d   : > { %17123 = vmatprep.mubr.msk.f32.mxu0 %vm17756_vm1, %v23917_v31  ;;  %v9697_v8 = vld [vmem:[#allocation3 + $0x119] sm:$0xf]  ;;  %v9422_v33 = vadd.f32 %v22376_v4, %v9355_v0  ;;  %v9354_v3 = vadd.f32 %v22244_v60, %v8683_v16  ;;  %v9691_v6 = vmax.f32 %v9685_v20, %v9688_v29  ;;  %v8686_v32 = vadd.f32 %v16878_v30, %v7949_v50  ;;  %v24041_v26 = vld [vmem:[#allocation53_spill] sm:$0xff]  ;;  %v24043_v50 = vld [vmem:[#allocation54_spill] sm:$0xff] }
 0x75e   : > { %v9419_v54 = vadd.f32 %v22376_v4, %v9352_v36  ;;  %v9684_v63 = vld [vmem:[#allocation3 + $0xf8] sm:$0xff]  ;;  %v9700_v38 = vmax.f32 %v9694_v22, %v9697_v8  ;;  %9541 = vst.msk [vmem:[#allocation3 + $0x138] sm:$0xff] %vm9501_vm6, %v9480_v19  ;;  %v9693_v21 = vld [vmem:[#allocation3 + $0x110] sm:$0xff]  ;;  %v8554_v55 = vpop.f32.mrf.mxu1 }
 0x75f   : > { %17034 = vmatmul.mubr.msk.f32.gmra.mxu1 %vm9501_vm6, %v22388_v40  ;;  %v9690_v47 = vmax.f32 %v9684_v63, %v9687_v18  ;;  %v9695_v39 = vld [vmem:[#allocation3 + $0x109] sm:$0xff]  ;;  %v9696_v9 = vld [vmem:[#allocation3 + $0x111] sm:$0xff]  ;;  %v9482_v2 = vmax.f32 %v9422_v33, 0.0  ;;  %v9421_v24 = vadd.f32 %v22376_v4, %v9354_v3  ;;  %v9357_v36 = vadd.f32 %v22258_v27, %v8686_v32  ;;  %v22412_v18 = vpop.f32.mrf.mxu0  ;;  %v24044_v23 = vld [vmem:[#allocation88_spill] sm:$0xff] }
 0x760   : > { %v9479_v44 = vmax.f32 %v9419_v54, 0.0  ;;  %17124 = vmatmul.mubr.msk.f32.gmra.mxu0 %vm9501_vm6, %v22368_v1  ;;  %17036 = vmatprep.mubr.msk.f32.mxu1 %vm17756_vm1, %v23917_v31  ;;  %v9698_v60 = vmax.f32 %v9692_v12, %v9695_v39  ;;  %v9699_v45 = vmax.f32 %v9693_v21, %v9696_v9  ;;  %v22405_v42 = vld [vmem:[#allocation4 + $0x5a] sm:$0xff]  ;;  %v24042_v41 = vld [vmem:[#allocation87_spill] sm:$0xff]  ;;  %v8685_v35 = vadd.f32 %v8554_v55, %v7944_v57  ;;  %v16881_v59 = vpop.f32.mrf.mxu1  ;;  %v24046_v12 = vld [vmem:[#allocation89_spill] sm:$0xff] }
 0x761   : > { %17126 = vmatprep.mubr.msk.f32.mxu0 %vm17756_vm1, %v23917_v31  ;;  %v22407_v56 = vld [vmem:[#allocation4 + $0x60] sm:$0xff]  ;;  %v7954_v62 = vadd.f32 %v24042_v41, %v24041_v26  ;;  %v9703_v20 = vmax.f32 %v9691_v6, %v9700_v38  ;;  %9543 = vst.msk [vmem:[#allocation3 + $0x148] sm:$0xff] %vm9501_vm6, %v9482_v2  ;;  %v9481_v29 = vmax.f32 %v9421_v24, 0.0  ;;  %v8688_v19 = vadd.f32 %v16881_v59, %v7959_v11  ;;  %v22426_v43 = vpop.f32.mrf.mxu0  ;;  %v24045_v63 = vld [vmem:[#allocation55_spill] sm:$0xff]  ;;  %v24048_v21 = vld [vmem:[#allocation90_spill] sm:$0xff] }
 0x762   : > { %9540 = vst.msk [vmem:[#allocation3 + $0x130] sm:$0xff] %vm9501_vm6, %v9479_v44  ;;  %v9701_v54 = vmax.f32 %v9689_v28, %v9698_v60  ;;  %v9702_v0 = vmax.f32 %v9690_v47, %v9699_v45  ;;  %v9424_v16 = vadd.f32 %v22376_v4, %v9357_v36  ;;  %v9356_v27 = vadd.f32 %v22288_v5, %v8685_v35  ;;  %v8564_v61 = vpop.f32.mrf.mxu1  ;;  %v22435_v11 = vld [vmem:[#allocation4 + $0x62] sm:$0xff]  ;;  %v24047_v6 = vld [vmem:[#allocation56_spill] sm:$0xff]  ;;  %v24050_v32 = vld [vmem:[#allocation91_spill] sm:$0xff] }
 0x763   : > { %17037 = vmatmul.mubr.msk.f32.gmra.mxu1 %vm9501_vm6, %v22405_v42  ;;  %9706 = vst.msk [vmem:[#allocation4 + $0x88] sm:$0xf] %vm9585_vm7, %v9703_v20  ;;  %v7969_v46 = vadd.f32 %v24044_v23, %v24043_v50  ;;  %v9359_v57 = vadd.f32 %v22299_v58, %v8688_v19  ;;  %v8687_v10 = vadd.f32 %v8564_v61, %v7954_v62  ;;  %v22437_v28 = vld [vmem:[#allocation4 + $0x68] sm:$0xff]  ;;  %v22447_v44 = vld [vmem:[#allocation3 + $0x120] sm:$0xff]  ;;  %v22463_v26 = vld [vmem:[#allocation4 + $0x70] sm:$0xff] }
 0x764   : > { %17127 = vmatmul.mubr.msk.f32.gmra.mxu0 %vm9501_vm6, %v22407_v56  ;;  %17039 = vmatprep.mubr.msk.f32.mxu1 %vm17756_vm1, %v23917_v31  ;;  %9542 = vst.msk [vmem:[#allocation3 + $0x140] sm:$0xff] %vm9501_vm6, %v9481_v29  ;;  %9704 = vst.msk [vmem:[#allocation4 + $0x78] sm:$0xff] %vm9501_vm6, %v9701_v54  ;;  %v9484_v5 = vmax.f32 %v9424_v16, 0.0  ;;  %v9423_v51 = vadd.f32 %v22376_v4, %v9356_v27  ;;  %v16884_v22 = vpop.f32.mrf.mxu1  ;;  %v7964_v38 = vadd.f32 %v24046_v12, %v24045_v63  ;;  %v22449_v33 = vld [vmem:[#allocation3 + $0x121] sm:$0xff]  ;;  %v24051_v41 = vld [vmem:[#allocation58_spill] sm:$0xff] }
 0x765   : > { %17129 = vmatprep.mubr.msk.f32.mxu0 %vm17756_vm1, %v23917_v31  ;;  %9705 = vst.msk [vmem:[#allocation4 + $0x80] sm:$0xff] %vm9501_vm6, %v9702_v0  ;;  %v9426_v8 = vadd.f32 %v22376_v4, %v9359_v57  ;;  %v9358_v30 = vadd.f32 %v22322_v13, %v8687_v10  ;;  %v8690_v58 = vadd.f32 %v16884_v22, %v7969_v46  ;;  %v22456_v13 = vpop.f32.mrf.mxu0  ;;  %v24049_v9 = vld [vmem:[#allocation57_spill] sm:$0xff]  ;;  %v24052_v62 = vld [vmem:[#allocation92_spill] sm:$0xff]  ;;  %v24053_v35 = vld [vmem:[#allocation59_spill] sm:$0xff] }
 0x766   : > { %9545 = vst.msk [vmem:[#allocation3 + $0x158] sm:$0xff] %vm9501_vm6, %v9484_v5  ;;  %v9483_v3 = vmax.f32 %v9423_v51, 0.0  ;;  %v8574_v47 = vpop.f32.mrf.mxu1  ;;  %v7979_v39 = vadd.f32 %v24048_v21, %v24047_v6  ;;  %v7974_v55 = vadd.f32 %v24050_v32, %v24049_v9  ;;  %v7989_v36 = vadd.f32 %v24052_v62, %v24051_v41  ;;  %v24054_v59 = vld [vmem:[#allocation93_spill] sm:$0xff]  ;;  %v22471_v16 = vld [vmem:[#allocation4 + $0x6a] sm:$0xff]  ;;  %v9716_v23 = vld [vmem:[#allocation3 + $0x138] sm:$0xff] }
 0x767   : > { %17040 = vmatmul.mubr.msk.f32.gmra.mxu1 %vm9501_vm6, %v22435_v11  ;;  %v9486_v2 = vmax.f32 %v9426_v8, 0.0  ;;  %v9425_v24 = vadd.f32 %v22376_v4, %v9358_v30  ;;  %v7984_v20 = vadd.f32 %v24054_v59, %v24053_v35  ;;  %v9361_v54 = vadd.f32 %v22338_v49, %v8690_v58  ;;  %v22473_v61 = vpop.f32.mrf.mxu0  ;;  %v9708_v12 = vld [vmem:[#allocation3 + $0x128] sm:$0xff] }
 0x768   : > { %17130 = vmatmul.mubr.msk.f32.gmra.mxu0 %vm9501_vm6, %v22437_v28  ;;  %17042 = vmatprep.mubr.msk.f32.mxu1 %vm17756_vm1, %v23917_v31  ;;  %v9718_v29 = vld [vmem:[#allocation3 + $0x148] sm:$0xf]  ;;  %9544 = vst.msk [vmem:[#allocation3 + $0x150] sm:$0xff] %vm9501_vm6, %v9483_v3  ;;  %v8689_v0 = vadd.f32 %v8574_v47, %v7964_v38  ;;  %v16887_v27 = vpop.f32.mrf.mxu1  ;;  %v9713_v50 = vmax.f32 %v22447_v44, %v22449_v33 }
 0x769   : > { %17132 = vmatprep.mubr.msk.f32.mxu0 %vm17756_vm1, %v23917_v31  ;;  %v9709_v60 = vld [vmem:[#allocation3 + $0x130] sm:$0xf]  ;;  %v9721_v19 = vld [vmem:[#allocation3 + $0x149] sm:$0xf]  ;;  %9547 = vst.msk [vmem:[#allocation3 + $0x168] sm:$0xff] %vm9501_vm6, %v9486_v2  ;;  %v9485_v10 = vmax.f32 %v9425_v24, 0.0  ;;  %v8692_v49 = vadd.f32 %v16887_v27, %v7979_v39  ;;  %v9428_v30 = vadd.f32 %v22376_v4, %v9361_v54 }
 0x76a   : > { %v9712_v45 = vld [vmem:[#allocation3 + $0x131] sm:$0xf]  ;;  %v9711_v46 = vld [vmem:[#allocation3 + $0x129] sm:$0xff]  ;;  %v9724_v57 = vmax.f32 %v9718_v29, %v9721_v19  ;;  %v9360_v58 = vadd.f32 %v22370_v14, %v8689_v0  ;;  %v8584_v63 = vpop.f32.mrf.mxu1 }
 0x76b   : > { %17043 = vmatmul.mubr.msk.f32.gmra.mxu1 %vm9501_vm6, %v22471_v16  ;;  %v9715_v5 = vmax.f32 %v9709_v60, %v9712_v45  ;;  %v9717_v51 = vld [vmem:[#allocation3 + $0x140] sm:$0xff]  ;;  %9546 = vst.msk [vmem:[#allocation3 + $0x160] sm:$0xff] %vm9501_vm6, %v9485_v10  ;;  %v9363_v33 = vadd.f32 %v22390_v52, %v8692_v49  ;;  %v8691_v3 = vadd.f32 %v8584_v63, %v7974_v55  ;;  %v22490_v47 = vld [vmem:[#allocation4 + $0x72] sm:$0xff]  ;;  %v9488_v21 = vmax.f32 %v9428_v30, 0.0  ;;  %v22495_v60 = vpop.f32.mrf.mxu0  ;;  %v24056_v24 = vld [vmem:[#allocation94_spill] sm:$0xff] }
 0x76c   : > { %17133 = vmatmul.mubr.msk.f32.gmra.mxu0 %vm9501_vm6, %v22463_v26  ;;  %v9719_v22 = vld [vmem:[#allocation3 + $0x139] sm:$0xff]  ;;  %v9720_v8 = vld [vmem:[#allocation3 + $0x141] sm:$0xff]  ;;  %17045 = vmatprep.mubr.msk.f32.mxu1 %vm17756_vm1, %v23917_v31  ;;  %v9714_v14 = vmax.f32 %v9708_v12, %v9711_v46  ;;  %v9427_v39 = vadd.f32 %v22376_v4, %v9360_v58  ;;  %v16890_v9 = vpop.f32.mrf.mxu1  ;;  %v24059_v30 = vld [vmem:[#allocation62_spill] sm:$0xff] }
 0x76d   : > { %17135 = vmatprep.mubr.msk.f32.mxu0 %vm17756_vm1, %v23917_v31  ;;  %v9722_v38 = vmax.f32 %v9716_v23, %v9719_v22  ;;  %v9723_v44 = vmax.f32 %v9717_v51, %v9720_v8  ;;  %v22492_v6 = vld [vmem:[#allocation4 + $0x78] sm:$0xff]  ;;  %v9727_v32 = vmax.f32 %v9715_v5, %v9724_v57  ;;  %v9430_v45 = vadd.f32 %v22376_v4, %v9363_v33  ;;  %v22511_v29 = vpop.f32.mrf.mxu0  ;;  %v22518_v23 = vld [vmem:[#allocation4 + $0x80] sm:$0xff]  ;;  %v22545_v33 = vld [vmem:[#allocation4 + $0x88] sm:$0xff] }
 0x76e   : > { %v9362_v2 = vadd.f32 %v22412_v18, %v8691_v3  ;;  %v8694_v52 = vadd.f32 %v16890_v9, %v7989_v36  ;;  %v24055_v55 = vld [vmem:[#allocation60_spill] sm:$0xff]  ;;  %9549 = vst.msk [vmem:[#allocation3 + $0x178] sm:$0xff] %vm9501_vm6, %v9488_v21  ;;  %v9487_v62 = vmax.f32 %v9427_v39, 0.0  ;;  %v8594_v35 = vpop.f32.mrf.mxu1  ;;  %v24058_v49 = vld [vmem:[#allocation95_spill] sm:$0xff]  ;;  %v24064_v9 = vld [vmem:[#allocation98_spill] sm:$0xff] }
 0x76f   : > { %17046 = vmatmul.mubr.msk.f32.gmra.mxu1 %vm9501_vm6, %v22490_v47  ;;  %v7999_v41 = vadd.f32 %v24056_v24, %v24055_v55  ;;  %v9725_v18 = vmax.f32 %v9713_v50, %v9722_v38  ;;  %v9726_v59 = vmax.f32 %v9714_v14, %v9723_v44  ;;  %9730 = vst.msk [vmem:[#allocation4 + $0xa0] sm:$0xf] %vm9585_vm7, %v9727_v32  ;;  %v9490_v36 = vmax.f32 %v9430_v45, 0.0  ;;  %v22516_v27 = vld [vmem:[#allocation4 + $0x7a] sm:$0xff]  ;;  %v22531_v51 = vld [vmem:[#allocation3 + $0x150] sm:$0xff]  ;;  %v22543_v44 = vld [vmem:[#allocation4 + $0x82] sm:$0xff] }
 0x770   : > { %17136 = vmatmul.mubr.msk.f32.gmra.mxu0 %vm9501_vm6, %v22492_v6  ;;  %17048 = vmatprep.mubr.msk.f32.mxu1 %vm17756_vm1, %v23917_v31  ;;  %v9429_v19 = vadd.f32 %v22376_v4, %v9362_v2  ;;  %v9365_v54 = vadd.f32 %v22426_v43, %v8694_v52  ;;  %v8693_v0 = vadd.f32 %v8594_v35, %v7984_v20  ;;  %v16893_v46 = vpop.f32.mrf.mxu1  ;;  %v24057_v20 = vld [vmem:[#allocation61_spill] sm:$0xff]  ;;  %v22533_v22 = vld [vmem:[#allocation3 + $0x151] sm:$0xff]  ;;  %v24060_v58 = vld [vmem:[#allocation96_spill] sm:$0xff] }
 0x771   : > { %17138 = vmatprep.mubr.msk.f32.mxu0 %vm17756_vm1, %v23917_v31  ;;  %9548 = vst.msk [vmem:[#allocation3 + $0x170] sm:$0xff] %vm9501_vm6, %v9487_v62  ;;  %9728 = vst.msk [vmem:[#allocation4 + $0x90] sm:$0xff] %vm9501_vm6, %v9725_v18  ;;  %v8696_v43 = vadd.f32 %v16893_v46, %v7999_v41  ;;  %v7994_v5 = vadd.f32 %v24058_v49, %v24057_v20  ;;  %v8009_v63 = vadd.f32 %v24060_v58, %v24059_v30  ;;  %v24061_v3 = vld [vmem:[#allocation63_spill] sm:$0xff]  ;;  %v24062_v14 = vld [vmem:[#allocation97_spill] sm:$0xff] }
 0x772   : > { %9729 = vst.msk [vmem:[#allocation4 + $0x98] sm:$0xff] %vm9501_vm6, %v9726_v59  ;;  %9551 = vst.msk [vmem:[#allocation3 + $0x188] sm:$0xff] %vm9501_vm6, %v9490_v36  ;;  %v9489_v50 = vmax.f32 %v9429_v19, 0.0  ;;  %v9432_v57 = vadd.f32 %v22376_v4, %v9365_v54  ;;  %v9364_v10 = vadd.f32 %v22456_v13, %v8693_v0  ;;  %v8604_v8 = vpop.f32.mrf.mxu1  ;;  %v9285_v13 = vpop.f32.mrf.mxu0  ;;  %v8004_v21 = vadd.f32 %v24062_v14, %v24061_v3  ;;  %v24063_v39 = vld [vmem:[#allocation64_spill] sm:$0xff]  ;;  %v24065_v35 = vld [vmem:[#allocation65_spill] sm:$0xff] }
 0x773   : > { %17049 = vmatmul.mubr.msk.f32.gmra.mxu1 %vm9501_vm6, %v22516_v27  ;;  %v8019_v32 = vadd.f32 %v24064_v9, %v24063_v39  ;;  %v9733_v45 = vld [vmem:[#allocation3 + $0x160] sm:$0xf]  ;;  %v9367_v55 = vadd.f32 %v22473_v61, %v8696_v43  ;;  %v8695_v24 = vadd.f32 %v8604_v8, %v7994_v5  ;;  %v24066_v18 = vld [vmem:[#allocation99_spill] sm:$0xff]  ;;  %v9737_v36 = vmax.f32 %v22531_v51, %v22533_v22 }
 0x774   : > { %17139 = vmatmul.mubr.msk.f32.gmra.mxu0 %vm9501_vm6, %v22518_v23  ;;  %17051 = vmatprep.mubr.msk.f32.mxu1 %vm17756_vm1, %v23917_v31  ;;  %9550 = vst.msk [vmem:[#allocation3 + $0x180] sm:$0xff] %vm9501_vm6, %v9489_v50  ;;  %v9492_v12 = vmax.f32 %v9432_v57, 0.0  ;;  %v9431_v38 = vadd.f32 %v22376_v4, %v9364_v10  ;;  %v9735_v2 = vld [vmem:[#allocation3 + $0x159] sm:$0xff]  ;;  %v9736_v52 = vld [vmem:[#allocation3 + $0x161] sm:$0xf]  ;;  %v16896_v41 = vpop.f32.mrf.mxu1  ;;  %v16993_v62 = vpop.f32.mrf.mxu0  ;;  %v8014_v59 = vadd.f32 %v24066_v18, %v24065_v35  ;;  %v9740_v50 = vld [vmem:[#allocation3 + $0x168] sm:$0xff] }
 0x775   : > { %17141 = vmatprep.mubr.msk.f32.mxu0 %vm17756_vm1, %v23917_v31  ;;  %v9742_v19 = vld [vmem:[#allocation3 + $0x178] sm:$0xf]  ;;  %v8698_v61 = vadd.f32 %v16896_v41, %v8009_v63  ;;  %v9434_v10 = vadd.f32 %v22376_v4, %v9367_v55  ;;  %v9366_v43 = vadd.f32 %v22495_v60, %v8695_v24  ;;  %v9739_v5 = vmax.f32 %v9733_v45, %v9736_v52  ;;  %v24067_v41 = vld [vmem:[#allocation66_spill] sm:$0xff] }
 0x776   : > { %v9745_v54 = vld [vmem:[#allocation3 + $0x179] sm:$0xf]  ;;  %9553 = vst.msk [vmem:[#allocation3 + $0x198] sm:$0xff] %vm9501_vm6, %v9492_v12  ;;  %v9491_v0 = vmax.f32 %v9431_v38, 0.0  ;;  %v8614_v20 = vpop.f32.mrf.mxu1  ;;  %v9295_v9 = vpop.f32.mrf.mxu0 }
 0x777   : > { %17052 = vmatmul.mubr.msk.f32.gmra.mxu1 %vm9501_vm6, %v22543_v44  ;;  %v9732_v46 = vld [vmem:[#allocation3 + $0x158] sm:$0xff]  ;;  %v9748_v57 = vmax.f32 %v9742_v19, %v9745_v54  ;;  %v9369_v30 = vadd.f32 %v22511_v29, %v8698_v61  ;;  %v8697_v58 = vadd.f32 %v8614_v20, %v8004_v21  ;;  %v9494_v60 = vmax.f32 %v9434_v10, 0.0 }
 0x778   : > { %17142 = vmatmul.mubr.msk.f32.gmra.mxu0 %vm9501_vm6, %v22545_v33  ;;  %17054 = vmatprep.mubr.msk.f32.mxu1 %vm17756_vm1, %v23917_v31  ;;  %v9738_v49 = vmax.f32 %v9732_v46, %v9735_v2  ;;  %v9741_v51 = vld [vmem:[#allocation3 + $0x170] sm:$0xff]  ;;  %9552 = vst.msk [vmem:[#allocation3 + $0x190] sm:$0xff] %vm9501_vm6, %v9491_v0  ;;  %v9433_v38 = vadd.f32 %v22376_v4, %v9366_v43  ;;  %v16899_v39 = vpop.f32.mrf.mxu1  ;;  %v24068_v35 = vld [vmem:[#allocation100_spill] sm:$0xff]  ;;  %v24070_v43 = vld [vmem:[#allocation101_spill] sm:$0xff] }
 0x779   : > { %17144 = vmatprep.mubr.msk.f32.mxu0 %vm17756_vm1, %v23917_v31  ;;  %v9743_v22 = vld [vmem:[#allocation3 + $0x169] sm:$0xff]  ;;  %v9744_v8 = vld [vmem:[#allocation3 + $0x171] sm:$0xff]  ;;  %v9436_v45 = vadd.f32 %v22376_v4, %v9369_v30  ;;  %v9368_v2 = vadd.f32 %v9285_v13, %v8697_v58  ;;  %v8700_v29 = vadd.f32 %v16899_v39, %v8019_v32  ;;  %9555 = vst.msk [vmem:[#allocation3 + $0x1a8] sm:$0xff] %vm9501_vm6, %v9494_v60 }
 0x77a   : > { %v9746_v63 = vmax.f32 %v9740_v50, %v9743_v22  ;;  %v9747_v12 = vmax.f32 %v9741_v51, %v9744_v8  ;;  %v22570_v3 = vld [vmem:[#allocation4 + $0x8a] sm:$0xff]  ;;  %v9493_v21 = vmax.f32 %v9433_v38, 0.0  ;;  %v8624_v52 = vpop.f32.mrf.mxu1  ;;  %v9751_v13 = vmax.f32 %v9739_v5, %v9748_v57  ;;  %v22588_v61 = vld [vmem:[#allocation4 + $0x92] sm:$0xff]  ;;  %v22607_v51 = vld [vmem:[#allocation4 + $0xa0] sm:$0xff] }
 0x77b   : > { %v22572_v14 = vld [vmem:[#allocation4 + $0x90] sm:$0xff]  ;;  %17055 = vmatmul.mubr.msk.f32.gmra.mxu1 %vm9501_vm6, %v22570_v3  ;;  %v8029_v18 = vadd.f32 %v24068_v35, %v24067_v41  ;;  %v9496_v19 = vmax.f32 %v9436_v45, 0.0  ;;  %v9435_v54 = vadd.f32 %v22376_v4, %v9368_v2  ;;  %v9371_v32 = vadd.f32 %v16993_v62, %v8700_v29  ;;  %v22590_v46 = vld [vmem:[#allocation4 + $0x98] sm:$0xff]  ;;  %v9758_v60 = vld [vmem:[#allocation3 + $0x181] sm:$0xff] }
 0x77c   : > { %17145 = vmatmul.mubr.msk.f32.gmra.mxu0 %vm9501_vm6, %v22572_v14  ;;  %17057 = vmatprep.mubr.msk.f32.mxu1 %vm17756_vm1, %v23917_v31  ;;  %v9749_v55 = vmax.f32 %v9737_v36, %v9746_v63  ;;  %v9750_v24 = vmax.f32 %v9738_v49, %v9747_v12  ;;  %9554 = vst.msk [vmem:[#allocation3 + $0x1a0] sm:$0xff] %vm9501_vm6, %v9493_v21  ;;  %v16902_v50 = vpop.f32.mrf.mxu1  ;;  %v16996_v36 = vpop.f32.mrf.mxu0  ;;  %v24069_v10 = vld [vmem:[#allocation67_spill] sm:$0xff]  ;;  %v22610_v63 = vld [vmem:[#allocation4 + $0x9a] sm:$0xff] }
 0x77d   : > { %17147 = vmatprep.mubr.msk.f32.mxu0 %vm17756_vm1, %v23917_v31  ;;  %v8699_v0 = vadd.f32 %v8624_v52, %v8014_v59  ;;  %9754 = vst.msk [vmem:[#allocation4 + $0xb8] sm:$0xf] %vm9585_vm7, %v9751_v13  ;;  %v9495_v57 = vmax.f32 %v9435_v54, 0.0  ;;  %v9438_v62 = vadd.f32 %v22376_v4, %v9371_v32  ;;  %v8702_v59 = vadd.f32 %v16902_v50, %v8029_v18  ;;  %v9755_v12 = vld [vmem:[#allocation3 + $0x180] sm:$0xff]  ;;  %v9756_v52 = vld [vmem:[#allocation3 + $0x188] sm:$0xff] }
 0x77e   : > { %9752 = vst.msk [vmem:[#allocation4 + $0xa8] sm:$0xff] %vm9501_vm6, %v9749_v55  ;;  %9753 = vst.msk [vmem:[#allocation4 + $0xb0] sm:$0xff] %vm9501_vm6, %v9750_v24  ;;  %v8024_v20 = vadd.f32 %v24070_v43, %v24069_v10  ;;  %v8634_v5 = vpop.f32.mrf.mxu1  ;;  %v9305_v45 = vpop.f32.mrf.mxu0  ;;  %v9764_v55 = vld [vmem:[#allocation3 + $0x198] sm:$0xff]  ;;  %v9761_v18 = vmax.f32 %v9755_v12, %v9758_v60 }
 0x77f   : > { %9557 = vst.msk [vmem:[#allocation3 + $0x1b8] sm:$0xff] %vm9501_vm6, %v9496_v19  ;;  %17058 = vmatmul.mubr.msk.f32.gmra.mxu1 %vm9501_vm6, %v22588_v61  ;;  %v9370_v49 = vadd.f32 %v9295_v9, %v8699_v0  ;;  %v9757_v22 = vld [vmem:[#allocation3 + $0x190] sm:$0xf]  ;;  %9556 = vst.msk [vmem:[#allocation3 + $0x1b0] sm:$0xff] %vm9501_vm6, %v9495_v57  ;;  %v9498_v30 = vmax.f32 %v9438_v62, 0.0  ;;  %v9373_v58 = vadd.f32 %v16996_v36, %v8702_v59 }
 0x780   : > { %17148 = vmatmul.mubr.msk.f32.gmra.mxu0 %vm9501_vm6, %v22590_v46  ;;  %17060 = vmatprep.mubr.msk.f32.mxu1 %vm17756_vm1, %v23917_v31  ;;  %v9760_v8 = vld [vmem:[#allocation3 + $0x191] sm:$0xf]  ;;  %v9759_v38 = vld [vmem:[#allocation3 + $0x189] sm:$0xff]  ;;  %v8701_v9 = vadd.f32 %v8634_v5, %v8024_v20 }
 0x781   : > { %17150 = vmatprep.mubr.msk.f32.mxu0 %vm17756_vm1, %v23917_v31  ;;  %v9437_v39 = vadd.f32 %v22376_v4, %v9370_v49  ;;  %v9766_v2 = vld [vmem:[#allocation3 + $0x1a8] sm:$0xf]  ;;  %9559 = vst.msk [vmem:[#allocation3 + $0x1c8] sm:$0xff] %vm9501_vm6, %v9498_v30  ;;  %v9440_v21 = vadd.f32 %v22376_v4, %v9373_v58  ;;  %v9763_v24 = vmax.f32 %v9757_v22, %v9760_v8 }
 0x782   : > { %v9769_v29 = vld [vmem:[#allocation3 + $0x1a9] sm:$0xf]  ;;  %v9372_v35 = vadd.f32 %v9305_v45, %v8701_v9  ;;  %v9762_v19 = vmax.f32 %v9756_v52, %v9759_v38 }
 0x783   : > { %17061 = vmatmul.mubr.msk.f32.gmra.mxu1 %vm9501_vm6, %v22610_v63  ;;  %v9772_v13 = vmax.f32 %v9766_v2, %v9769_v29  ;;  %v9497_v41 = vmax.f32 %v9437_v39, 0.0  ;;  %v9765_v54 = vld [vmem:[#allocation3 + $0x1a0] sm:$0xff]  ;;  %v9500_v50 = vmax.f32 %v9440_v21, 0.0 }
 0x784   : > { %17151 = vmatmul.mubr.msk.f32.gmra.mxu0 %vm9501_vm6, %v22607_v51  ;;  %17063 = vmatprep.mubr.msk.f32.mxu1 %vm17756_vm1, %v23917_v31  ;;  %v9767_v32 = vld [vmem:[#allocation3 + $0x199] sm:$0xff]  ;;  %v9768_v0 = vld [vmem:[#allocation3 + $0x1a1] sm:$0xff]  ;;  %v9439_v62 = vadd.f32 %v22376_v4, %v9372_v35 }
 0x785   : > { %17153 = vmatprep.mubr.msk.f32.mxu0 %vm17756_vm1, %v23917_v31  ;;  %v9770_v36 = vmax.f32 %v9764_v55, %v9767_v32  ;;  %v9771_v57 = vmax.f32 %v9765_v54, %v9768_v0  ;;  %9558 = vst.msk [vmem:[#allocation3 + $0x1c0] sm:$0xff] %vm9501_vm6, %v9497_v41  ;;  %v22625_v59 = vld [vmem:[#allocation4 + $0xa2] sm:$0xff]  ;;  %v9775_v43 = vmax.f32 %v9763_v24, %v9772_v13  ;;  %9561 = vst.msk [vmem:[#allocation3 + $0x1d8] sm:$0xff] %vm9501_vm6, %v9500_v50  ;;  %v22640_v5 = vld [vmem:[#allocation4 + $0xaa] sm:$0xff] }
 0x786   : > { %v22627_v10 = vld [vmem:[#allocation4 + $0xa8] sm:$0xff]  ;;  %v9499_v20 = vmax.f32 %v9439_v62, 0.0  ;;  %v22642_v22 = vld [vmem:[#allocation4 + $0xb0] sm:$0xff]  ;;  %v22656_v38 = vld [vmem:[#allocation4 + $0xb8] sm:$0xff] }
 0x787   : > { %17064 = vmatmul.mubr.msk.f32.gmra.mxu1 %vm9501_vm6, %v22625_v59  ;;  %v9773_v4 = vmax.f32 %v9761_v18, %v9770_v36  ;;  %v9774_v49 = vmax.f32 %v9762_v19, %v9771_v57  ;;  %9778 = vst.msk [vmem:[#allocation4 + $0xd0] sm:$0xf] %vm9585_vm7, %v9775_v43  ;;  %v22654_v58 = vld [vmem:[#allocation4 + $0xb2] sm:$0xff] }
 0x788   : > { %17154 = vmatmul.mubr.msk.f32.gmra.mxu0 %vm9501_vm6, %v22627_v10  ;;  %17066 = vmatprep.mubr.msk.f32.mxu1 %vm17756_vm1, %v23917_v31  ;;  %9560 = vst.msk [vmem:[#allocation3 + $0x1d0] sm:$0xff] %vm9501_vm6, %v9499_v20  ;;  %v9779_v39 = vld [vmem:[#allocation3 + $0x1b0] sm:$0xff]  ;;  %v9780_v21 = vld [vmem:[#allocation3 + $0x1b8] sm:$0xff]  ;;  %v9788_v52 = vld [vmem:[#allocation3 + $0x1c8] sm:$0xff] }
 0x789   : > { %17156 = vmatprep.mubr.msk.f32.mxu0 %vm17756_vm1, %v23917_v31  ;;  %9776 = vst.msk [vmem:[#allocation4 + $0xc0] sm:$0xff] %vm9501_vm6, %v9773_v4  ;;  %9777 = vst.msk [vmem:[#allocation4 + $0xc8] sm:$0xff] %vm9501_vm6, %v9774_v49  ;;  %v9782_v9 = vld [vmem:[#allocation3 + $0x1b1] sm:$0xff]  ;;  %v11229_v49 = vld [vmem:[%s23773_s7 + $0x8] sm:$0x3] }
 0x78a   : > { %v9785_v35 = vmax.f32 %v9779_v39, %v9782_v9  ;;  %v17689_v39 = vld [vmem:[#allocation4 + $0x20] sm:$0xff]  ;;  %v17690_v9 = vld [vmem:[#allocation4 + $0x2a] sm:$0xff] }
 0x78b   : > { %17067 = vmatmul.mubr.msk.f32.gmra.mxu1 %vm9501_vm6, %v22640_v5 }
 0x78c   : > { %17157 = vmatmul.mubr.msk.f32.gmra.mxu0 %vm9501_vm6, %v22642_v22  ;;  %17069 = vmatprep.mubr.msk.f32.mxu1 %vm17756_vm1, %v23917_v31  ;;  %v9781_v8 = vld [vmem:[#allocation3 + $0x1c0] sm:$0xf]  ;;  %v9790_v12 = vld [vmem:[#allocation3 + $0x1d8] sm:$0xf] }
 0x78d   : > { %17159 = vmatprep.mubr.msk.f32.mxu0 %vm17756_vm1, %v23917_v31  ;;  %v9784_v30 = vld [vmem:[#allocation3 + $0x1c1] sm:$0xf]  ;;  %v9793_v60 = vld [vmem:[#allocation3 + $0x1d9] sm:$0xf] }
 0x78e   : > { %v9783_v45 = vld [vmem:[#allocation3 + $0x1b9] sm:$0xff]  ;;  %v9787_v2 = vmax.f32 %v9781_v8, %v9784_v30  ;;  %v9796_v29 = vmax.f32 %v9790_v12, %v9793_v60  ;;  %v22695_v20 = vld [vmem:[#allocation4 + $0xd0] sm:$0xff]  ;;  %v17688_v60 = vld [vmem:[#allocation4 + $0x22] sm:$0xff] }
 0x78f   : > { %17070 = vmatmul.mubr.msk.f32.gmra.mxu1 %vm9501_vm6, %v22654_v58  ;;  %v9789_v55 = vld [vmem:[#allocation3 + $0x1d0] sm:$0xff]  ;;  %v9786_v18 = vmax.f32 %v9780_v21, %v9783_v45  ;;  %v17687_v8 = vld [vmem:[#allocation4 + $0x1a] sm:$0xff]  ;;  %v13748_v12 = vld [vmem:[%s23773_s7 + $0x18] sm:$0x3] }
 0x790   : > { %17160 = vmatmul.mubr.msk.f32.gmra.mxu0 %vm9501_vm6, %v22656_v38  ;;  %17072 = vmatprep.mubr.msk.f32.mxu1 %vm17756_vm1, %v23917_v31  ;;  %v9791_v24 = vld [vmem:[#allocation3 + $0x1c9] sm:$0xff]  ;;  %v9792_v13 = vld [vmem:[#allocation3 + $0x1d1] sm:$0xff]  ;;  %v9799_v41 = vmax.f32 %v9787_v2, %v9796_v29  ;;  %v22666_v32 = vld [vmem:[#allocation4 + $0xba] sm:$0xff] }
 0x791   : > { %17162 = vmatprep.mubr.msk.f32.mxu0 %vm17756_vm1, %v23917_v31  ;;  %v9794_v19 = vmax.f32 %v9788_v52, %v9791_v24  ;;  %v9795_v54 = vmax.f32 %v9789_v55, %v9792_v13  ;;  %v22668_v0 = vld [vmem:[#allocation4 + $0xc0] sm:$0xff]  ;;  %v22681_v62 = vld [vmem:[#allocation4 + $0xc8] sm:$0xff]  ;;  %v10433_v30 = vld [vmem:[#allocation4 + $0x18] sm:$0xff] }
 0x792   : > { %9802 = vst.msk [vmem:[#allocation4 + $0xe8] sm:$0xf] %vm9585_vm7, %v9799_v41  ;;  %v22679_v57 = vld [vmem:[#allocation4 + $0xc2] sm:$0xff]  ;;  %v22693_v43 = vld [vmem:[#allocation4 + $0xca] sm:$0xff] }
 0x793   : > { %17073 = vmatmul.mubr.msk.f32.gmra.mxu1 %vm9501_vm6, %v22666_v32  ;;  %v9797_v50 = vmax.f32 %v9785_v35, %v9794_v19  ;;  %v9798_v36 = vmax.f32 %v9786_v18, %v9795_v54  ;;  %v17691_v45 = vld [vmem:[#allocation4 + $0x28] sm:$0xff]  ;;  %v17692_v2 = vld [vmem:[#allocation4 + $0x30] sm:$0xff] }
 0x794   : > { %17163 = vmatmul.mubr.msk.f32.gmra.mxu0 %vm9501_vm6, %v22668_v0  ;;  %17075 = vmatprep.mubr.msk.f32.mxu1 %vm17756_vm1, %v23917_v31 }
 0x795   : > { %17165 = vmatprep.mubr.msk.f32.mxu0 %vm17756_vm1, %v23917_v31  ;;  %9800 = vst.msk [vmem:[#allocation4 + $0xd8] sm:$0xff] %vm9501_vm6, %v9797_v50  ;;  %9801 = vst.msk [vmem:[#allocation4 + $0xe0] sm:$0xff] %vm9501_vm6, %v9798_v36 }
 0x797   : > { %17076 = vmatmul.mubr.msk.f32.gmra.mxu1 %vm9501_vm6, %v22679_v57 }
 0x798   : > { %17166 = vmatmul.mubr.msk.f32.gmra.mxu0 %vm9501_vm6, %v22681_v62  ;;  %17078 = vmatprep.mubr.msk.f32.mxu1 %vm17756_vm1, %v23917_v31 }
 0x799   : > { %17168 = vmatprep.mubr.msk.f32.mxu0 %vm17756_vm1, %v23917_v31  ;;  %v10459_v29 = vld [vmem:[#allocation4 + $0xe8] sm:$0xff] }
 0x79b   : > { %17079 = vmatmul.mubr.msk.f32.gmra.mxu1 %vm9501_vm6, %v22693_v43 }
 0x79c   : > { %17169 = vmatmul.mubr.msk.f32.gmra.mxu0 %vm9501_vm6, %v22695_v20  ;;  %17081 = vmatprep.mubr.msk.f32.mxu1 %vm17756_vm1, %v23917_v31  ;;  %v22705_v4 = vld [vmem:[#allocation4 + $0xd2] sm:$0xff] }
 0x79d   : > { %17264 = vmatprep.mubr.msk.f32.mxu0 %vm17756_vm1, %v23917_v31 }
 0x79f   : > { %17082 = vmatmul.mubr.msk.f32.gmra.mxu1 %vm9501_vm6, %v22705_v4 }
 0x7a0   : > { %17265 = vmatmul.mubr.msk.f32.vlgmr.msra.gmra.mxu0 %vm9501_vm6, %v17687_v8  ;;  %17177 = vmatprep.mubr.msk.f32.mxu1 %vm17756_vm1, %v23917_v31 }
 0x7a1   : > { %17267 = vmatprep.mubr.msk.f32.mxu0 %vm17756_vm1, %v23917_v31  ;;  %17419 = vmatpush3.msk.msra.mxu0 %vm7115_vm3, %v11229_v49 }
 0x7a2   : > { %17420 = vmatprep.subr.mxu0 %v23917_v31 }
 0x7a3   : > { %17178 = vmatmul.mubr.msk.f32.vlgmr.msra.gmra.mxu1 %vm9501_vm6, %v10433_v30 }
 0x7a4   : > { %17268 = vmatmul.mubr.msk.f32.gmra.mxu0 %vm9501_vm6, %v17688_v60  ;;  %17180 = vmatprep.mubr.msk.f32.mxu1 %vm17756_vm1, %v23917_v31 }
 0x7a5   : > { %17270 = vmatprep.mubr.msk.f32.mxu0 %vm17756_vm1, %v23917_v31  ;;  %17346 = vmatpush3.msk.msra.mxu1 %vm7115_vm3, %v13748_v12 }
 0x7a6   : > { %17347 = vmatprep.subr.mxu1 %v23917_v31 }
 0x7a7   : > { %17181 = vmatmul.mubr.msk.f32.gmra.mxu1 %vm9501_vm6, %v17689_v39 }
 0x7a8   : > { %17271 = vmatmul.mubr.msk.f32.gmra.mxu0 %vm9501_vm6, %v17690_v9  ;;  %17183 = vmatprep.mubr.msk.f32.mxu1 %vm17756_vm1, %v23917_v31 }
 0x7a9   : > { %17273 = vmatprep.mubr.msk.f32.mxu0 %vm17756_vm1, %v23917_v31 }
 0x7ab   : > { %17184 = vmatmul.mubr.msk.f32.gmra.mxu1 %vm9501_vm6, %v17691_v45 }
 0x7ac   : > { %17274 = vmatmul.mubr.msk.f32.gmra.mxu0 %vm9501_vm6, %v22265_v34  ;;  %17186 = vmatprep.mubr.msk.f32.mxu1 %vm17756_vm1, %v23917_v31  ;;  %v13747_v34 = vld [vmem:[%s23773_s7 + $0x10] sm:$0xff] }
 0x7ad   : > { %17276 = vmatprep.mubr.msk.f32.mxu0 %vm17756_vm1, %v23917_v31  ;;  %17348 = vmatpush3.msra.mxu1 %v13747_v34 }
 0x7ae   : > { %17491 = vmatprep.subr.mxu1 %v23917_v31 }
 0x7af   : > { %17187 = vmatmul.mubr.msk.f32.gmra.mxu1 %vm9501_vm6, %v17692_v2 }
 0x7b0   : > { %17277 = vmatmul.mubr.msk.f32.gmra.mxu0 %vm9501_vm6, %v22297_v7  ;;  %17189 = vmatprep.mubr.msk.f32.mxu1 %vm17756_vm1, %v23917_v31 }
 0x7b1   : > { %17279 = vmatprep.mubr.msk.f32.mxu0 %vm17756_vm1, %v23917_v31 }
 0x7b3   : > { %17190 = vmatmul.mubr.msk.f32.gmra.mxu1 %vm9501_vm6, %v22267_v15  ;;  %v11228_v15 = vld [vmem:[%s23773_s7] sm:$0xff] }
 0x7b4   : > { %17280 = vmatmul.mubr.msk.f32.gmra.mxu0 %vm9501_vm6, %v22318_v37  ;;  %17192 = vmatprep.mubr.msk.f32.mxu1 %vm17756_vm1, %v23917_v31 }
 0x7b5   : > { %17282 = vmatprep.mubr.msk.f32.mxu0 %vm17756_vm1, %v23917_v31  ;;  %17421 = vmatpush3.msra.mxu0 %v11228_v15 }
 0x7b6   : > { %17564 = vmatprep.subr.mxu0 %v23917_v31 }
 0x7b7   : > { %17193 = vmatmul.mubr.msk.f32.gmra.mxu1 %vm9501_vm6, %v22286_v48 }
 0x7b8   : > { %17283 = vmatmul.mubr.msk.f32.gmra.mxu0 %vm9501_vm6, %v22347_v25  ;;  %17195 = vmatprep.mubr.msk.f32.mxu1 %vm17756_vm1, %v23917_v31 }
 0x7b9   : > { %17285 = vmatprep.mubr.msk.f32.mxu0 %vm17756_vm1, %v23917_v31 }
 0x7bb   : > { %17196 = vmatmul.mubr.msk.f32.gmra.mxu1 %vm9501_vm6, %v22320_v53 }
 0x7bc   : > { %17286 = vmatmul.mubr.msk.f32.gmra.mxu0 %vm9501_vm6, %v22388_v40  ;;  %17198 = vmatprep.mubr.msk.f32.mxu1 %vm17756_vm1, %v23917_v31 }
 0x7bd   : > { %17288 = vmatprep.mubr.msk.f32.mxu0 %vm17756_vm1, %v23917_v31 }
 0x7bf   : > { %17199 = vmatmul.mubr.msk.f32.gmra.mxu1 %vm9501_vm6, %v22349_v17 }
 0x7c0   : > { %17289 = vmatmul.mubr.msk.f32.gmra.mxu0 %vm9501_vm6, %v22405_v42  ;;  %17201 = vmatprep.mubr.msk.f32.mxu1 %vm17756_vm1, %v23917_v31 }
 0x7c1   : > { %17291 = vmatprep.mubr.msk.f32.mxu0 %vm17756_vm1, %v23917_v31 }
 0x7c3   : > { %17202 = vmatmul.mubr.msk.f32.gmra.mxu1 %vm9501_vm6, %v22368_v1 }
 0x7c4   : > { %17292 = vmatmul.mubr.msk.f32.gmra.mxu0 %vm9501_vm6, %v22435_v11  ;;  %17204 = vmatprep.mubr.msk.f32.mxu1 %vm17756_vm1, %v23917_v31 }
 0x7c5   : > { %17294 = vmatprep.mubr.msk.f32.mxu0 %vm17756_vm1, %v23917_v31 }
 0x7c7   : > { %17205 = vmatmul.mubr.msk.f32.gmra.mxu1 %vm9501_vm6, %v22407_v56 }
 0x7c8   : > { %17295 = vmatmul.mubr.msk.f32.gmra.mxu0 %vm9501_vm6, %v22471_v16  ;;  %17207 = vmatprep.mubr.msk.f32.mxu1 %vm17756_vm1, %v23917_v31 }
 0x7c9   : > { %17297 = vmatprep.mubr.msk.f32.mxu0 %vm17756_vm1, %v23917_v31 }
 0x7cb   : > { %17208 = vmatmul.mubr.msk.f32.gmra.mxu1 %vm9501_vm6, %v22437_v28 }
 0x7cc   : > { %17298 = vmatmul.mubr.msk.f32.gmra.mxu0 %vm9501_vm6, %v22490_v47  ;;  %17210 = vmatprep.mubr.msk.f32.mxu1 %vm17756_vm1, %v23917_v31  ;;  %v10799_v47 = vld [vmem:[#allocation4 + $0xda] sm:$0xff] }
 0x7cd   : > { %17300 = vmatprep.mubr.msk.f32.mxu0 %vm17756_vm1, %v23917_v31 }
 0x7cf   : > { %17211 = vmatmul.mubr.msk.f32.gmra.mxu1 %vm9501_vm6, %v22463_v26 }
 0x7d0   : > { %17301 = vmatmul.mubr.msk.f32.gmra.mxu0 %vm9501_vm6, %v22516_v27  ;;  %17213 = vmatprep.mubr.msk.f32.mxu1 %vm17756_vm1, %v23917_v31 }
 0x7d1   : > { %17303 = vmatprep.mubr.msk.f32.mxu0 %vm17756_vm1, %v23917_v31 }
 0x7d3   : > { %17214 = vmatmul.mubr.msk.f32.gmra.mxu1 %vm9501_vm6, %v22492_v6 }
 0x7d4   : > { %17304 = vmatmul.mubr.msk.f32.gmra.mxu0 %vm9501_vm6, %v22543_v44  ;;  %17216 = vmatprep.mubr.msk.f32.mxu1 %vm17756_vm1, %v23917_v31 }
 0x7d5   : > { %17306 = vmatprep.mubr.msk.f32.mxu0 %vm17756_vm1, %v23917_v31 }
 0x7d7   : > { %17217 = vmatmul.mubr.msk.f32.gmra.mxu1 %vm9501_vm6, %v22518_v23 }
 0x7d8   : > { %17307 = vmatmul.mubr.msk.f32.gmra.mxu0 %vm9501_vm6, %v22570_v3  ;;  %17219 = vmatprep.mubr.msk.f32.mxu1 %vm17756_vm1, %v23917_v31  ;;  %v10457_v3 = vld [vmem:[#allocation4 + $0xd8] sm:$0xff] }
 0x7d9   : > { %17309 = vmatprep.mubr.msk.f32.mxu0 %vm17756_vm1, %v23917_v31 }
 0x7db   : > { %17220 = vmatmul.mubr.msk.f32.gmra.mxu1 %vm9501_vm6, %v22545_v33 }
 0x7dc   : > { %17310 = vmatmul.mubr.msk.f32.gmra.mxu0 %vm9501_vm6, %v22588_v61  ;;  %17222 = vmatprep.mubr.msk.f32.mxu1 %vm17756_vm1, %v23917_v31 }
 0x7dd   : > { %17312 = vmatprep.mubr.msk.f32.mxu0 %vm17756_vm1, %v23917_v31 }
 0x7df   : > { %17223 = vmatmul.mubr.msk.f32.gmra.mxu1 %vm9501_vm6, %v22572_v14  ;;  %v10800_v14 = vld [vmem:[#allocation4 + $0xe2] sm:$0xff] }
 0x7e0   : > { %17313 = vmatmul.mubr.msk.f32.gmra.mxu0 %vm9501_vm6, %v22610_v63  ;;  %17225 = vmatprep.mubr.msk.f32.mxu1 %vm17756_vm1, %v23917_v31 }
 0x7e1   : > { %17315 = vmatprep.mubr.msk.f32.mxu0 %vm17756_vm1, %v23917_v31 }
 0x7e3   : > { %17226 = vmatmul.mubr.msk.f32.gmra.mxu1 %vm9501_vm6, %v22590_v46 }
 0x7e4   : > { %17316 = vmatmul.mubr.msk.f32.gmra.mxu0 %vm9501_vm6, %v22625_v59  ;;  %17228 = vmatprep.mubr.msk.f32.mxu1 %vm17756_vm1, %v23917_v31 }
 0x7e5   : > { %17318 = vmatprep.mubr.msk.f32.mxu0 %vm17756_vm1, %v23917_v31 }
 0x7e7   : > { %17229 = vmatmul.mubr.msk.f32.gmra.mxu1 %vm9501_vm6, %v22607_v51 }
 0x7e8   : > { %17319 = vmatmul.mubr.msk.f32.gmra.mxu0 %vm9501_vm6, %v22640_v5  ;;  %17231 = vmatprep.mubr.msk.f32.mxu1 %vm17756_vm1, %v23917_v31  ;;  %v10801_v5 = vld [vmem:[#allocation4 + $0xea] sm:$0xff] }
 0x7e9   : > { %17321 = vmatprep.mubr.msk.f32.mxu0 %vm17756_vm1, %v23917_v31 }
 0x7eb   : > { %17232 = vmatmul.mubr.msk.f32.gmra.mxu1 %vm9501_vm6, %v22627_v10  ;;  %v10458_v10 = vld [vmem:[#allocation4 + $0xe0] sm:$0xff] }
 0x7ec   : > { %17322 = vmatmul.mubr.msk.f32.gmra.mxu0 %vm9501_vm6, %v22654_v58  ;;  %17234 = vmatprep.mubr.msk.f32.mxu1 %vm17756_vm1, %v23917_v31 }
 0x7ed   : > { %17324 = vmatprep.mubr.msk.f32.mxu0 %vm17756_vm1, %v23917_v31 }
 0x7ef   : > { %17235 = vmatmul.mubr.msk.f32.gmra.mxu1 %vm9501_vm6, %v22642_v22 }
 0x7f0   : > { %17325 = vmatmul.mubr.msk.f32.gmra.mxu0 %vm9501_vm6, %v22666_v32  ;;  %17237 = vmatprep.mubr.msk.f32.mxu1 %vm17756_vm1, %v23917_v31  ;;  %v10015_v48 = vpop.f32.mrf.mxu1 }
 0x7f1   : > { %17327 = vmatprep.mubr.msk.f32.mxu0 %vm17756_vm1, %v23917_v31  ;;  %v10299_v7 = vpop.f32.mrf.mxu0 }
 0x7f2   : > { %v22886_v37 = vadd.f32 %v10299_v7, %v10015_v48  ;;  %v17005_v53 = vpop.f32.mrf.mxu1 }
 0x7f3   : > { %17238 = vmatmul.mubr.msk.f32.gmra.mxu1 %vm9501_vm6, %v22656_v38  ;;  %v17092_v25 = vpop.f32.mrf.mxu0 }
 0x7f4   : > { %17328 = vmatmul.mubr.msk.f32.gmra.mxu0 %vm9501_vm6, %v22679_v57  ;;  %17240 = vmatprep.mubr.msk.f32.mxu1 %vm17756_vm1, %v23917_v31  ;;  %v10020_v17 = vpop.f32.mrf.mxu1 }
 0x7f5   : > { %17330 = vmatprep.mubr.msk.f32.mxu0 %vm17756_vm1, %v23917_v31  ;;  %v10304_v1 = vpop.f32.mrf.mxu0 }
 0x7f6   : > { %v22896_v40 = vadd.f32 %v10304_v1, %v10020_v17  ;;  %v17008_v42 = vpop.f32.mrf.mxu1 }
 0x7f7   : > { %17241 = vmatmul.mubr.msk.f32.gmra.mxu1 %vm9501_vm6, %v22668_v0  ;;  %v17095_v56 = vpop.f32.mrf.mxu0 }
 0x7f8   : > { %17331 = vmatmul.mubr.msk.f32.gmra.mxu0 %vm9501_vm6, %v22693_v43  ;;  %17243 = vmatprep.mubr.msk.f32.mxu1 %vm17756_vm1, %v23917_v31 }
 0x7f9   : > { %17333 = vmatprep.mubr.msk.f32.mxu0 %vm17756_vm1, %v23917_v31  ;;  %v10309_v11 = vpop.f32.mrf.mxu0 }
 0x7fb   : > { %17244 = vmatmul.mubr.msk.f32.gmra.mxu1 %vm9501_vm6, %v22681_v62  ;;  %v17098_v28 = vpop.f32.mrf.mxu0 }
 0x7fc   : > { %17334 = vmatmul.mubr.msk.f32.gmra.mxu0 %vm9501_vm6, %v22705_v4  ;;  %17246 = vmatprep.mubr.msk.f32.mxu1 %vm17756_vm1, %v23917_v31 }
 0x7fd   : > { %17336 = vmatprep.mubr.msk.f32.mxu0 %vm17756_vm1, %v23917_v31  ;;  %v10025_v26 = vpop.f32.mrf.mxu1 }
 0x7fe   : > { %v10314_v16 = vpop.f32.mrf.mxu0  ;;  %v22914_v6 = vadd.f32 %v10309_v11, %v10025_v26 }
 0x7ff   : > { %17247 = vmatmul.mubr.msk.f32.gmra.mxu1 %vm9501_vm6, %v22695_v20  ;;  %v17011_v27 = vpop.f32.mrf.mxu1 }
 0x800   : > { %17337 = vmatmul.mubr.msk.f32.gmra.mxu0 %vm9501_vm6, %v10799_v47  ;;  %v17101_v23 = vpop.f32.mrf.mxu0  ;;  %17249 = vmatprep.mubr.msk.f32.mxu1 %vm17756_vm1, %v23917_v31 }
 0x801   : > { %17339 = vmatprep.mubr.msk.f32.mxu0 %vm17756_vm1, %v23917_v31  ;;  %v10030_v44 = vpop.f32.mrf.mxu1 }
 0x802   : > { %v10319_v33 = vpop.f32.mrf.mxu0  ;;  %v22923_v61 = vadd.f32 %v10314_v16, %v10030_v44 }
 0x803   : > { %17250 = vmatmul.mubr.msk.f32.gmra.mxu1 %vm9501_vm6, %v10457_v3  ;;  %v17014_v46 = vpop.f32.mrf.mxu1 }
 0x804   : > { %17340 = vmatmul.mubr.msk.f32.gmra.mxu0 %vm9501_vm6, %v10800_v14  ;;  %v17104_v51 = vpop.f32.mrf.mxu0  ;;  %17252 = vmatprep.mubr.msk.f32.mxu1 %vm17756_vm1, %v23917_v31 }
 0x805   : > { %17342 = vmatprep.mubr.msk.f32.mxu0 %vm17756_vm1, %v23917_v31  ;;  %v10035_v63 = vpop.f32.mrf.mxu1 }
 0x806   : > { %v10324_v59 = vpop.f32.mrf.mxu0  ;;  %v22931_v22 = vadd.f32 %v10319_v33, %v10035_v63 }
 0x807   : > { %17253 = vmatmul.mubr.msk.f32.gmra.mxu1 %vm9501_vm6, %v10458_v10  ;;  %v17017_v58 = vpop.f32.mrf.mxu1 }
 0x808   : > { %17343 = vmatmul.mubr.msk.f32.gmra.mxu0 %vm9501_vm6, %v10801_v5  ;;  %v17107_v38 = vpop.f32.mrf.mxu0  ;;  %17255 = vmatprep.mubr.msk.f32.mxu1 %vm17756_vm1, %v23917_v31 }
 0x809   : > { %17422 = vmatprep.mubr.msk.f32.mxu0 %vm17756_vm1, %v23917_v31 }
 0x80b   : > { %v10040_v21 = vpop.f32.mrf.mxu1  ;;  %17256 = vmatmul.mubr.msk.f32.gmra.mxu1 %vm9501_vm6, %v10459_v29 }
 0x80c   : > { %v10329_v52 = vpop.f32.mrf.mxu0  ;;  %v22940_v55 = vadd.f32 %v10324_v59, %v10040_v21  ;;  %17349 = vmatprep.mubr.msk.f32.mxu1 %vm17756_vm1, %v23917_v31 }
 0x80d   : > { %v17020_v24 = vpop.f32.mrf.mxu1 }
 0x80e   : > { %v17110_v13 = vpop.f32.mrf.mxu0 }
 0x80f   : > { %v10045_v41 = vpop.f32.mrf.mxu1 }
 0x810   : > { %v10334_v35 = vpop.f32.mrf.mxu0  ;;  %v22944_v18 = vadd.f32 %v10329_v52, %v10045_v41 }
 0x811   : > { %v17023_v19 = vpop.f32.mrf.mxu1 }
 0x812   : > { %v17113_v54 = vpop.f32.mrf.mxu0 }
 0x813   : > { %v10050_v32 = vpop.f32.mrf.mxu1 }
 0x814   : > { %v10339_v0 = vpop.f32.mrf.mxu0  ;;  %v22946_v50 = vadd.f32 %v10334_v35, %v10050_v32 }
 0x815   : > { %v17026_v36 = vpop.f32.mrf.mxu1 }
 0x816   : > { %v17116_v57 = vpop.f32.mrf.mxu0 }
 0x817   : > { %v10055_v62 = vpop.f32.mrf.mxu1 }
 0x818   : > { %v10344_v43 = vpop.f32.mrf.mxu0  ;;  %v22948_v20 = vadd.f32 %v10339_v0, %v10055_v62 }
 0x819   : > { %v17029_v4 = vpop.f32.mrf.mxu1 }
 0x81a   : > { %v17119_v49 = vpop.f32.mrf.mxu0 }
 0x81b   : > { %v10060_v8 = vpop.f32.mrf.mxu1 }
 0x81c   : > { %v10349_v30 = vpop.f32.mrf.mxu0  ;;  %v22950_v12 = vadd.f32 %v10344_v43, %v10060_v8 }
 0x81d   : > { %v17032_v60 = vpop.f32.mrf.mxu1 }
 0x81e   : > { %v17122_v39 = vpop.f32.mrf.mxu0 }
 0x81f   : > { %v10065_v9 = vpop.f32.mrf.mxu1 }
 0x820   : > { %v10354_v45 = vpop.f32.mrf.mxu0  ;;  %v22952_v2 = vadd.f32 %v10349_v30, %v10065_v9 }
 0x821   : > { %v17035_v34 = vpop.f32.mrf.mxu1 }
 0x822   : > { %v17125_v15 = vpop.f32.mrf.mxu0 }
 0x823   : > { %v10070_v48 = vpop.f32.mrf.mxu1 }
 0x824   : > { %v10359_v7 = vpop.f32.mrf.mxu0  ;;  %v22954_v53 = vadd.f32 %v10354_v45, %v10070_v48 }
 0x825   : > { %v17038_v25 = vpop.f32.mrf.mxu1 }
 0x826   : > { %v17128_v17 = vpop.f32.mrf.mxu0 }
 0x827   : > { %v10075_v1 = vpop.f32.mrf.mxu1 }
 0x828   : > { %v10364_v42 = vpop.f32.mrf.mxu0  ;;  %v22956_v56 = vadd.f32 %v10359_v7, %v10075_v1 }
 0x829   : > { %v17041_v11 = vpop.f32.mrf.mxu1 }
 0x82a   : > { %v17131_v28 = vpop.f32.mrf.mxu0 }
 0x82b   : > { %v10080_v26 = vpop.f32.mrf.mxu1 }
 0x82c   : > { %v10369_v16 = vpop.f32.mrf.mxu0  ;;  %v22958_v47 = vadd.f32 %v10364_v42, %v10080_v26 }
 0x82d   : > { %v17044_v27 = vpop.f32.mrf.mxu1 }
 0x82e   : > { %v17134_v23 = vpop.f32.mrf.mxu0 }
 0x82f   : > { %v10085_v44 = vpop.f32.mrf.mxu1 }
 0x830   : > { %v10374_v33 = vpop.f32.mrf.mxu0  ;;  %v22960_v3 = vadd.f32 %v10369_v16, %v10085_v44 }
 0x831   : > { %v17047_v14 = vpop.f32.mrf.mxu1 }
 0x832   : > { %v17137_v46 = vpop.f32.mrf.mxu0 }
 0x833   : > { %v10090_v51 = vpop.f32.mrf.mxu1 }
 0x834   : > { %v10379_v63 = vpop.f32.mrf.mxu0  ;;  %v22962_v59 = vadd.f32 %v10374_v33, %v10090_v51 }
 0x835   : > { %v17050_v10 = vpop.f32.mrf.mxu1 }
 0x836   : > { %v17140_v5 = vpop.f32.mrf.mxu0 }
 0x837   : > { %v10095_v58 = vpop.f32.mrf.mxu1 }
 0x838   : > { %v10384_v38 = vpop.f32.mrf.mxu0  ;;  %v22964_v29 = vadd.f32 %v10379_v63, %v10095_v58 }
 0x839   : > { %v17053_v21 = vpop.f32.mrf.mxu1 }
 0x83a   : > { %v17143_v52 = vpop.f32.mrf.mxu0 }
 0x83b   : > { %v10100_v24 = vpop.f32.mrf.mxu1 }
 0x83c   : > { %v10389_v13 = vpop.f32.mrf.mxu0  ;;  %v22966_v41 = vadd.f32 %v10384_v38, %v10100_v24 }
 0x83d   : > { %v17056_v35 = vpop.f32.mrf.mxu1 }
 0x83e   : > { %v17146_v19 = vpop.f32.mrf.mxu0 }
 0x83f   : > { %v10105_v54 = vpop.f32.mrf.mxu1 }
 0x840   : > { %v10394_v32 = vpop.f32.mrf.mxu0  ;;  %v22968_v0 = vadd.f32 %v10389_v13, %v10105_v54 }
 0x841   : > { %v17059_v36 = vpop.f32.mrf.mxu1 }
 0x842   : > { %v17149_v57 = vpop.f32.mrf.mxu0 }
 0x843   : > { %v10110_v62 = vpop.f32.mrf.mxu1  ;;  %v22990_v57 = vld [vmem:[%s23772_s6] ss:$0 sm:$0xff] }
 0x844   : > { %v10399_v43 = vpop.f32.mrf.mxu0  ;;  %v22970_v4 = vadd.f32 %v10394_v32, %v10110_v62 }
 0x845   : > { %v17062_v49 = vpop.f32.mrf.mxu1 }
 0x846   : > { %v17152_v8 = vpop.f32.mrf.mxu0 }
 0x847   : > { %v10115_v30 = vpop.f32.mrf.mxu1 }
 0x848   : > { %v10404_v60 = vpop.f32.mrf.mxu0  ;;  %v22972_v39 = vadd.f32 %v10399_v43, %v10115_v30 }
 0x849   : > { %v17065_v9 = vpop.f32.mrf.mxu1 }
 0x84a   : > { %v17155_v45 = vpop.f32.mrf.mxu0 }
 0x84b   : > { %v10120_v34 = vpop.f32.mrf.mxu1 }
 0x84c   : > { %v10409_v15 = vpop.f32.mrf.mxu0  ;;  %v22974_v48 = vadd.f32 %v10404_v60, %v10120_v34 }
 0x84d   : > { %v17068_v7 = vpop.f32.mrf.mxu1 }
 0x84e   : > { %v17158_v25 = vpop.f32.mrf.mxu0 }
 0x84f   : > { %v10125_v17 = vpop.f32.mrf.mxu1 }
 0x850   : > { %v10414_v1 = vpop.f32.mrf.mxu0  ;;  %v22976_v42 = vadd.f32 %v10409_v15, %v10125_v17 }
 0x851   : > { %v17071_v11 = vpop.f32.mrf.mxu1 }
 0x852   : > { %v17161_v28 = vpop.f32.mrf.mxu0 }
 0x853   : > { %v10130_v26 = vpop.f32.mrf.mxu1 }
 0x854   : > { %v10419_v16 = vpop.f32.mrf.mxu0  ;;  %v22978_v27 = vadd.f32 %v10414_v1, %v10130_v26 }
 0x855   : > { %v17074_v23 = vpop.f32.mrf.mxu1 }
 0x856   : > { %v17164_v44 = vpop.f32.mrf.mxu0 }
 0x857   : > { %v10135_v33 = vpop.f32.mrf.mxu1 }
 0x858   : > { %v10424_v14 = vpop.f32.mrf.mxu0  ;;  %v22980_v46 = vadd.f32 %v10419_v16, %v10135_v33 }
 0x859   : > { %v17077_v51 = vpop.f32.mrf.mxu1 }
 0x85a   : > { %v17167_v63 = vpop.f32.mrf.mxu0 }
 0x85b   : > { %v10140_v10 = vpop.f32.mrf.mxu1 }
 0x85c   : > { %v10429_v5 = vpop.f32.mrf.mxu0  ;;  %v22982_v58 = vadd.f32 %v10424_v14, %v10140_v10 }
 0x85d   : > { %v17080_v38 = vpop.f32.mrf.mxu1 }
 0x85e   : > { %v17170_v21 = vpop.f32.mrf.mxu0 }
 0x85f   : > { %v10145_v52 = vpop.f32.mrf.mxu1 }
 0x860   : > { %v10956_v24 = vpop.f32.mrf.mxu0  ;;  %v22984_v13 = vadd.f32 %v10429_v5, %v10145_v52 }
 0x861   : > { %v17083_v35 = vpop.f32.mrf.mxu1 }
 0x862   : > { %v17266_v19 = vpop.f32.mrf.mxu0 }
 0x863   : > { %v10614_v54 = vpop.f32.mrf.mxu1 }
 0x864   : > { %v10961_v32 = vpop.f32.mrf.mxu0  ;;  %v10748_v36 = vadd.f32 %v10614_v54, %v22886_v37 }
 0x865   : > { %v17179_v62 = vpop.f32.mrf.mxu1 }
 0x866   : > { %v17269_v43 = vpop.f32.mrf.mxu0  ;;  %v11090_v49 = vadd.f32 %v10956_v24, %v10748_v36  ;;  %v13798_v36 = vld [vmem:[%s23773_s7 + $0x28] sm:$0x3] }
 0x867   : > { %v10619_v8 = vpop.f32.mrf.mxu1 }
 0x868   : > { %v10966_v30 = vpop.f32.mrf.mxu0  ;;  %v11124_v60 = vadd.f32 %v22990_v57, %v11090_v49  ;;  %v10749_v9 = vadd.f32 %v10619_v8, %v22896_v40 }
 0x869   : > { %v17182_v45 = vpop.f32.mrf.mxu1 }
 0x86a   : > { %v17272_v34 = vpop.f32.mrf.mxu0  ;;  %v11151_v15 = vmax.f32 %v11124_v60, 0.0  ;;  %v11091_v7 = vadd.f32 %v10961_v32, %v10749_v9  ;;  %v13797_v60 = vld [vmem:[%s23773_s7 + $0x20] sm:$0xff] }
 0x86b   : > { %v10624_v25 = vpop.f32.mrf.mxu1 }
 0x86c   : > { %v10971_v37 = vpop.f32.mrf.mxu0  ;;  %11178 = vst.msk [vmem:[#allocation5] sm:$0xff] %vm6746_vm4, %v11151_v15  ;;  %v11125_v17 = vadd.f32 %v22990_v57, %v11091_v7  ;;  %v10750_v1 = vadd.f32 %v10624_v25, %v22914_v6  ;;  %v13824_v6 = vld [vmem:[%s23773_s7 + $0x38] sm:$0x3] }
 0x86d   : > { %v17185_v11 = vpop.f32.mrf.mxu1 }
 0x86e   : > { %v17275_v28 = vpop.f32.mrf.mxu0  ;;  %v11152_v26 = vmax.f32 %v11125_v17, 0.0  ;;  %v11092_v16 = vadd.f32 %v10966_v30, %v10750_v1 }
 0x86f   : > { %v10629_v23 = vpop.f32.mrf.mxu1 }
 0x870   : > { %v10976_v44 = vpop.f32.mrf.mxu0  ;;  %11179 = vst.msk [vmem:[#allocation5 + $0x8] sm:$0xff] %vm6746_vm4, %v11152_v26  ;;  %v11126_v40 = vadd.f32 %v22990_v57, %v11092_v16  ;;  %v10751_v33 = vadd.f32 %v10629_v23, %v22923_v61  ;;  %v13823_v61 = vld [vmem:[%s23773_s7 + $0x30] sm:$0xff] }
 0x871   : > { %v17188_v14 = vpop.f32.mrf.mxu1 }
 0x872   : > { %v17278_v51 = vpop.f32.mrf.mxu0  ;;  %v11153_v63 = vmax.f32 %v11126_v40, 0.0  ;;  %v11093_v10 = vadd.f32 %v10971_v37, %v10751_v33 }
 0x873   : > { %v10634_v5 = vpop.f32.mrf.mxu1  ;;  %v11205_v21 = vld [vmem:[#allocation5] sm:$0xff] }
 0x874   : > { %v10981_v38 = vpop.f32.mrf.mxu0  ;;  %11180 = vst.msk [vmem:[#allocation5 + $0x10] sm:$0xff] %vm6746_vm4, %v11153_v63  ;;  %v11127_v52 = vadd.f32 %v22990_v57, %v11093_v10  ;;  %v10752_v24 = vadd.f32 %v10634_v5, %v22931_v22  ;;  %17423 = vmatmul.mubr.msk.f32.vlgmr.msra.gmra.mxu0 %vm6746_vm4, %v11205_v21 }
 0x875   : > { %v17191_v35 = vpop.f32.mrf.mxu1  ;;  %17425 = vmatprep.mubr.msk.f32.mxu0 %vm17756_vm1, %v23917_v31  ;;  %17565 = vmatpush3.msk.msra.mxu0 %vm7115_vm3, %v13824_v6 }
 0x876   : > { %v17281_v19 = vpop.f32.mrf.mxu0  ;;  %v11154_v54 = vmax.f32 %v11127_v52, 0.0  ;;  %v11094_v32 = vadd.f32 %v10976_v44, %v10752_v24  ;;  %17566 = vmatprep.subr.mxu0 %v23917_v31 }
 0x877   : > { %v10639_v22 = vpop.f32.mrf.mxu1  ;;  %v11230_v43 = vld [vmem:[#allocation5 + $0x2] sm:$0xff]  ;;  %17567 = vmatpush3.msra.mxu0 %v13823_v61 }
 0x878   : > { %v10986_v62 = vpop.f32.mrf.mxu0  ;;  %v11206_v49 = vld [vmem:[#allocation5 + $0x8] sm:$0xff]  ;;  %11181 = vst.msk [vmem:[#allocation5 + $0x18] sm:$0xff] %vm6746_vm4, %v11154_v54  ;;  %v11128_v8 = vadd.f32 %v22990_v57, %v11094_v32  ;;  %v10753_v30 = vadd.f32 %v10639_v22, %v22940_v55  ;;  %17350 = vmatmul.mubr.msk.f32.vlgmr.msra.gmra.mxu1 %vm6746_vm4, %v11230_v43  ;;  %12633 = vmatprep.subr.mxu0 %v23917_v31 }
 0x879   : > { %17426 = vmatmul.mubr.msk.f32.gmra.mxu0 %vm6746_vm4, %v11206_v49  ;;  %17492 = vmatpush3.msk.msra.mxu1 %vm7115_vm3, %v13798_v36  ;;  %v17194_v9 = vpop.f32.mrf.mxu1 }
 0x87a   : > { %v17284_v45 = vpop.f32.mrf.mxu0  ;;  %17352 = vmatprep.mubr.msk.f32.mxu1 %vm17756_vm1, %v23917_v31  ;;  %v11155_v34 = vmax.f32 %v11128_v8, 0.0  ;;  %v11095_v15 = vadd.f32 %v10981_v38, %v10753_v30  ;;  %17428 = vmatprep.mubr.msk.f32.mxu0 %vm17756_vm1, %v23917_v31 }
 0x87b   : > { %17493 = vmatprep.subr.mxu1 %v23917_v31  ;;  %v10644_v55 = vpop.f32.mrf.mxu1  ;;  %v11231_v25 = vld [vmem:[#allocation5 + $0xa] sm:$0xff] }
 0x87c   : > { %v10991_v7 = vpop.f32.mrf.mxu0  ;;  %v11207_v37 = vld [vmem:[#allocation5 + $0x10] sm:$0xff]  ;;  %17494 = vmatpush3.msra.mxu1 %v13797_v60  ;;  %11182 = vst.msk [vmem:[#allocation5 + $0x20] sm:$0xff] %vm6746_vm4, %v11155_v34  ;;  %v11129_v17 = vadd.f32 %v22990_v57, %v11095_v15  ;;  %v10754_v1 = vadd.f32 %v10644_v55, %v22944_v18 }
 0x87d   : > { %17353 = vmatmul.mubr.msk.f32.gmra.mxu1 %vm6746_vm4, %v11231_v25  ;;  %17429 = vmatmul.mubr.msk.f32.gmra.mxu0 %vm6746_vm4, %v11207_v37  ;;  %v17197_v11 = vpop.f32.mrf.mxu1 }
 0x87e   : > { %v17287_v28 = vpop.f32.mrf.mxu0  ;;  %17355 = vmatprep.mubr.msk.f32.mxu1 %vm17756_vm1, %v23917_v31  ;;  %17431 = vmatprep.mubr.msk.f32.mxu0 %vm17756_vm1, %v23917_v31  ;;  %v11156_v26 = vmax.f32 %v11129_v17, 0.0  ;;  %v11096_v16 = vadd.f32 %v10986_v62, %v10754_v1 }
 0x87f   : > { %v10649_v23 = vpop.f32.mrf.mxu1  ;;  %v11232_v40 = vld [vmem:[#allocation5 + $0x12] sm:$0xff] }
 0x880   : > { %v10996_v44 = vpop.f32.mrf.mxu0  ;;  %v23041_v33 = vld [vmem:[#allocation5 + $0x18] sm:$0xff]  ;;  %11183 = vst.msk [vmem:[#allocation5 + $0x28] sm:$0xff] %vm6746_vm4, %v11156_v26  ;;  %v11130_v18 = vadd.f32 %v22990_v57, %v11096_v16  ;;  %v10755_v14 = vadd.f32 %v10649_v23, %v22946_v50 }
 0x881   : > { %17356 = vmatmul.mubr.msk.f32.gmra.mxu1 %vm6746_vm4, %v11232_v40  ;;  %17432 = vmatmul.mubr.msk.f32.gmra.mxu0 %vm6746_vm4, %v23041_v33  ;;  %v17200_v51 = vpop.f32.mrf.mxu1 }
 0x882   : > { %v17290_v63 = vpop.f32.mrf.mxu0  ;;  %17358 = vmatprep.mubr.msk.f32.mxu1 %vm17756_vm1, %v23917_v31  ;;  %17434 = vmatprep.mubr.msk.f32.mxu0 %vm17756_vm1, %v23917_v31  ;;  %v11157_v10 = vmax.f32 %v11130_v18, 0.0  ;;  %v11097_v6 = vadd.f32 %v10991_v7, %v10755_v14 }
 0x883   : > { %v10654_v5 = vpop.f32.mrf.mxu1  ;;  %v23053_v21 = vld [vmem:[#allocation5 + $0x1a] sm:$0xff] }
 0x884   : > { %v11001_v38 = vpop.f32.mrf.mxu0  ;;  %v23055_v50 = vld [vmem:[#allocation5 + $0x20] sm:$0xff]  ;;  %11184 = vst.msk [vmem:[#allocation5 + $0x30] sm:$0xff] %vm6746_vm4, %v11157_v10  ;;  %v11131_v52 = vadd.f32 %v22990_v57, %v11097_v6  ;;  %v10756_v24 = vadd.f32 %v10654_v5, %v22948_v20 }
 0x885   : > { %17359 = vmatmul.mubr.msk.f32.gmra.mxu1 %vm6746_vm4, %v23053_v21  ;;  %17435 = vmatmul.mubr.msk.f32.gmra.mxu0 %vm6746_vm4, %v23055_v50  ;;  %v17203_v61 = vpop.f32.mrf.mxu1 }
 0x886   : > { %v17293_v35 = vpop.f32.mrf.mxu0  ;;  %17361 = vmatprep.mubr.msk.f32.mxu1 %vm17756_vm1, %v23917_v31  ;;  %17437 = vmatprep.mubr.msk.f32.mxu0 %vm17756_vm1, %v23917_v31  ;;  %v11158_v19 = vmax.f32 %v11131_v52, 0.0  ;;  %v11098_v54 = vadd.f32 %v10996_v44, %v10756_v24 }
 0x887   : > { %v10659_v32 = vpop.f32.mrf.mxu1  ;;  %v23068_v22 = vld [vmem:[#allocation5 + $0x22] sm:$0xff] }
 0x888   : > { %v11006_v36 = vpop.f32.mrf.mxu0  ;;  %v23070_v20 = vld [vmem:[#allocation5 + $0x28] sm:$0xff]  ;;  %11185 = vst.msk [vmem:[#allocation5 + $0x38] sm:$0xff] %vm6746_vm4, %v11158_v19  ;;  %v11132_v62 = vadd.f32 %v22990_v57, %v11098_v54  ;;  %v10757_v43 = vadd.f32 %v10659_v32, %v22950_v12 }
 0x889   : > { %17362 = vmatmul.mubr.msk.f32.gmra.mxu1 %vm6746_vm4, %v23068_v22  ;;  %17438 = vmatmul.mubr.msk.f32.gmra.mxu0 %vm6746_vm4, %v23070_v20  ;;  %v17206_v49 = vpop.f32.mrf.mxu1 }
 0x88a   : > { %v17296_v8 = vpop.f32.mrf.mxu0  ;;  %17364 = vmatprep.mubr.msk.f32.mxu1 %vm17756_vm1, %v23917_v31  ;;  %17440 = vmatprep.mubr.msk.f32.mxu0 %vm17756_vm1, %v23917_v31  ;;  %v11159_v30 = vmax.f32 %v11132_v62, 0.0  ;;  %v11099_v60 = vadd.f32 %v11001_v38, %v10757_v43 }
 0x88b   : > { %v10664_v9 = vpop.f32.mrf.mxu1  ;;  %v23083_v34 = vld [vmem:[#allocation5 + $0x2a] sm:$0xff] }
 0x88c   : > { %v11011_v45 = vpop.f32.mrf.mxu0  ;;  %v23085_v12 = vld [vmem:[#allocation5 + $0x30] sm:$0xff]  ;;  %11186 = vst.msk [vmem:[#allocation5 + $0x40] sm:$0xff] %vm6746_vm4, %v11159_v30  ;;  %v11133_v15 = vadd.f32 %v22990_v57, %v11099_v60  ;;  %v10758_v55 = vadd.f32 %v10664_v9, %v22952_v2 }
 0x88d   : > { %17365 = vmatmul.mubr.msk.f32.gmra.mxu1 %vm6746_vm4, %v23083_v34  ;;  %17441 = vmatmul.mubr.msk.f32.gmra.mxu0 %vm6746_vm4, %v23085_v12  ;;  %v17209_v7 = vpop.f32.mrf.mxu1 }
 0x88e   : > { %v17299_v25 = vpop.f32.mrf.mxu0  ;;  %17367 = vmatprep.mubr.msk.f32.mxu1 %vm17756_vm1, %v23917_v31  ;;  %17443 = vmatprep.mubr.msk.f32.mxu0 %vm17756_vm1, %v23917_v31  ;;  %v11160_v37 = vmax.f32 %v11133_v15, 0.0  ;;  %v11100_v17 = vadd.f32 %v11006_v36, %v10758_v55 }
 0x88f   : > { %v10669_v1 = vpop.f32.mrf.mxu1  ;;  %v23098_v28 = vld [vmem:[#allocation5 + $0x32] sm:$0xff] }
 0x890   : > { %v11016_v11 = vpop.f32.mrf.mxu0  ;;  %v23100_v2 = vld [vmem:[#allocation5 + $0x38] sm:$0xff]  ;;  %11187 = vst.msk [vmem:[#allocation5 + $0x48] sm:$0xff] %vm6746_vm4, %v11160_v37  ;;  %v11134_v26 = vadd.f32 %v22990_v57, %v11100_v17  ;;  %v10759_v16 = vadd.f32 %v10669_v1, %v22954_v53 }
 0x891   : > { %17368 = vmatmul.mubr.msk.f32.gmra.mxu1 %vm6746_vm4, %v23098_v28  ;;  %17444 = vmatmul.mubr.msk.f32.gmra.mxu0 %vm6746_vm4, %v23100_v2  ;;  %v17212_v23 = vpop.f32.mrf.mxu1 }
 0x892   : > { %v17302_v44 = vpop.f32.mrf.mxu0  ;;  %17370 = vmatprep.mubr.msk.f32.mxu1 %vm17756_vm1, %v23917_v31  ;;  %17446 = vmatprep.mubr.msk.f32.mxu0 %vm17756_vm1, %v23917_v31  ;;  %v11161_v40 = vmax.f32 %v11134_v26, 0.0  ;;  %v11101_v18 = vadd.f32 %v11011_v45, %v10759_v16 }
 0x893   : > { %v10674_v14 = vpop.f32.mrf.mxu1  ;;  %v23113_v63 = vld [vmem:[#allocation5 + $0x3a] sm:$0xff] }
 0x894   : > { %v11021_v51 = vpop.f32.mrf.mxu0  ;;  %v23115_v53 = vld [vmem:[#allocation5 + $0x40] sm:$0xff]  ;;  %11188 = vst.msk [vmem:[#allocation5 + $0x50] sm:$0xff] %vm6746_vm4, %v11161_v40  ;;  %v11135_v10 = vadd.f32 %v22990_v57, %v11101_v18  ;;  %v10760_v6 = vadd.f32 %v10674_v14, %v22956_v56 }
 0x895   : > { %17371 = vmatmul.mubr.msk.f32.gmra.mxu1 %vm6746_vm4, %v23113_v63  ;;  %17447 = vmatmul.mubr.msk.f32.gmra.mxu0 %vm6746_vm4, %v23115_v53  ;;  %v17215_v5 = vpop.f32.mrf.mxu1 }
 0x896   : > { %v17305_v38 = vpop.f32.mrf.mxu0  ;;  %17373 = vmatprep.mubr.msk.f32.mxu1 %vm17756_vm1, %v23917_v31  ;;  %17449 = vmatprep.mubr.msk.f32.mxu0 %vm17756_vm1, %v23917_v31  ;;  %v11162_v52 = vmax.f32 %v11135_v10, 0.0  ;;  %v11102_v24 = vadd.f32 %v11016_v11, %v10760_v6 }
 0x897   : > { %v10679_v61 = vpop.f32.mrf.mxu1  ;;  %v23128_v19 = vld [vmem:[#allocation5 + $0x42] sm:$0xff] }
 0x898   : > { %v11026_v35 = vpop.f32.mrf.mxu0  ;;  %v23130_v56 = vld [vmem:[#allocation5 + $0x48] sm:$0xff]  ;;  %11189 = vst.msk [vmem:[#allocation5 + $0x58] sm:$0xff] %vm6746_vm4, %v11162_v52  ;;  %v11136_v54 = vadd.f32 %v22990_v57, %v11102_v24  ;;  %v10761_v32 = vadd.f32 %v10679_v61, %v22958_v47 }
 0x899   : > { %17374 = vmatmul.mubr.msk.f32.gmra.mxu1 %vm6746_vm4, %v23128_v19  ;;  %17450 = vmatmul.mubr.msk.f32.gmra.mxu0 %vm6746_vm4, %v23130_v56  ;;  %v17218_v36 = vpop.f32.mrf.mxu1 }
 0x89a   : > { %v17308_v62 = vpop.f32.mrf.mxu0  ;;  %17376 = vmatprep.mubr.msk.f32.mxu1 %vm17756_vm1, %v23917_v31  ;;  %17452 = vmatprep.mubr.msk.f32.mxu0 %vm17756_vm1, %v23917_v31  ;;  %v11163_v43 = vmax.f32 %v11136_v54, 0.0  ;;  %v11103_v49 = vadd.f32 %v11021_v51, %v10761_v32 }
 0x89b   : > { %v10684_v8 = vpop.f32.mrf.mxu1  ;;  %v23143_v60 = vld [vmem:[#allocation5 + $0x4a] sm:$0xff] }
 0x89c   : > { %v11031_v30 = vpop.f32.mrf.mxu0  ;;  %v23145_v47 = vld [vmem:[#allocation5 + $0x50] sm:$0xff]  ;;  %11190 = vst.msk [vmem:[#allocation5 + $0x60] sm:$0xff] %vm6746_vm4, %v11163_v43  ;;  %v11137_v9 = vadd.f32 %v22990_v57, %v11103_v49  ;;  %v10762_v45 = vadd.f32 %v10684_v8, %v22960_v3 }
 0x89d   : > { %17377 = vmatmul.mubr.msk.f32.gmra.mxu1 %vm6746_vm4, %v23143_v60  ;;  %17453 = vmatmul.mubr.msk.f32.gmra.mxu0 %vm6746_vm4, %v23145_v47  ;;  %v17221_v15 = vpop.f32.mrf.mxu1 }
 0x89e   : > { %v17311_v55 = vpop.f32.mrf.mxu0  ;;  %17379 = vmatprep.mubr.msk.f32.mxu1 %vm17756_vm1, %v23917_v31  ;;  %17455 = vmatprep.mubr.msk.f32.mxu0 %vm17756_vm1, %v23917_v31  ;;  %v11164_v7 = vmax.f32 %v11137_v9, 0.0  ;;  %v11104_v25 = vadd.f32 %v11026_v35, %v10762_v45 }
 0x89f   : > { %v10689_v37 = vpop.f32.mrf.mxu1  ;;  %v23158_v1 = vld [vmem:[#allocation5 + $0x52] sm:$0xff] }
 0x8a0   : > { %v11036_v17 = vpop.f32.mrf.mxu0  ;;  %v23160_v3 = vld [vmem:[#allocation5 + $0x58] sm:$0xff]  ;;  %11191 = vst.msk [vmem:[#allocation5 + $0x68] sm:$0xff] %vm6746_vm4, %v11164_v7  ;;  %v11138_v11 = vadd.f32 %v22990_v57, %v11104_v25  ;;  %v10763_v26 = vadd.f32 %v10689_v37, %v22962_v59 }
 0x8a1   : > { %17380 = vmatmul.mubr.msk.f32.gmra.mxu1 %vm6746_vm4, %v23158_v1  ;;  %17456 = vmatmul.mubr.msk.f32.gmra.mxu0 %vm6746_vm4, %v23160_v3  ;;  %v17224_v16 = vpop.f32.mrf.mxu1 }
 0x8a2   : > { %v17314_v23 = vpop.f32.mrf.mxu0  ;;  %17382 = vmatprep.mubr.msk.f32.mxu1 %vm17756_vm1, %v23917_v31  ;;  %17458 = vmatprep.mubr.msk.f32.mxu0 %vm17756_vm1, %v23917_v31  ;;  %v11165_v44 = vmax.f32 %v11138_v11, 0.0  ;;  %v11105_v40 = vadd.f32 %v11031_v30, %v10763_v26 }
 0x8a3   : > { %v10694_v18 = vpop.f32.mrf.mxu1  ;;  %v23173_v51 = vld [vmem:[#allocation5 + $0x5a] sm:$0xff] }
 0x8a4   : > { %v11041_v14 = vpop.f32.mrf.mxu0  ;;  %v23175_v59 = vld [vmem:[#allocation5 + $0x60] sm:$0xff]  ;;  %11192 = vst.msk [vmem:[#allocation5 + $0x70] sm:$0xff] %vm6746_vm4, %v11165_v44  ;;  %v11139_v10 = vadd.f32 %v22990_v57, %v11105_v40  ;;  %v10764_v6 = vadd.f32 %v10694_v18, %v22964_v29 }
 0x8a5   : > { %17383 = vmatmul.mubr.msk.f32.gmra.mxu1 %vm6746_vm4, %v23173_v51  ;;  %17459 = vmatmul.mubr.msk.f32.gmra.mxu0 %vm6746_vm4, %v23175_v59  ;;  %v17227_v5 = vpop.f32.mrf.mxu1 }
 0x8a6   : > { %v17317_v38 = vpop.f32.mrf.mxu0  ;;  %17385 = vmatprep.mubr.msk.f32.mxu1 %vm17756_vm1, %v23917_v31  ;;  %17461 = vmatprep.mubr.msk.f32.mxu0 %vm17756_vm1, %v23917_v31  ;;  %v11166_v52 = vmax.f32 %v11139_v10, 0.0  ;;  %v11106_v24 = vadd.f32 %v11036_v17, %v10764_v6 }
 0x8a7   : > { %v10699_v61 = vpop.f32.mrf.mxu1  ;;  %v23188_v54 = vld [vmem:[#allocation5 + $0x62] sm:$0xff] }
 0x8a8   : > { %v11046_v35 = vpop.f32.mrf.mxu0  ;;  %v23190_v29 = vld [vmem:[#allocation5 + $0x68] sm:$0xff]  ;;  %11193 = vst.msk [vmem:[#allocation5 + $0x78] sm:$0xff] %vm6746_vm4, %v11166_v52  ;;  %v11140_v32 = vadd.f32 %v22990_v57, %v11106_v24  ;;  %v10765_v36 = vadd.f32 %v10699_v61, %v22966_v41 }
 0x8a9   : > { %17386 = vmatmul.mubr.msk.f32.gmra.mxu1 %vm6746_vm4, %v23188_v54  ;;  %17462 = vmatmul.mubr.msk.f32.gmra.mxu0 %vm6746_vm4, %v23190_v29  ;;  %v17230_v62 = vpop.f32.mrf.mxu1 }
 0x8aa   : > { %v17320_v43 = vpop.f32.mrf.mxu0  ;;  %17388 = vmatprep.mubr.msk.f32.mxu1 %vm17756_vm1, %v23917_v31  ;;  %17464 = vmatprep.mubr.msk.f32.mxu0 %vm17756_vm1, %v23917_v31  ;;  %v11167_v49 = vmax.f32 %v11140_v32, 0.0  ;;  %v11107_v8 = vadd.f32 %v11041_v14, %v10765_v36 }
 0x8ab   : > { %v10704_v30 = vpop.f32.mrf.mxu1  ;;  %v23203_v45 = vld [vmem:[#allocation5 + $0x6a] sm:$0xff] }
 0x8ac   : > { %v11051_v9 = vpop.f32.mrf.mxu0  ;;  %v23205_v41 = vld [vmem:[#allocation5 + $0x70] sm:$0xff]  ;;  %11194 = vst.msk [vmem:[#allocation5 + $0x80] sm:$0xff] %vm6746_vm4, %v11167_v49  ;;  %v11141_v15 = vadd.f32 %v22990_v57, %v11107_v8  ;;  %v10766_v55 = vadd.f32 %v10704_v30, %v22968_v0 }
 0x8ad   : > { %17389 = vmatmul.mubr.msk.f32.gmra.mxu1 %vm6746_vm4, %v23203_v45  ;;  %17465 = vmatmul.mubr.msk.f32.gmra.mxu0 %vm6746_vm4, %v23205_v41  ;;  %v17233_v7 = vpop.f32.mrf.mxu1 }
 0x8ae   : > { %v17323_v25 = vpop.f32.mrf.mxu0  ;;  %17391 = vmatprep.mubr.msk.f32.mxu1 %vm17756_vm1, %v23917_v31  ;;  %17467 = vmatprep.mubr.msk.f32.mxu0 %vm17756_vm1, %v23917_v31  ;;  %v11168_v37 = vmax.f32 %v11141_v15, 0.0  ;;  %v11108_v17 = vadd.f32 %v11046_v35, %v10766_v55 }
 0x8af   : > { %v10709_v11 = vpop.f32.mrf.mxu1  ;;  %v23218_v16 = vld [vmem:[#allocation5 + $0x72] sm:$0xff] }
 0x8b0   : > { %v11056_v26 = vpop.f32.mrf.mxu0  ;;  %v23220_v0 = vld [vmem:[#allocation5 + $0x78] sm:$0xff]  ;;  %11195 = vst.msk [vmem:[#allocation5 + $0x88] sm:$0xff] %vm6746_vm4, %v11168_v37  ;;  %v11142_v23 = vadd.f32 %v22990_v57, %v11108_v17  ;;  %v10767_v44 = vadd.f32 %v10709_v11, %v22970_v4 }
 0x8b1   : > { %17392 = vmatmul.mubr.msk.f32.gmra.mxu1 %vm6746_vm4, %v23218_v16  ;;  %17468 = vmatmul.mubr.msk.f32.gmra.mxu0 %vm6746_vm4, %v23220_v0  ;;  %v17236_v40 = vpop.f32.mrf.mxu1 }
 0x8b2   : > { %v17326_v18 = vpop.f32.mrf.mxu0  ;;  %17394 = vmatprep.mubr.msk.f32.mxu1 %vm17756_vm1, %v23917_v31  ;;  %17470 = vmatprep.mubr.msk.f32.mxu0 %vm17756_vm1, %v23917_v31  ;;  %v11169_v14 = vmax.f32 %v11142_v23, 0.0  ;;  %v11109_v10 = vadd.f32 %v11051_v9, %v10767_v44 }
 0x8b3   : > { %v10714_v6 = vpop.f32.mrf.mxu1  ;;  %v23233_v38 = vld [vmem:[#allocation5 + $0x7a] sm:$0xff] }
 0x8b4   : > { %v11061_v5 = vpop.f32.mrf.mxu0  ;;  %v23235_v4 = vld [vmem:[#allocation5 + $0x80] sm:$0xff]  ;;  %11196 = vst.msk [vmem:[#allocation5 + $0x90] sm:$0xff] %vm6746_vm4, %v11169_v14  ;;  %v11143_v52 = vadd.f32 %v22990_v57, %v11109_v10  ;;  %v10768_v24 = vadd.f32 %v10714_v6, %v22972_v39 }
 0x8b5   : > { %17395 = vmatmul.mubr.msk.f32.gmra.mxu1 %vm6746_vm4, %v23233_v38  ;;  %17471 = vmatmul.mubr.msk.f32.gmra.mxu0 %vm6746_vm4, %v23235_v4  ;;  %v17239_v61 = vpop.f32.mrf.mxu1 }
 0x8b6   : > { %v17329_v35 = vpop.f32.mrf.mxu0  ;;  %17397 = vmatprep.mubr.msk.f32.mxu1 %vm17756_vm1, %v23917_v31  ;;  %17473 = vmatprep.mubr.msk.f32.mxu0 %vm17756_vm1, %v23917_v31  ;;  %v11170_v32 = vmax.f32 %v11143_v52, 0.0  ;;  %v11110_v36 = vadd.f32 %v11056_v26, %v10768_v24 }
 0x8b7   : > { %v10719_v62 = vpop.f32.mrf.mxu1  ;;  %v23248_v49 = vld [vmem:[#allocation5 + $0x82] sm:$0xff] }
 0x8b8   : > { %v11066_v43 = vpop.f32.mrf.mxu0  ;;  %v23250_v39 = vld [vmem:[#allocation5 + $0x88] sm:$0xff]  ;;  %11197 = vst.msk [vmem:[#allocation5 + $0x98] sm:$0xff] %vm6746_vm4, %v11170_v32  ;;  %v11144_v8 = vadd.f32 %v22990_v57, %v11110_v36  ;;  %v10769_v30 = vadd.f32 %v10719_v62, %v22974_v48 }
 0x8b9   : > { %17398 = vmatmul.mubr.msk.f32.gmra.mxu1 %vm6746_vm4, %v23248_v49  ;;  %17474 = vmatmul.mubr.msk.f32.gmra.mxu0 %vm6746_vm4, %v23250_v39  ;;  %v17242_v9 = vpop.f32.mrf.mxu1 }
 0x8ba   : > { %v17332_v15 = vpop.f32.mrf.mxu0  ;;  %17400 = vmatprep.mubr.msk.f32.mxu1 %vm17756_vm1, %v23917_v31  ;;  %17476 = vmatprep.mubr.msk.f32.mxu0 %vm17756_vm1, %v23917_v31  ;;  %v11171_v55 = vmax.f32 %v11144_v8, 0.0  ;;  %v11111_v7 = vadd.f32 %v11061_v5, %v10769_v30 }
 0x8bb   : > { %v10724_v25 = vpop.f32.mrf.mxu1  ;;  %v23263_v17 = vld [vmem:[#allocation5 + $0x8a] sm:$0xff] }
 0x8bc   : > { %v11071_v37 = vpop.f32.mrf.mxu0  ;;  %v23265_v48 = vld [vmem:[#allocation5 + $0x90] sm:$0xff]  ;;  %11198 = vst.msk [vmem:[#allocation5 + $0xa0] sm:$0xff] %vm6746_vm4, %v11171_v55  ;;  %v11145_v11 = vadd.f32 %v22990_v57, %v11111_v7  ;;  %v10770_v26 = vadd.f32 %v10724_v25, %v22976_v42 }
 0x8bd   : > { %17401 = vmatmul.mubr.msk.f32.gmra.mxu1 %vm6746_vm4, %v23263_v17  ;;  %17477 = vmatmul.mubr.msk.f32.gmra.mxu0 %vm6746_vm4, %v23265_v48  ;;  %v17245_v23 = vpop.f32.mrf.mxu1 }
 0x8be   : > { %v17335_v44 = vpop.f32.mrf.mxu0  ;;  %17403 = vmatprep.mubr.msk.f32.mxu1 %vm17756_vm1, %v23917_v31  ;;  %17479 = vmatprep.mubr.msk.f32.mxu0 %vm17756_vm1, %v23917_v31  ;;  %v11172_v40 = vmax.f32 %v11145_v11, 0.0  ;;  %v11112_v18 = vadd.f32 %v11066_v43, %v10770_v26 }
 0x8bf   : > { %v10729_v14 = vpop.f32.mrf.mxu1  ;;  %v23278_v6 = vld [vmem:[#allocation5 + $0x92] sm:$0xff] }
 0x8c0   : > { %v11076_v10 = vpop.f32.mrf.mxu0  ;;  %v23280_v42 = vld [vmem:[#allocation5 + $0x98] sm:$0xff]  ;;  %11199 = vst.msk [vmem:[#allocation5 + $0xa8] sm:$0xff] %vm6746_vm4, %v11172_v40  ;;  %v11146_v5 = vadd.f32 %v22990_v57, %v11112_v18  ;;  %v10771_v52 = vadd.f32 %v10729_v14, %v22978_v27 }
 0x8c1   : > { %17404 = vmatmul.mubr.msk.f32.gmra.mxu1 %vm6746_vm4, %v23278_v6  ;;  %17480 = vmatmul.mubr.msk.f32.gmra.mxu0 %vm6746_vm4, %v23280_v42  ;;  %v17248_v24 = vpop.f32.mrf.mxu1 }
 0x8c2   : > { %v17338_v61 = vpop.f32.mrf.mxu0  ;;  %17406 = vmatprep.mubr.msk.f32.mxu1 %vm17756_vm1, %v23917_v31  ;;  %17482 = vmatprep.mubr.msk.f32.mxu0 %vm17756_vm1, %v23917_v31  ;;  %v11173_v35 = vmax.f32 %v11146_v5, 0.0  ;;  %v11113_v32 = vadd.f32 %v11071_v37, %v10771_v52 }
 0x8c3   : > { %v10734_v36 = vpop.f32.mrf.mxu1  ;;  %v23293_v43 = vld [vmem:[#allocation5 + $0x9a] sm:$0xff] }
 0x8c4   : > { %v11081_v62 = vpop.f32.mrf.mxu0  ;;  %v23295_v27 = vld [vmem:[#allocation5 + $0xa0] sm:$0xff]  ;;  %11200 = vst.msk [vmem:[#allocation5 + $0xb0] sm:$0xff] %vm6746_vm4, %v11173_v35  ;;  %v11147_v8 = vadd.f32 %v22990_v57, %v11113_v32  ;;  %v10772_v30 = vadd.f32 %v10734_v36, %v22980_v46 }
 0x8c5   : > { %17407 = vmatmul.mubr.msk.f32.gmra.mxu1 %vm6746_vm4, %v23293_v43  ;;  %17483 = vmatmul.mubr.msk.f32.gmra.mxu0 %vm6746_vm4, %v23295_v27  ;;  %v17251_v9 = vpop.f32.mrf.mxu1 }
 0x8c6   : > { %v17341_v15 = vpop.f32.mrf.mxu0  ;;  %17409 = vmatprep.mubr.msk.f32.mxu1 %vm17756_vm1, %v23917_v31  ;;  %17485 = vmatprep.mubr.msk.f32.mxu0 %vm17756_vm1, %v23917_v31  ;;  %v11174_v55 = vmax.f32 %v11147_v8, 0.0  ;;  %v11114_v7 = vadd.f32 %v11076_v10, %v10772_v30 }
 0x8c7   : > { %v10739_v25 = vpop.f32.mrf.mxu1  ;;  %v23308_v11 = vld [vmem:[#allocation5 + $0xa2] sm:$0xff] }
 0x8c8   : > { %v11086_v37 = vpop.f32.mrf.mxu0  ;;  %v23310_v46 = vld [vmem:[#allocation5 + $0xa8] sm:$0xff]  ;;  %11201 = vst.msk [vmem:[#allocation5 + $0xb8] sm:$0xff] %vm6746_vm4, %v11174_v55  ;;  %v11148_v26 = vadd.f32 %v22990_v57, %v11114_v7  ;;  %v10773_v23 = vadd.f32 %v10739_v25, %v22982_v58 }
 0x8c9   : > { %17410 = vmatmul.mubr.msk.f32.gmra.mxu1 %vm6746_vm4, %v23308_v11  ;;  %17486 = vmatmul.mubr.msk.f32.gmra.mxu0 %vm6746_vm4, %v23310_v46  ;;  %v17254_v44 = vpop.f32.mrf.mxu1 }
 0x8ca   : > { %v17344_v40 = vpop.f32.mrf.mxu0  ;;  %17412 = vmatprep.mubr.msk.f32.mxu1 %vm17756_vm1, %v23917_v31  ;;  %17488 = vmatprep.mubr.msk.f32.mxu0 %vm17756_vm1, %v23917_v31  ;;  %v11175_v18 = vmax.f32 %v11148_v26, 0.0  ;;  %v11115_v14 = vadd.f32 %v11081_v62, %v10773_v23  ;;  %v12490_v44 = vld [vmem:[%s23775_s9 + $0x8] sm:$0xff] }
 0x8cb   : > { %v10744_v10 = vpop.f32.mrf.mxu1  ;;  %v23323_v5 = vld [vmem:[#allocation5 + $0xaa] sm:$0xff] }
 0x8cc   : > { %v23325_v58 = vld [vmem:[#allocation5 + $0xb0] sm:$0xff]  ;;  %11202 = vst.msk [vmem:[#allocation5 + $0xc0] sm:$0xff] %vm6746_vm4, %v11175_v18  ;;  %v11149_v52 = vadd.f32 %v22990_v57, %v11115_v14  ;;  %v10774_v24 = vadd.f32 %v10744_v10, %v22984_v13  ;;  %v12489_v14 = vld [vmem:[%s23775_s9] sm:$0xff] }
 0x8cd   : > { %17413 = vmatmul.mubr.msk.f32.gmra.mxu1 %vm6746_vm4, %v23323_v5  ;;  %17489 = vmatmul.mubr.msk.f32.gmra.mxu0 %vm6746_vm4, %v23325_v58  ;;  %v17257_v61 = vpop.f32.mrf.mxu1 }
 0x8ce   : > { %17415 = vmatprep.mubr.msk.f32.mxu1 %vm17756_vm1, %v23917_v31  ;;  %17568 = vmatprep.mubr.msk.f32.mxu0 %vm17756_vm1, %v23917_v31  ;;  %v11176_v35 = vmax.f32 %v11149_v52, 0.0  ;;  %v11116_v32 = vadd.f32 %v11086_v37, %v10774_v24 }
 0x8cf   : > { %v23338_v36 = vld [vmem:[#allocation5 + $0xb2] sm:$0xff] }
 0x8d0   : > { %11203 = vst.msk [vmem:[#allocation5 + $0xc8] sm:$0xff] %vm6746_vm4, %v11176_v35  ;;  %v11150_v13 = vadd.f32 %v22990_v57, %v11116_v32 }
 0x8d1   : > { %17416 = vmatmul.mubr.msk.f32.gmra.mxu1 %vm6746_vm4, %v23338_v36  ;;  %17569 = vmatmul.mubr.msk.f32.vlgmr.msra.gmra.mxu0 %vm6746_vm4, %v23053_v21 }
 0x8d2   : > { %17495 = vmatprep.mubr.msk.f32.mxu1 %vm17756_vm1, %v23917_v31  ;;  %17571 = vmatprep.mubr.msk.f32.mxu0 %vm17756_vm1, %v23917_v31  ;;  %v11177_v62 = vmax.f32 %v11150_v13, 0.0 }
 0x8d3   : > { %v12081_v57 = vld [vmem:[#allocation5 + $0xba] sm:$0xff] }
 0x8d4   : > { %11204 = vst.msk [vmem:[#allocation5 + $0xd0] sm:$0xff] %vm6746_vm4, %v11177_v62 }
 0x8d5   : > { %17496 = vmatmul.mubr.msk.f32.vlgmr.msra.gmra.mxu1 %vm6746_vm4, %v23041_v33  ;;  %17572 = vmatmul.mubr.msk.f32.gmra.mxu0 %vm6746_vm4, %v23068_v22  ;;  %v11780_v33 = vld [vmem:[#allocation5 + $0xb8] sm:$0xff] }
 0x8d6   : > { %17498 = vmatprep.mubr.msk.f32.mxu1 %vm17756_vm1, %v23917_v31  ;;  %17574 = vmatprep.mubr.msk.f32.mxu0 %vm17756_vm1, %v23917_v31 }
 0x8d7   : > { %v12082_v21 = vld [vmem:[#allocation5 + $0xc2] sm:$0xff] }
 0x8d9   : > { %17499 = vmatmul.mubr.msk.f32.gmra.mxu1 %vm6746_vm4, %v23055_v50  ;;  %17575 = vmatmul.mubr.msk.f32.gmra.mxu0 %vm6746_vm4, %v23083_v34  ;;  %v11781_v50 = vld [vmem:[#allocation5 + $0xc0] sm:$0xff]  ;;  %v11782_v34 = vld [vmem:[#allocation5 + $0xc8] sm:$0xff] }
 0x8da   : > { %17501 = vmatprep.mubr.msk.f32.mxu1 %vm17756_vm1, %v23917_v31  ;;  %17577 = vmatprep.mubr.msk.f32.mxu0 %vm17756_vm1, %v23917_v31 }
 0x8db   : > { %v12083_v22 = vld [vmem:[#allocation5 + $0xca] sm:$0xff] }
 0x8dd   : > { %17502 = vmatmul.mubr.msk.f32.gmra.mxu1 %vm6746_vm4, %v23070_v20  ;;  %17578 = vmatmul.mubr.msk.f32.gmra.mxu0 %vm6746_vm4, %v23098_v28  ;;  %v12494_v20 = vld [vmem:[%s23775_s9 + $0x28] sm:$0xf] }
 0x8de   : > { %17504 = vmatprep.mubr.msk.f32.mxu1 %vm17756_vm1, %v23917_v31  ;;  %17580 = vmatprep.mubr.msk.f32.mxu0 %vm17756_vm1, %v23917_v31 }
 0x8df   : > { %13850 = vmatprep.subr.msk.mxu1 %vm9945_vm5, %v12494_v20 }
 0x8e1   : > { %17505 = vmatmul.mubr.msk.f32.gmra.mxu1 %vm6746_vm4, %v23085_v12  ;;  %17581 = vmatmul.mubr.msk.f32.gmra.mxu0 %vm6746_vm4, %v23113_v63  ;;  %v12493_v12 = vld [vmem:[%s23775_s9 + $0x20] sm:$0xf] }
 0x8e2   : > { %17507 = vmatprep.mubr.msk.f32.mxu1 %vm17756_vm1, %v23917_v31  ;;  %17583 = vmatprep.mubr.msk.f32.mxu0 %vm17756_vm1, %v23917_v31 }
 0x8e3   : > { %13851 = vmatpush1.msk.msra.mxu1 %vm9945_vm5, %v12493_v12 }
 0x8e5   : > { %17508 = vmatmul.mubr.msk.f32.gmra.mxu1 %vm6746_vm4, %v23100_v2  ;;  %17584 = vmatmul.mubr.msk.f32.gmra.mxu0 %vm6746_vm4, %v23128_v19 }
 0x8e6   : > { %17510 = vmatprep.mubr.msk.f32.mxu1 %vm17756_vm1, %v23917_v31  ;;  %17586 = vmatprep.mubr.msk.f32.mxu0 %vm17756_vm1, %v23917_v31 }
 0x8e9   : > { %17511 = vmatmul.mubr.msk.f32.gmra.mxu1 %vm6746_vm4, %v23115_v53  ;;  %17587 = vmatmul.mubr.msk.f32.gmra.mxu0 %vm6746_vm4, %v23143_v60 }
 0x8ea   : > { %17513 = vmatprep.mubr.msk.f32.mxu1 %vm17756_vm1, %v23917_v31  ;;  %17589 = vmatprep.mubr.msk.f32.mxu0 %vm17756_vm1, %v23917_v31 }
 0x8ed   : > { %17514 = vmatmul.mubr.msk.f32.gmra.mxu1 %vm6746_vm4, %v23130_v56  ;;  %17590 = vmatmul.mubr.msk.f32.gmra.mxu0 %vm6746_vm4, %v23158_v1 }
 0x8ee   : > { %17516 = vmatprep.mubr.msk.f32.mxu1 %vm17756_vm1, %v23917_v31  ;;  %17592 = vmatprep.mubr.msk.f32.mxu0 %vm17756_vm1, %v23917_v31 }
 0x8f1   : > { %17517 = vmatmul.mubr.msk.f32.gmra.mxu1 %vm6746_vm4, %v23145_v47  ;;  %17593 = vmatmul.mubr.msk.f32.gmra.mxu0 %vm6746_vm4, %v23173_v51 }
 0x8f2   : > { %17519 = vmatprep.mubr.msk.f32.mxu1 %vm17756_vm1, %v23917_v31  ;;  %17595 = vmatprep.mubr.msk.f32.mxu0 %vm17756_vm1, %v23917_v31 }
 0x8f5   : > { %17520 = vmatmul.mubr.msk.f32.gmra.mxu1 %vm6746_vm4, %v23160_v3  ;;  %17596 = vmatmul.mubr.msk.f32.gmra.mxu0 %vm6746_vm4, %v23188_v54 }
 0x8f6   : > { %17522 = vmatprep.mubr.msk.f32.mxu1 %vm17756_vm1, %v23917_v31  ;;  %17598 = vmatprep.mubr.msk.f32.mxu0 %vm17756_vm1, %v23917_v31 }
 0x8f9   : > { %17523 = vmatmul.mubr.msk.f32.gmra.mxu1 %vm6746_vm4, %v23175_v59  ;;  %17599 = vmatmul.mubr.msk.f32.gmra.mxu0 %vm6746_vm4, %v23203_v45 }
 0x8fa   : > { %17525 = vmatprep.mubr.msk.f32.mxu1 %vm17756_vm1, %v23917_v31  ;;  %17601 = vmatprep.mubr.msk.f32.mxu0 %vm17756_vm1, %v23917_v31 }
 0x8fd   : > { %17526 = vmatmul.mubr.msk.f32.gmra.mxu1 %vm6746_vm4, %v23190_v29  ;;  %17602 = vmatmul.mubr.msk.f32.gmra.mxu0 %vm6746_vm4, %v23218_v16 }
 0x8fe   : > { %17528 = vmatprep.mubr.msk.f32.mxu1 %vm17756_vm1, %v23917_v31  ;;  %17604 = vmatprep.mubr.msk.f32.mxu0 %vm17756_vm1, %v23917_v31 }
 0x901   : > { %17529 = vmatmul.mubr.msk.f32.gmra.mxu1 %vm6746_vm4, %v23205_v41  ;;  %17605 = vmatmul.mubr.msk.f32.gmra.mxu0 %vm6746_vm4, %v23233_v38 }
 0x902   : > { %17531 = vmatprep.mubr.msk.f32.mxu1 %vm17756_vm1, %v23917_v31  ;;  %17607 = vmatprep.mubr.msk.f32.mxu0 %vm17756_vm1, %v23917_v31 }
 0x905   : > { %17532 = vmatmul.mubr.msk.f32.gmra.mxu1 %vm6746_vm4, %v23220_v0  ;;  %17608 = vmatmul.mubr.msk.f32.gmra.mxu0 %vm6746_vm4, %v23248_v49 }
 0x906   : > { %17534 = vmatprep.mubr.msk.f32.mxu1 %vm17756_vm1, %v23917_v31  ;;  %17610 = vmatprep.mubr.msk.f32.mxu0 %vm17756_vm1, %v23917_v31 }
 0x909   : > { %17535 = vmatmul.mubr.msk.f32.gmra.mxu1 %vm6746_vm4, %v23235_v4  ;;  %17611 = vmatmul.mubr.msk.f32.gmra.mxu0 %vm6746_vm4, %v23263_v17 }
 0x90a   : > { %17537 = vmatprep.mubr.msk.f32.mxu1 %vm17756_vm1, %v23917_v31  ;;  %17613 = vmatprep.mubr.msk.f32.mxu0 %vm17756_vm1, %v23917_v31 }
 0x90d   : > { %17538 = vmatmul.mubr.msk.f32.gmra.mxu1 %vm6746_vm4, %v23250_v39  ;;  %17614 = vmatmul.mubr.msk.f32.gmra.mxu0 %vm6746_vm4, %v23278_v6  ;;  %v12492_v6 = vld [vmem:[%s23775_s9 + $0x18] sm:$0xff] }
 0x90e   : > { %17540 = vmatprep.mubr.msk.f32.mxu1 %vm17756_vm1, %v23917_v31  ;;  %17616 = vmatprep.mubr.msk.f32.mxu0 %vm17756_vm1, %v23917_v31 }
 0x90f   : > { %12535 = vmatprep.subr.mxu1 %v12492_v6 }
 0x911   : > { %17541 = vmatmul.mubr.msk.f32.gmra.mxu1 %vm6746_vm4, %v23265_v48  ;;  %17617 = vmatmul.mubr.msk.f32.gmra.mxu0 %vm6746_vm4, %v23293_v43 }
 0x912   : > { %17543 = vmatprep.mubr.msk.f32.mxu1 %vm17756_vm1, %v23917_v31  ;;  %17619 = vmatprep.mubr.msk.f32.mxu0 %vm17756_vm1, %v23917_v31 }
 0x915   : > { %17544 = vmatmul.mubr.msk.f32.gmra.mxu1 %vm6746_vm4, %v23280_v42  ;;  %17620 = vmatmul.mubr.msk.f32.gmra.mxu0 %vm6746_vm4, %v23308_v11  ;;  %v12491_v42 = vld [vmem:[%s23775_s9 + $0x10] sm:$0xff] }
 0x916   : > { %17546 = vmatprep.mubr.msk.f32.mxu1 %vm17756_vm1, %v23917_v31  ;;  %17622 = vmatprep.mubr.msk.f32.mxu0 %vm17756_vm1, %v23917_v31 }
 0x917   : > { %12536 = vmatpush1.msra.mxu1 %v12491_v42 }
 0x918   : > { %12537 = vmatprep.subr.mxu1 %v12490_v44  ;;  %v12624_v44 = vld [vmem:[%s23777_s11 + $0x78] sm:$0xff] }
 0x919   : > { %17547 = vmatmul.mubr.msk.f32.gmra.mxu1 %vm6746_vm4, %v23295_v27  ;;  %17623 = vmatmul.mubr.msk.f32.gmra.mxu0 %vm6746_vm4, %v23323_v5 }
 0x91a   : > { %17549 = vmatprep.mubr.msk.f32.mxu1 %vm17756_vm1, %v23917_v31  ;;  %17625 = vmatprep.mubr.msk.f32.mxu0 %vm17756_vm1, %v23917_v31 }
 0x91b   : > { %12538 = vmatpush1.msra.mxu1 %v12489_v14  ;;  %12634 = vmatpush1.msra.mxu0 %v12624_v44 }
 0x91c   : > { %12635 = vmatprep.subr.mxu0 %v23917_v31 }
 0x91d   : > { %17550 = vmatmul.mubr.msk.f32.gmra.mxu1 %vm6746_vm4, %v23310_v46  ;;  %17626 = vmatmul.mubr.msk.f32.gmra.mxu0 %vm6746_vm4, %v23338_v36 }
 0x91e   : > { %17552 = vmatprep.mubr.msk.f32.mxu1 %vm17756_vm1, %v23917_v31  ;;  %17628 = vmatprep.mubr.msk.f32.mxu0 %vm17756_vm1, %v23917_v31 }
 0x921   : > { %17553 = vmatmul.mubr.msk.f32.gmra.mxu1 %vm6746_vm4, %v23325_v58  ;;  %17629 = vmatmul.mubr.msk.f32.gmra.mxu0 %vm6746_vm4, %v12081_v57 }
 0x922   : > { %17555 = vmatprep.mubr.msk.f32.mxu1 %vm17756_vm1, %v23917_v31  ;;  %17631 = vmatprep.mubr.msk.f32.mxu0 %vm17756_vm1, %v23917_v31 }
 0x925   : > { %17556 = vmatmul.mubr.msk.f32.gmra.mxu1 %vm6746_vm4, %v11780_v33  ;;  %17632 = vmatmul.mubr.msk.f32.gmra.mxu0 %vm6746_vm4, %v12082_v21 }
 0x926   : > { %17558 = vmatprep.mubr.msk.f32.mxu1 %vm17756_vm1, %v23917_v31  ;;  %17634 = vmatprep.mubr.msk.f32.mxu0 %vm17756_vm1, %v23917_v31 }
 0x929   : > { %17559 = vmatmul.mubr.msk.f32.gmra.mxu1 %vm6746_vm4, %v11781_v50  ;;  %17635 = vmatmul.mubr.msk.f32.gmra.mxu0 %vm6746_vm4, %v12083_v22 }
 0x92a   : > { %17561 = vmatprep.mubr.msk.f32.mxu1 %vm17756_vm1, %v23917_v31 }
 0x92d   : > { %17562 = vmatmul.mubr.msk.f32.gmra.mxu1 %vm6746_vm4, %v11782_v34 }
 0x92e   : > { %12571 = vmatprep.mubr.f32.mxu1 %v23917_v31 }
 0x934   : > { %v11646_v28 = vpop.f32.mrf.mxu0 }
 0x936   : > { %v17424_v2 = vpop.f32.mrf.mxu0 }
 0x938   : > { %v11394_v63 = vpop.f32.mrf.mxu1 }
 0x939   : > { %v11651_v53 = vpop.f32.mrf.mxu0  ;;  %v23530_v19 = vadd.f32 %v11646_v28, %v11394_v63 }
 0x93a   : > { %v17351_v56 = vpop.f32.mrf.mxu1 }
 0x93b   : > { %v17427_v60 = vpop.f32.mrf.mxu0 }
 0x93d   : > { %v11399_v47 = vpop.f32.mrf.mxu1  ;;  %v11656_v1 = vpop.f32.mrf.mxu0 }
 0x93e   : > { %v23532_v3 = vadd.f32 %v11651_v53, %v11399_v47 }
 0x93f   : > { %v17354_v51 = vpop.f32.mrf.mxu1  ;;  %v17430_v59 = vpop.f32.mrf.mxu0 }
 0x941   : > { %v11404_v54 = vpop.f32.mrf.mxu1  ;;  %v11661_v29 = vpop.f32.mrf.mxu0 }
 0x943   : > { %v17357_v45 = vpop.f32.mrf.mxu1  ;;  %v17433_v41 = vpop.f32.mrf.mxu0 }
 0x945   : > { %v11409_v16 = vpop.f32.mrf.mxu1  ;;  %v11666_v0 = vpop.f32.mrf.mxu0 }
 0x946   : > { %v23534_v38 = vadd.f32 %v11661_v29, %v11409_v16 }
 0x947   : > { %v17360_v4 = vpop.f32.mrf.mxu1  ;;  %v17436_v49 = vpop.f32.mrf.mxu0 }
 0x949   : > { %v11414_v39 = vpop.f32.mrf.mxu1  ;;  %v11671_v17 = vpop.f32.mrf.mxu0 }
 0x94a   : > { %v23536_v48 = vadd.f32 %v11666_v0, %v11414_v39 }
 0x94b   : > { %v17363_v43 = vpop.f32.mrf.mxu1  ;;  %v17439_v27 = vpop.f32.mrf.mxu0 }
 0x94d   : > { %v11419_v8 = vpop.f32.mrf.mxu1  ;;  %v11676_v30 = vpop.f32.mrf.mxu0 }
 0x94f   : > { %v17366_v9 = vpop.f32.mrf.mxu1  ;;  %v17442_v15 = vpop.f32.mrf.mxu0 }
 0x951   : > { %v11424_v55 = vpop.f32.mrf.mxu1  ;;  %v11681_v7 = vpop.f32.mrf.mxu0 }
 0x952   : > { %v23544_v25 = vadd.f32 %v11676_v30, %v11424_v55 }
 0x953   : > { %v17369_v37 = vpop.f32.mrf.mxu1  ;;  %v17445_v11 = vpop.f32.mrf.mxu0 }
 0x955   : > { %v11429_v46 = vpop.f32.mrf.mxu1  ;;  %v11686_v26 = vpop.f32.mrf.mxu0 }
 0x956   : > { %v23546_v23 = vadd.f32 %v11681_v7, %v11429_v46 }
 0x957   : > { %v17372_v40 = vpop.f32.mrf.mxu1  ;;  %v17448_v18 = vpop.f32.mrf.mxu0 }
 0x958   : > { %v12623_v40 = vld [vmem:[%s23777_s11 + $0x70] sm:$0xff] }
 0x959   : > { %v11434_v10 = vpop.f32.mrf.mxu1  ;;  %v11691_v5 = vpop.f32.mrf.mxu0  ;;  %12636 = vmatpush1.msra.mxu0 %v12623_v40 }
 0x95a   : > { %12637 = vmatprep.subr.mxu0 %v23917_v31 }
 0x95b   : > { %v17375_v58 = vpop.f32.mrf.mxu1  ;;  %v17451_v52 = vpop.f32.mrf.mxu0 }
 0x95d   : > { %v11439_v24 = vpop.f32.mrf.mxu1  ;;  %v11696_v61 = vpop.f32.mrf.mxu0 }
 0x95e   : > { %v23554_v35 = vadd.f32 %v11691_v5, %v11439_v24  ;;  %v12622_v5 = vld [vmem:[%s23777_s11 + $0x68] sm:$0xff]  ;;  %v12621_v24 = vld [vmem:[%s23777_s11 + $0x60] sm:$0xff] }
 0x95f   : > { %v17378_v32 = vpop.f32.mrf.mxu1  ;;  %v17454_v36 = vpop.f32.mrf.mxu0  ;;  %12638 = vmatpush1.msra.mxu0 %v12622_v5 }
 0x960   : > { %12639 = vmatprep.subr.mxu0 %v23917_v31  ;;  %v12620_v36 = vld [vmem:[%s23777_s11 + $0x58] sm:$0xff] }
 0x961   : > { %v11444_v13 = vpop.f32.mrf.mxu1  ;;  %v11701_v62 = vpop.f32.mrf.mxu0  ;;  %12640 = vmatpush1.msra.mxu0 %v12621_v24 }
 0x962   : > { %v23556_v57 = vadd.f32 %v11696_v61, %v11444_v13  ;;  %12641 = vmatprep.subr.mxu0 %v23917_v31 }
 0x963   : > { %v17381_v33 = vpop.f32.mrf.mxu1  ;;  %v17457_v21 = vpop.f32.mrf.mxu0  ;;  %12642 = vmatpush1.msra.mxu0 %v12620_v36 }
 0x964   : > { %12643 = vmatprep.subr.mxu0 %v23917_v31 }
 0x965   : > { %v11449_v50 = vpop.f32.mrf.mxu1  ;;  %v11706_v22 = vpop.f32.mrf.mxu0 }
 0x967   : > { %v17384_v20 = vpop.f32.mrf.mxu1  ;;  %v17460_v34 = vpop.f32.mrf.mxu0 }
 0x969   : > { %v11454_v12 = vpop.f32.mrf.mxu1  ;;  %v11711_v28 = vpop.f32.mrf.mxu0 }
 0x96a   : > { %v23558_v2 = vadd.f32 %v11706_v22, %v11454_v12 }
 0x96b   : > { %v17387_v63 = vpop.f32.mrf.mxu1  ;;  %v17463_v53 = vpop.f32.mrf.mxu0 }
 0x96d   : > { %v11459_v56 = vpop.f32.mrf.mxu1  ;;  %v11716_v60 = vpop.f32.mrf.mxu0 }
 0x96e   : > { %v23560_v47 = vadd.f32 %v11711_v28, %v11459_v56  ;;  %v23598_v60 = vld [vmem:[%s23774_s8] ss:$0 sm:$0xff] }
 0x96f   : > { %v17390_v1 = vpop.f32.mrf.mxu1  ;;  %v17466_v51 = vpop.f32.mrf.mxu0 }
 0x971   : > { %v11464_v59 = vpop.f32.mrf.mxu1  ;;  %v11721_v54 = vpop.f32.mrf.mxu0 }
 0x973   : > { %v17393_v29 = vpop.f32.mrf.mxu1  ;;  %v17469_v45 = vpop.f32.mrf.mxu0 }
 0x975   : > { %v11469_v41 = vpop.f32.mrf.mxu1  ;;  %v11726_v16 = vpop.f32.mrf.mxu0 }
 0x976   : > { %v23562_v0 = vadd.f32 %v11721_v54, %v11469_v41 }
 0x977   : > { %v17396_v4 = vpop.f32.mrf.mxu1  ;;  %v17472_v49 = vpop.f32.mrf.mxu0 }
 0x979   : > { %v11474_v39 = vpop.f32.mrf.mxu1  ;;  %v11731_v17 = vpop.f32.mrf.mxu0 }
 0x97a   : > { %v23564_v6 = vadd.f32 %v11726_v16, %v11474_v39 }
 0x97b   : > { %v17399_v42 = vpop.f32.mrf.mxu1  ;;  %v17475_v43 = vpop.f32.mrf.mxu0 }
 0x97d   : > { %v11479_v27 = vpop.f32.mrf.mxu1  ;;  %v11736_v8 = vpop.f32.mrf.mxu0 }
 0x97f   : > { %v17402_v30 = vpop.f32.mrf.mxu1  ;;  %v17478_v9 = vpop.f32.mrf.mxu0 }
 0x981   : > { %v11484_v15 = vpop.f32.mrf.mxu1  ;;  %v11741_v55 = vpop.f32.mrf.mxu0 }
 0x982   : > { %v23566_v7 = vadd.f32 %v11736_v8, %v11484_v15 }
 0x983   : > { %v17405_v37 = vpop.f32.mrf.mxu1  ;;  %v17481_v11 = vpop.f32.mrf.mxu0 }
 0x985   : > { %v11489_v46 = vpop.f32.mrf.mxu1  ;;  %v11746_v26 = vpop.f32.mrf.mxu0 }
 0x986   : > { %v23574_v18 = vadd.f32 %v11741_v55, %v11489_v46 }
 0x987   : > { %v17408_v14 = vpop.f32.mrf.mxu1  ;;  %v17484_v10 = vpop.f32.mrf.mxu0 }
 0x989   : > { %v11494_v58 = vpop.f32.mrf.mxu1  ;;  %v11751_v52 = vpop.f32.mrf.mxu0 }
 0x98b   : > { %v17411_v61 = vpop.f32.mrf.mxu1  ;;  %v17487_v32 = vpop.f32.mrf.mxu0 }
 0x98d   : > { %v11499_v13 = vpop.f32.mrf.mxu1  ;;  %v11756_v62 = vpop.f32.mrf.mxu0 }
 0x98e   : > { %v23589_v33 = vadd.f32 %v11751_v52, %v11499_v13 }
 0x98f   : > { %v17414_v21 = vpop.f32.mrf.mxu1  ;;  %v17490_v50 = vpop.f32.mrf.mxu0 }
 0x991   : > { %v11504_v22 = vpop.f32.mrf.mxu1  ;;  %v12225_v20 = vpop.f32.mrf.mxu0 }
 0x992   : > { %v23592_v34 = vadd.f32 %v11756_v62, %v11504_v22 }
 0x993   : > { %v17417_v12 = vpop.f32.mrf.mxu1  ;;  %v17570_v28 = vpop.f32.mrf.mxu0 }
 0x995   : > { %v11924_v63 = vpop.f32.mrf.mxu1  ;;  %v12230_v53 = vpop.f32.mrf.mxu0 }
 0x996   : > { %v12038_v56 = vadd.f32 %v11924_v63, %v23530_v19 }
 0x997   : > { %v17497_v1 = vpop.f32.mrf.mxu1  ;;  %v17573_v51 = vpop.f32.mrf.mxu0 }
 0x998   : > { %v12339_v59 = vadd.f32 %v12225_v20, %v12038_v56 }
 0x999   : > { %v11929_v54 = vpop.f32.mrf.mxu1  ;;  %v12235_v29 = vpop.f32.mrf.mxu0 }
 0x99a   : > { %v12369_v45 = vadd.f32 %v23598_v60, %v12339_v59  ;;  %v12039_v41 = vadd.f32 %v11929_v54, %v23532_v3 }
 0x99b   : > { %v17500_v16 = vpop.f32.mrf.mxu1  ;;  %v17576_v4 = vpop.f32.mrf.mxu0 }
 0x99c   : > { %v12392_v49 = vmax.f32 %v12369_v45, 0.0  ;;  %v12340_v39 = vadd.f32 %v12230_v53, %v12039_v41 }
 0x99d   : > { %v11934_v17 = vpop.f32.mrf.mxu1  ;;  %v12240_v19 = vpop.f32.mrf.mxu0 }
 0x99e   : > { %12415 = vst.msk [vmem:[#allocation6] sm:$0xff] %vm9501_vm6, %v12392_v49  ;;  %v12370_v42 = vadd.f32 %v23598_v60, %v12340_v39 }
 0x99f   : > { %v17503_v43 = vpop.f32.mrf.mxu1  ;;  %v17579_v27 = vpop.f32.mrf.mxu0 }
 0x9a0   : > { %v12393_v8 = vmax.f32 %v12370_v42, 0.0 }
 0x9a1   : > { %v11939_v30 = vpop.f32.mrf.mxu1  ;;  %v12245_v9 = vpop.f32.mrf.mxu0 }
 0x9a2   : > { %12416 = vst.msk [vmem:[#allocation6 + $0x8] sm:$0xff] %vm9501_vm6, %v12393_v8  ;;  %v12041_v15 = vadd.f32 %v11939_v30, %v23534_v38 }
 0x9a3   : > { %v17506_v3 = vpop.f32.mrf.mxu1  ;;  %v17582_v55 = vpop.f32.mrf.mxu0 }
 0x9a4   : > { %v12342_v37 = vadd.f32 %v12240_v19, %v12041_v15 }
 0x9a5   : > { %v11944_v11 = vpop.f32.mrf.mxu1  ;;  %v12250_v46 = vpop.f32.mrf.mxu0 }
 0x9a6   : > { %v12372_v26 = vadd.f32 %v23598_v60, %v12342_v37  ;;  %v12042_v44 = vadd.f32 %v11944_v11, %v23536_v48 }
 0x9a7   : > { %v17509_v40 = vpop.f32.mrf.mxu1  ;;  %v17585_v14 = vpop.f32.mrf.mxu0 }
 0x9a8   : > { %v12395_v10 = vmax.f32 %v12372_v26, 0.0  ;;  %v12343_v5 = vadd.f32 %v12245_v9, %v12042_v44 }
 0x9a9   : > { %v11949_v58 = vpop.f32.mrf.mxu1  ;;  %v12255_v52 = vpop.f32.mrf.mxu0 }
 0x9aa   : > { %12418 = vst.msk [vmem:[#allocation6 + $0x18] sm:$0xff] %vm9501_vm6, %v12395_v10  ;;  %v12373_v24 = vadd.f32 %v23598_v60, %v12343_v5 }
 0x9ab   : > { %v17512_v38 = vpop.f32.mrf.mxu1  ;;  %v17588_v61 = vpop.f32.mrf.mxu0 }
 0x9ac   : > { %v12396_v32 = vmax.f32 %v12373_v24, 0.0 }
 0x9ad   : > { %v11954_v36 = vpop.f32.mrf.mxu1  ;;  %v12260_v13 = vpop.f32.mrf.mxu0 }
 0x9ae   : > { %12419 = vst.msk [vmem:[#allocation6 + $0x20] sm:$0xff] %vm9501_vm6, %v12396_v32  ;;  %v12044_v62 = vadd.f32 %v11954_v36, %v23544_v25  ;;  %v12438_v36 = vld [vmem:[#allocation6] ss:$4 sm:$0xf] }
 0x9af   : > { %v17515_v48 = vpop.f32.mrf.mxu1  ;;  %v17591_v21 = vpop.f32.mrf.mxu0 }
 0x9b0   : > { %v12345_v50 = vadd.f32 %v12255_v52, %v12044_v62 }
 0x9b1   : > { %v11959_v22 = vpop.f32.mrf.mxu1  ;;  %v12265_v20 = vpop.f32.mrf.mxu0 }
 0x9b2   : > { %v12375_v12 = vadd.f32 %v23598_v60, %v12345_v50  ;;  %v12045_v28 = vadd.f32 %v11959_v22, %v23546_v23  ;;  %v12440_v50 = vld [vmem:[#allocation6 + $0x2] ss:$4 sm:$0xf] }
 0x9b3   : > { %v17518_v63 = vpop.f32.mrf.mxu1  ;;  %v17594_v53 = vpop.f32.mrf.mxu0 }
 0x9b4   : > { %v12398_v56 = vmax.f32 %v12375_v12, 0.0  ;;  %v12346_v1 = vadd.f32 %v12260_v13, %v12045_v28 }
 0x9b5   : > { %v11964_v51 = vpop.f32.mrf.mxu1  ;;  %v12270_v59 = vpop.f32.mrf.mxu0  ;;  %v12442_v24 = vld [vmem:[#allocation6 + $0x18] ss:$4 sm:$0xf]  ;;  %v12444_v38 = vld [vmem:[#allocation6 + $0x1a] ss:$4 sm:$0xf] }
 0x9b6   : > { %12421 = vst.msk [vmem:[#allocation6 + $0x30] sm:$0xff] %vm9501_vm6, %v12398_v56  ;;  %v12376_v54 = vadd.f32 %v23598_v60, %v12346_v1  ;;  %v12446_v20 = vmax.f32 %v12442_v24, %v12444_v38 }
 0x9b7   : > { %v17521_v25 = vpop.f32.mrf.mxu1  ;;  %v17597_v29 = vpop.f32.mrf.mxu0 }
 0x9b8   : > { %v12399_v45 = vmax.f32 %v12376_v54, 0.0 }
 0x9b9   : > { %v11969_v41 = vpop.f32.mrf.mxu1  ;;  %v12275_v16 = vpop.f32.mrf.mxu0 }
 0x9ba   : > { %12422 = vst.msk [vmem:[#allocation6 + $0x38] sm:$0xff] %vm9501_vm6, %v12399_v45  ;;  %v12047_v4 = vadd.f32 %v11969_v41, %v23554_v35 }
 0x9bb   : > { %v17524_v23 = vpop.f32.mrf.mxu1  ;;  %v17600_v49 = vpop.f32.mrf.mxu0 }
 0x9bc   : > { %v12348_v39 = vadd.f32 %v12270_v59, %v12047_v4  ;;  %v12445_v59 = vmax.f32 %v12438_v36, %v12440_v50 }
 0x9bd   : > { %v11974_v17 = vpop.f32.mrf.mxu1  ;;  %v12280_v19 = vpop.f32.mrf.mxu0 }
 0x9be   : > { %v12378_v42 = vadd.f32 %v23598_v60, %v12348_v39  ;;  %v12048_v43 = vadd.f32 %v11974_v17, %v23556_v57  ;;  %v12447_v41 = vmax.f32 %v12445_v59, %v12446_v20 }
 0x9bf   : > { %v17527_v27 = vpop.f32.mrf.mxu1  ;;  %v17603_v8 = vpop.f32.mrf.mxu0 }
 0x9c0   : > { %v12401_v30 = vmax.f32 %v12378_v42, 0.0  ;;  %v12349_v9 = vadd.f32 %v12275_v16, %v12048_v43 }
 0x9c1   : > { %v11979_v15 = vpop.f32.mrf.mxu1  ;;  %v12285_v3 = vpop.f32.mrf.mxu0  ;;  %v12449_v13 = vld [vmem:[#allocation6 + $0x30] ss:$4 sm:$0xf]  ;;  %v12451_v62 = vld [vmem:[#allocation6 + $0x32] ss:$4 sm:$0xf] }
 0x9c2   : > { %12424 = vst.msk [vmem:[#allocation6 + $0x48] sm:$0xff] %vm9501_vm6, %v12401_v30  ;;  %v12379_v55 = vadd.f32 %v23598_v60, %v12349_v9 }
 0x9c3   : > { %v17530_v35 = vpop.f32.mrf.mxu1  ;;  %v17606_v37 = vpop.f32.mrf.mxu0 }
 0x9c4   : > { %v12402_v11 = vmax.f32 %v12379_v55, 0.0 }
 0x9c5   : > { %v11984_v46 = vpop.f32.mrf.mxu1  ;;  %v12290_v26 = vpop.f32.mrf.mxu0 }
 0x9c6   : > { %12425 = vst.msk [vmem:[#allocation6 + $0x50] sm:$0xff] %vm9501_vm6, %v12402_v11  ;;  %v12050_v44 = vadd.f32 %v11984_v46, %v23558_v2 }
 0x9c7   : > { %v17533_v57 = vpop.f32.mrf.mxu1  ;;  %v17609_v40 = vpop.f32.mrf.mxu0 }
 0x9c8   : > { %v12351_v14 = vadd.f32 %v12285_v3, %v12050_v44 }
 0x9c9   : > { %v11989_v10 = vpop.f32.mrf.mxu1  ;;  %v12295_v5 = vpop.f32.mrf.mxu0 }
 0x9ca   : > { %v12381_v58 = vadd.f32 %v23598_v60, %v12351_v14  ;;  %v12051_v52 = vadd.f32 %v11989_v10, %v23560_v47  ;;  %v12456_v47 = vmax.f32 %v12449_v13, %v12451_v62 }
 0x9cb   : > { %v17536_v61 = vpop.f32.mrf.mxu1  ;;  %v17612_v32 = vpop.f32.mrf.mxu0 }
 0x9cc   : > { %v12404_v48 = vmax.f32 %v12381_v58, 0.0  ;;  %v12352_v21 = vadd.f32 %v12290_v26, %v12051_v52 }
 0x9cd   : > { %v11994_v2 = vpop.f32.mrf.mxu1  ;;  %v12300_v22 = vpop.f32.mrf.mxu0  ;;  %v12453_v12 = vld [vmem:[#allocation6 + $0x48] ss:$4 sm:$0xf]  ;;  %v12455_v28 = vld [vmem:[#allocation6 + $0x4a] ss:$4 sm:$0xf] }
 0x9ce   : > { %12427 = vst.msk [vmem:[#allocation6 + $0x60] sm:$0xff] %vm9501_vm6, %v12404_v48  ;;  %v12382_v63 = vadd.f32 %v23598_v60, %v12352_v21  ;;  %v12457_v53 = vmax.f32 %v12453_v12, %v12455_v28 }
 0x9cf   : > { %v17539_v56 = vpop.f32.mrf.mxu1  ;;  %v17615_v1 = vpop.f32.mrf.mxu0 }
 0x9d0   : > { %v12405_v51 = vmax.f32 %v12382_v63, 0.0  ;;  %v12458_v54 = vmax.f32 %v12456_v47, %v12457_v53 }
 0x9d1   : > { %v11999_v25 = vpop.f32.mrf.mxu1  ;;  %v12305_v29 = vpop.f32.mrf.mxu0 }
 0x9d2   : > { %12428 = vst.msk [vmem:[#allocation6 + $0x68] sm:$0xff] %vm9501_vm6, %v12405_v51  ;;  %v12053_v45 = vadd.f32 %v11999_v25, %v23562_v0  ;;  %v12482_v16 = vrot.slane %v12458_v54, 4 }
 0x9d3   : > { %v17542_v4 = vpop.f32.mrf.mxu1  ;;  %v17618_v23 = vpop.f32.mrf.mxu0 }
 0x9d4   : > { %v12354_v49 = vadd.f32 %v12300_v22, %v12053_v45  ;;  %v12487_v39 = vsel %vm9945_vm5, %v12447_v41, %v12482_v16 }
 0x9d5   : > { %v12004_v17 = vpop.f32.mrf.mxu1  ;;  %v12310_v19 = vpop.f32.mrf.mxu0  ;;  %13852 = vmatmul.mubr.msk.f32.vlgmr.msra.gmra.mxu1 %vm9501_vm6, %v12487_v39 }
 0x9d6   : > { %v12384_v42 = vadd.f32 %v23598_v60, %v12354_v49  ;;  %v12054_v43 = vadd.f32 %v12004_v17, %v23564_v6  ;;  %12577 = vmatprep.mubr.f32.mxu1 %v23917_v31  ;;  %v12619_v19 = vld [vmem:[%s23777_s11 + $0x50] sm:$0xff] }
 0x9d7   : > { %v17545_v27 = vpop.f32.mrf.mxu1  ;;  %v17621_v8 = vpop.f32.mrf.mxu0  ;;  %12644 = vmatpush1.msra.mxu0 %v12619_v19 }
 0x9d8   : > { %v12407_v0 = vmax.f32 %v12384_v42, 0.0  ;;  %v12355_v30 = vadd.f32 %v12305_v29, %v12054_v43  ;;  %12645 = vmatprep.subr.mxu0 %v23917_v31  ;;  %v12618_v42 = vld [vmem:[%s23777_s11 + $0x48] sm:$0xff]  ;;  %v12617_v43 = vld [vmem:[%s23777_s11 + $0x40] sm:$0xff]  ;;  %v12616_v27 = vld [vmem:[%s23777_s11 + $0x38] sm:$0xff] }
 0x9d9   : > { %v12009_v9 = vpop.f32.mrf.mxu1  ;;  %v12315_v15 = vpop.f32.mrf.mxu0  ;;  %v12460_v25 = vld [vmem:[#allocation6 + $0x60] ss:$4 sm:$0xf]  ;;  %v12462_v29 = vld [vmem:[#allocation6 + $0x62] ss:$4 sm:$0xf]  ;;  %12646 = vmatpush1.msra.mxu0 %v12618_v42 }
 0x9da   : > { %12430 = vst.msk [vmem:[#allocation6 + $0x78] sm:$0xff] %vm9501_vm6, %v12407_v0  ;;  %v12385_v3 = vadd.f32 %v23598_v60, %v12355_v30  ;;  %v12467_v23 = vmax.f32 %v12460_v25, %v12462_v29  ;;  %12647 = vmatprep.subr.mxu0 %v23917_v31  ;;  %v12615_v8 = vld [vmem:[%s23777_s11 + $0x30] sm:$0xff]  ;;  %v12614_v0 = vld [vmem:[%s23777_s11 + $0x28] sm:$0xff]  ;;  %v12613_v30 = vld [vmem:[%s23777_s11 + $0x20] sm:$0xff] }
 0x9db   : > { %v17548_v55 = vpop.f32.mrf.mxu1  ;;  %v17624_v35 = vpop.f32.mrf.mxu0  ;;  %12648 = vmatpush1.msra.mxu0 %v12617_v43  ;;  %v12612_v9 = vld [vmem:[%s23777_s11 + $0x18] sm:$0xff] }
 0x9dc   : > { %v12408_v37 = vmax.f32 %v12385_v3, 0.0  ;;  %12649 = vmatprep.subr.mxu0 %v23917_v31  ;;  %v12610_v3 = vld [vmem:[%s23777_s11 + $0x8] sm:$0xff]  ;;  %v12609_v55 = vld [vmem:[%s23777_s11] sm:$0xff]  ;;  %v12628_v35 = vld [vmem:[%s23777_s11 + $0x98] sm:$0xff] }
 0x9dd   : > { %v12014_v11 = vpop.f32.mrf.mxu1  ;;  %v12320_v46 = vpop.f32.mrf.mxu0  ;;  %12650 = vmatpush1.msra.mxu0 %v12616_v27 }
 0x9de   : > { %12431 = vst.msk [vmem:[#allocation6 + $0x80] sm:$0xff] %vm9501_vm6, %v12408_v37  ;;  %v12056_v6 = vadd.f32 %v12014_v11, %v23566_v7  ;;  %12651 = vmatprep.subr.mxu0 %v23917_v31  ;;  %v12627_v37 = vld [vmem:[%s23777_s11 + $0x90] sm:$0xff]  ;;  %v12626_v11 = vld [vmem:[%s23777_s11 + $0x88] sm:$0xff] }
 0x9df   : > { %v17551_v26 = vpop.f32.mrf.mxu1  ;;  %v17627_v44 = vpop.f32.mrf.mxu0  ;;  %12652 = vmatpush1.msra.mxu0 %v12615_v8 }
 0x9e0   : > { %v12357_v57 = vadd.f32 %v12315_v15, %v12056_v6  ;;  %12653 = vmatprep.subr.mxu0 %v23917_v31  ;;  %v12611_v15 = vld [vmem:[%s23777_s11 + $0x10] sm:$0xff]  ;;  %v12584_v26 = vld [vmem:[%s23776_s10] sm:$0xff] }
 0x9e1   : > { %v12019_v40 = vpop.f32.mrf.mxu1  ;;  %v12325_v14 = vpop.f32.mrf.mxu0  ;;  %12654 = vmatpush1.msra.mxu0 %v12614_v0 }
 0x9e2   : > { %v12387_v10 = vadd.f32 %v23598_v60, %v12357_v57  ;;  %v12057_v5 = vadd.f32 %v12019_v40, %v23574_v18  ;;  %12655 = vmatprep.subr.mxu0 %v23917_v31  ;;  %v12585_v57 = vld [vmem:[%s23776_s10 + $0x8] sm:$0xff]  ;;  %v12586_v40 = vld [vmem:[%s23776_s10 + $0x10] sm:$0xff] }
 0x9e3   : > { %v17554_v58 = vpop.f32.mrf.mxu1  ;;  %v17630_v52 = vpop.f32.mrf.mxu0  ;;  %12656 = vmatpush1.msra.mxu0 %v12613_v30 }
 0x9e4   : > { %v12410_v24 = vmax.f32 %v12387_v10, 0.0  ;;  %v12358_v38 = vadd.f32 %v12320_v46, %v12057_v5  ;;  %12657 = vmatprep.subr.mxu0 %v23917_v31  ;;  %v12625_v46 = vld [vmem:[%s23777_s11 + $0x80] sm:$0xff] }
 0x9e5   : > { %v12024_v61 = vpop.f32.mrf.mxu1  ;;  %v12330_v32 = vpop.f32.mrf.mxu0  ;;  %v12464_v51 = vld [vmem:[#allocation6 + $0x78] ss:$4 sm:$0xf]  ;;  %12658 = vmatpush1.msra.mxu0 %v12612_v9 }
 0x9e6   : > { %12433 = vst.msk [vmem:[#allocation6 + $0x90] sm:$0xff] %vm9501_vm6, %v12410_v24  ;;  %v12388_v36 = vadd.f32 %v23598_v60, %v12358_v38  ;;  %12659 = vmatprep.subr.mxu0 %v23917_v31 }
 0x9e7   : > { %v17557_v7 = vpop.f32.mrf.mxu1  ;;  %v17633_v13 = vpop.f32.mrf.mxu0  ;;  %12660 = vmatpush1.msra.mxu0 %v12611_v15 }
 0x9e8   : > { %v12411_v62 = vmax.f32 %v12388_v36, 0.0  ;;  %12661 = vmatprep.subr.mxu0 %v23917_v31 }
 0x9e9   : > { %v12029_v48 = vpop.f32.mrf.mxu1  ;;  %v12335_v21 = vpop.f32.mrf.mxu0  ;;  %12662 = vmatpush1.msra.mxu0 %v12610_v3 }
 0x9ea   : > { %12434 = vst.msk [vmem:[#allocation6 + $0x98] sm:$0xff] %vm9501_vm6, %v12411_v62  ;;  %v12059_v50 = vadd.f32 %v12029_v48, %v23589_v33  ;;  %v12466_v33 = vld [vmem:[#allocation6 + $0x7a] ss:$4 sm:$0xf]  ;;  %12663 = vmatprep.subr.mxu0 %v23917_v31 }
 0x9eb   : > { %v17560_v18 = vpop.f32.mrf.mxu1  ;;  %v17636_v2 = vpop.f32.mrf.mxu0  ;;  %v12468_v16 = vmax.f32 %v12464_v51, %v12466_v33  ;;  %12664 = vmatpush1.msra.mxu0 %v12609_v55 }
 0x9ec   : > { %v12360_v22 = vadd.f32 %v12330_v32, %v12059_v50  ;;  %12689 = vmatprep.subr.mxu0 %v23917_v31 }
 0x9ed   : > { %v12034_v20 = vpop.f32.mrf.mxu1  ;;  %v12469_v39 = vmax.f32 %v12467_v23, %v12468_v16  ;;  %12690 = vmatpush2.msra.mxu0 %v12628_v35 }
 0x9ee   : > { %v12390_v12 = vadd.f32 %v23598_v60, %v12360_v22  ;;  %v12060_v28 = vadd.f32 %v12034_v20, %v23592_v34  ;;  %12691 = vmatprep.subr.mxu0 %v23917_v31 }
 0x9ef   : > { %v17563_v63 = vpop.f32.mrf.mxu1  ;;  %12692 = vmatpush2.msra.mxu0 %v12627_v37 }
 0x9f0   : > { %v12413_v47 = vmax.f32 %v12390_v12, 0.0  ;;  %v12361_v53 = vadd.f32 %v12335_v21, %v12060_v28  ;;  %12693 = vmatprep.subr.mxu0 %v23917_v31  ;;  %v12629_v63 = vld [vmem:[%s23778_s12] sm:$0x1] }
 0x9f1   : > { %v12471_v59 = vld [vmem:[#allocation6 + $0x90] ss:$4 sm:$0xf]  ;;  %v12473_v54 = vld [vmem:[#allocation6 + $0x92] ss:$4 sm:$0xf]  ;;  %12694 = vmatpush2.msra.mxu0 %v12626_v11 }
 0x9f2   : > { %12436 = vst.msk [vmem:[#allocation6 + $0xa8] sm:$0xff] %vm9501_vm6, %v12413_v47  ;;  %v12391_v56 = vadd.f32 %v23598_v60, %v12361_v53  ;;  %v12478_v34 = vmax.f32 %v12471_v59, %v12473_v54  ;;  %12695 = vmatprep.subr.mxu0 %v23917_v31  ;;  %v12587_v31 = vld [vmem:[%s23776_s10 + $0x18] sm:$0xff] }
 0x9f3   : > { %12696 = vmatpush2.msra.mxu0 %v12625_v46 }
 0x9f4   : > { %v12414_v1 = vmax.f32 %v12391_v56, 0.0 }
 0x9f6   : > { %12437 = vst.msk [vmem:[#allocation6 + $0xb0] sm:$0xff] %vm9501_vm6, %v12414_v1 }
 0x9fd   : > { %v12475_v45 = vld [vmem:[#allocation6 + $0xa8] ss:$4 sm:$0xf]  ;;  %v12477_v41 = vld [vmem:[#allocation6 + $0xaa] ss:$4 sm:$0xf] }
 0x9fe   : > { %v12479_v4 = vmax.f32 %v12475_v45, %v12477_v41 }
 0xa00   : > { %v12480_v49 = vmax.f32 %v12478_v34, %v12479_v4 }
 0xa02   : > { %v12485_v17 = vrot.slane %v12480_v49, 4 }
 0xa04   : > { %v12488_v60 = vsel %vm9945_vm5, %v12469_v39, %v12485_v17 }
 0xa05   : > { %13853 = vmatmul.mubr.msk.f32.gmra.mxu1 %vm9501_vm6, %v12488_v60 }
 0xa95   : > { %v12573_v6 = vpop.f32.mrf.mxu1 }
 0xa96   : > { %v12588_v10 = vmul.f32 %v12584_v26, %v12573_v6 }
 0xa97   : > { %v12575_v44 = vpop.f32.mrf.mxu1 }
 0xa98   : > { %v12589_v5 = vmul.f32 %v12585_v57, %v12575_v44 }
 0xa9a   : > { %v12600_v61 = vsel %vm12599_vm8, %v12589_v5, 0.0 }
 0xac5   : > { %v12579_v14 = vpop.f32.mrf.mxu1 }
 0xac6   : > { %v12590_v58 = vmul.f32 %v12586_v40, %v12579_v14 }
 0xac7   : > { %v12581_v52 = vpop.f32.mrf.mxu1 }
 0xac8   : > { %v12592_v24 = vadd.f32 %v12590_v58, %v12588_v10  ;;  %v12591_v38 = vmul.f32 %v12587_v31, %v12581_v52 }
 0xaca   : > { %v12593_v32 = vrot.slane %v12592_v24, 4  ;;  %v12601_v36 = vsel %vm12599_vm8, %v12591_v38, 0.0 }
 0xacb   : > { %v12602_v7 = vadd.f32 %v12601_v36, %v12600_v61 }
 0xacc   : > { %v12594_v13 = vadd.f32 %v12593_v32, %v12592_v24 }
 0xacd   : > { %v12603_v62 = vrot.slane %v12602_v7, 4 }
 0xace   : > { %v12595_v48 = vrot.slane %v12594_v13, 2 }
 0xacf   : > { %v12604_v21 = vadd.f32 %v12603_v62, %v12602_v7 }
 0xad0   : > { %v12596_v50 = vadd.f32 %v12595_v48, %v12594_v13 }
 0xad1   : > { %v12605_v18 = vrot.slane %v12604_v21, 2 }
 0xad2   : > { %v12597_v22 = vrot.slane %v12596_v50, 1 }
 0xad3   : > { %v12606_v2 = vadd.f32 %v12605_v18, %v12604_v21 }
 0xad4   : > { %v12598_v28 = vadd.f32 %v12597_v22, %v12596_v50 }
 0xad5   : > { %v12607_v20 = vrot.slane %v12606_v2, 1 }
 0xad7   : > { %v12608_v12 = vadd.f32 %v12607_v20, %v12606_v2 }
 0xad9   : > { %13854 = vmatprep.mubr.msk.f32.mxu0 %vm12599_vm8, %v12608_v12 }
 0xada   : > { %12698 = vmatmul.mubr.f32.vlgmr.msra.gmra.mxu0 %v12598_v28 }
 0xb9a   : > { %v12699_v47 = vpop.f32.mrf.mxu0 }
 0xb9b   : > { %v12700_v53 = vadd.f32 %v12699_v47, %v12629_v63 }
 0xb9c   : > { %v12701_v56 = vpop.f32.mrf.mxu0 }
 0xb9d   : > { %v12704_v1 = vsel %vm12703_vm9, %v12700_v53, -inf }
 0xb9e   : > { %12705 = vmax.xlane.f32.xlu0 %v12704_v1 }
 0xc27   : > { %v12706_v51 = vpop.xlane.xlu0 %12705 }
 0xc28   : > { %v12707_v33 = vsub.f32 %v12700_v53, %v12706_v51 }
 0xc2a   : > { %v12708_v59 = vmul.f32 1.442695, %v12707_v33 }
 0xc2c   : > { %17681 = vpow2.f32 %v12708_v59 }
 0xc39   : > { %v17682_v54 = vpop.eup %17681 }
 0xc3a   : > { %v12710_v25 = vsel %vm12703_vm9, %v17682_v54, 0.0 }
 0xc3b   : > { %12711 = vadd.xlane.f32.xlu0 %v12710_v25 }
 0xcc4   : > { %v12712_v29 = vpop.xlane.xlu0 %12711 }
 0xcc5   : > { %17683 = vrcp.f32 %v12712_v29 }
 0xcd2   : > { %v17684_v45 = vpop.eup %17683 }
 0xcd3   : > { %v12714_v41 = vmul.f32 %v17684_v45, %v17682_v54 }
 0xcd5   : > { %12715 = vst.msk [vmem:[%s432_s15] sm:$0x1] %vm12703_vm9, %v12714_v41 }
 0xcd6   : > { %17706 = shalt.err (!%p17703_p3)
}
 0xcd7   : > { %s17707_s20 = scalar_lea.hbm %s12727_s22, 16  ;;  %s17711_s15 = scalar_lea.hbm %s23779_s13, 32 }
 0xcd8   : > { %p17708_p4 = scmp.ne.s32.totalorder %s12727_s22, %s17707_s20  ;;  %p17712_p9 = scmp.lt.s32.totalorder %s12727_s22, %s23779_s13 }
 0xcd9   : > { %p17713_p10 = scmp.lt.s32.totalorder %s17711_s15, %s17707_s20 }
 0xcda   : > { %p17709_p7 = pnand %p17708_p4, %p17866_p5 }
 0xcdb   : > { %p17714_p11 = por %p17713_p10, %p17712_p9 }
 0xcdc   : > { %p17710_p8 = pneg %p17709_p7 }
 0xcde   : > { %p17715_p12 = pnand %p17714_p11, %p17710_p8 }
 0xce0   : > { %17718 = shalt.err (!%p17715_p12)
}
 0xce1   : > { %17640 = dma.vmem_to_hbm [thread:$0]  (%p17866_p5), %s12730_s16, 16, %s12727_s22, %s12717_s23  }
 0xce2 PF: > { %p17646_p13 = scmp.ge.s32.totalorder %s17753_s28, 2  ;;  %s12741_s0 = sand.u32 1, %s17741_s25  }
 0xce3   : > { %s12742_s1 = scalar_lea.sflag [#allocation8], %s12741_s0 }
 0xce4   : > { %p17643_p0 = pnand %p17646_p13, %p17870_p6 }
 0xce6   : > { %p17644_p1 = pneg %p17643_p0 }
 0xce8   : > { %17736 = dma.done.wait (%p17644_p1), %s12742_s1, 16  }
 0xce9   : > { %17738 = vsyncadd (%p17644_p1), %s12742_s1, 4294967280  ;;  %p23_p2 = scmp.ge.s32.totalorder %s17853_s14, 4   ;;  %s24071_s25 = smov %s17745_s26 }
 0xcea   : > { %s24072_s26 = smov %s17749_s27  ;;  %s24073_s27 = smov %s17864_s17 }
 0xceb   : > { %s24074_s28 = smov %s17853_s14  ;;  %25 = sbr.rel (!%p23_p2) target bundleno = 8 (0x8), region = 139 }
 0xcf0   :  { %12746 = vsyncpa [#allocation8], 1 }
 0xcf1   :  { %12748 = vsyncpa [#allocation8 + $0x1], 1 }

</bundles_post_ra>
